<compile_context>
chip_gen: v7x
topology: tpu7x:2x2x1
jax: 0.10.0
libtpu: 0.0.40
codegen_flags: <defaults>
</compile_context>

<pallas_src>
import functools

import jax
import jax.numpy as jnp
from jax.experimental import pallas as pl
from jax.experimental.pallas import tpu as pltpu


# ----------------------------------------------------------------------------
# Single fused Pallas kernel: the whole Encoder forward.
# ----------------------------------------------------------------------------
def _encoder_kernel(dims,
                    cols1_ref, w1_ref, b1_ref, w2_ref, b2_ref, w3_ref, b3_ref,
                    l1w_ref, l1b_ref, l2w_ref, l2b_ref, o_ref):
    (ho1, wo1), (ho2, wo2), (ho3, wo3) = dims
    K = 4  # conv kernel size (stride is 2; the parity tricks below assume it)

    def conv_block(cols, w_ref, b_ref):
        # cols: (M, B, Kd) bf16 ; w: (Kd, Cout) bf16 ; b: (1, 1, Cout) f32
        m = cols.shape[0]
        w = w_ref[...]
        w_b = jnp.broadcast_to(w[None], (m,) + w.shape)        # (M, Kd, Cout)
        acc = jax.lax.dot_general(                              # batched MXU matmul
            cols, w_b,
            dimension_numbers=(((2,), (1,)), ((0,), (0,))),
            preferred_element_type=jnp.float32)                 # (M, B, Cout) f32
        return jnp.tanh(acc + b_ref[...])                       # f32 epilogue (v5e-safe)

    def extract_patches(act, ho, wo):
        # act: (H, W, B, C) bf16  ->  (ho*wo, B, 16*C) patch rows, feature order
        # (kh, kw, c).  Stride-2 access is expressed with leading-dim parity
        # reshapes and static slices only.
        h, w, bsz, c = act.shape
        if h % 2:
            act = jnp.concatenate(
                [act, jnp.zeros((1, w, bsz, c), act.dtype)], axis=0)
            h += 1
        if w % 2:
            act = jnp.concatenate(
                [act, jnp.zeros((h, 1, bsz, c), act.dtype)], axis=1)
            w += 1
        xr = act.reshape(h // 2, 2, w // 2, 2, bsz, c)
        pieces = []
        for i in range(K):
            for j in range(K):
                sub = xr[:, i % 2, :, j % 2]                    # (h//2, w//2, B, C)
                sub = sub[i // 2:i // 2 + ho, j // 2:j // 2 + wo]
                pieces.append(sub)
        cols = jnp.concatenate(pieces, axis=-1)                 # (ho, wo, B, 16C)
        return cols.reshape(ho * wo, bsz, K * K * c)

    bsz = cols1_ref.shape[1]

    # enc1 + tanh (patch rows for the raw input were built in the wrapper)
    a1 = conv_block(cols1_ref[...], w1_ref, b1_ref)             # (ho1*wo1, B, 16)
    a1 = a1.astype(jnp.bfloat16).reshape(ho1, wo1, bsz, -1)

    # enc2 (+ folded eval-mode BatchNorm) + tanh
    a2 = conv_block(extract_patches(a1, ho2, wo2), w2_ref, b2_ref)
    a2 = a2.astype(jnp.bfloat16).reshape(ho2, wo2, bsz, -1)

    # enc3 + tanh
    a3 = conv_block(extract_patches(a2, ho3, wo3), w3_ref, b3_ref)
    a3 = a3.astype(jnp.bfloat16).reshape(ho3, wo3, bsz, -1)

    # flatten in (h, w, c) order; lin1 weight rows were pre-permuted to match
    feat = jnp.concatenate(
        [a3[h, w] for h in range(ho3) for w in range(wo3)], axis=-1)  # (B, C3*jj*kk)

    # encoder_lin: Linear -> Linear (no activations), bf16 MXU / f32 accumulate
    z = jnp.dot(feat, l1w_ref[...], preferred_element_type=jnp.float32)
    z = (z + l1b_ref[...]).astype(jnp.bfloat16)
    out = jnp.dot(z, l2w_ref[...], preferred_element_type=jnp.float32)
    o_ref[...] = (out + l2b_ref[...]).astype(o_ref.dtype)


# ----------------------------------------------------------------------------
# Wrapper-side layout plumbing (tiny raw input only) + weight preparation.
# ----------------------------------------------------------------------------
def _im2col_nchw(x, k, s):
    """x: (B, C, H, W) -> patch rows (Ho*Wo, B, k*k*C); feature order (kh, kw, c)."""
    b, c, h, w = x.shape
    ho = (h - k) // s + 1
    wo = (w - k) // s + 1
    patches = []
    for i in range(k):
        for j in range(k):
            patches.append(x[:, :, i:i + s * ho:s, j:j + s * wo:s])  # (B,C,Ho,Wo)
    p = jnp.stack(patches, axis=2)                 # (B, C, k*k, Ho, Wo)
    p = p.transpose(3, 4, 0, 2, 1)                 # (Ho, Wo, B, k*k, C)
    return p.reshape(ho * wo, b, k * k * c), ho, wo


def _conv_weight_matrix(w_oihw):
    """PyTorch OIHW conv weight -> (kh*kw*Cin, Cout) matching (kh, kw, c) order."""
    cout = w_oihw.shape[0]
    return jnp.transpose(w_oihw, (2, 3, 1, 0)).reshape(-1, cout)


def encoder_forward(x, params):
    """x: [N, 3, H, W] float32 (NCHW) -> [N, encoded_space_dim] float32."""
    p = params
    k, s, eps = 4, 2, 1e-5
    bsz = x.shape[0]

    # Fold eval-mode BatchNorm into conv2's weight / bias.
    # TODO(synk): PyTorch's default training-mode BatchNorm2d uses batch
    # statistics; here eval-mode running stats are folded in.
    bn_scale = p["bn_gamma"] / jnp.sqrt(p["bn_var"] + eps)
    w2_folded = p["w2"] * bn_scale[:, None, None, None]
    b2_folded = p["b2"] * bn_scale + (p["bn_beta"] - p["bn_mean"] * bn_scale)

    w1m = _conv_weight_matrix(p["w1"]).astype(jnp.bfloat16)
    w2m = _conv_weight_matrix(w2_folded).astype(jnp.bfloat16)
    w3m = _conv_weight_matrix(p["w3"]).astype(jnp.bfloat16)

    # conv1 patch rows on the raw (tiny) input; everything else is in-kernel.
    cols1, ho1, wo1 = _im2col_nchw(x, k, s)
    cols1 = cols1.astype(jnp.bfloat16)
    ho2, wo2 = (ho1 - k) // s + 1, (wo1 - k) // s + 1
    ho3, wo3 = (ho2 - k) // s + 1, (wo2 - k) // s + 1

    ch3 = p["w3"].shape[0]
    d_hidden = p["lin1_w"].shape[1]
    esd = p["lin2_w"].shape[1]
    assert p["lin1_w"].shape[0] == ch3 * ho3 * wo3, "lin1 size mismatch"

    # Permute lin1 rows from PyTorch (c, h, w) flatten order to the kernel's
    # (h, w, c) order, so no in-kernel relayout is needed.
    # (Linear weights here are stored [in, out]; transpose a real PyTorch
    # state_dict's [out, in] weights before using them.)
    l1w = p["lin1_w"].reshape(ch3, ho3, wo3, d_hidden).transpose(1, 2, 0, 3)
    l1w = l1w.reshape(ho3 * wo3 * ch3, d_hidden).astype(jnp.bfloat16)
    l2w = p["lin2_w"].astype(jnp.bfloat16)

    b1 = p["b1"].reshape(1, 1, -1).astype(jnp.float32)
    b2 = b2_folded.reshape(1, 1, -1).astype(jnp.float32)
    b3 = p["b3"].reshape(1, 1, -1).astype(jnp.float32)
    l1b = p["lin1_b"].reshape(1, -1).astype(jnp.float32)
    l2b = p["lin2_b"].reshape(1, -1).astype(jnp.float32)

    kern = functools.partial(
        _encoder_kernel, ((ho1, wo1), (ho2, wo2), (ho3, wo3)))
    return pl.pallas_call(
        kern,
        out_shape=jax.ShapeDtypeStruct((bsz, esd), jnp.float32),
        in_specs=[pl.BlockSpec(memory_space=pltpu.MemorySpace.VMEM)] * 11,
        out_specs=pl.BlockSpec(memory_space=pltpu.MemorySpace.VMEM),
    )(cols1, w1m, b1, w2m, b2, w3m, b3, l1w, l1b, l2w, l2b)


# ----------------------------------------------------------------------------
# Parameter init (same conventions as before: conv weights OIHW, linear [in, out]).
# ----------------------------------------------------------------------------
def init_params(key, encoded_space_dim, jj, kk):
    ks = jax.random.split(key, 12)
    ch1, ch2, ch3, k = 16, 32, 64, 4

    def u(key, shape, scale=0.05):
        return jax.random.uniform(key, shape, jnp.float32, -scale, scale)

    return {
        "w1": u(ks[0], (ch1, 3, k, k)),
        "b1": u(ks[1], (ch1,)),
        "w2": u(ks[2], (ch2, ch1, k, k)),
        "b2": u(ks[3], (ch2,)),
        "bn_gamma": 1.0 + u(ks[4], (ch2,)),
        "bn_beta": u(ks[5], (ch2,)),
        "bn_mean": u(ks[6], (ch2,)),
        "bn_var": 1.0 + jnp.abs(u(ks[7], (ch2,))),
        "w3": u(ks[8], (ch3, ch2, k, k)),
        "b3": u(ks[9], (ch3,)),
        "lin1_w": u(ks[10], (ch3 * jj * kk, 128)),
        "lin1_b": jnp.zeros((128,), jnp.float32),
        "lin2_w": u(ks[11], (128, encoded_space_dim)),
        "lin2_b": jnp.zeros((encoded_space_dim,), jnp.float32),
    }


if __name__ == "__main__":
    # Input 32x32 -> conv chain (k=4, s=2, p=0): 32 -> 15 -> 6 -> 2  => jj=kk=2
    encoded_space_dim, jj, kk = 8, 2, 2
    batch = 2

    key = jax.random.PRNGKey(0)
    k_x, k_p = jax.random.split(key)
    x = jax.random.normal(k_x, (batch, 3, 32, 32), jnp.float32)  # NCHW
    params = init_params(k_p, encoded_space_dim, jj, kk)

    out = encoder_forward(x, params)
    out = jax.block_until_ready(out)
    assert out.shape == (batch, encoded_space_dim), out.shape
    print("KERNEL_OK")
</pallas_src>

<mosaic_0001>
module attributes {stable_mosaic.version = 11 : i64} {
  func.func @_encoder_kernel(%arg0: memref<225x2x48xbf16, #tpu.memory_space<vmem>>, %arg1: memref<48x16xbf16, #tpu.memory_space<vmem>>, %arg2: memref<1x1x16xf32, #tpu.memory_space<vmem>>, %arg3: memref<256x32xbf16, #tpu.memory_space<vmem>>, %arg4: memref<1x1x32xf32, #tpu.memory_space<vmem>>, %arg5: memref<512x64xbf16, #tpu.memory_space<vmem>>, %arg6: memref<1x1x64xf32, #tpu.memory_space<vmem>>, %arg7: memref<256x128xbf16, #tpu.memory_space<vmem>>, %arg8: memref<1x128xf32, #tpu.memory_space<vmem>>, %arg9: memref<128x8xbf16, #tpu.memory_space<vmem>>, %arg10: memref<1x8xf32, #tpu.memory_space<vmem>>, %arg11: memref<2x8xf32, #tpu.memory_space<vmem>>) attributes {dimension_semantics = [], scalar_prefetch = 0 : i64, scratch_operands = 0 : i64, tpu.core_type = #tpu.core_type<tc>} {
    %c0 = arith.constant 0 : index
    %c0_0 = arith.constant 0 : index
    %c0_1 = arith.constant 0 : index
    %0 = vector.load %arg0[%c0, %c0_0, %c0_1] : memref<225x2x48xbf16, #tpu.memory_space<vmem>>, vector<225x2x48xbf16>
    %c0_2 = arith.constant 0 : index
    %c0_3 = arith.constant 0 : index
    %1 = vector.load %arg1[%c0_2, %c0_3] : memref<48x16xbf16, #tpu.memory_space<vmem>>, vector<48x16xbf16>
    %2 = vector.shape_cast %1 : vector<48x16xbf16> to vector<1x48x16xbf16>
    %3 = vector.shape_cast %2 : vector<1x48x16xbf16> to vector<1x48x16xbf16>
    %4 = vector.broadcast %3 : vector<1x48x16xbf16> to vector<225x48x16xbf16>
    %cst = arith.constant dense<0.000000e+00> : vector<225x2x16xf32>
    %5 = tpu.matmul %0, %4, %cst {dimension_numbers = #tpu.dot_dimension_numbers<[2], [1], [1], [2], [0, 0, 0, 1, 1, 2], [0], [0]>} : vector<225x2x48xbf16>, vector<225x48x16xbf16>, vector<225x2x16xf32> -> vector<225x2x16xf32>
    %c0_4 = arith.constant 0 : index
    %c0_5 = arith.constant 0 : index
    %c0_6 = arith.constant 0 : index
    %6 = vector.load %arg2[%c0_4, %c0_5, %c0_6] : memref<1x1x16xf32, #tpu.memory_space<vmem>>, vector<1x1x16xf32>
    %7 = vector.broadcast %6 : vector<1x1x16xf32> to vector<225x2x16xf32>
    %8 = arith.addf %5, %7 : vector<225x2x16xf32>
    %9 = math.tanh %8 : vector<225x2x16xf32>
    %10 = arith.truncf %9 : vector<225x2x16xf32> to vector<225x2x16xbf16>
    %11 = vector.shape_cast %10 : vector<225x2x16xbf16> to vector<15x15x2x16xbf16>
    %cst_7 = arith.constant 0.000000e+00 : bf16
    %12 = vector.broadcast %cst_7 : bf16 to vector<1x15x2x16xbf16>
    %13 = tpu.concatenate %11, %12 in 0 : vector<15x15x2x16xbf16>, vector<1x15x2x16xbf16> -> vector<16x15x2x16xbf16>
    %cst_8 = arith.constant 0.000000e+00 : bf16
    %14 = vector.broadcast %cst_8 : bf16 to vector<16x1x2x16xbf16>
    %15 = tpu.concatenate %13, %14 in 1 : vector<16x15x2x16xbf16>, vector<16x1x2x16xbf16> -> vector<16x16x2x16xbf16>
    %16 = vector.shape_cast %15 : vector<16x16x2x16xbf16> to vector<8x2x8x2x2x16xbf16>
    %17 = vector.extract_strided_slice %16 {offsets = [0, 0, 0, 0, 0, 0], sizes = [8, 1, 8, 1, 2, 16], strides = [1, 1, 1, 1, 1, 1]} : vector<8x2x8x2x2x16xbf16> to vector<8x1x8x1x2x16xbf16>
    %18 = vector.shape_cast %17 : vector<8x1x8x1x2x16xbf16> to vector<8x8x2x16xbf16>
    %19 = vector.extract_strided_slice %18 {offsets = [0, 0, 0, 0], sizes = [6, 6, 2, 16], strides = [1, 1, 1, 1]} : vector<8x8x2x16xbf16> to vector<6x6x2x16xbf16>
    %20 = vector.extract_strided_slice %16 {offsets = [0, 0, 0, 1, 0, 0], sizes = [8, 1, 8, 1, 2, 16], strides = [1, 1, 1, 1, 1, 1]} : vector<8x2x8x2x2x16xbf16> to vector<8x1x8x1x2x16xbf16>
    %21 = vector.shape_cast %20 : vector<8x1x8x1x2x16xbf16> to vector<8x8x2x16xbf16>
    %22 = vector.extract_strided_slice %21 {offsets = [0, 0, 0, 0], sizes = [6, 6, 2, 16], strides = [1, 1, 1, 1]} : vector<8x8x2x16xbf16> to vector<6x6x2x16xbf16>
    %23 = vector.extract_strided_slice %16 {offsets = [0, 0, 0, 0, 0, 0], sizes = [8, 1, 8, 1, 2, 16], strides = [1, 1, 1, 1, 1, 1]} : vector<8x2x8x2x2x16xbf16> to vector<8x1x8x1x2x16xbf16>
    %24 = vector.shape_cast %23 : vector<8x1x8x1x2x16xbf16> to vector<8x8x2x16xbf16>
    %25 = vector.extract_strided_slice %24 {offsets = [0, 1, 0, 0], sizes = [6, 6, 2, 16], strides = [1, 1, 1, 1]} : vector<8x8x2x16xbf16> to vector<6x6x2x16xbf16>
    %26 = vector.extract_strided_slice %16 {offsets = [0, 0, 0, 1, 0, 0], sizes = [8, 1, 8, 1, 2, 16], strides = [1, 1, 1, 1, 1, 1]} : vector<8x2x8x2x2x16xbf16> to vector<8x1x8x1x2x16xbf16>
    %27 = vector.shape_cast %26 : vector<8x1x8x1x2x16xbf16> to vector<8x8x2x16xbf16>
    %28 = vector.extract_strided_slice %27 {offsets = [0, 1, 0, 0], sizes = [6, 6, 2, 16], strides = [1, 1, 1, 1]} : vector<8x8x2x16xbf16> to vector<6x6x2x16xbf16>
    %29 = vector.extract_strided_slice %16 {offsets = [0, 1, 0, 0, 0, 0], sizes = [8, 1, 8, 1, 2, 16], strides = [1, 1, 1, 1, 1, 1]} : vector<8x2x8x2x2x16xbf16> to vector<8x1x8x1x2x16xbf16>
    %30 = vector.shape_cast %29 : vector<8x1x8x1x2x16xbf16> to vector<8x8x2x16xbf16>
    %31 = vector.extract_strided_slice %30 {offsets = [0, 0, 0, 0], sizes = [6, 6, 2, 16], strides = [1, 1, 1, 1]} : vector<8x8x2x16xbf16> to vector<6x6x2x16xbf16>
    %32 = vector.extract_strided_slice %16 {offsets = [0, 1, 0, 1, 0, 0], sizes = [8, 1, 8, 1, 2, 16], strides = [1, 1, 1, 1, 1, 1]} : vector<8x2x8x2x2x16xbf16> to vector<8x1x8x1x2x16xbf16>
    %33 = vector.shape_cast %32 : vector<8x1x8x1x2x16xbf16> to vector<8x8x2x16xbf16>
    %34 = vector.extract_strided_slice %33 {offsets = [0, 0, 0, 0], sizes = [6, 6, 2, 16], strides = [1, 1, 1, 1]} : vector<8x8x2x16xbf16> to vector<6x6x2x16xbf16>
    %35 = vector.extract_strided_slice %16 {offsets = [0, 1, 0, 0, 0, 0], sizes = [8, 1, 8, 1, 2, 16], strides = [1, 1, 1, 1, 1, 1]} : vector<8x2x8x2x2x16xbf16> to vector<8x1x8x1x2x16xbf16>
    %36 = vector.shape_cast %35 : vector<8x1x8x1x2x16xbf16> to vector<8x8x2x16xbf16>
    %37 = vector.extract_strided_slice %36 {offsets = [0, 1, 0, 0], sizes = [6, 6, 2, 16], strides = [1, 1, 1, 1]} : vector<8x8x2x16xbf16> to vector<6x6x2x16xbf16>
    %38 = vector.extract_strided_slice %16 {offsets = [0, 1, 0, 1, 0, 0], sizes = [8, 1, 8, 1, 2, 16], strides = [1, 1, 1, 1, 1, 1]} : vector<8x2x8x2x2x16xbf16> to vector<8x1x8x1x2x16xbf16>
    %39 = vector.shape_cast %38 : vector<8x1x8x1x2x16xbf16> to vector<8x8x2x16xbf16>
    %40 = vector.extract_strided_slice %39 {offsets = [0, 1, 0, 0], sizes = [6, 6, 2, 16], strides = [1, 1, 1, 1]} : vector<8x8x2x16xbf16> to vector<6x6x2x16xbf16>
    %41 = vector.extract_strided_slice %16 {offsets = [0, 0, 0, 0, 0, 0], sizes = [8, 1, 8, 1, 2, 16], strides = [1, 1, 1, 1, 1, 1]} : vector<8x2x8x2x2x16xbf16> to vector<8x1x8x1x2x16xbf16>
    %42 = vector.shape_cast %41 : vector<8x1x8x1x2x16xbf16> to vector<8x8x2x16xbf16>
    %43 = vector.extract_strided_slice %42 {offsets = [1, 0, 0, 0], sizes = [6, 6, 2, 16], strides = [1, 1, 1, 1]} : vector<8x8x2x16xbf16> to vector<6x6x2x16xbf16>
    %44 = vector.extract_strided_slice %16 {offsets = [0, 0, 0, 1, 0, 0], sizes = [8, 1, 8, 1, 2, 16], strides = [1, 1, 1, 1, 1, 1]} : vector<8x2x8x2x2x16xbf16> to vector<8x1x8x1x2x16xbf16>
    %45 = vector.shape_cast %44 : vector<8x1x8x1x2x16xbf16> to vector<8x8x2x16xbf16>
    %46 = vector.extract_strided_slice %45 {offsets = [1, 0, 0, 0], sizes = [6, 6, 2, 16], strides = [1, 1, 1, 1]} : vector<8x8x2x16xbf16> to vector<6x6x2x16xbf16>
    %47 = vector.extract_strided_slice %16 {offsets = [0, 0, 0, 0, 0, 0], sizes = [8, 1, 8, 1, 2, 16], strides = [1, 1, 1, 1, 1, 1]} : vector<8x2x8x2x2x16xbf16> to vector<8x1x8x1x2x16xbf16>
    %48 = vector.shape_cast %47 : vector<8x1x8x1x2x16xbf16> to vector<8x8x2x16xbf16>
    %49 = vector.extract_strided_slice %48 {offsets = [1, 1, 0, 0], sizes = [6, 6, 2, 16], strides = [1, 1, 1, 1]} : vector<8x8x2x16xbf16> to vector<6x6x2x16xbf16>
    %50 = vector.extract_strided_slice %16 {offsets = [0, 0, 0, 1, 0, 0], sizes = [8, 1, 8, 1, 2, 16], strides = [1, 1, 1, 1, 1, 1]} : vector<8x2x8x2x2x16xbf16> to vector<8x1x8x1x2x16xbf16>
    %51 = vector.shape_cast %50 : vector<8x1x8x1x2x16xbf16> to vector<8x8x2x16xbf16>
    %52 = vector.extract_strided_slice %51 {offsets = [1, 1, 0, 0], sizes = [6, 6, 2, 16], strides = [1, 1, 1, 1]} : vector<8x8x2x16xbf16> to vector<6x6x2x16xbf16>
    %53 = vector.extract_strided_slice %16 {offsets = [0, 1, 0, 0, 0, 0], sizes = [8, 1, 8, 1, 2, 16], strides = [1, 1, 1, 1, 1, 1]} : vector<8x2x8x2x2x16xbf16> to vector<8x1x8x1x2x16xbf16>
    %54 = vector.shape_cast %53 : vector<8x1x8x1x2x16xbf16> to vector<8x8x2x16xbf16>
    %55 = vector.extract_strided_slice %54 {offsets = [1, 0, 0, 0], sizes = [6, 6, 2, 16], strides = [1, 1, 1, 1]} : vector<8x8x2x16xbf16> to vector<6x6x2x16xbf16>
    %56 = vector.extract_strided_slice %16 {offsets = [0, 1, 0, 1, 0, 0], sizes = [8, 1, 8, 1, 2, 16], strides = [1, 1, 1, 1, 1, 1]} : vector<8x2x8x2x2x16xbf16> to vector<8x1x8x1x2x16xbf16>
    %57 = vector.shape_cast %56 : vector<8x1x8x1x2x16xbf16> to vector<8x8x2x16xbf16>
    %58 = vector.extract_strided_slice %57 {offsets = [1, 0, 0, 0], sizes = [6, 6, 2, 16], strides = [1, 1, 1, 1]} : vector<8x8x2x16xbf16> to vector<6x6x2x16xbf16>
    %59 = vector.extract_strided_slice %16 {offsets = [0, 1, 0, 0, 0, 0], sizes = [8, 1, 8, 1, 2, 16], strides = [1, 1, 1, 1, 1, 1]} : vector<8x2x8x2x2x16xbf16> to vector<8x1x8x1x2x16xbf16>
    %60 = vector.shape_cast %59 : vector<8x1x8x1x2x16xbf16> to vector<8x8x2x16xbf16>
    %61 = vector.extract_strided_slice %60 {offsets = [1, 1, 0, 0], sizes = [6, 6, 2, 16], strides = [1, 1, 1, 1]} : vector<8x8x2x16xbf16> to vector<6x6x2x16xbf16>
    %62 = vector.extract_strided_slice %16 {offsets = [0, 1, 0, 1, 0, 0], sizes = [8, 1, 8, 1, 2, 16], strides = [1, 1, 1, 1, 1, 1]} : vector<8x2x8x2x2x16xbf16> to vector<8x1x8x1x2x16xbf16>
    %63 = vector.shape_cast %62 : vector<8x1x8x1x2x16xbf16> to vector<8x8x2x16xbf16>
    %64 = vector.extract_strided_slice %63 {offsets = [1, 1, 0, 0], sizes = [6, 6, 2, 16], strides = [1, 1, 1, 1]} : vector<8x8x2x16xbf16> to vector<6x6x2x16xbf16>
    %65 = tpu.concatenate %19, %22, %25, %28, %31, %34, %37, %40, %43, %46, %49, %52, %55, %58, %61, %64 in 3 : vector<6x6x2x16xbf16>, vector<6x6x2x16xbf16>, vector<6x6x2x16xbf16>, vector<6x6x2x16xbf16>, vector<6x6x2x16xbf16>, vector<6x6x2x16xbf16>, vector<6x6x2x16xbf16>, vector<6x6x2x16xbf16>, vector<6x6x2x16xbf16>, vector<6x6x2x16xbf16>, vector<6x6x2x16xbf16>, vector<6x6x2x16xbf16>, vector<6x6x2x16xbf16>, vector<6x6x2x16xbf16>, vector<6x6x2x16xbf16>, vector<6x6x2x16xbf16> -> vector<6x6x2x256xbf16>
    %66 = vector.shape_cast %65 : vector<6x6x2x256xbf16> to vector<36x2x256xbf16>
    %c0_9 = arith.constant 0 : index
    %c0_10 = arith.constant 0 : index
    %67 = vector.load %arg3[%c0_9, %c0_10] : memref<256x32xbf16, #tpu.memory_space<vmem>>, vector<256x32xbf16>
    %68 = vector.shape_cast %67 : vector<256x32xbf16> to vector<1x256x32xbf16>
    %69 = vector.shape_cast %68 : vector<1x256x32xbf16> to vector<1x256x32xbf16>
    %70 = vector.broadcast %69 : vector<1x256x32xbf16> to vector<36x256x32xbf16>
    %cst_11 = arith.constant dense<0.000000e+00> : vector<36x2x32xf32>
    %71 = tpu.matmul %66, %70, %cst_11 {dimension_numbers = #tpu.dot_dimension_numbers<[2], [1], [1], [2], [0, 0, 0, 1, 1, 2], [0], [0]>} : vector<36x2x256xbf16>, vector<36x256x32xbf16>, vector<36x2x32xf32> -> vector<36x2x32xf32>
    %c0_12 = arith.constant 0 : index
    %c0_13 = arith.constant 0 : index
    %c0_14 = arith.constant 0 : index
    %72 = vector.load %arg4[%c0_12, %c0_13, %c0_14] : memref<1x1x32xf32, #tpu.memory_space<vmem>>, vector<1x1x32xf32>
    %73 = vector.broadcast %72 : vector<1x1x32xf32> to vector<36x2x32xf32>
    %74 = arith.addf %71, %73 : vector<36x2x32xf32>
    %75 = math.tanh %74 : vector<36x2x32xf32>
    %76 = arith.truncf %75 : vector<36x2x32xf32> to vector<36x2x32xbf16>
    %77 = vector.shape_cast %76 : vector<36x2x32xbf16> to vector<6x6x2x32xbf16>
    %78 = vector.shape_cast %77 : vector<6x6x2x32xbf16> to vector<3x2x3x2x2x32xbf16>
    %79 = vector.extract_strided_slice %78 {offsets = [0, 0, 0, 0, 0, 0], sizes = [3, 1, 3, 1, 2, 32], strides = [1, 1, 1, 1, 1, 1]} : vector<3x2x3x2x2x32xbf16> to vector<3x1x3x1x2x32xbf16>
    %80 = vector.shape_cast %79 : vector<3x1x3x1x2x32xbf16> to vector<3x3x2x32xbf16>
    %81 = vector.extract_strided_slice %80 {offsets = [0, 0, 0, 0], sizes = [2, 2, 2, 32], strides = [1, 1, 1, 1]} : vector<3x3x2x32xbf16> to vector<2x2x2x32xbf16>
    %82 = vector.extract_strided_slice %78 {offsets = [0, 0, 0, 1, 0, 0], sizes = [3, 1, 3, 1, 2, 32], strides = [1, 1, 1, 1, 1, 1]} : vector<3x2x3x2x2x32xbf16> to vector<3x1x3x1x2x32xbf16>
    %83 = vector.shape_cast %82 : vector<3x1x3x1x2x32xbf16> to vector<3x3x2x32xbf16>
    %84 = vector.extract_strided_slice %83 {offsets = [0, 0, 0, 0], sizes = [2, 2, 2, 32], strides = [1, 1, 1, 1]} : vector<3x3x2x32xbf16> to vector<2x2x2x32xbf16>
    %85 = vector.extract_strided_slice %78 {offsets = [0, 0, 0, 0, 0, 0], sizes = [3, 1, 3, 1, 2, 32], strides = [1, 1, 1, 1, 1, 1]} : vector<3x2x3x2x2x32xbf16> to vector<3x1x3x1x2x32xbf16>
    %86 = vector.shape_cast %85 : vector<3x1x3x1x2x32xbf16> to vector<3x3x2x32xbf16>
    %87 = vector.extract_strided_slice %86 {offsets = [0, 1, 0, 0], sizes = [2, 2, 2, 32], strides = [1, 1, 1, 1]} : vector<3x3x2x32xbf16> to vector<2x2x2x32xbf16>
    %88 = vector.extract_strided_slice %78 {offsets = [0, 0, 0, 1, 0, 0], sizes = [3, 1, 3, 1, 2, 32], strides = [1, 1, 1, 1, 1, 1]} : vector<3x2x3x2x2x32xbf16> to vector<3x1x3x1x2x32xbf16>
    %89 = vector.shape_cast %88 : vector<3x1x3x1x2x32xbf16> to vector<3x3x2x32xbf16>
    %90 = vector.extract_strided_slice %89 {offsets = [0, 1, 0, 0], sizes = [2, 2, 2, 32], strides = [1, 1, 1, 1]} : vector<3x3x2x32xbf16> to vector<2x2x2x32xbf16>
    %91 = vector.extract_strided_slice %78 {offsets = [0, 1, 0, 0, 0, 0], sizes = [3, 1, 3, 1, 2, 32], strides = [1, 1, 1, 1, 1, 1]} : vector<3x2x3x2x2x32xbf16> to vector<3x1x3x1x2x32xbf16>
    %92 = vector.shape_cast %91 : vector<3x1x3x1x2x32xbf16> to vector<3x3x2x32xbf16>
    %93 = vector.extract_strided_slice %92 {offsets = [0, 0, 0, 0], sizes = [2, 2, 2, 32], strides = [1, 1, 1, 1]} : vector<3x3x2x32xbf16> to vector<2x2x2x32xbf16>
    %94 = vector.extract_strided_slice %78 {offsets = [0, 1, 0, 1, 0, 0], sizes = [3, 1, 3, 1, 2, 32], strides = [1, 1, 1, 1, 1, 1]} : vector<3x2x3x2x2x32xbf16> to vector<3x1x3x1x2x32xbf16>
    %95 = vector.shape_cast %94 : vector<3x1x3x1x2x32xbf16> to vector<3x3x2x32xbf16>
    %96 = vector.extract_strided_slice %95 {offsets = [0, 0, 0, 0], sizes = [2, 2, 2, 32], strides = [1, 1, 1, 1]} : vector<3x3x2x32xbf16> to vector<2x2x2x32xbf16>
    %97 = vector.extract_strided_slice %78 {offsets = [0, 1, 0, 0, 0, 0], sizes = [3, 1, 3, 1, 2, 32], strides = [1, 1, 1, 1, 1, 1]} : vector<3x2x3x2x2x32xbf16> to vector<3x1x3x1x2x32xbf16>
    %98 = vector.shape_cast %97 : vector<3x1x3x1x2x32xbf16> to vector<3x3x2x32xbf16>
    %99 = vector.extract_strided_slice %98 {offsets = [0, 1, 0, 0], sizes = [2, 2, 2, 32], strides = [1, 1, 1, 1]} : vector<3x3x2x32xbf16> to vector<2x2x2x32xbf16>
    %100 = vector.extract_strided_slice %78 {offsets = [0, 1, 0, 1, 0, 0], sizes = [3, 1, 3, 1, 2, 32], strides = [1, 1, 1, 1, 1, 1]} : vector<3x2x3x2x2x32xbf16> to vector<3x1x3x1x2x32xbf16>
    %101 = vector.shape_cast %100 : vector<3x1x3x1x2x32xbf16> to vector<3x3x2x32xbf16>
    %102 = vector.extract_strided_slice %101 {offsets = [0, 1, 0, 0], sizes = [2, 2, 2, 32], strides = [1, 1, 1, 1]} : vector<3x3x2x32xbf16> to vector<2x2x2x32xbf16>
    %103 = vector.extract_strided_slice %78 {offsets = [0, 0, 0, 0, 0, 0], sizes = [3, 1, 3, 1, 2, 32], strides = [1, 1, 1, 1, 1, 1]} : vector<3x2x3x2x2x32xbf16> to vector<3x1x3x1x2x32xbf16>
    %104 = vector.shape_cast %103 : vector<3x1x3x1x2x32xbf16> to vector<3x3x2x32xbf16>
    %105 = vector.extract_strided_slice %104 {offsets = [1, 0, 0, 0], sizes = [2, 2, 2, 32], strides = [1, 1, 1, 1]} : vector<3x3x2x32xbf16> to vector<2x2x2x32xbf16>
    %106 = vector.extract_strided_slice %78 {offsets = [0, 0, 0, 1, 0, 0], sizes = [3, 1, 3, 1, 2, 32], strides = [1, 1, 1, 1, 1, 1]} : vector<3x2x3x2x2x32xbf16> to vector<3x1x3x1x2x32xbf16>
    %107 = vector.shape_cast %106 : vector<3x1x3x1x2x32xbf16> to vector<3x3x2x32xbf16>
    %108 = vector.extract_strided_slice %107 {offsets = [1, 0, 0, 0], sizes = [2, 2, 2, 32], strides = [1, 1, 1, 1]} : vector<3x3x2x32xbf16> to vector<2x2x2x32xbf16>
    %109 = vector.extract_strided_slice %78 {offsets = [0, 0, 0, 0, 0, 0], sizes = [3, 1, 3, 1, 2, 32], strides = [1, 1, 1, 1, 1, 1]} : vector<3x2x3x2x2x32xbf16> to vector<3x1x3x1x2x32xbf16>
    %110 = vector.shape_cast %109 : vector<3x1x3x1x2x32xbf16> to vector<3x3x2x32xbf16>
    %111 = vector.extract_strided_slice %110 {offsets = [1, 1, 0, 0], sizes = [2, 2, 2, 32], strides = [1, 1, 1, 1]} : vector<3x3x2x32xbf16> to vector<2x2x2x32xbf16>
    %112 = vector.extract_strided_slice %78 {offsets = [0, 0, 0, 1, 0, 0], sizes = [3, 1, 3, 1, 2, 32], strides = [1, 1, 1, 1, 1, 1]} : vector<3x2x3x2x2x32xbf16> to vector<3x1x3x1x2x32xbf16>
    %113 = vector.shape_cast %112 : vector<3x1x3x1x2x32xbf16> to vector<3x3x2x32xbf16>
    %114 = vector.extract_strided_slice %113 {offsets = [1, 1, 0, 0], sizes = [2, 2, 2, 32], strides = [1, 1, 1, 1]} : vector<3x3x2x32xbf16> to vector<2x2x2x32xbf16>
    %115 = vector.extract_strided_slice %78 {offsets = [0, 1, 0, 0, 0, 0], sizes = [3, 1, 3, 1, 2, 32], strides = [1, 1, 1, 1, 1, 1]} : vector<3x2x3x2x2x32xbf16> to vector<3x1x3x1x2x32xbf16>
    %116 = vector.shape_cast %115 : vector<3x1x3x1x2x32xbf16> to vector<3x3x2x32xbf16>
    %117 = vector.extract_strided_slice %116 {offsets = [1, 0, 0, 0], sizes = [2, 2, 2, 32], strides = [1, 1, 1, 1]} : vector<3x3x2x32xbf16> to vector<2x2x2x32xbf16>
    %118 = vector.extract_strided_slice %78 {offsets = [0, 1, 0, 1, 0, 0], sizes = [3, 1, 3, 1, 2, 32], strides = [1, 1, 1, 1, 1, 1]} : vector<3x2x3x2x2x32xbf16> to vector<3x1x3x1x2x32xbf16>
    %119 = vector.shape_cast %118 : vector<3x1x3x1x2x32xbf16> to vector<3x3x2x32xbf16>
    %120 = vector.extract_strided_slice %119 {offsets = [1, 0, 0, 0], sizes = [2, 2, 2, 32], strides = [1, 1, 1, 1]} : vector<3x3x2x32xbf16> to vector<2x2x2x32xbf16>
    %121 = vector.extract_strided_slice %78 {offsets = [0, 1, 0, 0, 0, 0], sizes = [3, 1, 3, 1, 2, 32], strides = [1, 1, 1, 1, 1, 1]} : vector<3x2x3x2x2x32xbf16> to vector<3x1x3x1x2x32xbf16>
    %122 = vector.shape_cast %121 : vector<3x1x3x1x2x32xbf16> to vector<3x3x2x32xbf16>
    %123 = vector.extract_strided_slice %122 {offsets = [1, 1, 0, 0], sizes = [2, 2, 2, 32], strides = [1, 1, 1, 1]} : vector<3x3x2x32xbf16> to vector<2x2x2x32xbf16>
    %124 = vector.extract_strided_slice %78 {offsets = [0, 1, 0, 1, 0, 0], sizes = [3, 1, 3, 1, 2, 32], strides = [1, 1, 1, 1, 1, 1]} : vector<3x2x3x2x2x32xbf16> to vector<3x1x3x1x2x32xbf16>
    %125 = vector.shape_cast %124 : vector<3x1x3x1x2x32xbf16> to vector<3x3x2x32xbf16>
    %126 = vector.extract_strided_slice %125 {offsets = [1, 1, 0, 0], sizes = [2, 2, 2, 32], strides = [1, 1, 1, 1]} : vector<3x3x2x32xbf16> to vector<2x2x2x32xbf16>
    %127 = tpu.concatenate %81, %84, %87, %90, %93, %96, %99, %102, %105, %108, %111, %114, %117, %120, %123, %126 in 3 : vector<2x2x2x32xbf16>, vector<2x2x2x32xbf16>, vector<2x2x2x32xbf16>, vector<2x2x2x32xbf16>, vector<2x2x2x32xbf16>, vector<2x2x2x32xbf16>, vector<2x2x2x32xbf16>, vector<2x2x2x32xbf16>, vector<2x2x2x32xbf16>, vector<2x2x2x32xbf16>, vector<2x2x2x32xbf16>, vector<2x2x2x32xbf16>, vector<2x2x2x32xbf16>, vector<2x2x2x32xbf16>, vector<2x2x2x32xbf16>, vector<2x2x2x32xbf16> -> vector<2x2x2x512xbf16>
    %128 = vector.shape_cast %127 : vector<2x2x2x512xbf16> to vector<4x2x512xbf16>
    %c0_15 = arith.constant 0 : index
    %c0_16 = arith.constant 0 : index
    %129 = vector.load %arg5[%c0_15, %c0_16] : memref<512x64xbf16, #tpu.memory_space<vmem>>, vector<512x64xbf16>
    %130 = vector.shape_cast %129 : vector<512x64xbf16> to vector<1x512x64xbf16>
    %131 = vector.shape_cast %130 : vector<1x512x64xbf16> to vector<1x512x64xbf16>
    %132 = vector.broadcast %131 : vector<1x512x64xbf16> to vector<4x512x64xbf16>
    %cst_17 = arith.constant dense<0.000000e+00> : vector<4x2x64xf32>
    %133 = tpu.matmul %128, %132, %cst_17 {dimension_numbers = #tpu.dot_dimension_numbers<[2], [1], [1], [2], [0, 0, 0, 1, 1, 2], [0], [0]>} : vector<4x2x512xbf16>, vector<4x512x64xbf16>, vector<4x2x64xf32> -> vector<4x2x64xf32>
    %c0_18 = arith.constant 0 : index
    %c0_19 = arith.constant 0 : index
    %c0_20 = arith.constant 0 : index
    %134 = vector.load %arg6[%c0_18, %c0_19, %c0_20] : memref<1x1x64xf32, #tpu.memory_space<vmem>>, vector<1x1x64xf32>
    %135 = vector.broadcast %134 : vector<1x1x64xf32> to vector<4x2x64xf32>
    %136 = arith.addf %133, %135 : vector<4x2x64xf32>
    %137 = math.tanh %136 : vector<4x2x64xf32>
    %138 = arith.truncf %137 : vector<4x2x64xf32> to vector<4x2x64xbf16>
    %139 = vector.shape_cast %138 : vector<4x2x64xbf16> to vector<2x2x2x64xbf16>
    %140 = vector.extract_strided_slice %139 {offsets = [0, 0, 0, 0], sizes = [1, 1, 2, 64], strides = [1, 1, 1, 1]} : vector<2x2x2x64xbf16> to vector<1x1x2x64xbf16>
    %141 = vector.shape_cast %140 : vector<1x1x2x64xbf16> to vector<2x64xbf16>
    %142 = vector.extract_strided_slice %139 {offsets = [0, 1, 0, 0], sizes = [1, 1, 2, 64], strides = [1, 1, 1, 1]} : vector<2x2x2x64xbf16> to vector<1x1x2x64xbf16>
    %143 = vector.shape_cast %142 : vector<1x1x2x64xbf16> to vector<2x64xbf16>
    %144 = vector.extract_strided_slice %139 {offsets = [1, 0, 0, 0], sizes = [1, 1, 2, 64], strides = [1, 1, 1, 1]} : vector<2x2x2x64xbf16> to vector<1x1x2x64xbf16>
    %145 = vector.shape_cast %144 : vector<1x1x2x64xbf16> to vector<2x64xbf16>
    %146 = vector.extract_strided_slice %139 {offsets = [1, 1, 0, 0], sizes = [1, 1, 2, 64], strides = [1, 1, 1, 1]} : vector<2x2x2x64xbf16> to vector<1x1x2x64xbf16>
    %147 = vector.shape_cast %146 : vector<1x1x2x64xbf16> to vector<2x64xbf16>
    %148 = tpu.concatenate %141, %143, %145, %147 in 1 : vector<2x64xbf16>, vector<2x64xbf16>, vector<2x64xbf16>, vector<2x64xbf16> -> vector<2x256xbf16>
    %c0_21 = arith.constant 0 : index
    %c0_22 = arith.constant 0 : index
    %149 = vector.load %arg7[%c0_21, %c0_22] : memref<256x128xbf16, #tpu.memory_space<vmem>>, vector<256x128xbf16>
    %cst_23 = arith.constant dense<0.000000e+00> : vector<2x128xf32>
    %150 = tpu.matmul %148, %149, %cst_23 {dimension_numbers = #tpu.dot_dimension_numbers<[1], [0], [0], [1], [0, 0, 1, 1], [], []>} : vector<2x256xbf16>, vector<256x128xbf16>, vector<2x128xf32> -> vector<2x128xf32>
    %c0_24 = arith.constant 0 : index
    %c0_25 = arith.constant 0 : index
    %151 = vector.load %arg8[%c0_24, %c0_25] : memref<1x128xf32, #tpu.memory_space<vmem>>, vector<1x128xf32>
    %152 = vector.broadcast %151 : vector<1x128xf32> to vector<2x128xf32>
    %153 = arith.addf %150, %152 : vector<2x128xf32>
    %154 = arith.truncf %153 : vector<2x128xf32> to vector<2x128xbf16>
    %c0_26 = arith.constant 0 : index
    %c0_27 = arith.constant 0 : index
    %155 = vector.load %arg9[%c0_26, %c0_27] : memref<128x8xbf16, #tpu.memory_space<vmem>>, vector<128x8xbf16>
    %cst_28 = arith.constant dense<0.000000e+00> : vector<2x8xf32>
    %156 = tpu.matmul %154, %155, %cst_28 {dimension_numbers = #tpu.dot_dimension_numbers<[1], [0], [0], [1], [0, 0, 1, 1], [], []>} : vector<2x128xbf16>, vector<128x8xbf16>, vector<2x8xf32> -> vector<2x8xf32>
    %c0_29 = arith.constant 0 : index
    %c0_30 = arith.constant 0 : index
    %157 = vector.load %arg10[%c0_29, %c0_30] : memref<1x8xf32, #tpu.memory_space<vmem>>, vector<1x8xf32>
    %158 = vector.broadcast %157 : vector<1x8xf32> to vector<2x8xf32>
    %159 = arith.addf %156, %158 : vector<2x8xf32>
    %c0_31 = arith.constant 0 : index
    %c0_32 = arith.constant 0 : index
    %160 = vector.load %arg11[%c0_31, %c0_32] : memref<2x8xf32, #tpu.memory_space<vmem>>, vector<2x8xf32>
    tpu.vector_store %arg11[%c0_31, %c0_32], %159 {strides = array<i32>} : memref<2x8xf32, #tpu.memory_space<vmem>>, vector<2x8xf32>,
    return
  }
}

</mosaic_0001>

<bundles_post_ra>
// kernel: tpu_custom_call.1
= control target key start
LH: loop header
LB: loop body
LE: loop exit
PB: predicated region body
PF: predicated region fallthrough
CT: control target
= control target key end

     0   :  { %v24106_v1 = vmov 0.0   ;;  %vm17980_vm0 = vmmov 0   ;;  %vm267_vm1 = vcmask 392192   ;;  %s24085_s0 = inlined_call_operand.vmem [shape: bf16[225,2,48], index: 0, kind: input, shape index: {}]   ;;  %s24086_s1 = inlined_call_operand.vmem [shape: bf16[48,16], index: 1, kind: input, shape index: {}]   ;;  %s24087_s2 = inlined_call_operand.vmem [shape: f32[1,1,16], index: 2, kind: input, shape index: {}]   ;;  %s24088_s3 = inlined_call_operand.vmem [shape: bf16[256,32], index: 3, kind: input, shape index: {}]   ;;  %s24089_s4 = inlined_call_operand.vmem [shape: f32[1,1,32], index: 4, kind: input, shape index: {}]   ;;  %s24090_s5 = inlined_call_operand.vmem [shape: bf16[512,64], index: 5, kind: input, shape index: {}]   ;;  %s24091_s6 = inlined_call_operand.vmem [shape: f32[1,1,64], index: 6, kind: input, shape index: {}]   ;;  %s24092_s7 = inlined_call_operand.vmem [shape: bf16[256,128], index: 7, kind: input, shape index: {}]   ;;  %s24093_s8 = inlined_call_operand.vmem [shape: f32[1,128], index: 8, kind: input, shape index: {}]   ;;  %s24094_s9 = inlined_call_operand.vmem [shape: bf16[128,8], index: 9, kind: input, shape index: {}]   ;;  %s24095_s10 = inlined_call_operand.vmem [shape: f32[1,8], index: 10, kind: input, shape index: {}]   ;;  %s24096_s11 = inlined_call_operand.hbm [shape: f32[2,8], index: 11, kind: output, shape index: {}]  }
   0x1   :  { %v18052_v0 = vld [vmem:[%s24086_s1] sm:$0xff]   ;;  %15355 = vmatprep.subr.bf16.mxu0 %v24106_v1  ;;  %15365 = vmatprep.subr.bf16.mxu1 %v24106_v1  ;;  %v18061_v2 = vld [vmem:[%s24086_s1 + $0x8] sm:$0xff]   ;;  %v18074_v3 = vld [vmem:[%s24086_s1 + $0x10] sm:$0xff]  }
   0x2   :  { %15356 = vmatpush3.bf16.msra.mxu0 %v18052_v0  ;;  %15366 = vmatpush3.bf16.msra.mxu1 %v18052_v0  ;;  %v40_v4 = vld [vmem:[%s24085_s0] sm:$0x1]  ;;  %v41_v5 = vld [vmem:[%s24085_s0 + $0x1] sm:$0x1]  ;;  %v42_v6 = vld [vmem:[%s24085_s0 + $0x2] sm:$0x1] }
   0x3   :  { %15357 = vmatprep.subr.bf16.mxu0 %v24106_v1  ;;  %15367 = vmatprep.subr.bf16.mxu1 %v24106_v1  ;;  %v43_v7 = vld [vmem:[%s24085_s0 + $0x3] sm:$0x1]  ;;  %v44_v8 = vld [vmem:[%s24085_s0 + $0x4] sm:$0x1]  ;;  %v45_v9 = vld [vmem:[%s24085_s0 + $0x5] sm:$0x1] }
   0x4   :  { %15361 = vmatprep.mubr.msk.bf16.mxu0 %vm17980_vm0, %v24106_v1  ;;  %15371 = vmatprep.mubr.msk.bf16.mxu1 %vm17980_vm0, %v24106_v1  ;;  %v46_v10 = vld [vmem:[%s24085_s0 + $0x6] sm:$0x1]  ;;  %v47_v11 = vld [vmem:[%s24085_s0 + $0x7] sm:$0x1]  ;;  %v48_v12 = vld [vmem:[%s24085_s0 + $0x8] sm:$0x1] }
   0x5   :  { %v49_v13 = vld [vmem:[%s24085_s0 + $0x9] sm:$0x1] }
   0x6   :  { %15358 = vmatpush3.bf16.msra.mxu0 %v18061_v2  ;;  %15368 = vmatpush3.bf16.msra.mxu1 %v18061_v2 }
   0x7   :  { %15359 = vmatprep.subr.bf16.mxu0 %v24106_v1  ;;  %15369 = vmatprep.subr.bf16.mxu1 %v24106_v1 }
   0xa   :  { %15360 = vmatpush3.bf16.msra.mxu0 %v18074_v3  ;;  %15370 = vmatpush3.bf16.msra.mxu1 %v18074_v3 }
   0xb   :  { %15375 = vmatprep.subr.bf16.mxu0 %v24106_v1  ;;  %15385 = vmatprep.subr.bf16.mxu1 %v24106_v1 }
   0xd   :  { %15362 = vmatmul.mubr.msk.bf16.vlgmr.msra.gmra.mrb[0].mxu0 %vm267_vm1, %v40_v4  ;;  %15372 = vmatmul.mubr.msk.bf16.vlgmr.msra.gmra.mrb[0].mxu1 %vm267_vm1, %v41_v5 }
   0xe   :  { %15376 = vmatpush3.bf16.msra.mxu0 %v18052_v0  ;;  %15386 = vmatpush3.bf16.msra.mxu1 %v18052_v0 }
   0xf   :  { %15377 = vmatprep.subr.bf16.mxu0 %v24106_v1  ;;  %15387 = vmatprep.subr.bf16.mxu1 %v24106_v1 }
  0x10   :  { %15381 = vmatprep.mubr.msk.bf16.mxu0 %vm17980_vm0, %v24106_v1  ;;  %15391 = vmatprep.mubr.msk.bf16.mxu1 %vm17980_vm0, %v24106_v1 }
  0x12   :  { %15378 = vmatpush3.bf16.msra.mxu0 %v18061_v2  ;;  %15388 = vmatpush3.bf16.msra.mxu1 %v18061_v2 }
  0x13   :  { %15379 = vmatprep.subr.bf16.mxu0 %v24106_v1  ;;  %15389 = vmatprep.subr.bf16.mxu1 %v24106_v1 }
  0x16   :  { %15380 = vmatpush3.bf16.msra.mxu0 %v18074_v3  ;;  %15390 = vmatpush3.bf16.msra.mxu1 %v18074_v3 }
  0x17   :  { %15395 = vmatprep.subr.bf16.mxu0 %v24106_v1  ;;  %15405 = vmatprep.subr.bf16.mxu1 %v24106_v1 }
  0x19   :  { %15382 = vmatmul.mubr.msk.bf16.vlgmr.msra.gmra.mrb[4].mxu0 %vm267_vm1, %v42_v6  ;;  %15392 = vmatmul.mubr.msk.bf16.vlgmr.msra.gmra.mrb[4].mxu1 %vm267_vm1, %v43_v7 }
  0x1a   :  { %15396 = vmatpush3.bf16.msra.mxu0 %v18052_v0  ;;  %15406 = vmatpush3.bf16.msra.mxu1 %v18052_v0 }
  0x1b   :  { %15397 = vmatprep.subr.bf16.mxu0 %v24106_v1  ;;  %15407 = vmatprep.subr.bf16.mxu1 %v24106_v1 }
  0x1c   :  { %15401 = vmatprep.mubr.msk.bf16.mxu0 %vm17980_vm0, %v24106_v1  ;;  %15411 = vmatprep.mubr.msk.bf16.mxu1 %vm17980_vm0, %v24106_v1 }
  0x1e   :  { %15398 = vmatpush3.bf16.msra.mxu0 %v18061_v2  ;;  %15408 = vmatpush3.bf16.msra.mxu1 %v18061_v2 }
  0x1f   :  { %15399 = vmatprep.subr.bf16.mxu0 %v24106_v1  ;;  %15409 = vmatprep.subr.bf16.mxu1 %v24106_v1 }
  0x22   :  { %15400 = vmatpush3.bf16.msra.mxu0 %v18074_v3  ;;  %15410 = vmatpush3.bf16.msra.mxu1 %v18074_v3 }
  0x23   :  { %15415 = vmatprep.subr.bf16.mxu0 %v24106_v1  ;;  %15425 = vmatprep.subr.bf16.mxu1 %v24106_v1 }
  0x25   :  { %15402 = vmatmul.mubr.msk.bf16.vlgmr.msra.gmra.mrb[8].mxu0 %vm267_vm1, %v44_v8  ;;  %15412 = vmatmul.mubr.msk.bf16.vlgmr.msra.gmra.mrb[8].mxu1 %vm267_vm1, %v45_v9 }
  0x26   :  { %15416 = vmatpush3.bf16.msra.mxu0 %v18052_v0  ;;  %15426 = vmatpush3.bf16.msra.mxu1 %v18052_v0 }
  0x27   :  { %15417 = vmatprep.subr.bf16.mxu0 %v24106_v1  ;;  %15427 = vmatprep.subr.bf16.mxu1 %v24106_v1 }
  0x28   :  { %15421 = vmatprep.mubr.msk.bf16.mxu0 %vm17980_vm0, %v24106_v1  ;;  %15431 = vmatprep.mubr.msk.bf16.mxu1 %vm17980_vm0, %v24106_v1 }
  0x2a   :  { %15418 = vmatpush3.bf16.msra.mxu0 %v18061_v2  ;;  %15428 = vmatpush3.bf16.msra.mxu1 %v18061_v2 }
  0x2b   :  { %15419 = vmatprep.subr.bf16.mxu0 %v24106_v1  ;;  %15429 = vmatprep.subr.bf16.mxu1 %v24106_v1 }
  0x2e   :  { %15420 = vmatpush3.bf16.msra.mxu0 %v18074_v3  ;;  %15430 = vmatpush3.bf16.msra.mxu1 %v18074_v3 }
  0x2f   :  { %15435 = vmatprep.subr.bf16.mxu0 %v24106_v1  ;;  %15445 = vmatprep.subr.bf16.mxu1 %v24106_v1 }
  0x31   :  { %15422 = vmatmul.mubr.msk.bf16.vlgmr.msra.gmra.mrb[12].mxu0 %vm267_vm1, %v46_v10  ;;  %15432 = vmatmul.mubr.msk.bf16.vlgmr.msra.gmra.mrb[12].mxu1 %vm267_vm1, %v47_v11 }
  0x32   :  { %15436 = vmatpush3.bf16.msra.mxu0 %v18052_v0  ;;  %15446 = vmatpush3.bf16.msra.mxu1 %v18052_v0 }
  0x33   :  { %15437 = vmatprep.subr.bf16.mxu0 %v24106_v1  ;;  %15447 = vmatprep.subr.bf16.mxu1 %v24106_v1 }
  0x34   :  { %15441 = vmatprep.mubr.msk.bf16.mxu0 %vm17980_vm0, %v24106_v1  ;;  %15451 = vmatprep.mubr.msk.bf16.mxu1 %vm17980_vm0, %v24106_v1 }
  0x36   :  { %15438 = vmatpush3.bf16.msra.mxu0 %v18061_v2  ;;  %15448 = vmatpush3.bf16.msra.mxu1 %v18061_v2 }
  0x37   :  { %15439 = vmatprep.subr.bf16.mxu0 %v24106_v1  ;;  %15449 = vmatprep.subr.bf16.mxu1 %v24106_v1 }
  0x3a   :  { %15440 = vmatpush3.bf16.msra.mxu0 %v18074_v3  ;;  %15450 = vmatpush3.bf16.msra.mxu1 %v18074_v3 }
  0x3b   :  { %15455 = vmatprep.subr.bf16.mxu0 %v24106_v1  ;;  %15465 = vmatprep.subr.bf16.mxu1 %v24106_v1 }
  0x3d   :  { %15442 = vmatmul.mubr.msk.bf16.vlgmr.msra.gmra.mrb[16].mxu0 %vm267_vm1, %v48_v12  ;;  %15452 = vmatmul.mubr.msk.bf16.vlgmr.msra.gmra.mrb[16].mxu1 %vm267_vm1, %v49_v13 }
  0x3e   :  { %16 = vsyncpa [#allocation3], 0  ;;  %15456 = vmatpush3.bf16.msra.mxu0 %v18052_v0  ;;  %15466 = vmatpush3.bf16.msra.mxu1 %v18052_v0  ;;  %v50_v14 = vld [vmem:[%s24085_s0 + $0xa] sm:$0x1]  ;;  %v51_v15 = vld [vmem:[%s24085_s0 + $0xb] sm:$0x1] }
  0x3f   :  { %15457 = vmatprep.subr.bf16.mxu0 %v24106_v1  ;;  %15467 = vmatprep.subr.bf16.mxu1 %v24106_v1  ;;  %v52_v16 = vld [vmem:[%s24085_s0 + $0xc] sm:$0x1]  ;;  %v53_v17 = vld [vmem:[%s24085_s0 + $0xd] sm:$0x1]  ;;  %v54_v18 = vld [vmem:[%s24085_s0 + $0xf] sm:$0x1] }
  0x40   :  { %15461 = vmatprep.mubr.msk.bf16.mxu0 %vm17980_vm0, %v24106_v1  ;;  %15471 = vmatprep.mubr.msk.bf16.mxu1 %vm17980_vm0, %v24106_v1  ;;  %v55_v19 = vld [vmem:[%s24085_s0 + $0x10] sm:$0x1]  ;;  %v56_v20 = vld [vmem:[%s24085_s0 + $0x11] sm:$0x1]  ;;  %v57_v21 = vld [vmem:[%s24085_s0 + $0x12] sm:$0x1] }
  0x41   :  { %v58_v22 = vld [vmem:[%s24085_s0 + $0x13] sm:$0x1]  ;;  %v59_v23 = vld [vmem:[%s24085_s0 + $0x14] sm:$0x1]  ;;  %v60_v24 = vld [vmem:[%s24085_s0 + $0x15] sm:$0x1] }
  0x42   :  { %15458 = vmatpush3.bf16.msra.mxu0 %v18061_v2  ;;  %15468 = vmatpush3.bf16.msra.mxu1 %v18061_v2  ;;  %v61_v25 = vld [vmem:[%s24085_s0 + $0x16] sm:$0x1]  ;;  %v62_v26 = vld [vmem:[%s24085_s0 + $0x17] sm:$0x1]  ;;  %v63_v27 = vld [vmem:[%s24085_s0 + $0x18] sm:$0x1] }
  0x43   :  { %15459 = vmatprep.subr.bf16.mxu0 %v24106_v1  ;;  %15469 = vmatprep.subr.bf16.mxu1 %v24106_v1  ;;  %v64_v28 = vld [vmem:[%s24085_s0 + $0x19] sm:$0x1]  ;;  %v65_v29 = vld [vmem:[%s24085_s0 + $0x1a] sm:$0x1]  ;;  %v66_v30 = vld [vmem:[%s24085_s0 + $0x1b] sm:$0x1] }
  0x44   :  { %v67_v31 = vld [vmem:[%s24085_s0 + $0x1c] sm:$0x1]  ;;  %v68_v32 = vld [vmem:[%s24085_s0 + $0x1e] sm:$0x1]  ;;  %v69_v33 = vld [vmem:[%s24085_s0 + $0x1f] sm:$0x1] }
  0x45   :  { %v70_v34 = vld [vmem:[%s24085_s0 + $0x20] sm:$0x1]  ;;  %v71_v35 = vld [vmem:[%s24085_s0 + $0x21] sm:$0x1]  ;;  %v72_v36 = vld [vmem:[%s24085_s0 + $0x22] sm:$0x1] }
  0x46   :  { %15460 = vmatpush3.bf16.msra.mxu0 %v18074_v3  ;;  %15470 = vmatpush3.bf16.msra.mxu1 %v18074_v3  ;;  %v73_v37 = vld [vmem:[%s24085_s0 + $0x23] sm:$0x1]  ;;  %v74_v38 = vld [vmem:[%s24085_s0 + $0x24] sm:$0x1]  ;;  %v75_v39 = vld [vmem:[%s24085_s0 + $0x25] sm:$0x1] }
  0x47   :  { %15475 = vmatprep.subr.bf16.mxu0 %v24106_v1  ;;  %15485 = vmatprep.subr.bf16.mxu1 %v24106_v1  ;;  %v18511_v40 = vld [vmem:[%s24087_s2] ss:$0 sm:$0xff]  ;;  %v76_v48 = vld [vmem:[%s24085_s0 + $0x26] sm:$0x1]  ;;  %v77_v49 = vld [vmem:[%s24085_s0 + $0x27] sm:$0x1] }
  0x48   :  { %v78_v61 = vld [vmem:[%s24085_s0 + $0x28] sm:$0x1]  ;;  %s17981_s29 = smov 16   ;;  %s17982_s21 = smov 32   ;;  %vm9865_vm2 = vcmask 130048   ;;  %vm9974_vm3 = vcmask 261120  }
  0x49   :  { %15462 = vmatmul.mubr.msk.bf16.vlgmr.msra.gmra.mrb[20].mxu0 %vm267_vm1, %v50_v14  ;;  %15472 = vmatmul.mubr.msk.bf16.vlgmr.msra.gmra.mrb[20].mxu1 %vm267_vm1, %v51_v15  ;;  %v18573_v4 = vld [vmem:[%s24086_s1 + $0x8] sm:$0xff]   ;;  %v18584_v14 = vld [vmem:[%s24086_s1 + $0x10] sm:$0xff]   ;;  %s17983_s22 = smov 48   ;;  %s17984_s13 = smov 64   ;;  %vm10119_vm4 = vcmask 523264   ;;  %vm10192_vm5 = vcmask 654336  }
  0x4a   :  { %15476 = vmatpush3.bf16.msra.mxu0 %v18052_v0  ;;  %15486 = vmatpush3.bf16.msra.mxu1 %v18052_v0  ;;  %s17985_s14 = smov 80   ;;  %s17986_s19 = smov 96   ;;  %vm10265_vm6 = vcmask 785408   ;;  %vm10338_vm7 = vcmask 916480   ;;  %vm13280_vm8 = vcmask 58368  }
  0x4b   :  { %15477 = vmatprep.subr.bf16.mxu0 %v24106_v1  ;;  %15487 = vmatprep.subr.bf16.mxu1 %v24106_v1  ;;  %s17987_s20 = smov 112  }
  0x4c   :  { %15481 = vmatprep.mubr.msk.bf16.mxu0 %vm17980_vm0, %v24106_v1  ;;  %15491 = vmatprep.mubr.msk.bf16.mxu1 %vm17980_vm0, %v24106_v1 }
  0x4e   :  { %15478 = vmatpush3.bf16.msra.mxu0 %v18061_v2  ;;  %15488 = vmatpush3.bf16.msra.mxu1 %v18061_v2 }
  0x4f   :  { %15479 = vmatprep.subr.bf16.mxu0 %v24106_v1  ;;  %15489 = vmatprep.subr.bf16.mxu1 %v24106_v1 }
  0x52   :  { %15480 = vmatpush3.bf16.msra.mxu0 %v18074_v3  ;;  %15490 = vmatpush3.bf16.msra.mxu1 %v18074_v3 }
  0x53   :  { %15495 = vmatprep.subr.bf16.mxu0 %v24106_v1  ;;  %15505 = vmatprep.subr.bf16.mxu1 %v24106_v1 }
  0x55   :  { %15482 = vmatmul.mubr.msk.bf16.vlgmr.msra.gmra.mrb[24].mxu0 %vm267_vm1, %v52_v16  ;;  %15492 = vmatmul.mubr.msk.bf16.vlgmr.msra.gmra.mrb[24].mxu1 %vm267_vm1, %v53_v17  ;;  %v80_v17 = vld [vmem:[%s24085_s0 + $0x2a] sm:$0x1] }
  0x56   :  { %15496 = vmatpush3.bf16.msra.mxu0 %v18052_v0  ;;  %15506 = vmatpush3.bf16.msra.mxu1 %v18052_v0 }
  0x57   :  { %15497 = vmatprep.subr.bf16.mxu0 %v24106_v1  ;;  %15507 = vmatprep.subr.bf16.mxu1 %v24106_v1 }
  0x58   :  { %15501 = vmatprep.mubr.msk.bf16.mxu0 %vm17980_vm0, %v24106_v1  ;;  %15511 = vmatprep.mubr.msk.bf16.mxu1 %vm17980_vm0, %v24106_v1 }
  0x5a   :  { %15498 = vmatpush3.bf16.msra.mxu0 %v18061_v2  ;;  %15508 = vmatpush3.bf16.msra.mxu1 %v18061_v2 }
  0x5b   :  { %15499 = vmatprep.subr.bf16.mxu0 %v24106_v1  ;;  %15509 = vmatprep.subr.bf16.mxu1 %v24106_v1 }
  0x5e   :  { %15500 = vmatpush3.bf16.msra.mxu0 %v18074_v3  ;;  %15510 = vmatpush3.bf16.msra.mxu1 %v18074_v3 }
  0x5f   :  { %15515 = vmatprep.subr.bf16.mxu0 %v24106_v1  ;;  %15525 = vmatprep.subr.bf16.mxu1 %v24106_v1 }
  0x61   :  { %15502 = vmatmul.mubr.msk.bf16.vlgmr.msra.gmra.mrb[28].mxu0 %vm267_vm1, %v54_v18  ;;  %15512 = vmatmul.mubr.msk.bf16.vlgmr.msra.gmra.mrb[28].mxu1 %vm267_vm1, %v55_v19 }
  0x62   :  { %15516 = vmatpush3.bf16.msra.mxu0 %v18052_v0  ;;  %15526 = vmatpush3.bf16.msra.mxu1 %v18052_v0 }
  0x63   :  { %15517 = vmatprep.subr.bf16.mxu0 %v24106_v1  ;;  %15527 = vmatprep.subr.bf16.mxu1 %v24106_v1 }
  0x64   :  { %15521 = vmatprep.mubr.msk.bf16.mxu0 %vm17980_vm0, %v24106_v1  ;;  %15531 = vmatprep.mubr.msk.bf16.mxu1 %vm17980_vm0, %v24106_v1 }
  0x66   :  { %15518 = vmatpush3.bf16.msra.mxu0 %v18061_v2  ;;  %15528 = vmatpush3.bf16.msra.mxu1 %v18061_v2 }
  0x67   :  { %15519 = vmatprep.subr.bf16.mxu0 %v24106_v1  ;;  %15529 = vmatprep.subr.bf16.mxu1 %v24106_v1 }
  0x6a   :  { %15520 = vmatpush3.bf16.msra.mxu0 %v18074_v3  ;;  %15530 = vmatpush3.bf16.msra.mxu1 %v18074_v3 }
  0x6b   :  { %15535 = vmatprep.subr.bf16.mxu0 %v24106_v1  ;;  %15545 = vmatprep.subr.bf16.mxu1 %v24106_v1 }
  0x6d   :  { %15522 = vmatmul.mubr.msk.bf16.vlgmr.msra.gmra.mrb[32].mxu0 %vm267_vm1, %v56_v20  ;;  %15532 = vmatmul.mubr.msk.bf16.vlgmr.msra.gmra.mrb[32].mxu1 %vm267_vm1, %v57_v21  ;;  %v81_v21 = vld [vmem:[%s24085_s0 + $0x2b] sm:$0x1] }
  0x6e   :  { %15536 = vmatpush3.bf16.msra.mxu0 %v18052_v0  ;;  %15546 = vmatpush3.bf16.msra.mxu1 %v18052_v0 }
  0x6f   :  { %15537 = vmatprep.subr.bf16.mxu0 %v24106_v1  ;;  %15547 = vmatprep.subr.bf16.mxu1 %v24106_v1 }
  0x70   :  { %15541 = vmatprep.mubr.msk.bf16.mxu0 %vm17980_vm0, %v24106_v1  ;;  %15551 = vmatprep.mubr.msk.bf16.mxu1 %vm17980_vm0, %v24106_v1 }
  0x72   :  { %15538 = vmatpush3.bf16.msra.mxu0 %v18061_v2  ;;  %15548 = vmatpush3.bf16.msra.mxu1 %v18061_v2 }
  0x73   :  { %15539 = vmatprep.subr.bf16.mxu0 %v24106_v1  ;;  %15549 = vmatprep.subr.bf16.mxu1 %v24106_v1 }
  0x76   :  { %15540 = vmatpush3.bf16.msra.mxu0 %v18074_v3  ;;  %15550 = vmatpush3.bf16.msra.mxu1 %v18074_v3 }
  0x77   :  { %15555 = vmatprep.subr.bf16.mxu0 %v24106_v1  ;;  %15565 = vmatprep.subr.bf16.mxu1 %v24106_v1 }
  0x79   :  { %15542 = vmatmul.mubr.msk.bf16.vlgmr.msra.gmra.mrb[36].mxu0 %vm267_vm1, %v58_v22  ;;  %15552 = vmatmul.mubr.msk.bf16.vlgmr.msra.gmra.mrb[36].mxu1 %vm267_vm1, %v59_v23 }
  0x7a   :  { %15556 = vmatpush3.bf16.msra.mxu0 %v18052_v0  ;;  %15566 = vmatpush3.bf16.msra.mxu1 %v18052_v0 }
  0x7b   :  { %15557 = vmatprep.subr.bf16.mxu0 %v24106_v1  ;;  %15567 = vmatprep.subr.bf16.mxu1 %v24106_v1 }
  0x7c   :  { %15561 = vmatprep.mubr.msk.bf16.mxu0 %vm17980_vm0, %v24106_v1  ;;  %15571 = vmatprep.mubr.msk.bf16.mxu1 %vm17980_vm0, %v24106_v1 }
  0x7e   :  { %15558 = vmatpush3.bf16.msra.mxu0 %v18061_v2  ;;  %15568 = vmatpush3.bf16.msra.mxu1 %v18061_v2 }
  0x7f   :  { %15559 = vmatprep.subr.bf16.mxu0 %v24106_v1  ;;  %15569 = vmatprep.subr.bf16.mxu1 %v24106_v1 }
  0x82   :  { %15560 = vmatpush3.bf16.msra.mxu0 %v18074_v3  ;;  %15570 = vmatpush3.bf16.msra.mxu1 %v18074_v3 }
  0x83   :  { %15575 = vmatprep.subr.bf16.mxu0 %v24106_v1  ;;  %15585 = vmatprep.subr.bf16.mxu1 %v24106_v1 }
  0x85   :  { %15562 = vmatmul.mubr.msk.bf16.vlgmr.msra.gmra.mrb[40].mxu0 %vm267_vm1, %v60_v24  ;;  %15572 = vmatmul.mubr.msk.bf16.vlgmr.msra.gmra.mrb[40].mxu1 %vm267_vm1, %v61_v25 }
  0x86   :  { %15576 = vmatpush3.bf16.msra.mxu0 %v18052_v0  ;;  %15586 = vmatpush3.bf16.msra.mxu1 %v18052_v0 }
  0x87   :  { %15577 = vmatprep.subr.bf16.mxu0 %v24106_v1  ;;  %15587 = vmatprep.subr.bf16.mxu1 %v24106_v1 }
  0x88   :  { %15581 = vmatprep.mubr.msk.bf16.mxu0 %vm17980_vm0, %v24106_v1  ;;  %15591 = vmatprep.mubr.msk.bf16.mxu1 %vm17980_vm0, %v24106_v1 }
  0x8a   :  { %15578 = vmatpush3.bf16.msra.mxu0 %v18061_v2  ;;  %15588 = vmatpush3.bf16.msra.mxu1 %v18061_v2 }
  0x8b   :  { %15579 = vmatprep.subr.bf16.mxu0 %v24106_v1  ;;  %15589 = vmatprep.subr.bf16.mxu1 %v24106_v1 }
  0x8e   :  { %15580 = vmatpush3.bf16.msra.mxu0 %v18074_v3  ;;  %15590 = vmatpush3.bf16.msra.mxu1 %v18074_v3 }
  0x8f   :  { %15595 = vmatprep.subr.bf16.mxu0 %v24106_v1  ;;  %15605 = vmatprep.subr.bf16.mxu1 %v24106_v1 }
  0x91   :  { %15582 = vmatmul.mubr.msk.bf16.vlgmr.msra.gmra.mrb[44].mxu0 %vm267_vm1, %v62_v26  ;;  %15592 = vmatmul.mubr.msk.bf16.vlgmr.msra.gmra.mrb[44].mxu1 %vm267_vm1, %v63_v27 }
  0x92   :  { %15596 = vmatpush3.bf16.msra.mxu0 %v18052_v0  ;;  %15606 = vmatpush3.bf16.msra.mxu1 %v18052_v0 }
  0x93   :  { %15597 = vmatprep.subr.bf16.mxu0 %v24106_v1  ;;  %15607 = vmatprep.subr.bf16.mxu1 %v24106_v1 }
  0x94   :  { %15601 = vmatprep.mubr.msk.bf16.mxu0 %vm17980_vm0, %v24106_v1  ;;  %15611 = vmatprep.mubr.msk.bf16.mxu1 %vm17980_vm0, %v24106_v1 }
  0x96   :  { %15598 = vmatpush3.bf16.msra.mxu0 %v18061_v2  ;;  %15608 = vmatpush3.bf16.msra.mxu1 %v18061_v2 }
  0x97   :  { %15599 = vmatprep.subr.bf16.mxu0 %v24106_v1  ;;  %15609 = vmatprep.subr.bf16.mxu1 %v24106_v1 }
  0x9a   :  { %15600 = vmatpush3.bf16.msra.mxu0 %v18074_v3  ;;  %15610 = vmatpush3.bf16.msra.mxu1 %v18074_v3 }
  0x9b   :  { %15615 = vmatprep.subr.bf16.mxu0 %v24106_v1  ;;  %15625 = vmatprep.subr.bf16.mxu1 %v24106_v1 }
  0x9d   :  { %15602 = vmatmul.mubr.msk.bf16.vlgmr.msra.gmra.mrb[48].mxu0 %vm267_vm1, %v64_v28  ;;  %15612 = vmatmul.mubr.msk.bf16.vlgmr.msra.gmra.mrb[48].mxu1 %vm267_vm1, %v65_v29 }
  0x9e   :  { %15616 = vmatpush3.bf16.msra.mxu0 %v18052_v0  ;;  %15626 = vmatpush3.bf16.msra.mxu1 %v18052_v0 }
  0x9f   :  { %15617 = vmatprep.subr.bf16.mxu0 %v24106_v1  ;;  %15627 = vmatprep.subr.bf16.mxu1 %v24106_v1 }
  0xa0   :  { %15621 = vmatprep.mubr.msk.bf16.mxu0 %vm17980_vm0, %v24106_v1  ;;  %15631 = vmatprep.mubr.msk.bf16.mxu1 %vm17980_vm0, %v24106_v1 }
  0xa2   :  { %15618 = vmatpush3.bf16.msra.mxu0 %v18061_v2  ;;  %15628 = vmatpush3.bf16.msra.mxu1 %v18061_v2 }
  0xa3   :  { %15619 = vmatprep.subr.bf16.mxu0 %v24106_v1  ;;  %15629 = vmatprep.subr.bf16.mxu1 %v24106_v1 }
  0xa6   :  { %15620 = vmatpush3.bf16.msra.mxu0 %v18074_v3  ;;  %15630 = vmatpush3.bf16.msra.mxu1 %v18074_v3 }
  0xa7   :  { %15635 = vmatprep.subr.bf16.mxu0 %v24106_v1  ;;  %15645 = vmatprep.subr.bf16.mxu1 %v24106_v1 }
  0xa9   :  { %15622 = vmatmul.mubr.msk.bf16.vlgmr.msra.gmra.mrb[52].mxu0 %vm267_vm1, %v66_v30  ;;  %15632 = vmatmul.mubr.msk.bf16.vlgmr.msra.gmra.mrb[52].mxu1 %vm267_vm1, %v67_v31 }
  0xaa   :  { %15636 = vmatpush3.bf16.msra.mxu0 %v18052_v0  ;;  %15646 = vmatpush3.bf16.msra.mxu1 %v18052_v0 }
  0xab   :  { %15637 = vmatprep.subr.bf16.mxu0 %v24106_v1  ;;  %15647 = vmatprep.subr.bf16.mxu1 %v24106_v1 }
  0xac   :  { %15641 = vmatprep.mubr.msk.bf16.mxu0 %vm17980_vm0, %v24106_v1  ;;  %15651 = vmatprep.mubr.msk.bf16.mxu1 %vm17980_vm0, %v24106_v1 }
  0xae   :  { %15638 = vmatpush3.bf16.msra.mxu0 %v18061_v2  ;;  %15648 = vmatpush3.bf16.msra.mxu1 %v18061_v2 }
  0xaf   :  { %15639 = vmatprep.subr.bf16.mxu0 %v24106_v1  ;;  %15649 = vmatprep.subr.bf16.mxu1 %v24106_v1 }
  0xb2   :  { %15640 = vmatpush3.bf16.msra.mxu0 %v18074_v3  ;;  %15650 = vmatpush3.bf16.msra.mxu1 %v18074_v3 }
  0xb3   :  { %15655 = vmatprep.subr.bf16.mxu0 %v24106_v1  ;;  %15665 = vmatprep.subr.bf16.mxu1 %v24106_v1 }
  0xb5   :  { %15642 = vmatmul.mubr.msk.bf16.vlgmr.msra.gmra.mrb[56].mxu0 %vm267_vm1, %v68_v32  ;;  %15652 = vmatmul.mubr.msk.bf16.vlgmr.msra.gmra.mrb[56].mxu1 %vm267_vm1, %v69_v33  ;;  %v82_v33 = vld [vmem:[%s24085_s0 + $0x2d] sm:$0x1] }
  0xb6   :  { %15656 = vmatpush3.bf16.msra.mxu0 %v18052_v0  ;;  %15666 = vmatpush3.bf16.msra.mxu1 %v18052_v0 }
  0xb7   :  { %15657 = vmatprep.subr.bf16.mxu0 %v24106_v1  ;;  %15667 = vmatprep.subr.bf16.mxu1 %v24106_v1 }
  0xb8   :  { %15661 = vmatprep.mubr.msk.bf16.mxu0 %vm17980_vm0, %v24106_v1  ;;  %15671 = vmatprep.mubr.msk.bf16.mxu1 %vm17980_vm0, %v24106_v1 }
  0xba   :  { %15658 = vmatpush3.bf16.msra.mxu0 %v18061_v2  ;;  %15668 = vmatpush3.bf16.msra.mxu1 %v18061_v2 }
  0xbb   :  { %15659 = vmatprep.subr.bf16.mxu0 %v24106_v1  ;;  %15669 = vmatprep.subr.bf16.mxu1 %v24106_v1 }
  0xbe   :  { %15660 = vmatpush3.bf16.msra.mxu0 %v18074_v3  ;;  %15670 = vmatpush3.bf16.msra.mxu1 %v18074_v3 }
  0xbf   :  { %15675 = vmatprep.subr.bf16.mxu0 %v24106_v1  ;;  %15685 = vmatprep.subr.bf16.mxu1 %v24106_v1 }
  0xc1   :  { %15662 = vmatmul.mubr.msk.bf16.vlgmr.msra.gmra.mrb[60].mxu0 %vm267_vm1, %v70_v34  ;;  %15672 = vmatmul.mubr.msk.bf16.vlgmr.msra.gmra.mrb[60].mxu1 %vm267_vm1, %v71_v35 }
  0xc2   :  { %15676 = vmatpush3.bf16.msra.mxu0 %v18052_v0  ;;  %15686 = vmatpush3.bf16.msra.mxu1 %v18052_v0 }
  0xc3   :  { %15677 = vmatprep.subr.bf16.mxu0 %v24106_v1  ;;  %15687 = vmatprep.subr.bf16.mxu1 %v24106_v1 }
  0xc4   :  { %15681 = vmatprep.mubr.msk.bf16.mxu0 %vm17980_vm0, %v24106_v1  ;;  %15691 = vmatprep.mubr.msk.bf16.mxu1 %vm17980_vm0, %v24106_v1 }
  0xc6   :  { %15678 = vmatpush3.bf16.msra.mxu0 %v18061_v2  ;;  %15688 = vmatpush3.bf16.msra.mxu1 %v18061_v2 }
  0xc7   :  { %15679 = vmatprep.subr.bf16.mxu0 %v24106_v1  ;;  %15689 = vmatprep.subr.bf16.mxu1 %v24106_v1 }
  0xca   :  { %15680 = vmatpush3.bf16.msra.mxu0 %v18074_v3  ;;  %15690 = vmatpush3.bf16.msra.mxu1 %v18074_v3 }
  0xcb   :  { %15695 = vmatprep.subr.bf16.mxu0 %v24106_v1  ;;  %15705 = vmatprep.subr.bf16.mxu1 %v24106_v1 }
  0xcd   :  { %15682 = vmatmul.mubr.msk.bf16.vlgmr.msra.gmra.mrb[64].mxu0 %vm267_vm1, %v72_v36  ;;  %15692 = vmatmul.mubr.msk.bf16.vlgmr.msra.gmra.mrb[64].mxu1 %vm267_vm1, %v73_v37  ;;  %v83_v37 = vld [vmem:[%s24085_s0 + $0x2e] sm:$0x1] }
  0xce   :  { %15696 = vmatpush3.bf16.msra.mxu0 %v18052_v0  ;;  %15706 = vmatpush3.bf16.msra.mxu1 %v18052_v0 }
  0xcf   :  { %15697 = vmatprep.subr.bf16.mxu0 %v24106_v1  ;;  %15707 = vmatprep.subr.bf16.mxu1 %v24106_v1 }
  0xd0   :  { %15701 = vmatprep.mubr.msk.bf16.mxu0 %vm17980_vm0, %v24106_v1  ;;  %15711 = vmatprep.mubr.msk.bf16.mxu1 %vm17980_vm0, %v24106_v1 }
  0xd2   :  { %15698 = vmatpush3.bf16.msra.mxu0 %v18061_v2  ;;  %15708 = vmatpush3.bf16.msra.mxu1 %v18061_v2 }
  0xd3   :  { %15699 = vmatprep.subr.bf16.mxu0 %v24106_v1  ;;  %15709 = vmatprep.subr.bf16.mxu1 %v24106_v1 }
  0xd6   :  { %15700 = vmatpush3.bf16.msra.mxu0 %v18074_v3  ;;  %15710 = vmatpush3.bf16.msra.mxu1 %v18074_v3 }
  0xd7   :  { %15715 = vmatprep.subr.bf16.mxu0 %v24106_v1  ;;  %15725 = vmatprep.subr.bf16.mxu1 %v24106_v1 }
  0xd9   :  { %15702 = vmatmul.mubr.msk.bf16.vlgmr.msra.gmra.mrb[68].mxu0 %vm267_vm1, %v74_v38  ;;  %15712 = vmatmul.mubr.msk.bf16.vlgmr.msra.gmra.mrb[68].mxu1 %vm267_vm1, %v75_v39 }
  0xda   :  { %15716 = vmatpush3.bf16.msra.mxu0 %v18052_v0  ;;  %15726 = vmatpush3.bf16.msra.mxu1 %v18052_v0 }
  0xdb   :  { %15717 = vmatprep.subr.bf16.mxu0 %v24106_v1  ;;  %15727 = vmatprep.subr.bf16.mxu1 %v24106_v1 }
  0xdc   :  { %15721 = vmatprep.mubr.msk.bf16.mxu0 %vm17980_vm0, %v24106_v1  ;;  %15731 = vmatprep.mubr.msk.bf16.mxu1 %vm17980_vm0, %v24106_v1 }
  0xde   :  { %15718 = vmatpush3.bf16.msra.mxu0 %v18061_v2  ;;  %15728 = vmatpush3.bf16.msra.mxu1 %v18061_v2 }
  0xdf   :  { %15719 = vmatprep.subr.bf16.mxu0 %v24106_v1  ;;  %15729 = vmatprep.subr.bf16.mxu1 %v24106_v1 }
  0xe0   :  { %v18515_v41 = vpop.f32.mrb[0].mxu0  ;;  %v348_v42 = vpop.f32.mrb[0].mxu1 }
  0xe1   :  { %v349_v43 = vadd.f32 %v18511_v40, %v348_v42  ;;  %v15363_v44 = vpop.f32.mrb[1].mxu0  ;;  %v15373_v45 = vpop.f32.mrb[1].mxu1 }
  0xe2   :  { %v308_v46 = vpop.f32.mrb[2].mxu0  ;;  %15720 = vmatpush3.bf16.msra.mxu0 %v18074_v3  ;;  %15730 = vmatpush3.bf16.msra.mxu1 %v18074_v3  ;;  %v351_v47 = vpop.f32.mrb[2].mxu1 }
  0xe3   :  { %v15364_v50 = vpop.f32.mrb[3].mxu0  ;;  %v15374_v51 = vpop.f32.mrb[3].mxu1  ;;  %15735 = vmatprep.subr.bf16.mxu0 %v24106_v1  ;;  %15745 = vmatprep.subr.bf16.mxu1 %v24106_v1  ;;  %17420 = vtanh.f32 %v349_v43 }
  0xe4   :  { %v84_v51 = vld [vmem:[%s24085_s0 + $0x2f] sm:$0x1] }
  0xe5   :  { %15722 = vmatmul.mubr.msk.bf16.vlgmr.msra.gmra.mrb[72].mxu0 %vm267_vm1, %v76_v48  ;;  %15732 = vmatmul.mubr.msk.bf16.vlgmr.msra.gmra.mrb[72].mxu1 %vm267_vm1, %v77_v49 }
  0xe6   :  { %15736 = vmatpush3.bf16.msra.mxu0 %v18052_v0  ;;  %15746 = vmatpush3.bf16.msra.mxu1 %v18052_v0 }
  0xe7   :  { %15737 = vmatprep.subr.bf16.mxu0 %v24106_v1  ;;  %15747 = vmatprep.subr.bf16.mxu1 %v24106_v1 }
  0xe8   :  { %15751 = vmatprep.mubr.msk.bf16.mxu1 %vm17980_vm0, %v24106_v1  ;;  %15741 = vmatprep.mubr.msk.bf16.mxu0 %vm17980_vm0, %v24106_v1 }
  0xea   :  { %15738 = vmatpush3.bf16.msra.mxu0 %v18061_v2  ;;  %15748 = vmatpush3.bf16.msra.mxu1 %v18061_v2  ;;  %v79_v2 = vld [vmem:[%s24085_s0 + $0x29] sm:$0x1] }
  0xeb   :  { %15739 = vmatprep.subr.bf16.mxu0 %v24106_v1  ;;  %15749 = vmatprep.subr.bf16.mxu1 %v24106_v1 }
  0xec   :  { %v391_v52 = vpop.f32.mrb[4].mxu0  ;;  %v434_v53 = vpop.f32.mrb[4].mxu1 }
  0xed   :  { %v392_v54 = vadd.f32 %v18511_v40, %v391_v52  ;;  %v435_v55 = vadd.f32 %v18511_v40, %v434_v53  ;;  %v15383_v56 = vpop.f32.mrb[5].mxu0  ;;  %v15393_v57 = vpop.f32.mrb[5].mxu1 }
  0xee   :  { %v17421_v58 = vpop.eup %17420  ;;  %v394_v59 = vpop.f32.mrb[6].mxu0  ;;  %15740 = vmatpush3.bf16.msra.mxu0 %v18074_v3  ;;  %15750 = vmatpush3.bf16.msra.mxu1 %v18074_v3  ;;  %v18560_v3 = vld [vmem:[%s24086_s1] sm:$0xff]  }
  0xef   :  { %v437_v60 = vpop.f32.mrb[6].mxu1  ;;  %17422 = vtanh.f32 %v392_v54  ;;  %v15384_v62 = vpop.f32.mrb[7].mxu0  ;;  %v8893_v63 = vpack.c.bf16 %v17421_v58, %v17421_v58  ;;  %15755 = vmatprep.subr.bf16.mxu0 %v24106_v1  ;;  %15765 = vmatprep.subr.bf16.mxu1 %v24106_v1 }
  0xf0   :  { %v15394_v0 = vpop.f32.mrb[7].mxu1  ;;  %17424 = vtanh.f32 %v435_v55  ;;  %v85_v55 = vld [vmem:[%s24085_s0 + $0x30] sm:$0x1] }
  0xf1   :  { %9124 = vrot.lane.b32.xlu0 %v8893_v63, %s17981_s29  ;;  %15742 = vmatmul.mubr.msk.bf16.vlgmr.msra.gmra.mrb[76].mxu0 %vm267_vm1, %v78_v61 }
  0xf2   :  { %15752 = vmatmul.mubr.msk.bf16.vlgmr.msra.gmra.mrb[76].mxu1 %vm267_vm1, %v79_v2  ;;  %15756 = vmatpush3.bf16.msra.mxu0 %v18560_v3  ;;  %v86_v2 = vld [vmem:[%s24085_s0 + $0x31] sm:$0x1] }
  0xf3   :  { %15766 = vmatpush3.bf16.msra.mxu1 %v18560_v3  ;;  %15757 = vmatprep.subr.bf16.mxu0 %v24106_v1 }
  0xf4   :  { %15767 = vmatprep.subr.bf16.mxu1 %v24106_v1  ;;  %15761 = vmatprep.mubr.msk.bf16.mxu0 %vm17980_vm0, %v24106_v1 }
  0xf5   :  { %15771 = vmatprep.mubr.msk.bf16.mxu1 %vm17980_vm0, %v24106_v1 }
  0xf6   :  { %15758 = vmatpush3.bf16.msra.mxu0 %v18573_v4 }
  0xf7   :  { %15768 = vmatpush3.bf16.msra.mxu1 %v18573_v4  ;;  %15759 = vmatprep.subr.bf16.mxu0 %v24106_v1 }
  0xf8   :  { %v477_v5 = vpop.f32.mrb[8].mxu0  ;;  %v520_v6 = vpop.f32.mrb[8].mxu1  ;;  %15769 = vmatprep.subr.bf16.mxu1 %v24106_v1 }
  0xf9   :  { %v17423_v7 = vpop.eup %17422  ;;  %v478_v8 = vadd.f32 %v18511_v40, %v477_v5  ;;  %v521_v9 = vadd.f32 %v18511_v40, %v520_v6  ;;  %v15403_v10 = vpop.f32.mrb[9].mxu0 }
  0xfa   :  { %v15413_v11 = vpop.f32.mrb[9].mxu1  ;;  %v17425_v12 = vpop.eup %17424  ;;  %15760 = vmatpush3.bf16.msra.mxu0 %v18584_v14  ;;  %v18587_v16 = vpack.c.bf16 %v17423_v7, %v17423_v7 }
  0xfb   :  { %v480_v13 = vpop.f32.mrb[10].mxu0  ;;  %v523_v15 = vpop.f32.mrb[10].mxu1  ;;  %17426 = vtanh.f32 %v478_v8  ;;  %15770 = vmatpush3.bf16.msra.mxu1 %v18584_v14  ;;  %v8895_v19 = vpack.c.bf16 %v17425_v12, %v17425_v12  ;;  %15775 = vmatprep.subr.bf16.mxu0 %v24106_v1  ;;  %v87_v8 = vld [vmem:[%s24085_s0 + $0x32] sm:$0x1] }
  0xfc   :  { %v15404_v18 = vpop.f32.mrb[11].mxu0  ;;  %v15414_v20 = vpop.f32.mrb[11].mxu1  ;;  %17428 = vtanh.f32 %v521_v9  ;;  %9232 = vrot.lane.b32.xlu1 %v18587_v16, %s17982_s21  ;;  %15785 = vmatprep.subr.bf16.mxu1 %v24106_v1 }
  0xfd   :  { %9126 = vrot.lane.b32.xlu0 %v8895_v19, %s17981_s29  ;;  %15762 = vmatmul.mubr.msk.bf16.vlgmr.msra.gmra.mrb[80].mxu0 %vm267_vm1, %v80_v17  ;;  %v88_v17 = vld [vmem:[%s24085_s0 + $0x33] sm:$0x1]  ;;  %v89_v20 = vld [vmem:[%s24085_s0 + $0x34] sm:$0x1] }
  0xfe   :  { %15772 = vmatmul.mubr.msk.bf16.vlgmr.msra.gmra.mrb[80].mxu1 %vm267_vm1, %v81_v21  ;;  %15776 = vmatpush3.bf16.msra.mxu0 %v18560_v3 }
  0xff   :  { %15786 = vmatpush3.bf16.msra.mxu1 %v18560_v3  ;;  %15777 = vmatprep.subr.bf16.mxu0 %v24106_v1 }
 0x100   :  { %9310 = vrot.lane.b32.xlu1 %v8895_v19, %s17983_s22  ;;  %15787 = vmatprep.subr.bf16.mxu1 %v24106_v1 }
 0x101   :  { %15781 = vmatprep.mubr.msk.bf16.mxu0 %vm17980_vm0, %v24106_v1  ;;  %15791 = vmatprep.mubr.msk.bf16.mxu1 %vm17980_vm0, %v24106_v1 }
 0x102   :  { %15778 = vmatpush3.bf16.msra.mxu0 %v18573_v4 }
 0x103   :  { %15788 = vmatpush3.bf16.msra.mxu1 %v18573_v4  ;;  %15779 = vmatprep.subr.bf16.mxu0 %v24106_v1 }
 0x104   :  { %v563_v22 = vpop.f32.mrb[12].mxu0  ;;  %v606_v23 = vpop.f32.mrb[12].mxu1  ;;  %15789 = vmatprep.subr.bf16.mxu1 %v24106_v1 }
 0x105   :  { %v17427_v24 = vpop.eup %17426  ;;  %v564_v25 = vadd.f32 %v18511_v40, %v563_v22  ;;  %v607_v26 = vadd.f32 %v18511_v40, %v606_v23  ;;  %v15423_v27 = vpop.f32.mrb[13].mxu0 }
 0x106   :  { %v15433_v28 = vpop.f32.mrb[13].mxu1  ;;  %v17429_v29 = vpop.eup %17428  ;;  %15780 = vmatpush3.bf16.msra.mxu0 %v18584_v14  ;;  %v18619_v32 = vpack.c.bf16 %v17427_v24, %v17427_v24 }
 0x107   :  { %v566_v30 = vpop.f32.mrb[14].mxu0  ;;  %v609_v31 = vpop.f32.mrb[14].mxu1  ;;  %17430 = vtanh.f32 %v564_v25  ;;  %15790 = vmatpush3.bf16.msra.mxu1 %v18584_v14  ;;  %v8897_v35 = vpack.c.bf16 %v17429_v29, %v17429_v29  ;;  %15795 = vmatprep.subr.bf16.mxu0 %v24106_v1  ;;  %v90_v29 = vld [vmem:[%s24085_s0 + $0x35] sm:$0x1] }
 0x108   :  { %24140 = vst [vmem:[#allocation5_spill] sm:$0xff] %v18619_v32  ;;  %v15424_v34 = vpop.f32.mrb[15].mxu0  ;;  %v15434_v36 = vpop.f32.mrb[15].mxu1  ;;  %17432 = vtanh.f32 %v607_v26  ;;  %9234 = vrot.lane.b32.xlu0 %v18619_v32, %s17982_s21  ;;  %15805 = vmatprep.subr.bf16.mxu1 %v24106_v1 }
 0x109   :  { %9128 = vrot.lane.b32.xlu1 %v8897_v35, %s17981_s29  ;;  %15782 = vmatmul.mubr.msk.bf16.vlgmr.msra.gmra.mrb[84].mxu0 %vm267_vm1, %v82_v33  ;;  %v91_v33 = vld [vmem:[%s24085_s0 + $0x36] sm:$0x1] }
 0x10a   :  { %15792 = vmatmul.mubr.msk.bf16.vlgmr.msra.gmra.mrb[84].mxu1 %vm267_vm1, %v83_v37  ;;  %15796 = vmatpush3.bf16.msra.mxu0 %v18560_v3 }
 0x10b   :  { %15806 = vmatpush3.bf16.msra.mxu1 %v18560_v3  ;;  %15797 = vmatprep.subr.bf16.mxu0 %v24106_v1 }
 0x10c   :  { %9312 = vrot.lane.b32.xlu0 %v8897_v35, %s17983_s22  ;;  %15807 = vmatprep.subr.bf16.mxu1 %v24106_v1 }
 0x10d   :  { %15801 = vmatprep.mubr.msk.bf16.mxu0 %vm17980_vm0, %v24106_v1  ;;  %15811 = vmatprep.mubr.msk.bf16.mxu1 %vm17980_vm0, %v24106_v1 }
 0x10e   :  { %15798 = vmatpush3.bf16.msra.mxu0 %v18573_v4 }
 0x10f   :  { %15808 = vmatpush3.bf16.msra.mxu1 %v18573_v4  ;;  %15799 = vmatprep.subr.bf16.mxu0 %v24106_v1 }
 0x110   :  { %v649_v38 = vpop.f32.mrb[16].mxu0  ;;  %v692_v39 = vpop.f32.mrb[16].mxu1  ;;  %15809 = vmatprep.subr.bf16.mxu1 %v24106_v1 }
 0x111   :  { %v17431_v42 = vpop.eup %17430  ;;  %v650_v43 = vadd.f32 %v18511_v40, %v649_v38  ;;  %v693_v44 = vadd.f32 %v18511_v40, %v692_v39  ;;  %v15443_v45 = vpop.f32.mrb[17].mxu0 }
 0x112   :  { %v15453_v46 = vpop.f32.mrb[17].mxu1  ;;  %v17433_v47 = vpop.eup %17432  ;;  %15800 = vmatpush3.bf16.msra.mxu0 %v18584_v14  ;;  %v18651_v50 = vpack.c.bf16 %v17431_v42, %v17431_v42 }
 0x113   :  { %v652_v48 = vpop.f32.mrb[18].mxu0  ;;  %v695_v49 = vpop.f32.mrb[18].mxu1  ;;  %17434 = vtanh.f32 %v650_v43  ;;  %15810 = vmatpush3.bf16.msra.mxu1 %v18584_v14  ;;  %v8899_v53 = vpack.c.bf16 %v17433_v47, %v17433_v47  ;;  %15815 = vmatprep.subr.bf16.mxu0 %v24106_v1  ;;  %v92_v47 = vld [vmem:[%s24085_s0 + $0x37] sm:$0x1] }
 0x114   :  { %24141 = vst [vmem:[#allocation6_spill] sm:$0xff] %v18651_v50  ;;  %v15444_v52 = vpop.f32.mrb[19].mxu0  ;;  %v15454_v54 = vpop.f32.mrb[19].mxu1  ;;  %17436 = vtanh.f32 %v693_v44  ;;  %9236 = vrot.lane.b32.xlu1 %v18651_v50, %s17982_s21  ;;  %15825 = vmatprep.subr.bf16.mxu1 %v24106_v1 }
 0x115   :  { %9130 = vrot.lane.b32.xlu0 %v8899_v53, %s17981_s29  ;;  %15802 = vmatmul.mubr.msk.bf16.vlgmr.msra.gmra.mrb[88].mxu0 %vm267_vm1, %v84_v51  ;;  %v93_v51 = vld [vmem:[%s24085_s0 + $0x38] sm:$0x1] }
 0x116   :  { %15812 = vmatmul.mubr.msk.bf16.vlgmr.msra.gmra.mrb[88].mxu1 %vm267_vm1, %v85_v55  ;;  %15816 = vmatpush3.bf16.msra.mxu0 %v18560_v3 }
 0x117   :  { %15826 = vmatpush3.bf16.msra.mxu1 %v18560_v3  ;;  %15817 = vmatprep.subr.bf16.mxu0 %v24106_v1 }
 0x118   :  { %9314 = vrot.lane.b32.xlu1 %v8899_v53, %s17983_s22  ;;  %15827 = vmatprep.subr.bf16.mxu1 %v24106_v1 }
 0x119   :  { %15821 = vmatprep.mubr.msk.bf16.mxu0 %vm17980_vm0, %v24106_v1  ;;  %15831 = vmatprep.mubr.msk.bf16.mxu1 %vm17980_vm0, %v24106_v1 }
 0x11a   :  { %15818 = vmatpush3.bf16.msra.mxu0 %v18573_v4 }
 0x11b   :  { %15828 = vmatpush3.bf16.msra.mxu1 %v18573_v4  ;;  %15819 = vmatprep.subr.bf16.mxu0 %v24106_v1 }
 0x11c   :  { %v18679_v56 = vpop.f32.mrb[20].mxu0  ;;  %15829 = vmatprep.subr.bf16.mxu1 %v24106_v1  ;;  %v18682_v57 = vpop.f32.mrb[20].mxu1 }
 0x11d   :  { %v17435_v58 = vpop.eup %17434  ;;  %v15463_v59 = vpop.f32.mrb[21].mxu0 }
 0x11e   :  { %v15473_v60 = vpop.f32.mrb[21].mxu1  ;;  %v17437_v61 = vpop.eup %17436  ;;  %15820 = vmatpush3.bf16.msra.mxu0 %v18584_v14  ;;  %v18685_v0 = vpack.c.bf16 %v17435_v58, %v17435_v58 }
 0x11f   :  { %v738_v62 = vpop.f32.mrb[22].mxu0  ;;  %v781_v63 = vpop.f32.mrb[22].mxu1  ;;  %15830 = vmatpush3.bf16.msra.mxu1 %v18584_v14  ;;  %v8901_v6 = vpack.c.bf16 %v17437_v61, %v17437_v61  ;;  %15835 = vmatprep.subr.bf16.mxu0 %v24106_v1 }
 0x120   :  { %24142 = vst [vmem:[#allocation7_spill] sm:$0xff] %v18685_v0  ;;  %v15464_v5 = vpop.f32.mrb[23].mxu0  ;;  %v15474_v7 = vpop.f32.mrb[23].mxu1  ;;  %9238 = vrot.lane.b32.xlu0 %v18685_v0, %s17982_s21  ;;  %15845 = vmatprep.subr.bf16.mxu1 %v24106_v1 }
 0x121   :  { %9132 = vrot.lane.b32.xlu1 %v8901_v6, %s17981_s29  ;;  %15822 = vmatmul.mubr.msk.bf16.vlgmr.msra.gmra.mrb[92].mxu0 %vm267_vm1, %v86_v2 }
 0x122   :  { %15832 = vmatmul.mubr.msk.bf16.vlgmr.msra.gmra.mrb[92].mxu1 %vm267_vm1, %v87_v8  ;;  %15836 = vmatpush3.bf16.msra.mxu0 %v18560_v3 }
 0x123   :  { %15846 = vmatpush3.bf16.msra.mxu1 %v18560_v3  ;;  %15837 = vmatprep.subr.bf16.mxu0 %v24106_v1 }
 0x124   :  { %9316 = vrot.lane.b32.xlu0 %v8901_v6, %s17983_s22  ;;  %15847 = vmatprep.subr.bf16.mxu1 %v24106_v1  ;;  %v94_v6 = vld [vmem:[%s24085_s0 + $0x39] sm:$0x1] }
 0x125   :  { %15841 = vmatprep.mubr.msk.bf16.mxu0 %vm17980_vm0, %v24106_v1  ;;  %15851 = vmatprep.mubr.msk.bf16.mxu1 %vm17980_vm0, %v24106_v1 }
 0x126   :  { %15838 = vmatpush3.bf16.msra.mxu0 %v18573_v4 }
 0x127   :  { %15848 = vmatpush3.bf16.msra.mxu1 %v18573_v4  ;;  %15839 = vmatprep.subr.bf16.mxu0 %v24106_v1 }
 0x128   :  { %v18713_v9 = vpop.f32.mrb[24].mxu0  ;;  %15849 = vmatprep.subr.bf16.mxu1 %v24106_v1  ;;  %v18716_v10 = vpop.f32.mrb[24].mxu1 }
 0x129   :  { %v15483_v11 = vpop.f32.mrb[25].mxu0  ;;  %v15493_v12 = vpop.f32.mrb[25].mxu1 }
 0x12a   :  { %v824_v13 = vpop.f32.mrb[26].mxu0  ;;  %15840 = vmatpush3.bf16.msra.mxu0 %v18584_v14  ;;  %v867_v15 = vpop.f32.mrb[26].mxu1  ;;  %v95_v11 = vld [vmem:[%s24085_s0 + $0x3a] sm:$0x1] }
 0x12b   :  { %15850 = vmatpush3.bf16.msra.mxu1 %v18584_v14  ;;  %v15484_v18 = vpop.f32.mrb[27].mxu0  ;;  %v15494_v19 = vpop.f32.mrb[27].mxu1  ;;  %15855 = vmatprep.subr.bf16.mxu0 %v24106_v1 }
 0x12c   :  { %15865 = vmatprep.subr.bf16.mxu1 %v24106_v1 }
 0x12d   :  { %15842 = vmatmul.mubr.msk.bf16.vlgmr.msra.gmra.mrb[96].mxu0 %vm267_vm1, %v88_v17 }
 0x12e   :  { %15852 = vmatmul.mubr.msk.bf16.vlgmr.msra.gmra.mrb[96].mxu1 %vm267_vm1, %v89_v20  ;;  %15856 = vmatpush3.bf16.msra.mxu0 %v18560_v3 }
 0x12f   :  { %15866 = vmatpush3.bf16.msra.mxu1 %v18560_v3  ;;  %15857 = vmatprep.subr.bf16.mxu0 %v24106_v1 }
 0x130   :  { %15867 = vmatprep.subr.bf16.mxu1 %v24106_v1  ;;  %15861 = vmatprep.mubr.msk.bf16.mxu0 %vm17980_vm0, %v24106_v1 }
 0x131   :  { %15871 = vmatprep.mubr.msk.bf16.mxu1 %vm17980_vm0, %v24106_v1 }
 0x132   :  { %15858 = vmatpush3.bf16.msra.mxu0 %v18573_v4 }
 0x133   :  { %15868 = vmatpush3.bf16.msra.mxu1 %v18573_v4  ;;  %15859 = vmatprep.subr.bf16.mxu0 %v24106_v1 }
 0x134   :  { %v907_v21 = vpop.f32.mrb[28].mxu0  ;;  %15869 = vmatprep.subr.bf16.mxu1 %v24106_v1  ;;  %v950_v22 = vpop.f32.mrb[28].mxu1 }
 0x135   :  { %v908_v23 = vadd.f32 %v18511_v40, %v907_v21  ;;  %v15503_v24 = vpop.f32.mrb[29].mxu0  ;;  %v951_v25 = vadd.f32 %v18511_v40, %v950_v22  ;;  %v15513_v26 = vpop.f32.mrb[29].mxu1 }
 0x136   :  { %v910_v27 = vpop.f32.mrb[30].mxu0  ;;  %15860 = vmatpush3.bf16.msra.mxu0 %v18584_v14  ;;  %v953_v28 = vpop.f32.mrb[30].mxu1  ;;  %v96_v26 = vld [vmem:[%s24085_s0 + $0x3c] sm:$0x1] }
 0x137   :  { %17438 = vtanh.f32 %v908_v23  ;;  %15870 = vmatpush3.bf16.msra.mxu1 %v18584_v14  ;;  %v15504_v30 = vpop.f32.mrb[31].mxu0  ;;  %v15514_v31 = vpop.f32.mrb[31].mxu1  ;;  %15875 = vmatprep.subr.bf16.mxu0 %v24106_v1 }
 0x138   :  { %17440 = vtanh.f32 %v951_v25  ;;  %15885 = vmatprep.subr.bf16.mxu1 %v24106_v1  ;;  %v97_v30 = vld [vmem:[%s24085_s0 + $0x3d] sm:$0x1] }
 0x139   :  { %15862 = vmatmul.mubr.msk.bf16.vlgmr.msra.gmra.mrb[100].mxu0 %vm267_vm1, %v90_v29 }
 0x13a   :  { %15872 = vmatmul.mubr.msk.bf16.vlgmr.msra.gmra.mrb[100].mxu1 %vm267_vm1, %v91_v33  ;;  %15876 = vmatpush3.bf16.msra.mxu0 %v18560_v3 }
 0x13b   :  { %15886 = vmatpush3.bf16.msra.mxu1 %v18560_v3  ;;  %15877 = vmatprep.subr.bf16.mxu0 %v24106_v1 }
 0x13c   :  { %15887 = vmatprep.subr.bf16.mxu1 %v24106_v1  ;;  %15881 = vmatprep.mubr.msk.bf16.mxu0 %vm17980_vm0, %v24106_v1 }
 0x13d   :  { %15891 = vmatprep.mubr.msk.bf16.mxu1 %vm17980_vm0, %v24106_v1 }
 0x13e   :  { %15878 = vmatpush3.bf16.msra.mxu0 %v18573_v4 }
 0x13f   :  { %15888 = vmatpush3.bf16.msra.mxu1 %v18573_v4  ;;  %15879 = vmatprep.subr.bf16.mxu0 %v24106_v1 }
 0x140   :  { %v993_v34 = vpop.f32.mrb[32].mxu0  ;;  %15889 = vmatprep.subr.bf16.mxu1 %v24106_v1  ;;  %v1036_v35 = vpop.f32.mrb[32].mxu1 }
 0x141   :  { %v17439_v36 = vpop.eup %17438  ;;  %v994_v37 = vadd.f32 %v18511_v40, %v993_v34  ;;  %v15523_v38 = vpop.f32.mrb[33].mxu0  ;;  %v1037_v39 = vadd.f32 %v18511_v40, %v1036_v35 }
 0x142   :  { %v15533_v42 = vpop.f32.mrb[33].mxu1  ;;  %v17441_v43 = vpop.eup %17440  ;;  %15880 = vmatpush3.bf16.msra.mxu0 %v18584_v14  ;;  %v8906_v46 = vpack.c.bf16 %v17439_v36, %v17439_v36 }
 0x143   :  { %v996_v44 = vpop.f32.mrb[34].mxu0  ;;  %v1039_v45 = vpop.f32.mrb[34].mxu1  ;;  %17442 = vtanh.f32 %v994_v37  ;;  %15890 = vmatpush3.bf16.msra.mxu1 %v18584_v14  ;;  %15895 = vmatprep.subr.bf16.mxu0 %v24106_v1  ;;  %v8907_v52 = vpack.c.bf16 %v17441_v43, %v17441_v43 }
 0x144   :  { %v15524_v48 = vpop.f32.mrb[35].mxu0  ;;  %v15534_v49 = vpop.f32.mrb[35].mxu1  ;;  %17444 = vtanh.f32 %v1037_v39  ;;  %9418 = vrot.lane.b32.xlu1 %v8906_v46, %s17984_s13  ;;  %15905 = vmatprep.subr.bf16.mxu1 %v24106_v1  ;;  %v98_v45 = vld [vmem:[%s24085_s0 + $0x3e] sm:$0x1] }
 0x145   :  { %15882 = vmatmul.mubr.msk.bf16.vlgmr.msra.gmra.mrb[104].mxu0 %vm267_vm1, %v92_v47  ;;  %v99_v48 = vld [vmem:[%s24085_s0 + $0x3f] sm:$0x1] }
 0x146   :  { %15892 = vmatmul.mubr.msk.bf16.vlgmr.msra.gmra.mrb[104].mxu1 %vm267_vm1, %v93_v51  ;;  %15896 = vmatpush3.bf16.msra.mxu0 %v18560_v3 }
 0x147   :  { %15906 = vmatpush3.bf16.msra.mxu1 %v18560_v3  ;;  %15897 = vmatprep.subr.bf16.mxu0 %v24106_v1 }
 0x148   :  { %9526 = vrot.lane.b32.xlu1 %v8907_v52, %s17985_s14  ;;  %15907 = vmatprep.subr.bf16.mxu1 %v24106_v1 }
 0x149   :  { %15901 = vmatprep.mubr.msk.bf16.mxu0 %vm17980_vm0, %v24106_v1  ;;  %15911 = vmatprep.mubr.msk.bf16.mxu1 %vm17980_vm0, %v24106_v1 }
 0x14a   :  { %15898 = vmatpush3.bf16.msra.mxu0 %v18573_v4 }
 0x14b   :  { %15908 = vmatpush3.bf16.msra.mxu1 %v18573_v4  ;;  %15899 = vmatprep.subr.bf16.mxu0 %v24106_v1 }
 0x14c   :  { %v1079_v53 = vpop.f32.mrb[36].mxu0  ;;  %v1122_v54 = vpop.f32.mrb[36].mxu1  ;;  %15909 = vmatprep.subr.bf16.mxu1 %v24106_v1 }
 0x14d   :  { %v17443_v55 = vpop.eup %17442  ;;  %v1080_v58 = vadd.f32 %v18511_v40, %v1079_v53  ;;  %v1123_v59 = vadd.f32 %v18511_v40, %v1122_v54  ;;  %v15543_v60 = vpop.f32.mrb[37].mxu0 }
 0x14e   :  { %v15553_v61 = vpop.f32.mrb[37].mxu1  ;;  %v17445_v62 = vpop.eup %17444  ;;  %15900 = vmatpush3.bf16.msra.mxu0 %v18584_v14  ;;  %v8908_v5 = vpack.c.bf16 %v17443_v55, %v17443_v55 }
 0x14f   :  { %v1082_v63 = vpop.f32.mrb[38].mxu0  ;;  %v1125_v2 = vpop.f32.mrb[38].mxu1  ;;  %17446 = vtanh.f32 %v1080_v58  ;;  %15910 = vmatpush3.bf16.msra.mxu1 %v18584_v14  ;;  %15915 = vmatprep.subr.bf16.mxu0 %v24106_v1  ;;  %v8909_v12 = vpack.c.bf16 %v17445_v62, %v17445_v62  ;;  %v100_v61 = vld [vmem:[%s24085_s0 + $0x40] sm:$0x1] }
 0x150   :  { %v15544_v7 = vpop.f32.mrb[39].mxu0  ;;  %v15554_v8 = vpop.f32.mrb[39].mxu1  ;;  %17448 = vtanh.f32 %v1123_v59  ;;  %9604 = vrot.lane.b32.xlu1 %v8908_v5, %s17986_s19  ;;  %9420 = vrot.lane.b32.xlu0 %v8908_v5, %s17984_s13  ;;  %v101_v5 = vld [vmem:[%s24085_s0 + $0x41] sm:$0x1] }
 0x151   :  { %15902 = vmatmul.mubr.msk.bf16.vlgmr.msra.gmra.mrb[108].mxu0 %vm267_vm1, %v94_v6  ;;  %15925 = vmatprep.subr.bf16.mxu1 %v24106_v1 }
 0x152   :  { %15912 = vmatmul.mubr.msk.bf16.vlgmr.msra.gmra.mrb[108].mxu1 %vm267_vm1, %v95_v11  ;;  %15916 = vmatpush3.bf16.msra.mxu0 %v18560_v3 }
 0x153   :  { %15926 = vmatpush3.bf16.msra.mxu1 %v18560_v3  ;;  %15917 = vmatprep.subr.bf16.mxu0 %v24106_v1 }
 0x154   :  { %9682 = vrot.lane.b32.xlu1 %v8909_v12, %s17987_s20  ;;  %9528 = vrot.lane.b32.xlu0 %v8909_v12, %s17985_s14 }
 0x155   :  { %15927 = vmatprep.subr.bf16.mxu1 %v24106_v1  ;;  %15921 = vmatprep.mubr.msk.bf16.mxu0 %vm17980_vm0, %v24106_v1 }
 0x156   :  { %15918 = vmatpush3.bf16.msra.mxu0 %v18573_v4  ;;  %15931 = vmatprep.mubr.msk.bf16.mxu1 %vm17980_vm0, %v24106_v1 }
 0x157   :  { %15928 = vmatpush3.bf16.msra.mxu1 %v18573_v4  ;;  %15919 = vmatprep.subr.bf16.mxu0 %v24106_v1 }
 0x158   :  { %v1165_v13 = vpop.f32.mrb[40].mxu0  ;;  %15929 = vmatprep.subr.bf16.mxu1 %v24106_v1  ;;  %v1208_v15 = vpop.f32.mrb[40].mxu1 }
 0x159   :  { %v17447_v17 = vpop.eup %17446  ;;  %v1166_v18 = vadd.f32 %v18511_v40, %v1165_v13  ;;  %v15563_v19 = vpop.f32.mrb[41].mxu0  ;;  %v1209_v20 = vadd.f32 %v18511_v40, %v1208_v15  ;;  %v102_v15 = vld [vmem:[%s24085_s0 + $0x42] sm:$0x1] }
 0x15a   :  { %v15573_v21 = vpop.f32.mrb[41].mxu1  ;;  %v17449_v22 = vpop.eup %17448  ;;  %15920 = vmatpush3.bf16.msra.mxu0 %v18584_v14  ;;  %v8910_v25 = vpack.c.bf16 %v17447_v17, %v17447_v17  ;;  %v103_v19 = vld [vmem:[%s24085_s0 + $0x43] sm:$0x1] }
 0x15b   :  { %v1168_v23 = vpop.f32.mrb[42].mxu0  ;;  %v1211_v24 = vpop.f32.mrb[42].mxu1  ;;  %17450 = vtanh.f32 %v1166_v18  ;;  %15930 = vmatpush3.bf16.msra.mxu1 %v18584_v14  ;;  %v8911_v28 = vpack.c.bf16 %v17449_v22, %v17449_v22  ;;  %15935 = vmatprep.subr.bf16.mxu0 %v24106_v1 }
 0x15c   :  { %v15564_v27 = vpop.f32.mrb[43].mxu0  ;;  %v15574_v29 = vpop.f32.mrb[43].mxu1  ;;  %17452 = vtanh.f32 %v1209_v20  ;;  %9606 = vrot.lane.b32.xlu0 %v8910_v25, %s17986_s19  ;;  %15945 = vmatprep.subr.bf16.mxu1 %v24106_v1 }
 0x15d   :  { %9684 = vrot.lane.b32.xlu1 %v8911_v28, %s17987_s20  ;;  %15922 = vmatmul.mubr.msk.bf16.vlgmr.msra.gmra.mrb[112].mxu0 %vm267_vm1, %v96_v26  ;;  %v104_v27 = vld [vmem:[%s24085_s0 + $0x44] sm:$0x1] }
 0x15e   :  { %15932 = vmatmul.mubr.msk.bf16.vlgmr.msra.gmra.mrb[112].mxu1 %vm267_vm1, %v97_v30  ;;  %15936 = vmatpush3.bf16.msra.mxu0 %v18560_v3  ;;  %v105_v30 = vld [vmem:[%s24085_s0 + $0x45] sm:$0x1] }
 0x15f   :  { %15946 = vmatpush3.bf16.msra.mxu1 %v18560_v3  ;;  %15937 = vmatprep.subr.bf16.mxu0 %v24106_v1 }
 0x160   :  { %15947 = vmatprep.subr.bf16.mxu1 %v24106_v1  ;;  %15941 = vmatprep.mubr.msk.bf16.mxu0 %vm17980_vm0, %v24106_v1 }
 0x161   :  { %9422 = vrot.lane.b32.xlu1 %v8910_v25, %s17984_s13  ;;  %15951 = vmatprep.mubr.msk.bf16.mxu1 %vm17980_vm0, %v24106_v1 }
 0x162   :  { %15938 = vmatpush3.bf16.msra.mxu0 %v18573_v4 }
 0x163   :  { %15948 = vmatpush3.bf16.msra.mxu1 %v18573_v4  ;;  %15939 = vmatprep.subr.bf16.mxu0 %v24106_v1 }
 0x164   :  { %v1251_v31 = vpop.f32.mrb[44].mxu0  ;;  %v1294_v33 = vpop.f32.mrb[44].mxu1  ;;  %15949 = vmatprep.subr.bf16.mxu1 %v24106_v1 }
 0x165   :  { %v17451_v34 = vpop.eup %17450  ;;  %9530 = vrot.lane.b32.xlu1 %v8911_v28, %s17985_s14  ;;  %v1252_v35 = vadd.f32 %v18511_v40, %v1251_v31  ;;  %v15583_v36 = vpop.f32.mrb[45].mxu0  ;;  %v1295_v37 = vadd.f32 %v18511_v40, %v1294_v33 }
 0x166   :  { %v15593_v38 = vpop.f32.mrb[45].mxu1  ;;  %v17453_v39 = vpop.eup %17452  ;;  %15940 = vmatpush3.bf16.msra.mxu0 %v18584_v14  ;;  %v8912_v44 = vpack.c.bf16 %v17451_v34, %v17451_v34 }
 0x167   :  { %v1254_v42 = vpop.f32.mrb[46].mxu0  ;;  %v1297_v43 = vpop.f32.mrb[46].mxu1  ;;  %17454 = vtanh.f32 %v1252_v35  ;;  %15950 = vmatpush3.bf16.msra.mxu1 %v18584_v14  ;;  %15955 = vmatprep.subr.bf16.mxu0 %v24106_v1  ;;  %v8913_v49 = vpack.c.bf16 %v17453_v39, %v17453_v39  ;;  %v18981_v39 = vld [vmem:[%s24087_s2] ss:$0 sm:$0xff] }
 0x168   :  { %v15584_v46 = vpop.f32.mrb[47].mxu0  ;;  %v15594_v47 = vpop.f32.mrb[47].mxu1  ;;  %17456 = vtanh.f32 %v1295_v37  ;;  %9424 = vrot.lane.b32.xlu0 %v8912_v44, %s17984_s13  ;;  %15965 = vmatprep.subr.bf16.mxu1 %v24106_v1 }
 0x169   :  { %9608 = vrot.lane.b32.xlu1 %v8912_v44, %s17986_s19  ;;  %15942 = vmatmul.mubr.msk.bf16.vlgmr.msra.gmra.mrb[116].mxu0 %vm267_vm1, %v98_v45  ;;  %v106_v44 = vld [vmem:[%s24085_s0 + $0x46] sm:$0x1]  ;;  %v107_v47 = vld [vmem:[%s24085_s0 + $0x47] sm:$0x1] }
 0x16a   :  { %15952 = vmatmul.mubr.msk.bf16.vlgmr.msra.gmra.mrb[116].mxu1 %vm267_vm1, %v99_v48  ;;  %15956 = vmatpush3.bf16.msra.mxu0 %v18560_v3 }
 0x16b   :  { %15966 = vmatpush3.bf16.msra.mxu1 %v18560_v3  ;;  %15957 = vmatprep.subr.bf16.mxu0 %v24106_v1 }
 0x16c   :  { %9532 = vrot.lane.b32.xlu0 %v8913_v49, %s17985_s14  ;;  %15967 = vmatprep.subr.bf16.mxu1 %v24106_v1 }
 0x16d   :  { %9686 = vrot.lane.b32.xlu1 %v8913_v49, %s17987_s20  ;;  %15961 = vmatprep.mubr.msk.bf16.mxu0 %vm17980_vm0, %v24106_v1 }
 0x16e   :  { %15958 = vmatpush3.bf16.msra.mxu0 %v18573_v4  ;;  %15971 = vmatprep.mubr.msk.bf16.mxu1 %vm17980_vm0, %v24106_v1 }
 0x16f   :  { %15968 = vmatpush3.bf16.msra.mxu1 %v18573_v4  ;;  %15959 = vmatprep.subr.bf16.mxu0 %v24106_v1 }
 0x170   :  { %v18885_v51 = vpop.f32.mrb[48].mxu0  ;;  %15969 = vmatprep.subr.bf16.mxu1 %v24106_v1  ;;  %v18888_v52 = vpop.f32.mrb[48].mxu1 }
 0x171   :  { %v17455_v53 = vpop.eup %17454  ;;  %v15603_v54 = vpop.f32.mrb[49].mxu0 }
 0x172   :  { %v15613_v55 = vpop.f32.mrb[49].mxu1  ;;  %v17457_v58 = vpop.eup %17456  ;;  %15960 = vmatpush3.bf16.msra.mxu0 %v18584_v14  ;;  %v18891_v60 = vpack.c.bf16 %v17455_v53, %v17455_v53 }
 0x173   :  { %v1340_v59 = vpop.f32.mrb[50].mxu0  ;;  %15970 = vmatpush3.bf16.msra.mxu1 %v18584_v14  ;;  %v1383_v63 = vpop.f32.mrb[50].mxu1  ;;  %15975 = vmatprep.subr.bf16.mxu0 %v24106_v1  ;;  %v18898_v2 = vpack.c.bf16 %v17457_v58, %v17457_v58 }
 0x174   :  { %v15604_v62 = vpop.f32.mrb[51].mxu0  ;;  %9610 = vrot.lane.b32.xlu0 %v18891_v60, %s17986_s19  ;;  %v15614_v6 = vpop.f32.mrb[51].mxu1  ;;  %15985 = vmatprep.subr.bf16.mxu1 %v24106_v1 }
 0x175   :  { %15962 = vmatmul.mubr.msk.bf16.vlgmr.msra.gmra.mrb[120].mxu0 %vm267_vm1, %v100_v61  ;;  %9688 = vrot.lane.b32.xlu1 %v18898_v2, %s17987_s20 }
 0x176   :  { %15972 = vmatmul.mubr.msk.bf16.vlgmr.msra.gmra.mrb[120].mxu1 %vm267_vm1, %v101_v5  ;;  %15976 = vmatpush3.bf16.msra.mxu0 %v18560_v3  ;;  %v108_v5 = vld [vmem:[%s24085_s0 + $0x48] sm:$0x1] }
 0x177   :  { %15986 = vmatpush3.bf16.msra.mxu1 %v18560_v3  ;;  %15977 = vmatprep.subr.bf16.mxu0 %v24106_v1 }
 0x178   :  { %15987 = vmatprep.subr.bf16.mxu1 %v24106_v1  ;;  %15981 = vmatprep.mubr.msk.bf16.mxu0 %vm17980_vm0, %v24106_v1 }
 0x179   :  { %15991 = vmatprep.mubr.msk.bf16.mxu1 %vm17980_vm0, %v24106_v1 }
 0x17a   :  { %15978 = vmatpush3.bf16.msra.mxu0 %v18573_v4 }
 0x17b   :  { %15988 = vmatpush3.bf16.msra.mxu1 %v18573_v4  ;;  %15979 = vmatprep.subr.bf16.mxu0 %v24106_v1 }
 0x17c   :  { %v18921_v7 = vpop.f32.mrb[52].mxu0  ;;  %15989 = vmatprep.subr.bf16.mxu1 %v24106_v1  ;;  %v18924_v8 = vpop.f32.mrb[52].mxu1 }
 0x17d   :  { %v15623_v11 = vpop.f32.mrb[53].mxu0  ;;  %v15633_v12 = vpop.f32.mrb[53].mxu1 }
 0x17e   :  { %15980 = vmatpush3.bf16.msra.mxu0 %v18584_v14  ;;  %v1426_v13 = vpop.f32.mrb[54].mxu0  ;;  %v1469_v18 = vpop.f32.mrb[54].mxu1 }
 0x17f   :  { %15990 = vmatpush3.bf16.msra.mxu1 %v18584_v14  ;;  %v15624_v17 = vpop.f32.mrb[55].mxu0  ;;  %15995 = vmatprep.subr.bf16.mxu0 %v24106_v1  ;;  %v15634_v20 = vpop.f32.mrb[55].mxu1  ;;  %v109_v13 = vld [vmem:[%s24085_s0 + $0x49] sm:$0x1] }
 0x180   :  { %16005 = vmatprep.subr.bf16.mxu1 %v24106_v1 }
 0x181   :  { %15982 = vmatmul.mubr.msk.bf16.vlgmr.msra.gmra.mrb[124].mxu0 %vm267_vm1, %v102_v15 }
 0x182   :  { %15992 = vmatmul.mubr.msk.bf16.vlgmr.msra.gmra.mrb[124].mxu1 %vm267_vm1, %v103_v19  ;;  %15996 = vmatpush3.bf16.msra.mxu0 %v18560_v3 }
 0x183   :  { %16006 = vmatpush3.bf16.msra.mxu1 %v18560_v3  ;;  %15997 = vmatprep.subr.bf16.mxu0 %v24106_v1 }
 0x184   :  { %16007 = vmatprep.subr.bf16.mxu1 %v24106_v1  ;;  %16001 = vmatprep.mubr.msk.bf16.mxu0 %vm17980_vm0, %v24106_v1 }
 0x185   :  { %16011 = vmatprep.mubr.msk.bf16.mxu1 %vm17980_vm0, %v24106_v1 }
 0x186   :  { %15998 = vmatpush3.bf16.msra.mxu0 %v18573_v4 }
 0x187   :  { %16008 = vmatpush3.bf16.msra.mxu1 %v18573_v4  ;;  %15999 = vmatprep.subr.bf16.mxu0 %v24106_v1 }
 0x188   :  { %v18949_v21 = vpop.f32.mrb[56].mxu0  ;;  %v1552_v22 = vpop.f32.mrb[56].mxu1  ;;  %16009 = vmatprep.subr.bf16.mxu1 %v24106_v1 }
 0x189   :  { %v1553_v23 = vadd.f32 %v18511_v40, %v1552_v22  ;;  %v15643_v24 = vpop.f32.mrb[57].mxu0  ;;  %v15653_v25 = vpop.f32.mrb[57].mxu1 }
 0x18a   :  { %16000 = vmatpush3.bf16.msra.mxu0 %v18584_v14  ;;  %v1512_v26 = vpop.f32.mrb[58].mxu0  ;;  %v1555_v29 = vpop.f32.mrb[58].mxu1 }
 0x18b   :  { %16010 = vmatpush3.bf16.msra.mxu1 %v18584_v14  ;;  %v15644_v28 = vpop.f32.mrb[59].mxu0  ;;  %16015 = vmatprep.subr.bf16.mxu0 %v24106_v1  ;;  %17458 = vtanh.f32 %v1553_v23  ;;  %v15654_v31 = vpop.f32.mrb[59].mxu1  ;;  %v110_v29 = vld [vmem:[%s24085_s0 + $0x4b] sm:$0x1] }
 0x18c   :  { %16025 = vmatprep.subr.bf16.mxu1 %v24106_v1 }
 0x18d   :  { %16002 = vmatmul.mubr.msk.bf16.vlgmr.msra.gmra.mrb[128].mxu0 %vm267_vm1, %v104_v27 }
 0x18e   :  { %16012 = vmatmul.mubr.msk.bf16.vlgmr.msra.gmra.mrb[128].mxu1 %vm267_vm1, %v105_v30  ;;  %16016 = vmatpush3.bf16.msra.mxu0 %v18560_v3  ;;  %v19057_v30 = vld [vmem:[%s24086_s1 + $0x10] sm:$0xff]  }
 0x18f   :  { %16026 = vmatpush3.bf16.msra.mxu1 %v18560_v3  ;;  %16017 = vmatprep.subr.bf16.mxu0 %v24106_v1 }
 0x190   :  { %16027 = vmatprep.subr.bf16.mxu1 %v24106_v1  ;;  %16021 = vmatprep.mubr.msk.bf16.mxu0 %vm17980_vm0, %v24106_v1 }
 0x191   :  { %16031 = vmatprep.mubr.msk.bf16.mxu1 %vm17980_vm0, %v24106_v1 }
 0x192   :  { %16018 = vmatpush3.bf16.msra.mxu0 %v18573_v4 }
 0x193   :  { %16028 = vmatpush3.bf16.msra.mxu1 %v18573_v4  ;;  %16019 = vmatprep.subr.bf16.mxu0 %v24106_v1 }
 0x194   :  { %v1595_v33 = vpop.f32.mrb[60].mxu0  ;;  %v1638_v34 = vpop.f32.mrb[60].mxu1  ;;  %16029 = vmatprep.subr.bf16.mxu1 %v24106_v1 }
 0x195   :  { %v1639_v35 = vadd.f32 %v18511_v40, %v1638_v34  ;;  %v15663_v36 = vpop.f32.mrb[61].mxu0  ;;  %v15673_v37 = vpop.f32.mrb[61].mxu1  ;;  %v1596_v42 = vadd.f32 %v18981_v39, %v1595_v33 }
 0x196   :  { %v17459_v38 = vpop.eup %17458  ;;  %16020 = vmatpush3.bf16.msra.mxu0 %v18584_v14  ;;  %v1598_v43 = vpop.f32.mrb[62].mxu0 }
 0x197   :  { %16030 = vmatpush3.bf16.msra.mxu1 %v18584_v14  ;;  %v15664_v40 = vpop.f32.mrb[63].mxu0  ;;  %v1641_v45 = vpop.f32.mrb[62].mxu1  ;;  %v8921_v46 = vpack.c.bf16 %v17459_v38, %v17459_v38  ;;  %16035 = vmatprep.subr.bf16.mxu0 %v24106_v1  ;;  %17460 = vtanh.f32 %v1639_v35  ;;  %v19072_v35 = vld [vmem:[%s24086_s1] sm:$0xff]  }
 0x198   :  { %v15674_v48 = vpop.f32.mrb[63].mxu1  ;;  %16045 = vmatprep.subr.bf16.mxu1 %v24106_v1  ;;  %17462 = vtanh.f32 %v1596_v42 }
 0x199   :  { %9136 = vrot.lane.b32.xlu0 %v8921_v46, %s17981_s29  ;;  %16022 = vmatmul.mubr.msk.bf16.vlgmr.msra.gmra.mrb[132].mxu0 %vm267_vm1, %v106_v44  ;;  %v112_v48 = vld [vmem:[%s24085_s0 + $0x4d] sm:$0x1] }
 0x19a   :  { %16032 = vmatmul.mubr.msk.bf16.vlgmr.msra.gmra.mrb[132].mxu1 %vm267_vm1, %v107_v47  ;;  %16036 = vmatpush3.bf16.msra.mxu0 %v18560_v3 }
 0x19b   :  { %16046 = vmatpush3.bf16.msra.mxu1 %v18560_v3  ;;  %16037 = vmatprep.subr.bf16.mxu0 %v24106_v1 }
 0x19c   :  { %16047 = vmatprep.subr.bf16.mxu1 %v24106_v1  ;;  %16041 = vmatprep.mubr.msk.bf16.mxu0 %vm17980_vm0, %v24106_v1 }
 0x19d   :  { %16051 = vmatprep.mubr.msk.bf16.mxu1 %vm17980_vm0, %v24106_v1 }
 0x19e   :  { %16038 = vmatpush3.bf16.msra.mxu0 %v18573_v4 }
 0x19f   :  { %16048 = vmatpush3.bf16.msra.mxu1 %v18573_v4  ;;  %16039 = vmatprep.subr.bf16.mxu0 %v24106_v1 }
 0x1a0   :  { %v1681_v49 = vpop.f32.mrb[64].mxu0  ;;  %16049 = vmatprep.subr.bf16.mxu1 %v24106_v1  ;;  %v1724_v53 = vpop.f32.mrb[64].mxu1 }
 0x1a1   :  { %v1682_v54 = vadd.f32 %v18981_v39, %v1681_v49  ;;  %v15683_v55 = vpop.f32.mrb[65].mxu0  ;;  %v1725_v58 = vadd.f32 %v18981_v39, %v1724_v53  ;;  %v15693_v59 = vpop.f32.mrb[65].mxu1 }
 0x1a2   :  { %v17461_v61 = vpop.eup %17460  ;;  %v1684_v62 = vpop.f32.mrb[66].mxu0  ;;  %16040 = vmatpush3.bf16.msra.mxu0 %v18584_v14  ;;  %v113_v55 = vld [vmem:[%s24085_s0 + $0x4e] sm:$0x1] }
 0x1a3   :  { %v1727_v63 = vpop.f32.mrb[66].mxu1  ;;  %17464 = vtanh.f32 %v1682_v54  ;;  %16050 = vmatpush3.bf16.msra.mxu1 %v18584_v14  ;;  %v15684_v6 = vpop.f32.mrb[67].mxu0  ;;  %v8923_v11 = vpack.c.bf16 %v17461_v61, %v17461_v61  ;;  %16055 = vmatprep.subr.bf16.mxu0 %v24106_v1 }
 0x1a4   :  { %v15694_v12 = vpop.f32.mrb[67].mxu1  ;;  %v17463_v15 = vpop.eup %17462  ;;  %17466 = vtanh.f32 %v1725_v58  ;;  %16065 = vmatprep.subr.bf16.mxu1 %v24106_v1 }
 0x1a5   :  { %9138 = vrot.lane.b32.xlu1 %v8923_v11, %s17981_s29  ;;  %16042 = vmatmul.mubr.msk.bf16.vlgmr.msra.gmra.mrb[136].mxu0 %vm267_vm1, %v108_v5  ;;  %v19026_v17 = vpack.c.bf16 %v17463_v15, %v17463_v15  ;;  %v114_v12 = vld [vmem:[%s24085_s0 + $0x4f] sm:$0x1] }
 0x1a6   :  { %16052 = vmatmul.mubr.msk.bf16.vlgmr.msra.gmra.mrb[136].mxu1 %vm267_vm1, %v109_v13  ;;  %16056 = vmatpush3.bf16.msra.mxu0 %v18560_v3 }
 0x1a7   :  { %16066 = vmatpush3.bf16.msra.mxu1 %v18560_v3  ;;  %16057 = vmatprep.subr.bf16.mxu0 %v24106_v1  ;;  %v19040_v3 = vld [vmem:[%s24086_s1 + $0x8] sm:$0xff]  }
 0x1a8   :  { %16067 = vmatprep.subr.bf16.mxu1 %v24106_v1  ;;  %16061 = vmatprep.mubr.msk.bf16.mxu0 %vm17980_vm0, %v24106_v1 }
 0x1a9   :  { %9244 = vrot.lane.b32.xlu1 %v19026_v17, %s17982_s21  ;;  %16071 = vmatprep.mubr.msk.bf16.mxu1 %vm17980_vm0, %v24106_v1 }
 0x1aa   :  { %16058 = vmatpush3.bf16.msra.mxu0 %v18573_v4 }
 0x1ab   :  { %16068 = vmatpush3.bf16.msra.mxu1 %v19040_v3  ;;  %16059 = vmatprep.subr.bf16.mxu0 %v24106_v1 }
 0x1ac   :  { %v1810_v18 = vpop.f32.mrb[68].mxu1  ;;  %v1767_v19 = vpop.f32.mrb[68].mxu0  ;;  %16069 = vmatprep.subr.bf16.mxu1 %v24106_v1 }
 0x1ad   :  { %v17465_v20 = vpop.eup %17464  ;;  %v1811_v22 = vadd.f32 %v18981_v39, %v1810_v18  ;;  %9322 = vrot.lane.b32.xlu1 %v8923_v11, %s17983_s22  ;;  %v1768_v4 = vadd.f32 %v18981_v39, %v1767_v19  ;;  %v15703_v23 = vpop.f32.mrb[69].mxu0  ;;  %v115_v18 = vld [vmem:[%s24085_s0 + $0x50] sm:$0x1] }
 0x1ae   :  { %v15713_v24 = vpop.f32.mrb[69].mxu1  ;;  %v17467_v25 = vpop.eup %17466  ;;  %16060 = vmatpush3.bf16.msra.mxu0 %v18584_v14  ;;  %v19049_v28 = vpack.c.bf16 %v17465_v20, %v17465_v20  ;;  %v111_v14 = vld [vmem:[%s24085_s0 + $0x4c] sm:$0x1] }
 0x1af   :  { %v1770_v26 = vpop.f32.mrb[70].mxu0  ;;  %v1813_v27 = vpop.f32.mrb[70].mxu1  ;;  %17468 = vtanh.f32 %v1811_v22  ;;  %16070 = vmatpush3.bf16.msra.mxu1 %v19057_v30  ;;  %16075 = vmatprep.subr.bf16.mxu0 %v24106_v1  ;;  %v8925_v34 = vpack.c.bf16 %v17467_v25, %v17467_v25 }
 0x1b0   :  { %v15704_v31 = vpop.f32.mrb[71].mxu0  ;;  %v15714_v33 = vpop.f32.mrb[71].mxu1  ;;  %17470 = vtanh.f32 %v1768_v4  ;;  %9246 = vrot.lane.b32.xlu0 %v19049_v28, %s17982_s21  ;;  %16085 = vmatprep.subr.bf16.mxu1 %v24106_v1 }
 0x1b1   :  { %16062 = vmatmul.mubr.msk.bf16.vlgmr.msra.gmra.mrb[140].mxu0 %vm267_vm1, %v110_v29  ;;  %v116_v31 = vld [vmem:[%s24085_s0 + $0x51] sm:$0x1] }
 0x1b2   :  { %16072 = vmatmul.mubr.msk.bf16.vlgmr.msra.gmra.mrb[140].mxu1 %vm267_vm1, %v111_v14  ;;  %16076 = vmatpush3.bf16.msra.mxu0 %v19072_v35 }
 0x1b3   :  { %16086 = vmatpush3.bf16.msra.mxu1 %v19072_v35  ;;  %16077 = vmatprep.subr.bf16.mxu0 %v24106_v1 }
 0x1b4   :  { %9324 = vrot.lane.b32.xlu0 %v8925_v34, %s17983_s22  ;;  %16087 = vmatprep.subr.bf16.mxu1 %v24106_v1 }
 0x1b5   :  { %16081 = vmatprep.mubr.msk.bf16.mxu0 %vm17980_vm0, %v24106_v1  ;;  %16091 = vmatprep.mubr.msk.bf16.mxu1 %vm17980_vm0, %v24106_v1 }
 0x1b6   :  { %16078 = vmatpush3.bf16.msra.mxu0 %v19040_v3 }
 0x1b7   :  { %16088 = vmatpush3.bf16.msra.mxu1 %v19040_v3  ;;  %16079 = vmatprep.subr.bf16.mxu0 %v24106_v1 }
 0x1b8   :  { %9140 = vrot.lane.b32.xlu0 %v8925_v34, %s17981_s29  ;;  %v1853_v36 = vpop.f32.mrb[72].mxu0  ;;  %16089 = vmatprep.subr.bf16.mxu1 %v24106_v1  ;;  %v1896_v37 = vpop.f32.mrb[72].mxu1  ;;  %v117_v34 = vld [vmem:[%s24085_s0 + $0x52] sm:$0x1] }
 0x1b9   :  { %v17469_v38 = vpop.eup %17468  ;;  %v1854_v42 = vadd.f32 %v18981_v39, %v1853_v36  ;;  %v15723_v43 = vpop.f32.mrb[73].mxu0  ;;  %v1897_v44 = vadd.f32 %v18981_v39, %v1896_v37 }
 0x1ba   :  { %v15733_v40 = vpop.f32.mrb[73].mxu1  ;;  %v17471_v45 = vpop.eup %17470  ;;  %16080 = vmatpush3.bf16.msra.mxu0 %v19057_v30  ;;  %v8927_v47 = vpack.c.bf16 %v17469_v38, %v17469_v38 }
 0x1bb   :  { %v1856_v46 = vpop.f32.mrb[74].mxu0  ;;  %17472 = vtanh.f32 %v1854_v42  ;;  %16090 = vmatpush3.bf16.msra.mxu1 %v19057_v30  ;;  %v1899_v53 = vpop.f32.mrb[74].mxu1  ;;  %v19095_v54 = vpack.c.bf16 %v17471_v45, %v17471_v45  ;;  %16095 = vmatprep.subr.bf16.mxu0 %v24106_v1 }
 0x1bc   :  { %v15724_v49 = vpop.f32.mrb[75].mxu0  ;;  %17474 = vtanh.f32 %v1897_v44  ;;  %9142 = vrot.lane.b32.xlu0 %v8927_v47, %s17981_s29  ;;  %v15734_v58 = vpop.f32.mrb[75].mxu1  ;;  %16105 = vmatprep.subr.bf16.mxu1 %v24106_v1  ;;  %v118_v46 = vld [vmem:[%s24085_s0 + $0x53] sm:$0x1] }
 0x1bd   :  { %9248 = vrot.lane.b32.xlu1 %v19095_v54, %s17982_s21  ;;  %16082 = vmatmul.mubr.msk.bf16.vlgmr.msra.gmra.mrb[144].mxu0 %vm267_vm1, %v112_v48  ;;  %v119_v48 = vld [vmem:[%s24085_s0 + $0x54] sm:$0x1] }
 0x1be   :  { %16092 = vmatmul.mubr.msk.bf16.vlgmr.msra.gmra.mrb[144].mxu1 %vm267_vm1, %v113_v55  ;;  %16096 = vmatpush3.bf16.msra.mxu0 %v19072_v35 }
 0x1bf   :  { %16106 = vmatpush3.bf16.msra.mxu1 %v19072_v35  ;;  %16097 = vmatprep.subr.bf16.mxu0 %v24106_v1 }
 0x1c0   :  { %16107 = vmatprep.subr.bf16.mxu1 %v24106_v1  ;;  %16101 = vmatprep.mubr.msk.bf16.mxu0 %vm17980_vm0, %v24106_v1 }
 0x1c1   :  { %9326 = vrot.lane.b32.xlu1 %v8927_v47, %s17983_s22  ;;  %16111 = vmatprep.mubr.msk.bf16.mxu1 %vm17980_vm0, %v24106_v1 }
 0x1c2   :  { %16098 = vmatpush3.bf16.msra.mxu0 %v19040_v3 }
 0x1c3   :  { %16108 = vmatpush3.bf16.msra.mxu1 %v19040_v3  ;;  %16099 = vmatprep.subr.bf16.mxu0 %v24106_v1 }
 0x1c4   :  { %v19119_v59 = vpop.f32.mrb[76].mxu0  ;;  %16109 = vmatprep.subr.bf16.mxu1 %v24106_v1 }
 0x1c5   :  { %v17473_v61 = vpop.eup %17472  ;;  %v1982_v62 = vpop.f32.mrb[76].mxu1 }
 0x1c6   :  { %v15743_v63 = vpop.f32.mrb[77].mxu0  ;;  %v17475_v5 = vpop.eup %17474  ;;  %v1983_v6 = vadd.f32 %v18981_v39, %v1982_v62  ;;  %16100 = vmatpush3.bf16.msra.mxu0 %v19057_v30  ;;  %v19124_v11 = vpack.c.bf16 %v17473_v61, %v17473_v61 }
 0x1c7   :  { %16110 = vmatpush3.bf16.msra.mxu1 %v19057_v30  ;;  %v1942_v13 = vpop.f32.mrb[78].mxu0  ;;  %v15753_v15 = vpop.f32.mrb[77].mxu1  ;;  %16115 = vmatprep.subr.bf16.mxu0 %v24106_v1  ;;  %v8929_v22 = vpack.c.bf16 %v17475_v5, %v17475_v5 }
 0x1c8   :  { %24143 = vst [vmem:[#allocation8_spill] sm:$0xff] %v19124_v11  ;;  %17476 = vtanh.f32 %v1983_v6  ;;  %v15744_v19 = vpop.f32.mrb[79].mxu0  ;;  %v1985_v20 = vpop.f32.mrb[78].mxu1  ;;  %9250 = vrot.lane.b32.xlu0 %v19124_v11, %s17982_s21  ;;  %16125 = vmatprep.subr.bf16.mxu1 %v24106_v1 }
 0x1c9   :  { %v15754_v4 = vpop.f32.mrb[79].mxu1  ;;  %16102 = vmatmul.mubr.msk.bf16.vlgmr.msra.gmra.mrb[148].mxu0 %vm267_vm1, %v114_v12  ;;  %v120_v19 = vld [vmem:[%s24085_s0 + $0x55] sm:$0x1] }
 0x1ca   :  { %16112 = vmatmul.mubr.msk.bf16.vlgmr.msra.gmra.mrb[148].mxu1 %vm267_vm1, %v115_v18  ;;  %16116 = vmatpush3.bf16.msra.mxu0 %v19072_v35  ;;  %v121_v4 = vld [vmem:[%s24085_s0 + $0x56] sm:$0x1] }
 0x1cb   :  { %16126 = vmatpush3.bf16.msra.mxu1 %v19072_v35  ;;  %16117 = vmatprep.subr.bf16.mxu0 %v24106_v1 }
 0x1cc   :  { %9328 = vrot.lane.b32.xlu0 %v8929_v22, %s17983_s22  ;;  %16127 = vmatprep.subr.bf16.mxu1 %v24106_v1 }
 0x1cd   :  { %16121 = vmatprep.mubr.msk.bf16.mxu0 %vm17980_vm0, %v24106_v1  ;;  %16131 = vmatprep.mubr.msk.bf16.mxu1 %vm17980_vm0, %v24106_v1 }
 0x1ce   :  { %16118 = vmatpush3.bf16.msra.mxu0 %v19040_v3 }
 0x1cf   :  { %16128 = vmatpush3.bf16.msra.mxu1 %v19040_v3  ;;  %16119 = vmatprep.subr.bf16.mxu0 %v24106_v1 }
 0x1d0   :  { %9144 = vrot.lane.b32.xlu0 %v8929_v22, %s17981_s29  ;;  %v19152_v23 = vpop.f32.mrb[80].mxu0  ;;  %16129 = vmatprep.subr.bf16.mxu1 %v24106_v1 }
 0x1d1   :  { %v15763_v24 = vpop.f32.mrb[81].mxu0  ;;  %v19155_v25 = vpop.f32.mrb[80].mxu1 }
 0x1d2   :  { %v17477_v26 = vpop.eup %17476  ;;  %16120 = vmatpush3.bf16.msra.mxu0 %v19057_v30  ;;  %v2028_v27 = vpop.f32.mrb[82].mxu0 }
 0x1d3   :  { %v15773_v29 = vpop.f32.mrb[81].mxu1  ;;  %16130 = vmatpush3.bf16.msra.mxu1 %v19057_v30  ;;  %v15764_v33 = vpop.f32.mrb[83].mxu0  ;;  %v19162_v14 = vpack.c.bf16 %v17477_v26, %v17477_v26  ;;  %16135 = vmatprep.subr.bf16.mxu0 %v24106_v1  ;;  %v1940_v27 = vadd.f32 %v18981_v39, %v19119_v59 }
 0x1d4   :  { %v2071_v36 = vpop.f32.mrb[82].mxu1  ;;  %16145 = vmatprep.subr.bf16.mxu1 %v24106_v1  ;;  %v736_v29 = vadd.f32 %v18981_v39, %v18679_v56 }
 0x1d5   :  { %9146 = vrot.lane.b32.xlu0 %v19162_v14, %s17981_s29  ;;  %v15774_v37 = vpop.f32.mrb[83].mxu1  ;;  %16122 = vmatmul.mubr.msk.bf16.vlgmr.msra.gmra.mrb[152].mxu0 %vm267_vm1, %v116_v31 }
 0x1d6   :  { %16132 = vmatmul.mubr.msk.bf16.vlgmr.msra.gmra.mrb[152].mxu1 %vm267_vm1, %v117_v34  ;;  %16136 = vmatpush3.bf16.msra.mxu0 %v19072_v35 }
 0x1d7   :  { %16146 = vmatpush3.bf16.msra.mxu1 %v19072_v35  ;;  %16137 = vmatprep.subr.bf16.mxu0 %v24106_v1 }
 0x1d8   :  { %16147 = vmatprep.subr.bf16.mxu1 %v24106_v1  ;;  %16141 = vmatprep.mubr.msk.bf16.mxu0 %vm17980_vm0, %v24106_v1 }
 0x1d9   :  { %16151 = vmatprep.mubr.msk.bf16.mxu1 %vm17980_vm0, %v24106_v1 }
 0x1da   :  { %16138 = vmatpush3.bf16.msra.mxu0 %v19040_v3 }
 0x1db   :  { %16148 = vmatpush3.bf16.msra.mxu1 %v19040_v3  ;;  %16139 = vmatprep.subr.bf16.mxu0 %v24106_v1 }
 0x1dc   :  { %v2111_v38 = vpop.f32.mrb[84].mxu0  ;;  %16149 = vmatprep.subr.bf16.mxu1 %v24106_v1 }
 0x1dd   :  { %v2112_v42 = vadd.f32 %v18981_v39, %v2111_v38  ;;  %v15783_v43 = vpop.f32.mrb[85].mxu0  ;;  %v2154_v44 = vpop.f32.mrb[84].mxu1 }
 0x1de   :  { %v2155_v40 = vadd.f32 %v18981_v39, %v2154_v44  ;;  %16140 = vmatpush3.bf16.msra.mxu0 %v19057_v30  ;;  %v2114_v45 = vpop.f32.mrb[86].mxu0  ;;  %v15793_v49 = vpop.f32.mrb[85].mxu1  ;;  %v122_v44 = vld [vmem:[%s24085_s0 + $0x57] sm:$0x1] }
 0x1df   :  { %17478 = vtanh.f32 %v2112_v42  ;;  %16150 = vmatpush3.bf16.msra.mxu1 %v19057_v30  ;;  %v15784_v47 = vpop.f32.mrb[87].mxu0  ;;  %16155 = vmatprep.subr.bf16.mxu0 %v24106_v1  ;;  %v2157_v53 = vpop.f32.mrb[86].mxu1  ;;  %v779_v49 = vadd.f32 %v18981_v39, %v18682_v57  ;;  %v2026_v57 = vadd.f32 %v18981_v39, %v19152_v23 }
 0x1e0   :  { %17480 = vtanh.f32 %v2155_v40  ;;  %16165 = vmatprep.subr.bf16.mxu1 %v24106_v1  ;;  %v15794_v55 = vpop.f32.mrb[87].mxu1 }
 0x1e1   :  { %16142 = vmatmul.mubr.msk.bf16.vlgmr.msra.gmra.mrb[156].mxu0 %vm267_vm1, %v118_v46  ;;  %v123_v46 = vld [vmem:[%s24085_s0 + $0x58] sm:$0x1] }
 0x1e2   :  { %16152 = vmatmul.mubr.msk.bf16.vlgmr.msra.gmra.mrb[156].mxu1 %vm267_vm1, %v119_v48  ;;  %16156 = vmatpush3.bf16.msra.mxu0 %v19072_v35 }
 0x1e3   :  { %16166 = vmatpush3.bf16.msra.mxu1 %v19072_v35  ;;  %16157 = vmatprep.subr.bf16.mxu0 %v24106_v1 }
 0x1e4   :  { %16167 = vmatprep.subr.bf16.mxu1 %v24106_v1  ;;  %16161 = vmatprep.mubr.msk.bf16.mxu0 %vm17980_vm0, %v24106_v1 }
 0x1e5   :  { %16171 = vmatprep.mubr.msk.bf16.mxu1 %vm17980_vm0, %v24106_v1 }
 0x1e6   :  { %16158 = vmatpush3.bf16.msra.mxu0 %v19040_v3 }
 0x1e7   :  { %16168 = vmatpush3.bf16.msra.mxu1 %v19040_v3  ;;  %16159 = vmatprep.subr.bf16.mxu0 %v24106_v1 }
 0x1e8   :  { %v2197_v58 = vpop.f32.mrb[88].mxu0  ;;  %16169 = vmatprep.subr.bf16.mxu1 %v24106_v1 }
 0x1e9   :  { %v17479_v61 = vpop.eup %17478  ;;  %v2198_v62 = vadd.f32 %v18981_v39, %v2197_v58  ;;  %v15803_v63 = vpop.f32.mrb[89].mxu0 }
 0x1ea   :  { %v2240_v5 = vpop.f32.mrb[88].mxu1  ;;  %v17481_v6 = vpop.eup %17480  ;;  %16160 = vmatpush3.bf16.msra.mxu0 %v19057_v30  ;;  %v8934_v18 = vpack.c.bf16 %v17479_v61, %v17479_v61 }
 0x1eb   :  { %v2200_v12 = vpop.f32.mrb[90].mxu0  ;;  %v2241_v13 = vadd.f32 %v18981_v39, %v2240_v5  ;;  %v15813_v15 = vpop.f32.mrb[89].mxu1  ;;  %17482 = vtanh.f32 %v2198_v62  ;;  %16170 = vmatpush3.bf16.msra.mxu1 %v19057_v30  ;;  %16175 = vmatprep.subr.bf16.mxu0 %v24106_v1  ;;  %v8935_v26 = vpack.c.bf16 %v17481_v6, %v17481_v6  ;;  %v822_v62 = vadd.f32 %v18981_v39, %v18713_v9  ;;  %v125_v9 = vld [vmem:[%s24085_s0 + $0x5b] sm:$0x1] }
 0x1ec   :  { %v15804_v20 = vpop.f32.mrb[91].mxu0  ;;  %v2243_v22 = vpop.f32.mrb[90].mxu1  ;;  %9430 = vrot.lane.b32.xlu1 %v8934_v18, %s17984_s13  ;;  %16185 = vmatprep.subr.bf16.mxu1 %v24106_v1 }
 0x1ed   :  { %17484 = vtanh.f32 %v2241_v13  ;;  %v15814_v24 = vpop.f32.mrb[91].mxu1  ;;  %16162 = vmatmul.mubr.msk.bf16.vlgmr.msra.gmra.mrb[160].mxu0 %vm267_vm1, %v120_v19  ;;  %v124_v19 = vld [vmem:[%s24085_s0 + $0x5a] sm:$0x1] }
 0x1ee   :  { %16172 = vmatmul.mubr.msk.bf16.vlgmr.msra.gmra.mrb[160].mxu1 %vm267_vm1, %v121_v4  ;;  %16176 = vmatpush3.bf16.msra.mxu0 %v19072_v35  ;;  %17486 = vtanh.f32 %v1940_v27  ;;  %v2069_v4 = vadd.f32 %v18981_v39, %v19155_v25 }
 0x1ef   :  { %16186 = vmatpush3.bf16.msra.mxu1 %v19072_v35  ;;  %16177 = vmatprep.subr.bf16.mxu0 %v24106_v1  ;;  %17488 = vtanh.f32 %v736_v29 }
 0x1f0   :  { %9538 = vrot.lane.b32.xlu1 %v8935_v26, %s17985_s14  ;;  %16187 = vmatprep.subr.bf16.mxu1 %v24106_v1 }
 0x1f1   :  { %16181 = vmatprep.mubr.msk.bf16.mxu0 %vm17980_vm0, %v24106_v1  ;;  %16191 = vmatprep.mubr.msk.bf16.mxu1 %vm17980_vm0, %v24106_v1 }
 0x1f2   :  { %16178 = vmatpush3.bf16.msra.mxu0 %v19040_v3 }
 0x1f3   :  { %16188 = vmatpush3.bf16.msra.mxu1 %v19040_v3  ;;  %16179 = vmatprep.subr.bf16.mxu0 %v24106_v1 }
 0x1f4   :  { %v2283_v59 = vpop.f32.mrb[92].mxu0  ;;  %16189 = vmatprep.subr.bf16.mxu1 %v24106_v1 }
 0x1f5   :  { %v17483_v31 = vpop.eup %17482  ;;  %v2284_v56 = vadd.f32 %v18981_v39, %v2283_v59  ;;  %v15823_v33 = vpop.f32.mrb[93].mxu0 }
 0x1f6   :  { %v2326_v34 = vpop.f32.mrb[92].mxu1  ;;  %v2286_v37 = vpop.f32.mrb[94].mxu0  ;;  %16180 = vmatpush3.bf16.msra.mxu0 %v19057_v30  ;;  %v8936_v43 = vpack.c.bf16 %v17483_v31, %v17483_v31 }
 0x1f7   :  { %v17485_v36 = vpop.eup %17484  ;;  %v2327_v38 = vadd.f32 %v18981_v39, %v2326_v34  ;;  %v15833_v42 = vpop.f32.mrb[93].mxu1  ;;  %17490 = vtanh.f32 %v2284_v56  ;;  %16190 = vmatpush3.bf16.msra.mxu1 %v19057_v30  ;;  %16195 = vmatprep.subr.bf16.mxu0 %v24106_v1 }
 0x1f8   :  { %v15824_v40 = vpop.f32.mrb[95].mxu0  ;;  %v2329_v45 = vpop.f32.mrb[94].mxu1  ;;  %9616 = vrot.lane.b32.xlu1 %v8936_v43, %s17986_s19  ;;  %9432 = vrot.lane.b32.xlu0 %v8936_v43, %s17984_s13  ;;  %v8937_v48 = vpack.c.bf16 %v17485_v36, %v17485_v36 }
 0x1f9   :  { %17492 = vtanh.f32 %v2327_v38  ;;  %v15834_v47 = vpop.f32.mrb[95].mxu1  ;;  %16182 = vmatmul.mubr.msk.bf16.vlgmr.msra.gmra.mrb[164].mxu0 %vm267_vm1, %v122_v44  ;;  %16205 = vmatprep.subr.bf16.mxu1 %v24106_v1  ;;  %v17487_v53 = vpop.eup %17486  ;;  %v126_v38 = vld [vmem:[%s24085_s0 + $0x5c] sm:$0x1]  ;;  %v127_v40 = vld [vmem:[%s24085_s0 + $0x5d] sm:$0x1] }
 0x1fa   :  { %16192 = vmatmul.mubr.msk.bf16.vlgmr.msra.gmra.mrb[164].mxu1 %vm267_vm1, %v123_v46  ;;  %16196 = vmatpush3.bf16.msra.mxu0 %v19072_v35  ;;  %17494 = vtanh.f32 %v779_v49  ;;  %v19272_v55 = vpack.c.bf16 %v17487_v53, %v17487_v53  ;;  %v17489_v58 = vpop.eup %17488  ;;  %v1338_v53 = vadd.f32 %v18981_v39, %v18885_v51 }
 0x1fb   :  { %16206 = vmatpush3.bf16.msra.mxu1 %v19072_v35  ;;  %16197 = vmatprep.subr.bf16.mxu0 %v24106_v1  ;;  %17496 = vtanh.f32 %v2026_v57  ;;  %v19284_v15 = vpack.c.bf16 %v17489_v58, %v17489_v58 }
 0x1fc   :  { %9694 = vrot.lane.b32.xlu1 %v8937_v48, %s17987_s20  ;;  %9540 = vrot.lane.b32.xlu0 %v8937_v48, %s17985_s14  ;;  %24144 = vst [vmem:[#allocation9_spill] sm:$0xff] %v19272_v55  ;;  %17498 = vtanh.f32 %v822_v62 }
 0x1fd   :  { %16207 = vmatprep.subr.bf16.mxu1 %v24106_v1  ;;  %16201 = vmatprep.mubr.msk.bf16.mxu0 %vm17980_vm0, %v24106_v1  ;;  %24145 = vst [vmem:[#allocation10_spill] sm:$0xff] %v19284_v15  ;;  %17500 = vtanh.f32 %v2069_v4 }
 0x1fe   :  { %16198 = vmatpush3.bf16.msra.mxu0 %v19040_v3  ;;  %16211 = vmatprep.mubr.msk.bf16.mxu1 %vm17980_vm0, %v24106_v1 }
 0x1ff   :  { %16208 = vmatpush3.bf16.msra.mxu1 %v19040_v3  ;;  %16199 = vmatprep.subr.bf16.mxu0 %v24106_v1 }
 0x200   :  { %9252 = vrot.lane.b32.xlu1 %v19272_v55, %s17982_s21  ;;  %v2369_v23 = vpop.f32.mrb[96].mxu0  ;;  %16209 = vmatprep.subr.bf16.mxu1 %v24106_v1 }
 0x201   :  { %v17491_v61 = vpop.eup %17490  ;;  %v15843_v63 = vpop.f32.mrb[97].mxu0  ;;  %v2370_v27 = vadd.f32 %v18981_v39, %v2369_v23 }
 0x202   :  { %v2412_v5 = vpop.f32.mrb[96].mxu1  ;;  %v2372_v12 = vpop.f32.mrb[98].mxu0  ;;  %16200 = vmatpush3.bf16.msra.mxu0 %v19057_v30  ;;  %v8938_v18 = vpack.c.bf16 %v17491_v61, %v17491_v61  ;;  %v865_v61 = vadd.f32 %v18981_v39, %v18716_v10  ;;  %v1381_v63 = vadd.f32 %v18981_v39, %v18888_v52  ;;  %v128_v10 = vld [vmem:[%s24085_s0 + $0x5e] sm:$0x1]  ;;  %v129_v52 = vld [vmem:[%s24085_s0 + $0x5f] sm:$0x1] }
 0x203   :  { %v17493_v6 = vpop.eup %17492  ;;  %v15853_v13 = vpop.f32.mrb[97].mxu1  ;;  %16210 = vmatpush3.bf16.msra.mxu1 %v19057_v30  ;;  %16215 = vmatprep.subr.bf16.mxu0 %v24106_v1  ;;  %17502 = vtanh.f32 %v2370_v27  ;;  %v2413_v25 = vadd.f32 %v18981_v39, %v2412_v5 }
 0x204   :  { %v15844_v20 = vpop.f32.mrb[99].mxu0  ;;  %v2415_v22 = vpop.f32.mrb[98].mxu1  ;;  %9240 = vrot.lane.b32.xlu1 %v19284_v15, %s17982_s21  ;;  %9618 = vrot.lane.b32.xlu0 %v8938_v18, %s17986_s19  ;;  %v8939_v26 = vpack.c.bf16 %v17493_v6, %v17493_v6 }
 0x205   :  { %v15854_v24 = vpop.f32.mrb[99].mxu1  ;;  %16202 = vmatmul.mubr.msk.bf16.vlgmr.msra.gmra.mrb[168].mxu0 %vm267_vm1, %v124_v19  ;;  %16225 = vmatprep.subr.bf16.mxu1 %v24106_v1  ;;  %v17495_v29 = vpop.eup %17494  ;;  %17504 = vtanh.f32 %v2413_v25 }
 0x206   :  { %16212 = vmatmul.mubr.msk.bf16.vlgmr.msra.gmra.mrb[168].mxu1 %vm267_vm1, %v125_v9  ;;  %16216 = vmatpush3.bf16.msra.mxu0 %v19072_v35  ;;  %v8903_v59 = vpack.c.bf16 %v17495_v29, %v17495_v29  ;;  %v17497_v31 = vpop.eup %17496 }
 0x207   :  { %16226 = vmatpush3.bf16.msra.mxu1 %v19072_v35  ;;  %16217 = vmatprep.subr.bf16.mxu0 %v24106_v1  ;;  %v8932_v37 = vpack.c.bf16 %v17497_v31, %v17497_v31  ;;  %v17499_v42 = vpop.eup %17498 }
 0x208   :  { %9330 = vrot.lane.b32.xlu1 %v19162_v14, %s17983_s22  ;;  %9696 = vrot.lane.b32.xlu0 %v8939_v26, %s17987_s20  ;;  %v17501_v47 = vpop.eup %17500  ;;  %v8904_v48 = vpack.c.bf16 %v17499_v42, %v17499_v42 }
 0x209   :  { %16227 = vmatprep.subr.bf16.mxu1 %v24106_v1  ;;  %16221 = vmatprep.mubr.msk.bf16.mxu0 %vm17980_vm0, %v24106_v1  ;;  %v8933_v58 = vpack.c.bf16 %v17501_v47, %v17501_v47 }
 0x20a   :  { %16218 = vmatpush3.bf16.msra.mxu0 %v19040_v3  ;;  %16231 = vmatprep.mubr.msk.bf16.mxu1 %vm17980_vm0, %v24106_v1 }
 0x20b   :  { %16228 = vmatpush3.bf16.msra.mxu1 %v19040_v3  ;;  %16219 = vmatprep.subr.bf16.mxu0 %v24106_v1 }
 0x20c   :  { %9318 = vrot.lane.b32.xlu1 %v8903_v59, %s17983_s22  ;;  %9134 = vrot.lane.b32.xlu0 %v8903_v59, %s17981_s29  ;;  %v2455_v14 = vpop.f32.mrb[100].mxu0 }
 0x20d   :  { %v15863_v56 = vpop.f32.mrb[101].mxu0  ;;  %16229 = vmatprep.subr.bf16.mxu1 %v24106_v1  ;;  %v2498_v33 = vpop.f32.mrb[100].mxu1  ;;  %v2456_v46 = vadd.f32 %v18981_v39, %v2455_v14 }
 0x20e   :  { %v2458_v34 = vpop.f32.mrb[102].mxu0  ;;  %16220 = vmatpush3.bf16.msra.mxu0 %v19057_v30  ;;  %v15873_v36 = vpop.f32.mrb[101].mxu1  ;;  %v2499_v57 = vadd.f32 %v18981_v39, %v2498_v33 }
 0x20f   :  { %16230 = vmatpush3.bf16.msra.mxu1 %v19057_v30  ;;  %v15864_v43 = vpop.f32.mrb[103].mxu0  ;;  %v2501_v44 = vpop.f32.mrb[102].mxu1  ;;  %16235 = vmatprep.subr.bf16.mxu0 %v24106_v1  ;;  %17506 = vtanh.f32 %v2456_v46 }
 0x210   :  { %9434 = vrot.lane.b32.xlu1 %v8938_v18, %s17984_s13  ;;  %9254 = vrot.lane.b32.xlu0 %v8932_v37, %s17982_s21  ;;  %v15874_v45 = vpop.f32.mrb[103].mxu1  ;;  %v17503_v49 = vpop.eup %17502  ;;  %17508 = vtanh.f32 %v1338_v53  ;;  %v131_v37 = vld [vmem:[%s24085_s0 + $0x61] sm:$0x1] }
 0x211   :  { %16222 = vmatmul.mubr.msk.bf16.vlgmr.msra.gmra.mrb[172].mxu0 %vm267_vm1, %v126_v38  ;;  %16245 = vmatprep.subr.bf16.mxu1 %v24106_v1  ;;  %v8940_v23 = vpack.c.bf16 %v17503_v49, %v17503_v49  ;;  %v17505_v51 = vpop.eup %17504  ;;  %17510 = vtanh.f32 %v2499_v57  ;;  %v1467_v45 = vadd.f32 %v18981_v39, %v18924_v8 }
 0x212   :  { %16232 = vmatmul.mubr.msk.bf16.vlgmr.msra.gmra.mrb[172].mxu1 %vm267_vm1, %v127_v40  ;;  %16236 = vmatpush3.bf16.msra.mxu0 %v19072_v35  ;;  %v8941_v18 = vpack.c.bf16 %v17505_v51, %v17505_v51  ;;  %17512 = vtanh.f32 %v865_v61 }
 0x213   :  { %16246 = vmatpush3.bf16.msra.mxu1 %v19072_v35  ;;  %16237 = vmatprep.subr.bf16.mxu0 %v24106_v1  ;;  %17514 = vtanh.f32 %v1381_v63 }
 0x214   :  { %9542 = vrot.lane.b32.xlu1 %v8939_v26, %s17985_s14  ;;  %9242 = vrot.lane.b32.xlu0 %v8904_v48, %s17982_s21 }
 0x215   :  { %16247 = vmatprep.subr.bf16.mxu1 %v24106_v1  ;;  %16241 = vmatprep.mubr.msk.bf16.mxu0 %vm17980_vm0, %v24106_v1 }
 0x216   :  { %16238 = vmatpush3.bf16.msra.mxu0 %v19040_v3  ;;  %16251 = vmatprep.mubr.msk.bf16.mxu1 %vm17980_vm0, %v24106_v1 }
 0x217   :  { %16248 = vmatpush3.bf16.msra.mxu1 %v19040_v3  ;;  %16239 = vmatprep.subr.bf16.mxu0 %v24106_v1 }
 0x218   :  { %9332 = vrot.lane.b32.xlu0 %v8933_v58, %s17983_s22  ;;  %9620 = vrot.lane.b32.xlu1 %v8940_v23, %s17986_s19  ;;  %v2541_v62 = vpop.f32.mrb[104].mxu0  ;;  %v132_v58 = vld [vmem:[%s24085_s0 + $0x62] sm:$0x1] }
 0x219   :  { %v15883_v5 = vpop.f32.mrb[105].mxu0  ;;  %16249 = vmatprep.subr.bf16.mxu1 %v24106_v1  ;;  %v2584_v6 = vpop.f32.mrb[104].mxu1  ;;  %v2542_v29 = vadd.f32 %v18981_v39, %v2541_v62  ;;  %v19444_v62 = vld [vmem:[%s24087_s2] ss:$0 sm:$0xff] }
 0x21a   :  { %16240 = vmatpush3.bf16.msra.mxu0 %v19057_v30  ;;  %v2544_v12 = vpop.f32.mrb[106].mxu0  ;;  %v15893_v13 = vpop.f32.mrb[105].mxu1  ;;  %v2585_v42 = vadd.f32 %v18981_v39, %v2584_v6 }
 0x21b   :  { %16250 = vmatpush3.bf16.msra.mxu1 %v19057_v30  ;;  %v15884_v19 = vpop.f32.mrb[107].mxu0  ;;  %16255 = vmatprep.subr.bf16.mxu0 %v24106_v1  ;;  %v2587_v20 = vpop.f32.mrb[106].mxu1 }
 0x21c   :  { %9698 = vrot.lane.b32.xlu1 %v8941_v18, %s17987_s20  ;;  %9436 = vrot.lane.b32.xlu0 %v8940_v23, %s17984_s13  ;;  %v15894_v22 = vpop.f32.mrb[107].mxu1  ;;  %v17507_v9 = vpop.eup %17506 }
 0x21d   :  { %16242 = vmatmul.mubr.msk.bf16.vlgmr.msra.gmra.mrb[176].mxu0 %vm267_vm1, %v128_v10  ;;  %16265 = vmatprep.subr.bf16.mxu1 %v24106_v1  ;;  %v17509_v4 = vpop.eup %17508  ;;  %v8942_v24 = vpack.c.bf16 %v17507_v9, %v17507_v9 }
 0x21e   :  { %16252 = vmatmul.mubr.msk.bf16.vlgmr.msra.gmra.mrb[176].mxu1 %vm267_vm1, %v129_v52  ;;  %16256 = vmatpush3.bf16.msra.mxu0 %v19072_v35  ;;  %v17511_v26 = vpop.eup %17510  ;;  %v8916_v56 = vpack.c.bf16 %v17509_v4, %v17509_v4 }
 0x21f   :  { %16266 = vmatpush3.bf16.msra.mxu1 %v19072_v35  ;;  %16257 = vmatprep.subr.bf16.mxu0 %v24106_v1  ;;  %v17513_v31 = vpop.eup %17512  ;;  %v8943_v33 = vpack.c.bf16 %v17511_v26, %v17511_v26  ;;  %v134_v26 = vld [vmem:[%s24085_s0 + $0x64] sm:$0x1] }
 0x220   :  { %9426 = vrot.lane.b32.xlu1 %v18891_v60, %s17984_s13  ;;  %9544 = vrot.lane.b32.xlu0 %v8941_v18, %s17985_s14  ;;  %v1424_v60 = vadd.f32 %v18981_v39, %v18921_v7  ;;  %v130_v7 = vld [vmem:[%s24085_s0 + $0x60] sm:$0x1]  ;;  %v8905_v40 = vpack.c.bf16 %v17513_v31, %v17513_v31 }
 0x221   :  { %16267 = vmatprep.subr.bf16.mxu1 %v24106_v1  ;;  %16261 = vmatprep.mubr.msk.bf16.mxu0 %vm17980_vm0, %v24106_v1 }
 0x222   :  { %16258 = vmatpush3.bf16.msra.mxu0 %v19040_v3  ;;  %16271 = vmatprep.mubr.msk.bf16.mxu1 %vm17980_vm0, %v24106_v1  ;;  %17516 = vtanh.f32 %v1424_v60 }
 0x223   :  { %16268 = vmatpush3.bf16.msra.mxu1 %v19040_v3  ;;  %16259 = vmatprep.subr.bf16.mxu0 %v24106_v1  ;;  %17518 = vtanh.f32 %v2542_v29 }
 0x224   :  { %9534 = vrot.lane.b32.xlu1 %v18898_v2, %s17985_s14  ;;  %9622 = vrot.lane.b32.xlu0 %v8942_v24, %s17986_s19  ;;  %v2627_v27 = vpop.f32.mrb[108].mxu0  ;;  %v17515_v2 = vpop.eup %17514  ;;  %17520 = vtanh.f32 %v2585_v42 }
 0x225   :  { %v15903_v25 = vpop.f32.mrb[109].mxu0  ;;  %16269 = vmatprep.subr.bf16.mxu1 %v24106_v1  ;;  %v2670_v59 = vpop.f32.mrb[108].mxu1  ;;  %v8917_v44 = vpack.c.bf16 %v17515_v2, %v17515_v2  ;;  %17522 = vtanh.f32 %v1467_v45  ;;  %v2628_v46 = vadd.f32 %v18981_v39, %v2627_v27  ;;  %v133_v39 = vld [vmem:[%s24085_s0 + $0x63] sm:$0x1]  ;;  %v136_v45 = vld [vmem:[%s24085_s0 + $0x66] sm:$0x1] }
 0x226   :  { %16260 = vmatpush3.bf16.msra.mxu0 %v19057_v30  ;;  %v2630_v14 = vpop.f32.mrb[110].mxu0  ;;  %v15913_v36 = vpop.f32.mrb[109].mxu1  ;;  %v2671_v63 = vadd.f32 %v19444_v62, %v2670_v59  ;;  %v135_v25 = vld [vmem:[%s24085_s0 + $0x65] sm:$0x1] }
 0x227   :  { %16270 = vmatpush3.bf16.msra.mxu1 %v19057_v30  ;;  %v15904_v34 = vpop.f32.mrb[111].mxu0  ;;  %16275 = vmatprep.subr.bf16.mxu0 %v24106_v1  ;;  %v2673_v38 = vpop.f32.mrb[110].mxu1  ;;  %17524 = vtanh.f32 %v2628_v46 }
 0x228   :  { %9612 = vrot.lane.b32.xlu1 %v8916_v56, %s17986_s19  ;;  %9700 = vrot.lane.b32.xlu0 %v8943_v33, %s17987_s20  ;;  %v15914_v43 = vpop.f32.mrb[111].mxu1  ;;  %17526 = vtanh.f32 %v2671_v63 }
 0x229   :  { %16262 = vmatmul.mubr.msk.bf16.vlgmr.msra.gmra.mrb[180].mxu0 %vm267_vm1, %v130_v7  ;;  %16285 = vmatprep.subr.bf16.mxu1 %v24106_v1  ;;  %v19507_v43 = vld [vmem:[%s24086_s1 + $0x10] sm:$0xff]  }
 0x22a   :  { %16272 = vmatmul.mubr.msk.bf16.vlgmr.msra.gmra.mrb[180].mxu1 %vm267_vm1, %v131_v37  ;;  %16276 = vmatpush3.bf16.msra.mxu0 %v19072_v35 }
 0x22b   :  { %16286 = vmatpush3.bf16.msra.mxu1 %v19072_v35  ;;  %16277 = vmatprep.subr.bf16.mxu0 %v24106_v1 }
 0x22c   :  { %9690 = vrot.lane.b32.xlu1 %v8917_v44, %s17987_s20  ;;  %9320 = vrot.lane.b32.xlu0 %v8905_v40, %s17983_s22  ;;  %v17517_v49 = vpop.eup %17516 }
 0x22d   :  { %16287 = vmatprep.subr.bf16.mxu1 %v24106_v1  ;;  %16281 = vmatprep.mubr.msk.bf16.mxu0 %vm17980_vm0, %v24106_v1  ;;  %v17519_v23 = vpop.eup %17518  ;;  %v8918_v6 = vpack.c.bf16 %v17517_v49, %v17517_v49 }
 0x22e   :  { %16278 = vmatpush3.bf16.msra.mxu0 %v19040_v3  ;;  %16291 = vmatprep.mubr.msk.bf16.mxu1 %vm17980_vm0, %v24106_v1  ;;  %v8944_v12 = vpack.c.bf16 %v17519_v23, %v17519_v23  ;;  %v17521_v13 = vpop.eup %17520 }
 0x22f   :  { %16288 = vmatpush3.bf16.msra.mxu1 %v19040_v3  ;;  %16279 = vmatprep.subr.bf16.mxu0 %v24106_v1  ;;  %v8945_v10 = vpack.c.bf16 %v17521_v13, %v17521_v13  ;;  %v17523_v19 = vpop.eup %17522 }
 0x230   :  { %9438 = vrot.lane.b32.xlu1 %v8942_v24, %s17984_s13  ;;  %9428 = vrot.lane.b32.xlu0 %v8916_v56, %s17984_s13  ;;  %v19426_v8 = vpop.f32.mrb[112].mxu0  ;;  %v19495_v56 = vld [vmem:[%s24086_s1 + $0x8] sm:$0xff]  }
 0x231   :  { %24146 = vst [vmem:[#allocation11_spill] sm:$0xff] %v19426_v8  ;;  %v15923_v47 = vpop.f32.mrb[113].mxu0  ;;  %16289 = vmatprep.subr.bf16.mxu1 %v24106_v1  ;;  %v2756_v48 = vpop.f32.mrb[112].mxu1 }
 0x232   :  { %16280 = vmatpush3.bf16.msra.mxu0 %v19057_v30  ;;  %v2716_v53 = vpop.f32.mrb[114].mxu0  ;;  %v15933_v57 = vpop.f32.mrb[113].mxu1  ;;  %v2757_v18 = vadd.f32 %v19444_v62, %v2756_v48 }
 0x233   :  { %16290 = vmatpush3.bf16.msra.mxu1 %v19057_v30  ;;  %v15924_v51 = vpop.f32.mrb[115].mxu0  ;;  %16295 = vmatprep.subr.bf16.mxu0 %v24106_v1  ;;  %v2759_v61 = vpop.f32.mrb[114].mxu1  ;;  %v137_v53 = vld [vmem:[%s24085_s0 + $0x67] sm:$0x1] }
 0x234   :  { %9546 = vrot.lane.b32.xlu1 %v8943_v33, %s17985_s14  ;;  %9536 = vrot.lane.b32.xlu0 %v8917_v44, %s17985_s14  ;;  %v15934_v5 = vpop.f32.mrb[115].mxu1  ;;  %17528 = vtanh.f32 %v2757_v18  ;;  %v17525_v60 = vpop.eup %17524  ;;  %v138_v18 = vld [vmem:[%s24085_s0 + $0x69] sm:$0x1] }
 0x235   :  { %16282 = vmatmul.mubr.msk.bf16.vlgmr.msra.gmra.mrb[184].mxu0 %vm267_vm1, %v132_v58  ;;  %16305 = vmatprep.subr.bf16.mxu1 %v24106_v1  ;;  %v17527_v14 = vpop.eup %17526  ;;  %v19526_v58 = vld [vmem:[%s24086_s1] sm:$0xff]  }
 0x236   :  { %16292 = vmatmul.mubr.msk.bf16.vlgmr.msra.gmra.mrb[184].mxu1 %vm267_vm1, %v133_v39  ;;  %16296 = vmatpush3.bf16.msra.mxu0 %v19072_v35 }
 0x237   :  { %16306 = vmatpush3.bf16.msra.mxu1 %v19072_v35  ;;  %16297 = vmatprep.subr.bf16.mxu0 %v24106_v1 }
 0x238   :  { %9614 = vrot.lane.b32.xlu0 %v8918_v6, %s17986_s19  ;;  %9624 = vrot.lane.b32.xlu1 %v8944_v12, %s17986_s19 }
 0x239   :  { %16307 = vmatprep.subr.bf16.mxu1 %v24106_v1  ;;  %16301 = vmatprep.mubr.msk.bf16.mxu0 %vm17980_vm0, %v24106_v1 }
 0x23a   :  { %16298 = vmatpush3.bf16.msra.mxu0 %v19040_v3  ;;  %16311 = vmatprep.mubr.msk.bf16.mxu1 %vm17980_vm0, %v24106_v1 }
 0x23b   :  { %16308 = vmatpush3.bf16.msra.mxu1 %v19040_v3  ;;  %16299 = vmatprep.subr.bf16.mxu0 %v24106_v1  ;;  %v8919_v3 = vpack.c.bf16 %v17523_v19, %v17523_v19 }
 0x23c   :  { %9702 = vrot.lane.b32.xlu1 %v8945_v10, %s17987_s20  ;;  %9440 = vrot.lane.b32.xlu0 %v8944_v12, %s17984_s13  ;;  %v2799_v52 = vpop.f32.mrb[116].mxu0 }
 0x23d   :  { %v2842_v20 = vpop.f32.mrb[116].mxu1  ;;  %v2800_v22 = vadd.f32 %v19444_v62, %v2799_v52  ;;  %v15943_v9 = vpop.f32.mrb[117].mxu0  ;;  %16309 = vmatprep.subr.bf16.mxu1 %v24106_v1  ;;  %v139_v52 = vld [vmem:[%s24085_s0 + $0x6a] sm:$0x1] }
 0x23e   :  { %v2843_v4 = vadd.f32 %v19444_v62, %v2842_v20  ;;  %16300 = vmatpush3.bf16.msra.mxu0 %v19057_v30  ;;  %v2802_v24 = vpop.f32.mrb[118].mxu0  ;;  %v15953_v29 = vpop.f32.mrb[117].mxu1 }
 0x23f   :  { %16310 = vmatpush3.bf16.msra.mxu1 %v19057_v30  ;;  %v15944_v27 = vpop.f32.mrb[119].mxu0  ;;  %16315 = vmatprep.subr.bf16.mxu0 %v24106_v1  ;;  %v2845_v59 = vpop.f32.mrb[118].mxu1  ;;  %v8946_v30 = vpack.c.bf16 %v17525_v60, %v17525_v60  ;;  %v141_v29 = vld [vmem:[%s24085_s0 + $0x6c] sm:$0x1] }
 0x240   :  { %17530 = vtanh.f32 %v2843_v4  ;;  %9692 = vrot.lane.b32.xlu1 %v8919_v3, %s17987_s20  ;;  %9548 = vrot.lane.b32.xlu0 %v8945_v10, %s17985_s14  ;;  %v15954_v31 = vpop.f32.mrb[119].mxu1  ;;  %v17529_v33 = vpop.eup %17528 }
 0x241   :  { %17532 = vtanh.f32 %v2800_v22  ;;  %16302 = vmatmul.mubr.msk.bf16.vlgmr.msra.gmra.mrb[188].mxu0 %vm267_vm1, %v134_v26  ;;  %16325 = vmatprep.subr.bf16.mxu1 %v24106_v1  ;;  %v8949_v40 = vpack.c.bf16 %v17529_v33, %v17529_v33  ;;  %v140_v26 = vld [vmem:[%s24085_s0 + $0x6b] sm:$0x1] }
 0x242   :  { %16312 = vmatmul.mubr.msk.bf16.vlgmr.msra.gmra.mrb[188].mxu1 %vm267_vm1, %v135_v25  ;;  %16316 = vmatpush3.bf16.msra.mxu0 %v19072_v35 }
 0x243   :  { %16326 = vmatpush3.bf16.msra.mxu1 %v19072_v35  ;;  %16317 = vmatprep.subr.bf16.mxu0 %v24106_v1  ;;  %v8947_v35 = vpack.c.bf16 %v17527_v14, %v17527_v14 }
 0x244   :  { %9626 = vrot.lane.b32.xlu0 %v8946_v30, %s17986_s19  ;;  %16327 = vmatprep.subr.bf16.mxu1 %v24106_v1 }
 0x245   :  { %16321 = vmatprep.mubr.msk.bf16.mxu0 %vm17980_vm0, %v24106_v1  ;;  %16331 = vmatprep.mubr.msk.bf16.mxu1 %vm17980_vm0, %v24106_v1 }
 0x246   :  { %16318 = vmatpush3.bf16.msra.mxu0 %v19495_v56 }
 0x247   :  { %16328 = vmatpush3.bf16.msra.mxu1 %v19495_v56  ;;  %16319 = vmatprep.subr.bf16.mxu0 %v24106_v1 }
 0x248   :  { %9704 = vrot.lane.b32.xlu0 %v8947_v35, %s17987_s20  ;;  %v2885_v7 = vpop.f32.mrb[120].mxu0  ;;  %16329 = vmatprep.subr.bf16.mxu1 %v24106_v1  ;;  %v142_v35 = vld [vmem:[%s24085_s0 + $0x6d] sm:$0x1] }
 0x249   :  { %v2886_v2 = vadd.f32 %v19444_v62, %v2885_v7  ;;  %v15963_v34 = vpop.f32.mrb[121].mxu0  ;;  %v2928_v36 = vpop.f32.mrb[120].mxu1 }
 0x24a   :  { %v17531_v37 = vpop.eup %17530  ;;  %v2888_v38 = vpop.f32.mrb[122].mxu0  ;;  %v2929_v42 = vadd.f32 %v19444_v62, %v2928_v36  ;;  %16320 = vmatpush3.bf16.msra.mxu0 %v19507_v43 }
 0x24b   :  { %v15973_v44 = vpop.f32.mrb[121].mxu1  ;;  %v17533_v46 = vpop.eup %17532  ;;  %17534 = vtanh.f32 %v2886_v2  ;;  %16330 = vmatpush3.bf16.msra.mxu1 %v19507_v43  ;;  %v8951_v49 = vpack.c.bf16 %v17531_v37, %v17531_v37  ;;  %16335 = vmatprep.subr.bf16.mxu0 %v24106_v1  ;;  %v143_v2 = vld [vmem:[%s24085_s0 + $0x6e] sm:$0x1] }
 0x24c   :  { %v15964_v47 = vpop.f32.mrb[123].mxu0  ;;  %v2931_v48 = vpop.f32.mrb[122].mxu1  ;;  %17536 = vtanh.f32 %v2929_v42  ;;  %9148 = vrot.lane.b32.xlu0 %v8949_v40, %s17981_s29  ;;  %16345 = vmatprep.subr.bf16.mxu1 %v24106_v1  ;;  %v19529_v23 = vpack.c.bf16 %v17533_v46, %v17533_v46  ;;  %v144_v40 = vld [vmem:[%s24085_s0 + $0x6f] sm:$0x1] }
 0x24d   :  { %v15974_v57 = vpop.f32.mrb[123].mxu1  ;;  %9150 = vrot.lane.b32.xlu1 %v8951_v49, %s17981_s29  ;;  %16322 = vmatmul.mubr.msk.bf16.vlgmr.msra.gmra.mrb[192].mxu0 %vm267_vm1, %v136_v45  ;;  %v145_v47 = vld [vmem:[%s24085_s0 + $0x70] sm:$0x1] }
 0x24e   :  { %16332 = vmatmul.mubr.msk.bf16.vlgmr.msra.gmra.mrb[192].mxu1 %vm267_vm1, %v137_v53  ;;  %16336 = vmatpush3.bf16.msra.mxu0 %v19526_v58  ;;  %24147 = vst [vmem:[#allocation12_spill] sm:$0xff] %v19529_v23 }
 0x24f   :  { %16346 = vmatpush3.bf16.msra.mxu1 %v19526_v58  ;;  %16337 = vmatprep.subr.bf16.mxu0 %v24106_v1 }
 0x250   :  { %9256 = vrot.lane.b32.xlu0 %v19529_v23, %s17982_s21  ;;  %16347 = vmatprep.subr.bf16.mxu1 %v24106_v1 }
 0x251   :  { %16341 = vmatprep.mubr.msk.bf16.mxu0 %vm17980_vm0, %v24106_v1  ;;  %16351 = vmatprep.mubr.msk.bf16.mxu1 %vm17980_vm0, %v24106_v1 }
 0x252   :  { %16338 = vmatpush3.bf16.msra.mxu0 %v19495_v56 }
 0x253   :  { %16348 = vmatpush3.bf16.msra.mxu1 %v19495_v56  ;;  %16339 = vmatprep.subr.bf16.mxu0 %v24106_v1 }
 0x254   :  { %9334 = vrot.lane.b32.xlu0 %v8951_v49, %s17983_s22  ;;  %v19544_v51 = vpop.f32.mrb[124].mxu0  ;;  %16349 = vmatprep.subr.bf16.mxu1 %v24106_v1 }
 0x255   :  { %v17535_v39 = vpop.eup %17534  ;;  %v15983_v61 = vpop.f32.mrb[125].mxu0 }
 0x256   :  { %v19547_v63 = vpop.f32.mrb[124].mxu1  ;;  %v17537_v5 = vpop.eup %17536  ;;  %16340 = vmatpush3.bf16.msra.mxu0 %v19507_v43  ;;  %v19550_v13 = vpack.c.bf16 %v17535_v39, %v17535_v39 }
 0x257   :  { %v2974_v6 = vpop.f32.mrb[126].mxu0  ;;  %v15993_v12 = vpop.f32.mrb[125].mxu1  ;;  %16350 = vmatpush3.bf16.msra.mxu1 %v19507_v43  ;;  %16355 = vmatprep.subr.bf16.mxu0 %v24106_v1  ;;  %v19563_v22 = vpack.c.bf16 %v17537_v5, %v17537_v5 }
 0x258   :  { %24148 = vst [vmem:[#allocation13_spill] sm:$0xff] %v19550_v13  ;;  %v15984_v10 = vpop.f32.mrb[127].mxu0  ;;  %v3017_v19 = vpop.f32.mrb[126].mxu1  ;;  %9258 = vrot.lane.b32.xlu1 %v19550_v13, %s17982_s21  ;;  %16365 = vmatprep.subr.bf16.mxu1 %v24106_v1  ;;  %v146_v12 = vld [vmem:[%s24085_s0 + $0x71] sm:$0x1] }
 0x259   :  { %v15994_v20 = vpop.f32.mrb[127].mxu1  ;;  %16342 = vmatmul.mubr.msk.bf16.vlgmr.msra.gmra.mrb[196].mxu0 %vm267_vm1, %v138_v18  ;;  %v147_v19 = vld [vmem:[%s24085_s0 + $0x72] sm:$0x1]  ;;  %v169_v13 = vld [vmem:[%s24085_s0 + $0x8a] sm:$0x1] }
 0x25a   :  { %16352 = vmatmul.mubr.msk.bf16.vlgmr.msra.gmra.mrb[196].mxu1 %vm267_vm1, %v139_v52  ;;  %16356 = vmatpush3.bf16.msra.mxu0 %v19526_v58 }
 0x25b   :  { %16366 = vmatpush3.bf16.msra.mxu1 %v19526_v58  ;;  %16357 = vmatprep.subr.bf16.mxu0 %v24106_v1 }
 0x25c   :  { %9336 = vrot.lane.b32.xlu1 %v19563_v22, %s17983_s22  ;;  %16367 = vmatprep.subr.bf16.mxu1 %v24106_v1 }
 0x25d   :  { %16361 = vmatprep.mubr.msk.bf16.mxu0 %vm17980_vm0, %v24106_v1  ;;  %16371 = vmatprep.mubr.msk.bf16.mxu1 %vm17980_vm0, %v24106_v1 }
 0x25e   :  { %16358 = vmatpush3.bf16.msra.mxu0 %v19495_v56 }
 0x25f   :  { %16368 = vmatpush3.bf16.msra.mxu1 %v19495_v56  ;;  %16359 = vmatprep.subr.bf16.mxu0 %v24106_v1 }
 0x260   :  { %v19580_v9 = vpop.f32.mrb[128].mxu0  ;;  %16369 = vmatprep.subr.bf16.mxu1 %v24106_v1 }
 0x261   :  { %v16003_v4 = vpop.f32.mrb[129].mxu0  ;;  %v19583_v24 = vpop.f32.mrb[128].mxu1 }
 0x262   :  { %16360 = vmatpush3.bf16.msra.mxu0 %v19507_v43  ;;  %v3060_v3 = vpop.f32.mrb[130].mxu0  ;;  %v16013_v27 = vpop.f32.mrb[129].mxu1 }
 0x263   :  { %16370 = vmatpush3.bf16.msra.mxu1 %v19507_v43  ;;  %v16004_v60 = vpop.f32.mrb[131].mxu0  ;;  %16375 = vmatprep.subr.bf16.mxu0 %v24106_v1  ;;  %v3103_v25 = vpop.f32.mrb[130].mxu1 }
 0x264   :  { %16385 = vmatprep.subr.bf16.mxu1 %v24106_v1  ;;  %v16014_v59 = vpop.f32.mrb[131].mxu1 }
 0x265   :  { %16362 = vmatmul.mubr.msk.bf16.vlgmr.msra.gmra.mrb[200].mxu0 %vm267_vm1, %v140_v26 }
 0x266   :  { %16372 = vmatmul.mubr.msk.bf16.vlgmr.msra.gmra.mrb[200].mxu1 %vm267_vm1, %v141_v29  ;;  %16376 = vmatpush3.bf16.msra.mxu0 %v19526_v58 }
 0x267   :  { %16386 = vmatpush3.bf16.msra.mxu1 %v19526_v58  ;;  %16377 = vmatprep.subr.bf16.mxu0 %v24106_v1 }
 0x268   :  { %16387 = vmatprep.subr.bf16.mxu1 %v24106_v1  ;;  %16381 = vmatprep.mubr.msk.bf16.mxu0 %vm17980_vm0, %v24106_v1 }
 0x269   :  { %16391 = vmatprep.mubr.msk.bf16.mxu1 %vm17980_vm0, %v24106_v1 }
 0x26a   :  { %16378 = vmatpush3.bf16.msra.mxu0 %v19495_v56 }
 0x26b   :  { %16388 = vmatpush3.bf16.msra.mxu1 %v19495_v56  ;;  %16379 = vmatprep.subr.bf16.mxu0 %v24106_v1 }
 0x26c   :  { %v19608_v31 = vpop.f32.mrb[132].mxu0  ;;  %16389 = vmatprep.subr.bf16.mxu1 %v24106_v1 }
 0x26d   :  { %v16023_v30 = vpop.f32.mrb[133].mxu0  ;;  %v19611_v14 = vpop.f32.mrb[132].mxu1 }
 0x26e   :  { %16380 = vmatpush3.bf16.msra.mxu0 %v19507_v43  ;;  %v3146_v33 = vpop.f32.mrb[134].mxu0  ;;  %v16033_v7 = vpop.f32.mrb[133].mxu1 }
 0x26f   :  { %16390 = vmatpush3.bf16.msra.mxu1 %v19507_v43  ;;  %16395 = vmatprep.subr.bf16.mxu0 %v24106_v1  ;;  %v16024_v34 = vpop.f32.mrb[135].mxu0  ;;  %v3189_v36 = vpop.f32.mrb[134].mxu1 }
 0x270   :  { %16405 = vmatprep.subr.bf16.mxu1 %v24106_v1  ;;  %v16034_v37 = vpop.f32.mrb[135].mxu1 }
 0x271   :  { %16382 = vmatmul.mubr.msk.bf16.vlgmr.msra.gmra.mrb[204].mxu0 %vm267_vm1, %v142_v35  ;;  %v148_v35 = vld [vmem:[%s24085_s0 + $0x73] sm:$0x1] }
 0x272   :  { %16392 = vmatmul.mubr.msk.bf16.vlgmr.msra.gmra.mrb[204].mxu1 %vm267_vm1, %v143_v2  ;;  %16396 = vmatpush3.bf16.msra.mxu0 %v19526_v58  ;;  %v149_v2 = vld [vmem:[%s24085_s0 + $0x74] sm:$0x1] }
 0x273   :  { %16406 = vmatpush3.bf16.msra.mxu1 %v19526_v58  ;;  %16397 = vmatprep.subr.bf16.mxu0 %v24106_v1 }
 0x274   :  { %16407 = vmatprep.subr.bf16.mxu1 %v24106_v1  ;;  %16401 = vmatprep.mubr.msk.bf16.mxu0 %vm17980_vm0, %v24106_v1 }
 0x275   :  { %16411 = vmatprep.mubr.msk.bf16.mxu1 %vm17980_vm0, %v24106_v1 }
 0x276   :  { %16398 = vmatpush3.bf16.msra.mxu0 %v19495_v56 }
 0x277   :  { %16408 = vmatpush3.bf16.msra.mxu1 %v19495_v56  ;;  %16399 = vmatprep.subr.bf16.mxu0 %v24106_v1 }
 0x278   :  { %v19636_v38 = vpop.f32.mrb[136].mxu0  ;;  %16409 = vmatprep.subr.bf16.mxu1 %v24106_v1 }
 0x279   :  { %v16043_v42 = vpop.f32.mrb[137].mxu0  ;;  %v19639_v44 = vpop.f32.mrb[136].mxu1 }
 0x27a   :  { %16400 = vmatpush3.bf16.msra.mxu0 %v19507_v43  ;;  %v3232_v45 = vpop.f32.mrb[138].mxu0  ;;  %v16053_v46 = vpop.f32.mrb[137].mxu1 }
 0x27b   :  { %16410 = vmatpush3.bf16.msra.mxu1 %v19507_v43  ;;  %16415 = vmatprep.subr.bf16.mxu0 %v24106_v1  ;;  %v16044_v48 = vpop.f32.mrb[139].mxu0  ;;  %v3275_v49 = vpop.f32.mrb[138].mxu1 }
 0x27c   :  { %16425 = vmatprep.subr.bf16.mxu1 %v24106_v1  ;;  %v16054_v53 = vpop.f32.mrb[139].mxu1 }
 0x27d   :  { %16402 = vmatmul.mubr.msk.bf16.vlgmr.msra.gmra.mrb[208].mxu0 %vm267_vm1, %v144_v40  ;;  %v2972_v40 = vadd.f32 %v19444_v62, %v19544_v51  ;;  %v3015_v51 = vadd.f32 %v19444_v62, %v19547_v63 }
 0x27e   :  { %16412 = vmatmul.mubr.msk.bf16.vlgmr.msra.gmra.mrb[208].mxu1 %vm267_vm1, %v145_v47  ;;  %16416 = vmatpush3.bf16.msra.mxu0 %v19526_v58 }
 0x27f   :  { %16426 = vmatpush3.bf16.msra.mxu1 %v19526_v58  ;;  %16417 = vmatprep.subr.bf16.mxu0 %v24106_v1 }
 0x280   :  { %16427 = vmatprep.subr.bf16.mxu1 %v24106_v1  ;;  %16421 = vmatprep.mubr.msk.bf16.mxu0 %vm17980_vm0, %v24106_v1 }
 0x281   :  { %16431 = vmatprep.mubr.msk.bf16.mxu1 %vm17980_vm0, %v24106_v1 }
 0x282   :  { %16418 = vmatpush3.bf16.msra.mxu0 %v19495_v56 }
 0x283   :  { %16428 = vmatpush3.bf16.msra.mxu1 %v19495_v56  ;;  %16419 = vmatprep.subr.bf16.mxu0 %v24106_v1 }
 0x284   :  { %v3315_v57 = vpop.f32.mrb[140].mxu0  ;;  %16429 = vmatprep.subr.bf16.mxu1 %v24106_v1 }
 0x285   :  { %v3316_v39 = vadd.f32 %v19444_v62, %v3315_v57  ;;  %v16063_v61 = vpop.f32.mrb[141].mxu0  ;;  %v3358_v5 = vpop.f32.mrb[140].mxu1 }
 0x286   :  { %v3359_v6 = vadd.f32 %v19444_v62, %v3358_v5  ;;  %16420 = vmatpush3.bf16.msra.mxu0 %v19507_v43  ;;  %v3318_v18 = vpop.f32.mrb[142].mxu0  ;;  %v16073_v10 = vpop.f32.mrb[141].mxu1 }
 0x287   :  { %17538 = vtanh.f32 %v3316_v39  ;;  %16430 = vmatpush3.bf16.msra.mxu1 %v19507_v43  ;;  %16435 = vmatprep.subr.bf16.mxu0 %v24106_v1  ;;  %v16064_v52 = vpop.f32.mrb[143].mxu0  ;;  %v3361_v20 = vpop.f32.mrb[142].mxu1  ;;  %v151_v18 = vld [vmem:[%s24085_s0 + $0x76] sm:$0x1] }
 0x288   :  { %17540 = vtanh.f32 %v3359_v6  ;;  %16445 = vmatprep.subr.bf16.mxu1 %v24106_v1  ;;  %v16074_v4 = vpop.f32.mrb[143].mxu1  ;;  %v19724_v57 = vpop.permute.xlu0 %9124  ;;  %v150_v6 = vld [vmem:[%s24085_s0 + $0x75] sm:$0x1] }
 0x289   :  { %16422 = vmatmul.mubr.msk.bf16.vlgmr.msra.gmra.mrb[212].mxu0 %vm267_vm1, %v146_v12  ;;  %v19726_v39 = vpop.permute.xlu1 %9232 }
 0x28a   :  { %16432 = vmatmul.mubr.msk.bf16.vlgmr.msra.gmra.mrb[212].mxu1 %vm267_vm1, %v147_v19  ;;  %16436 = vmatpush3.bf16.msra.mxu0 %v19526_v58 }
 0x28b   :  { %16446 = vmatpush3.bf16.msra.mxu1 %v19526_v58  ;;  %16437 = vmatprep.subr.bf16.mxu0 %v24106_v1 }
 0x28c   :  { %16447 = vmatprep.subr.bf16.mxu1 %v24106_v1  ;;  %16441 = vmatprep.mubr.msk.bf16.mxu0 %vm17980_vm0, %v24106_v1  ;;  %v19746_v4 = vpop.permute.xlu0 %9126 }
 0x28d   :  { %16451 = vmatprep.mubr.msk.bf16.mxu1 %vm17980_vm0, %v24106_v1 }
 0x28e   :  { %16438 = vmatpush3.bf16.msra.mxu0 %v19495_v56 }
 0x28f   :  { %16448 = vmatpush3.bf16.msra.mxu1 %v19495_v56  ;;  %16439 = vmatprep.subr.bf16.mxu0 %v24106_v1 }
 0x290   :  { %v3401_v3 = vpop.f32.mrb[144].mxu0  ;;  %16449 = vmatprep.subr.bf16.mxu1 %v24106_v1 }
 0x291   :  { %v17539_v26 = vpop.eup %17538  ;;  %v3402_v60 = vadd.f32 %v19444_v62, %v3401_v3  ;;  %v16083_v27 = vpop.f32.mrb[145].mxu0  ;;  %v3058_v3 = vadd.f32 %v19444_v62, %v19580_v9  ;;  %v3101_v9 = vadd.f32 %v19444_v62, %v19583_v24 }
 0x292   :  { %v3444_v29 = vpop.f32.mrb[144].mxu1  ;;  %v17541_v25 = vpop.eup %17540  ;;  %16440 = vmatpush3.bf16.msra.mxu0 %v19507_v43  ;;  %v8962_v30 = vpack.c.bf16 %v17539_v26, %v17539_v26 }
 0x293   :  { %v3445_v59 = vadd.f32 %v19444_v62, %v3444_v29  ;;  %17542 = vtanh.f32 %v3402_v60  ;;  %16450 = vmatpush3.bf16.msra.mxu1 %v19507_v43  ;;  %v3404_v33 = vpop.f32.mrb[146].mxu0  ;;  %v16093_v7 = vpop.f32.mrb[145].mxu1  ;;  %16455 = vmatprep.subr.bf16.mxu0 %v24106_v1  ;;  %v8963_v37 = vpack.c.bf16 %v17541_v25, %v17541_v25 }
 0x294   :  { %v16084_v34 = vpop.f32.mrb[147].mxu0  ;;  %v3447_v36 = vpop.f32.mrb[146].mxu1  ;;  %9442 = vrot.lane.b32.xlu0 %v8962_v30, %s17984_s13  ;;  %16465 = vmatprep.subr.bf16.mxu1 %v24106_v1 }
 0x295   :  { %17544 = vtanh.f32 %v3445_v59  ;;  %v16094_v42 = vpop.f32.mrb[147].mxu1  ;;  %16442 = vmatmul.mubr.msk.bf16.vlgmr.msra.gmra.mrb[216].mxu0 %vm267_vm1, %v148_v35  ;;  %v19755_v26 = vpop.permute.xlu1 %9310 }
 0x296   :  { %16452 = vmatmul.mubr.msk.bf16.vlgmr.msra.gmra.mrb[216].mxu1 %vm267_vm1, %v149_v2  ;;  %16456 = vmatpush3.bf16.msra.mxu0 %v19526_v58  ;;  %17546 = vtanh.f32 %v2972_v40  ;;  %v19762_v27 = vpop.permute.xlu0 %9234  ;;  %v153_v42 = vld [vmem:[%s24085_s0 + $0x79] sm:$0x1] }
 0x297   :  { %16466 = vmatpush3.bf16.msra.mxu1 %v19526_v58  ;;  %16457 = vmatprep.subr.bf16.mxu0 %v24106_v1 }
 0x298   :  { %9550 = vrot.lane.b32.xlu0 %v8963_v37, %s17985_s14  ;;  %16467 = vmatprep.subr.bf16.mxu1 %v24106_v1 }
 0x299   :  { %16461 = vmatprep.mubr.msk.bf16.mxu0 %vm17980_vm0, %v24106_v1  ;;  %16471 = vmatprep.mubr.msk.bf16.mxu1 %vm17980_vm0, %v24106_v1  ;;  %v19770_v7 = vpop.permute.xlu1 %9128 }
 0x29a   :  { %16458 = vmatpush3.bf16.msra.mxu0 %v19495_v56  ;;  %24149 = vst [vmem:[#allocation14_spill] sm:$0xff] %v19770_v7 }
 0x29b   :  { %16468 = vmatpush3.bf16.msra.mxu1 %v19495_v56  ;;  %16459 = vmatprep.subr.bf16.mxu0 %v24106_v1 }
 0x29c   :  { %v3487_v45 = vpop.f32.mrb[148].mxu0  ;;  %16469 = vmatprep.subr.bf16.mxu1 %v24106_v1 }
 0x29d   :  { %v17543_v46 = vpop.eup %17542  ;;  %v3488_v47 = vadd.f32 %v19444_v62, %v3487_v45  ;;  %v16103_v48 = vpop.f32.mrb[149].mxu0 }
 0x29e   :  { %v3530_v49 = vpop.f32.mrb[148].mxu1  ;;  %16460 = vmatpush3.bf16.msra.mxu0 %v19507_v43  ;;  %v8964_v5 = vpack.c.bf16 %v17543_v46, %v17543_v46  ;;  %v3490_v63 = vpop.f32.mrb[150].mxu0 }
 0x29f   :  { %v17545_v53 = vpop.eup %17544  ;;  %v3531_v61 = vadd.f32 %v19444_v62, %v3530_v49  ;;  %17548 = vtanh.f32 %v3488_v47  ;;  %16470 = vmatpush3.bf16.msra.mxu1 %v19507_v43  ;;  %v16113_v12 = vpop.f32.mrb[149].mxu1  ;;  %16475 = vmatprep.subr.bf16.mxu0 %v24106_v1  ;;  %v3144_v63 = vadd.f32 %v19444_v62, %v19608_v31  ;;  %v154_v31 = vld [vmem:[%s24085_s0 + $0x7a] sm:$0x1] }
 0x2a0   :  { %v16104_v10 = vpop.f32.mrb[151].mxu0  ;;  %v3533_v19 = vpop.f32.mrb[150].mxu1  ;;  %9628 = vrot.lane.b32.xlu0 %v8964_v5, %s17986_s19  ;;  %9444 = vrot.lane.b32.xlu1 %v8964_v5, %s17984_s13  ;;  %v8965_v52 = vpack.c.bf16 %v17545_v53, %v17545_v53 }
 0x2a1   :  { %17550 = vtanh.f32 %v3531_v61  ;;  %v16114_v20 = vpop.f32.mrb[151].mxu1  ;;  %16462 = vmatmul.mubr.msk.bf16.vlgmr.msra.gmra.mrb[220].mxu0 %vm267_vm1, %v150_v6  ;;  %16485 = vmatprep.subr.bf16.mxu1 %v24106_v1  ;;  %v17547_v60 = vpop.eup %17546 }
 0x2a2   :  { %17552 = vtanh.f32 %v3015_v51  ;;  %16472 = vmatmul.mubr.msk.bf16.vlgmr.msra.gmra.mrb[220].mxu1 %vm267_vm1, %v151_v18  ;;  %16476 = vmatpush3.bf16.msra.mxu0 %v19526_v58  ;;  %v19772_v2 = vpack.c.bf16 %v17547_v60, %v17547_v60  ;;  %v19789_v48 = vpop.permute.xlu0 %9312  ;;  %v19791_v49 = vpop.permute.xlu1 %9236 }
 0x2a3   :  { %16486 = vmatpush3.bf16.msra.mxu1 %v19526_v58  ;;  %16477 = vmatprep.subr.bf16.mxu0 %v24106_v1  ;;  %17554 = vtanh.f32 %v3058_v3  ;;  %24151 = vst [vmem:[#allocation16_spill] sm:$0xff] %v19791_v49 }
 0x2a4   :  { %9706 = vrot.lane.b32.xlu0 %v8965_v52, %s17987_s20  ;;  %9552 = vrot.lane.b32.xlu1 %v8965_v52, %s17985_s14  ;;  %24150 = vst [vmem:[#allocation15_spill] sm:$0xff] %v19772_v2  ;;  %17556 = vtanh.f32 %v3101_v9 }
 0x2a5   :  { %16487 = vmatprep.subr.bf16.mxu1 %v24106_v1  ;;  %16481 = vmatprep.mubr.msk.bf16.mxu0 %vm17980_vm0, %v24106_v1 }
 0x2a6   :  { %16478 = vmatpush3.bf16.msra.mxu0 %v19495_v56  ;;  %16491 = vmatprep.mubr.msk.bf16.mxu1 %vm17980_vm0, %v24106_v1  ;;  %v19802_v61 = vpop.permute.xlu0 %9130  ;;  %v19809_v6 = vpop.permute.xlu1 %9314 }
 0x2a7   :  { %16488 = vmatpush3.bf16.msra.mxu1 %v19495_v56  ;;  %16479 = vmatprep.subr.bf16.mxu0 %v24106_v1  ;;  %24152 = vst [vmem:[#allocation17_spill] sm:$0xff] %v19802_v61  ;;  %24153 = vst [vmem:[#allocation18_spill] sm:$0xff] %v19809_v6  ;;  %v177_v6 = vld [vmem:[%s24085_s0 + $0x92] sm:$0x1] }
 0x2a8   :  { %9152 = vrot.lane.b32.xlu0 %v19563_v22, %s17981_s29  ;;  %v3573_v29 = vpop.f32.mrb[152].mxu0  ;;  %16489 = vmatprep.subr.bf16.mxu1 %v24106_v1  ;;  %v152_v22 = vld [vmem:[%s24085_s0 + $0x78] sm:$0x1] }
 0x2a9   :  { %v17549_v25 = vpop.eup %17548  ;;  %v3574_v59 = vadd.f32 %v19444_v62, %v3573_v29  ;;  %v16123_v30 = vpop.f32.mrb[153].mxu0 }
 0x2aa   :  { %v3616_v35 = vpop.f32.mrb[152].mxu1  ;;  %16480 = vmatpush3.bf16.msra.mxu0 %v19507_v43  ;;  %v8966_v24 = vpack.c.bf16 %v17549_v25, %v17549_v25  ;;  %v3576_v36 = vpop.f32.mrb[154].mxu0 }
 0x2ab   :  { %v17551_v33 = vpop.eup %17550  ;;  %16490 = vmatpush3.bf16.msra.mxu1 %v19507_v43  ;;  %v16133_v37 = vpop.f32.mrb[153].mxu1  ;;  %16495 = vmatprep.subr.bf16.mxu0 %v24106_v1  ;;  %17558 = vtanh.f32 %v3574_v59  ;;  %v3617_v51 = vadd.f32 %v19444_v62, %v3616_v35  ;;  %v155_v59 = vld [vmem:[%s24085_s0 + $0x7b] sm:$0x1]  ;;  %v3187_v35 = vadd.f32 %v19444_v62, %v19611_v14 }
 0x2ac   :  { %v17553_v34 = vpop.eup %17552  ;;  %v16124_v40 = vpop.f32.mrb[155].mxu0  ;;  %9260 = vrot.lane.b32.xlu0 %v19772_v2, %s17982_s21  ;;  %9630 = vrot.lane.b32.xlu1 %v8966_v24, %s17986_s19  ;;  %v8967_v46 = vpack.c.bf16 %v17551_v33, %v17551_v33 }
 0x2ad   :  { %v3619_v45 = vpop.f32.mrb[154].mxu1  ;;  %16482 = vmatmul.mubr.msk.bf16.vlgmr.msra.gmra.mrb[224].mxu0 %vm267_vm1, %v152_v22  ;;  %16505 = vmatprep.subr.bf16.mxu1 %v24106_v1  ;;  %v8955_v53 = vpack.c.bf16 %v17553_v34, %v17553_v34  ;;  %17560 = vtanh.f32 %v3617_v51  ;;  %v17555_v5 = vpop.eup %17554  ;;  %v3230_v51 = vadd.f32 %v19444_v62, %v19636_v38  ;;  %v157_v38 = vld [vmem:[%s24085_s0 + $0x7d] sm:$0x1] }
 0x2ae   :  { %v16134_v47 = vpop.f32.mrb[155].mxu1  ;;  %16492 = vmatmul.mubr.msk.bf16.vlgmr.msra.gmra.mrb[224].mxu1 %vm267_vm1, %v153_v42  ;;  %16496 = vmatpush3.bf16.msra.mxu0 %v19526_v58  ;;  %v17557_v52 = vpop.eup %17556  ;;  %v19819_v3 = vpack.c.bf16 %v17555_v5, %v17555_v5  ;;  %17562 = vtanh.f32 %v3144_v63 }
 0x2af   :  { %16506 = vmatpush3.bf16.msra.mxu1 %v19526_v58  ;;  %16497 = vmatprep.subr.bf16.mxu0 %v24106_v1  ;;  %v19817_v20 = vpop.permute.xlu0 %9238  ;;  %v19830_v30 = vpop.permute.xlu1 %9132  ;;  %v8957_v34 = vpack.c.bf16 %v17557_v52, %v17557_v52 }
 0x2b0   :  { %9338 = vrot.lane.b32.xlu0 %v8955_v53, %s17983_s22  ;;  %9708 = vrot.lane.b32.xlu1 %v8967_v46, %s17987_s20  ;;  %24154 = vst [vmem:[#allocation19_spill] sm:$0xff] %v19817_v20  ;;  %24155 = vst [vmem:[#allocation20_spill] sm:$0xff] %v19819_v3 }
 0x2b1   :  { %16507 = vmatprep.subr.bf16.mxu1 %v24106_v1  ;;  %16501 = vmatprep.mubr.msk.bf16.mxu0 %vm17980_vm0, %v24106_v1  ;;  %24156 = vst [vmem:[#allocation21_spill] sm:$0xff] %v19830_v30 }
 0x2b2   :  { %16498 = vmatpush3.bf16.msra.mxu0 %v19495_v56  ;;  %16511 = vmatprep.mubr.msk.bf16.mxu1 %vm17980_vm0, %v24106_v1 }
 0x2b3   :  { %16508 = vmatpush3.bf16.msra.mxu1 %v19495_v56  ;;  %16499 = vmatprep.subr.bf16.mxu0 %v24106_v1  ;;  %v19844_v37 = vpop.permute.xlu0 %9316  ;;  %v19846_v42 = vpop.permute.xlu1 %9418 }
 0x2b4   :  { %9446 = vrot.lane.b32.xlu0 %v8966_v24, %s17984_s13  ;;  %9154 = vrot.lane.b32.xlu1 %v8955_v53, %s17981_s29  ;;  %v3659_v12 = vpop.f32.mrb[156].mxu0  ;;  %24157 = vst [vmem:[#allocation22_spill] sm:$0xff] %v19844_v37 }
 0x2b5   :  { %v3660_v18 = vadd.f32 %v19444_v62, %v3659_v12  ;;  %v16143_v10 = vpop.f32.mrb[157].mxu0  ;;  %16509 = vmatprep.subr.bf16.mxu1 %v24106_v1  ;;  %v3702_v19 = vpop.f32.mrb[156].mxu1 }
 0x2b6   :  { %16500 = vmatpush3.bf16.msra.mxu0 %v19507_v43  ;;  %v3662_v60 = vpop.f32.mrb[158].mxu0  ;;  %v17559_v9 = vpop.eup %17558  ;;  %v3703_v24 = vadd.f32 %v19444_v62, %v3702_v19 }
 0x2b7   :  { %16510 = vmatpush3.bf16.msra.mxu1 %v19507_v43  ;;  %v16144_v29 = vpop.f32.mrb[159].mxu0  ;;  %v16153_v25 = vpop.f32.mrb[157].mxu1  ;;  %16515 = vmatprep.subr.bf16.mxu0 %v24106_v1  ;;  %17564 = vtanh.f32 %v3660_v18  ;;  %v8968_v36 = vpack.c.bf16 %v17559_v9, %v17559_v9  ;;  %v156_v18 = vld [vmem:[%s24085_s0 + $0x7c] sm:$0x1]  ;;  %v3273_v60 = vadd.f32 %v19444_v62, %v19639_v44 }
 0x2b8   :  { %v3705_v33 = vpop.f32.mrb[158].mxu1  ;;  %9554 = vrot.lane.b32.xlu0 %v8967_v46, %s17985_s14  ;;  %9262 = vrot.lane.b32.xlu1 %v19819_v3, %s17982_s21  ;;  %v17561_v14 = vpop.eup %17560  ;;  %17566 = vtanh.f32 %v3187_v35 }
 0x2b9   :  { %v16154_v22 = vpop.f32.mrb[159].mxu1  ;;  %16502 = vmatmul.mubr.msk.bf16.vlgmr.msra.gmra.mrb[228].mxu0 %vm267_vm1, %v154_v31  ;;  %16525 = vmatprep.subr.bf16.mxu1 %v24106_v1  ;;  %17568 = vtanh.f32 %v3703_v24  ;;  %v8969_v40 = vpack.c.bf16 %v17561_v14, %v17561_v14  ;;  %v19858_v45 = vpop.permute.xlu0 %9420 }
 0x2ba   :  { %16512 = vmatmul.mubr.msk.bf16.vlgmr.msra.gmra.mrb[228].mxu1 %vm267_vm1, %v155_v59  ;;  %16516 = vmatpush3.bf16.msra.mxu0 %v19526_v58  ;;  %v17563_v5 = vpop.eup %17562  ;;  %v19865_v63 = vpop.permute.xlu1 %9526  ;;  %17570 = vtanh.f32 %v3230_v51 }
 0x2bb   :  { %16526 = vmatpush3.bf16.msra.mxu1 %v19526_v58  ;;  %16517 = vmatprep.subr.bf16.mxu0 %v24106_v1  ;;  %v19887_v33 = vpack.c.bf16 %v17563_v5, %v17563_v5  ;;  %17572 = vtanh.f32 %v3273_v60 }
 0x2bc   :  { %9340 = vrot.lane.b32.xlu1 %v8957_v34, %s17983_s22  ;;  %9632 = vrot.lane.b32.xlu0 %v8968_v36, %s17986_s19 }
 0x2bd   :  { %16527 = vmatprep.subr.bf16.mxu1 %v24106_v1  ;;  %16521 = vmatprep.mubr.msk.bf16.mxu0 %vm17980_vm0, %v24106_v1  ;;  %v19885_v35 = vpop.permute.xlu0 %9528  ;;  %24158 = vst [vmem:[#allocation23_spill] sm:$0xff] %v19887_v33 }
 0x2be   :  { %16518 = vmatpush3.bf16.msra.mxu0 %v19495_v56  ;;  %16531 = vmatprep.mubr.msk.bf16.mxu1 %vm17980_vm0, %v24106_v1  ;;  %v19883_v59 = vpop.permute.xlu1 %9604 }
 0x2bf   :  { %16528 = vmatpush3.bf16.msra.mxu1 %v19495_v56  ;;  %16519 = vmatprep.subr.bf16.mxu0 %v24106_v1 }
 0x2c0   :  { %9710 = vrot.lane.b32.xlu0 %v8969_v40, %s17987_s20  ;;  %9448 = vrot.lane.b32.xlu1 %v8968_v36, %s17984_s13  ;;  %v3745_v46 = vpop.f32.mrb[160].mxu0 }
 0x2c1   :  { %v16163_v47 = vpop.f32.mrb[161].mxu0  ;;  %16529 = vmatprep.subr.bf16.mxu1 %v24106_v1  ;;  %v3788_v53 = vpop.f32.mrb[160].mxu1  ;;  %v3746_v9 = vadd.f32 %v19444_v62, %v3745_v46 }
 0x2c2   :  { %16520 = vmatpush3.bf16.msra.mxu0 %v19507_v43  ;;  %v3748_v12 = vpop.f32.mrb[162].mxu0  ;;  %v17565_v10 = vpop.eup %17564  ;;  %v3789_v22 = vadd.f32 %v19444_v62, %v3788_v53 }
 0x2c3   :  { %16530 = vmatpush3.bf16.msra.mxu1 %v19507_v43  ;;  %v16164_v19 = vpop.f32.mrb[163].mxu0  ;;  %v16173_v52 = vpop.f32.mrb[161].mxu1  ;;  %16535 = vmatprep.subr.bf16.mxu0 %v24106_v1  ;;  %v8970_v44 = vpack.c.bf16 %v17565_v10, %v17565_v10  ;;  %17574 = vtanh.f32 %v3746_v9  ;;  %v158_v12 = vld [vmem:[%s24085_s0 + $0x7e] sm:$0x1] }
 0x2c4   :  { %v3791_v31 = vpop.f32.mrb[162].mxu1  ;;  %9156 = vrot.lane.b32.xlu0 %v8957_v34, %s17981_s29  ;;  %9556 = vrot.lane.b32.xlu1 %v8969_v40, %s17985_s14  ;;  %v17567_v25 = vpop.eup %17566  ;;  %17576 = vtanh.f32 %v3789_v22  ;;  %v159_v52 = vld [vmem:[%s24085_s0 + $0x7f] sm:$0x1] }
 0x2c5   :  { %v16174_v29 = vpop.f32.mrb[163].mxu1  ;;  %16522 = vmatmul.mubr.msk.bf16.vlgmr.msra.gmra.mrb[232].mxu0 %vm267_vm1, %v156_v18  ;;  %16545 = vmatprep.subr.bf16.mxu1 %v24106_v1  ;;  %v17569_v24 = vpop.eup %17568  ;;  %v8959_v36 = vpack.c.bf16 %v17567_v25, %v17567_v25 }
 0x2c6   :  { %16532 = vmatmul.mubr.msk.bf16.vlgmr.msra.gmra.mrb[232].mxu1 %vm267_vm1, %v157_v38  ;;  %16536 = vmatpush3.bf16.msra.mxu0 %v19526_v58  ;;  %v19900_v34 = vpop.permute.xlu0 %9606  ;;  %v8971_v14 = vpack.c.bf16 %v17569_v24, %v17569_v24  ;;  %v19907_v40 = vpop.permute.xlu1 %9682 }
 0x2c7   :  { %16546 = vmatpush3.bf16.msra.mxu1 %v19526_v58  ;;  %16537 = vmatprep.subr.bf16.mxu0 %v24106_v1  ;;  %24159 = vst [vmem:[#allocation24_spill] sm:$0xff] %v19907_v40  ;;  %v17571_v18 = vpop.eup %17570  ;;  %v204_v40 = vld [vmem:[%s24085_s0 + $0xaf] sm:$0x1] }
 0x2c8   :  { %9264 = vrot.lane.b32.xlu0 %v19887_v33, %s17982_s21  ;;  %9634 = vrot.lane.b32.xlu1 %v8970_v44, %s17986_s19  ;;  %v17573_v29 = vpop.eup %17572  ;;  %v8960_v25 = vpack.c.bf16 %v17571_v18, %v17571_v18 }
 0x2c9   :  { %16547 = vmatprep.subr.bf16.mxu1 %v24106_v1  ;;  %16541 = vmatprep.mubr.msk.bf16.mxu0 %vm17980_vm0, %v24106_v1 }
 0x2ca   :  { %16538 = vmatpush3.bf16.msra.mxu0 %v19495_v56  ;;  %16551 = vmatprep.mubr.msk.bf16.mxu1 %vm17980_vm0, %v24106_v1  ;;  %v19912_v53 = vpop.permute.xlu0 %9424  ;;  %v19925_v60 = vpop.permute.xlu1 %9684 }
 0x2cb   :  { %16548 = vmatpush3.bf16.msra.mxu1 %v19495_v56  ;;  %16539 = vmatprep.subr.bf16.mxu0 %v24106_v1  ;;  %24160 = vst [vmem:[#allocation25_spill] sm:$0xff] %v19912_v53  ;;  %24161 = vst [vmem:[#allocation26_spill] sm:$0xff] %v19925_v60  ;;  %v176_v53 = vld [vmem:[%s24085_s0 + $0x91] sm:$0x1] }
 0x2cc   :  { %9342 = vrot.lane.b32.xlu0 %v8959_v36, %s17983_s22  ;;  %9712 = vrot.lane.b32.xlu1 %v8971_v14, %s17987_s20  ;;  %v3831_v46 = vpop.f32.mrb[164].mxu0 }
 0x2cd   :  { %v16183_v51 = vpop.f32.mrb[165].mxu0  ;;  %16549 = vmatprep.subr.bf16.mxu1 %v24106_v1  ;;  %v3874_v47 = vpop.f32.mrb[164].mxu1  ;;  %v3832_v31 = vadd.f32 %v19444_v62, %v3831_v46  ;;  %v19941_v62 = vld [vmem:[%s24087_s2] ss:$0 sm:$0xff] }
 0x2ce   :  { %16540 = vmatpush3.bf16.msra.mxu0 %v19507_v43  ;;  %v3834_v5 = vpop.f32.mrb[166].mxu0  ;;  %v16193_v19 = vpop.f32.mrb[165].mxu1  ;;  %v3875_v22 = vadd.f32 %v19941_v62, %v3874_v47 }
 0x2cf   :  { %16550 = vmatpush3.bf16.msra.mxu1 %v19507_v43  ;;  %v16184_v10 = vpop.f32.mrb[167].mxu0  ;;  %16555 = vmatprep.subr.bf16.mxu0 %v24106_v1  ;;  %v3877_v38 = vpop.f32.mrb[166].mxu1  ;;  %17578 = vtanh.f32 %v3832_v31  ;;  %v160_v31 = vld [vmem:[%s24085_s0 + $0x80] sm:$0x1] }
 0x2d0   :  { %9450 = vrot.lane.b32.xlu0 %v8970_v44, %s17984_s13  ;;  %9158 = vrot.lane.b32.xlu1 %v8959_v36, %s17981_s29  ;;  %v16194_v9 = vpop.f32.mrb[167].mxu1  ;;  %v17575_v24 = vpop.eup %17574  ;;  %v8961_v36 = vpack.c.bf16 %v17573_v29, %v17573_v29  ;;  %17580 = vtanh.f32 %v3875_v22 }
 0x2d1   :  { %16542 = vmatmul.mubr.msk.bf16.vlgmr.msra.gmra.mrb[236].mxu0 %vm267_vm1, %v158_v12  ;;  %16565 = vmatprep.subr.bf16.mxu1 %v24106_v1  ;;  %v19934_v44 = vpop.permute.xlu0 %9532  ;;  %v8972_v46 = vpack.c.bf16 %v17575_v24, %v17575_v24  ;;  %v19950_v51 = vpop.permute.xlu1 %9422 }
 0x2d2   :  { %16552 = vmatmul.mubr.msk.bf16.vlgmr.msra.gmra.mrb[236].mxu1 %vm267_vm1, %v159_v52  ;;  %16556 = vmatpush3.bf16.msra.mxu0 %v19526_v58  ;;  %24162 = vst [vmem:[#allocation27_spill] sm:$0xff] %v19934_v44  ;;  %24163 = vst [vmem:[#allocation28_spill] sm:$0xff] %v19950_v51 }
 0x2d3   :  { %16566 = vmatpush3.bf16.msra.mxu1 %v19526_v58  ;;  %16557 = vmatprep.subr.bf16.mxu0 %v24106_v1 }
 0x2d4   :  { %9558 = vrot.lane.b32.xlu0 %v8971_v14, %s17985_s14  ;;  %9266 = vrot.lane.b32.xlu1 %v8960_v25, %s17982_s21  ;;  %v17577_v14 = vpop.eup %17576  ;;  %v161_v25 = vld [vmem:[%s24085_s0 + $0x81] sm:$0x1] }
 0x2d5   :  { %16567 = vmatprep.subr.bf16.mxu1 %v24106_v1  ;;  %16561 = vmatprep.mubr.msk.bf16.mxu0 %vm17980_vm0, %v24106_v1  ;;  %v19954_v47 = vpop.permute.xlu0 %9610  ;;  %v8973_v10 = vpack.c.bf16 %v17577_v14, %v17577_v14 }
 0x2d6   :  { %16558 = vmatpush3.bf16.msra.mxu0 %v19495_v56  ;;  %16571 = vmatprep.mubr.msk.bf16.mxu1 %vm17980_vm0, %v24106_v1  ;;  %24164 = vst [vmem:[#allocation29_spill] sm:$0xff] %v19954_v47 }
 0x2d7   :  { %16568 = vmatpush3.bf16.msra.mxu1 %v19495_v56  ;;  %16559 = vmatprep.subr.bf16.mxu0 %v24106_v1 }
 0x2d8   :  { %9344 = vrot.lane.b32.xlu1 %v8961_v36, %s17983_s22  ;;  %9636 = vrot.lane.b32.xlu0 %v8972_v46, %s17986_s19  ;;  %v19958_v5 = vpop.f32.mrb[168].mxu0 }
 0x2d9   :  { %24165 = vst [vmem:[#allocation30_spill] sm:$0xff] %v19958_v5  ;;  %v3960_v12 = vpop.f32.mrb[168].mxu1  ;;  %v16203_v18 = vpop.f32.mrb[169].mxu0  ;;  %16569 = vmatprep.subr.bf16.mxu1 %v24106_v1 }
 0x2da   :  { %v3961_v19 = vadd.f32 %v19941_v62, %v3960_v12  ;;  %v3920_v52 = vpop.f32.mrb[170].mxu0  ;;  %16560 = vmatpush3.bf16.msra.mxu0 %v19507_v43  ;;  %v16213_v38 = vpop.f32.mrb[169].mxu1 }
 0x2db   :  { %16570 = vmatpush3.bf16.msra.mxu1 %v19507_v43  ;;  %v16204_v9 = vpop.f32.mrb[171].mxu0  ;;  %v3963_v29 = vpop.f32.mrb[170].mxu1  ;;  %16575 = vmatprep.subr.bf16.mxu0 %v24106_v1 }
 0x2dc   :  { %v19971_v24 = vpop.permute.xlu0 %9136  ;;  %17582 = vtanh.f32 %v3961_v19  ;;  %9714 = vrot.lane.b32.xlu0 %v8973_v10, %s17987_s20  ;;  %9452 = vrot.lane.b32.xlu1 %v8972_v46, %s17984_s13  ;;  %v16214_v22 = vpop.f32.mrb[171].mxu1 }
 0x2dd   :  { %16562 = vmatmul.mubr.msk.bf16.vlgmr.msra.gmra.mrb[240].mxu0 %vm267_vm1, %v160_v31  ;;  %16585 = vmatprep.subr.bf16.mxu1 %v24106_v1  ;;  %v17579_v36 = vpop.eup %17578  ;;  %v19987_v46 = vpop.permute.xlu1 %9530 }
 0x2de   :  { %16572 = vmatmul.mubr.msk.bf16.vlgmr.msra.gmra.mrb[240].mxu1 %vm267_vm1, %v161_v25  ;;  %16576 = vmatpush3.bf16.msra.mxu0 %v19526_v58  ;;  %24166 = vst [vmem:[#allocation31_spill] sm:$0xff] %v19987_v46  ;;  %v8974_v14 = vpack.c.bf16 %v17579_v36, %v17579_v36  ;;  %v17581_v12 = vpop.eup %17580  ;;  %v20003_v36 = vld [vmem:[%s24086_s1 + $0x10] sm:$0xff]   ;;  %v174_v46 = vld [vmem:[%s24085_s0 + $0x8f] sm:$0x1] }
 0x2df   :  { %16586 = vmatpush3.bf16.msra.mxu1 %v19526_v58  ;;  %16577 = vmatprep.subr.bf16.mxu0 %v24106_v1  ;;  %v8975_v31 = vpack.c.bf16 %v17581_v12, %v17581_v12 }
 0x2e0   :  { %9560 = vrot.lane.b32.xlu1 %v8973_v10, %s17985_s14  ;;  %16587 = vmatprep.subr.bf16.mxu1 %v24106_v1 }
 0x2e1   :  { %16581 = vmatprep.mubr.msk.bf16.mxu0 %vm17980_vm0, %v24106_v1  ;;  %16591 = vmatprep.mubr.msk.bf16.mxu1 %vm17980_vm0, %v24106_v1 }
 0x2e2   :  { %16578 = vmatpush3.bf16.msra.mxu0 %v19495_v56 }
 0x2e3   :  { %16588 = vmatpush3.bf16.msra.mxu1 %v19495_v56  ;;  %16579 = vmatprep.subr.bf16.mxu0 %v24106_v1  ;;  %v162_v56 = vld [vmem:[%s24085_s0 + $0x82] sm:$0x1] }
 0x2e4   :  { %9638 = vrot.lane.b32.xlu1 %v8974_v14, %s17986_s19  ;;  %v4003_v18 = vpop.f32.mrb[172].mxu0  ;;  %16589 = vmatprep.subr.bf16.mxu1 %v24106_v1 }
 0x2e5   :  { %v4046_v10 = vpop.f32.mrb[172].mxu1  ;;  %v4004_v19 = vadd.f32 %v19941_v62, %v4003_v18  ;;  %v16223_v52 = vpop.f32.mrb[173].mxu0 }
 0x2e6   :  { %v17583_v38 = vpop.eup %17582  ;;  %v4047_v9 = vadd.f32 %v19941_v62, %v4046_v10  ;;  %v4006_v29 = vpop.f32.mrb[174].mxu0  ;;  %16580 = vmatpush3.bf16.msra.mxu0 %v19507_v43  ;;  %v163_v43 = vld [vmem:[%s24085_s0 + $0x83] sm:$0x1]  ;;  %v20030_v52 = vld [vmem:[%s24086_s1 + $0x8] sm:$0xff]  }
 0x2e7   :  { %v16233_v25 = vpop.f32.mrb[173].mxu1  ;;  %v8977_v22 = vpack.c.bf16 %v17583_v38, %v17583_v38  ;;  %17584 = vtanh.f32 %v4004_v19  ;;  %16590 = vmatpush3.bf16.msra.mxu1 %v20003_v36  ;;  %v16224_v14 = vpop.f32.mrb[175].mxu0  ;;  %16595 = vmatprep.subr.bf16.mxu0 %v24106_v1 }
 0x2e8   :  { %v4049_v12 = vpop.f32.mrb[174].mxu1  ;;  %v20010_v18 = vpop.permute.xlu1 %9608  ;;  %17586 = vtanh.f32 %v4047_v9  ;;  %9716 = vrot.lane.b32.xlu1 %v8975_v31, %s17987_s20  ;;  %16605 = vmatprep.subr.bf16.mxu1 %v24106_v1 }
 0x2e9   :  { %24167 = vst [vmem:[#allocation32_spill] sm:$0xff] %v20010_v18  ;;  %v16234_v10 = vpop.f32.mrb[175].mxu1  ;;  %v20014_v19 = vpop.permute.xlu0 %9246  ;;  %9160 = vrot.lane.b32.xlu0 %v8977_v22, %s17981_s29  ;;  %16582 = vmatmul.mubr.msk.bf16.vlgmr.msra.gmra.mrb[244].mxu0 %vm267_vm1, %v162_v56 }
 0x2ea   :  { %16592 = vmatmul.mubr.msk.bf16.vlgmr.msra.gmra.mrb[244].mxu1 %vm267_vm1, %v163_v43  ;;  %16596 = vmatpush3.bf16.msra.mxu0 %v19526_v58  ;;  %v164_v10 = vld [vmem:[%s24085_s0 + $0x84] sm:$0x1] }
 0x2eb   :  { %16606 = vmatpush3.bf16.msra.mxu1 %v19526_v58  ;;  %16597 = vmatprep.subr.bf16.mxu0 %v24106_v1 }
 0x2ec   :  { %16607 = vmatprep.subr.bf16.mxu1 %v24106_v1  ;;  %16601 = vmatprep.mubr.msk.bf16.mxu0 %vm17980_vm0, %v24106_v1 }
 0x2ed   :  { %16611 = vmatprep.mubr.msk.bf16.mxu1 %vm17980_vm0, %v24106_v1  ;;  %v20035_v58 = vpop.permute.xlu0 %9324 }
 0x2ee   :  { %16598 = vmatpush3.bf16.msra.mxu0 %v20030_v52 }
 0x2ef   :  { %16608 = vmatpush3.bf16.msra.mxu1 %v20030_v52  ;;  %16599 = vmatprep.subr.bf16.mxu0 %v24106_v1 }
 0x2f0   :  { %v4089_v38 = vpop.f32.mrb[176].mxu0  ;;  %16609 = vmatprep.subr.bf16.mxu1 %v24106_v1 }
 0x2f1   :  { %v17585_v31 = vpop.eup %17584  ;;  %v4090_v9 = vadd.f32 %v19941_v62, %v4089_v38  ;;  %v16243_v29 = vpop.f32.mrb[177].mxu0 }
 0x2f2   :  { %v4132_v25 = vpop.f32.mrb[176].mxu1  ;;  %v17587_v56 = vpop.eup %17586  ;;  %v20039_v22 = vpack.c.bf16 %v17585_v31, %v17585_v31  ;;  %16600 = vmatpush3.bf16.msra.mxu0 %v20003_v36  ;;  %v165_v31 = vld [vmem:[%s24085_s0 + $0x85] sm:$0x1] }
 0x2f3   :  { %v4092_v14 = vpop.f32.mrb[178].mxu0  ;;  %v4133_v12 = vadd.f32 %v19941_v62, %v4132_v25  ;;  %v16253_v43 = vpop.f32.mrb[177].mxu1  ;;  %v8979_v5 = vpack.c.bf16 %v17587_v56, %v17587_v56  ;;  %17588 = vtanh.f32 %v4090_v9  ;;  %16610 = vmatpush3.bf16.msra.mxu1 %v20003_v36  ;;  %16615 = vmatprep.subr.bf16.mxu0 %v24106_v1  ;;  %v20062_v9 = vld [vmem:[%s24086_s1] sm:$0xff]  }
 0x2f4   :  { %24168 = vst [vmem:[#allocation33_spill] sm:$0xff] %v20039_v22  ;;  %v16244_v38 = vpop.f32.mrb[179].mxu0  ;;  %v4135_v29 = vpop.f32.mrb[178].mxu1  ;;  %9268 = vrot.lane.b32.xlu0 %v20039_v22, %s17982_s21  ;;  %16625 = vmatprep.subr.bf16.mxu1 %v24106_v1  ;;  %v166_v22 = vld [vmem:[%s24085_s0 + $0x87] sm:$0x1] }
 0x2f5   :  { %17590 = vtanh.f32 %v4133_v12  ;;  %v16254_v25 = vpop.f32.mrb[179].mxu1  ;;  %v20054_v14 = vpop.permute.xlu1 %9686  ;;  %9162 = vrot.lane.b32.xlu1 %v8979_v5, %s17981_s29  ;;  %16602 = vmatmul.mubr.msk.bf16.vlgmr.msra.gmra.mrb[248].mxu0 %vm267_vm1, %v164_v10 }
 0x2f6   :  { %24169 = vst [vmem:[#allocation34_spill] sm:$0xff] %v20054_v14  ;;  %16612 = vmatmul.mubr.msk.bf16.vlgmr.msra.gmra.mrb[248].mxu1 %vm267_vm1, %v165_v31  ;;  %16616 = vmatpush3.bf16.msra.mxu0 %v20062_v9  ;;  %v20067_v56 = vpop.permute.xlu0 %9140 }
 0x2f7   :  { %16626 = vmatpush3.bf16.msra.mxu1 %v20062_v9  ;;  %16617 = vmatprep.subr.bf16.mxu0 %v24106_v1 }
 0x2f8   :  { %9346 = vrot.lane.b32.xlu0 %v8979_v5, %s17983_s22  ;;  %16627 = vmatprep.subr.bf16.mxu1 %v24106_v1 }
 0x2f9   :  { %16621 = vmatprep.mubr.msk.bf16.mxu0 %vm17980_vm0, %v24106_v1  ;;  %16631 = vmatprep.mubr.msk.bf16.mxu1 %vm17980_vm0, %v24106_v1 }
 0x2fa   :  { %16618 = vmatpush3.bf16.msra.mxu0 %v20030_v52 }
 0x2fb   :  { %16628 = vmatpush3.bf16.msra.mxu1 %v20030_v52  ;;  %16619 = vmatprep.subr.bf16.mxu0 %v24106_v1 }
 0x2fc   :  { %v20078_v12 = vpop.f32.mrb[180].mxu0  ;;  %16629 = vmatprep.subr.bf16.mxu1 %v24106_v1 }
 0x2fd   :  { %v17589_v43 = vpop.eup %17588  ;;  %v16263_v5 = vpop.f32.mrb[181].mxu0 }
 0x2fe   :  { %v20081_v10 = vpop.f32.mrb[180].mxu1  ;;  %v20083_v29 = vpack.c.bf16 %v17589_v43, %v17589_v43  ;;  %v4178_v31 = vpop.f32.mrb[182].mxu0  ;;  %16620 = vmatpush3.bf16.msra.mxu0 %v20003_v36  ;;  %v167_v5 = vld [vmem:[%s24085_s0 + $0x88] sm:$0x1] }
 0x2ff   :  { %v17591_v38 = vpop.eup %17590  ;;  %v16273_v25 = vpop.f32.mrb[181].mxu1  ;;  %16630 = vmatpush3.bf16.msra.mxu1 %v20003_v36  ;;  %16635 = vmatprep.subr.bf16.mxu0 %v24106_v1 }
 0x300   :  { %24170 = vst [vmem:[#allocation35_spill] sm:$0xff] %v20083_v29  ;;  %v16264_v33 = vpop.f32.mrb[183].mxu0  ;;  %v4221_v3 = vpop.f32.mrb[182].mxu1  ;;  %v20096_v31 = vpack.c.bf16 %v17591_v38, %v17591_v38  ;;  %16645 = vmatprep.subr.bf16.mxu1 %v24106_v1 }
 0x301   :  { %v20094_v43 = vpop.permute.xlu1 %9688  ;;  %9270 = vrot.lane.b32.xlu1 %v20083_v29, %s17982_s21  ;;  %v16274_v25 = vpop.f32.mrb[183].mxu1  ;;  %16622 = vmatmul.mubr.msk.bf16.vlgmr.msra.gmra.mrb[252].mxu0 %vm267_vm1, %v166_v22 }
 0x302   :  { %24171 = vst [vmem:[#allocation36_spill] sm:$0xff] %v20094_v43  ;;  %16632 = vmatmul.mubr.msk.bf16.vlgmr.msra.gmra.mrb[252].mxu1 %vm267_vm1, %v167_v5  ;;  %16636 = vmatpush3.bf16.msra.mxu0 %v20062_v9  ;;  %v168_v25 = vld [vmem:[%s24085_s0 + $0x89] sm:$0x1] }
 0x303   :  { %16646 = vmatpush3.bf16.msra.mxu1 %v20062_v9  ;;  %16637 = vmatprep.subr.bf16.mxu0 %v24106_v1 }
 0x304   :  { %16647 = vmatprep.subr.bf16.mxu1 %v24106_v1  ;;  %16641 = vmatprep.mubr.msk.bf16.mxu0 %vm17980_vm0, %v24106_v1 }
 0x305   :  { %v20106_v3 = vpop.permute.xlu1 %9138  ;;  %9348 = vrot.lane.b32.xlu1 %v20096_v31, %s17983_s22  ;;  %16651 = vmatprep.mubr.msk.bf16.mxu1 %vm17980_vm0, %v24106_v1 }
 0x306   :  { %16638 = vmatpush3.bf16.msra.mxu0 %v20030_v52 }
 0x307   :  { %16648 = vmatpush3.bf16.msra.mxu1 %v20030_v52  ;;  %16639 = vmatprep.subr.bf16.mxu0 %v24106_v1 }
 0x308   :  { %v20118_v33 = vpop.f32.mrb[184].mxu0  ;;  %16649 = vmatprep.subr.bf16.mxu1 %v24106_v1 }
 0x309   :  { %v16283_v22 = vpop.f32.mrb[185].mxu0  ;;  %v20121_v38 = vpop.f32.mrb[184].mxu1 }
 0x30a   :  { %16640 = vmatpush3.bf16.msra.mxu0 %v20003_v36  ;;  %v4264_v5 = vpop.f32.mrb[186].mxu0  ;;  %v16293_v2 = vpop.f32.mrb[185].mxu1 }
 0x30b   :  { %16650 = vmatpush3.bf16.msra.mxu1 %v20003_v36  ;;  %v16284_v29 = vpop.f32.mrb[187].mxu0  ;;  %16655 = vmatprep.subr.bf16.mxu0 %v24106_v1  ;;  %v4307_v22 = vpop.f32.mrb[186].mxu1 }
 0x30c   :  { %16665 = vmatprep.subr.bf16.mxu1 %v24106_v1  ;;  %v16294_v23 = vpop.f32.mrb[187].mxu1  ;;  %v170_v29 = vld [vmem:[%s24085_s0 + $0x8b] sm:$0x1]  ;;  %v171_v22 = vld [vmem:[%s24085_s0 + $0x8c] sm:$0x1] }
 0x30d   :  { %16642 = vmatmul.mubr.msk.bf16.vlgmr.msra.gmra.mrb[0].mxu0 %vm267_vm1, %v168_v25 }
 0x30e   :  { %16652 = vmatmul.mubr.msk.bf16.vlgmr.msra.gmra.mrb[0].mxu1 %vm267_vm1, %v169_v13  ;;  %16656 = vmatpush3.bf16.msra.mxu0 %v20062_v9 }
 0x30f   :  { %16666 = vmatpush3.bf16.msra.mxu1 %v20062_v9  ;;  %16657 = vmatprep.subr.bf16.mxu0 %v24106_v1 }
 0x310   :  { %16667 = vmatprep.subr.bf16.mxu1 %v24106_v1  ;;  %16661 = vmatprep.mubr.msk.bf16.mxu0 %vm17980_vm0, %v24106_v1 }
 0x311   :  { %16671 = vmatprep.mubr.msk.bf16.mxu1 %vm17980_vm0, %v24106_v1 }
 0x312   :  { %16658 = vmatpush3.bf16.msra.mxu0 %v20030_v52 }
 0x313   :  { %16668 = vmatpush3.bf16.msra.mxu1 %v20030_v52  ;;  %16659 = vmatprep.subr.bf16.mxu0 %v24106_v1 }
 0x314   :  { %v20146_v23 = vpop.f32.mrb[188].mxu0  ;;  %16669 = vmatprep.subr.bf16.mxu1 %v24106_v1 }
 0x315   :  { %v16303_v13 = vpop.f32.mrb[189].mxu0  ;;  %v20149_v2 = vpop.f32.mrb[188].mxu1 }
 0x316   :  { %16660 = vmatpush3.bf16.msra.mxu0 %v20003_v36  ;;  %v4350_v5 = vpop.f32.mrb[190].mxu0  ;;  %v16313_v25 = vpop.f32.mrb[189].mxu1 }
 0x317   :  { %16670 = vmatpush3.bf16.msra.mxu1 %v20003_v36  ;;  %16675 = vmatprep.subr.bf16.mxu0 %v24106_v1  ;;  %v16304_v15 = vpop.f32.mrb[191].mxu0  ;;  %v4393_v13 = vpop.f32.mrb[190].mxu1 }
 0x318   :  { %16685 = vmatprep.subr.bf16.mxu1 %v24106_v1  ;;  %v16314_v0 = vpop.f32.mrb[191].mxu1  ;;  %v20171_v15 = vpop.permute.xlu0 %9142 }
 0x319   :  { %16662 = vmatmul.mubr.msk.bf16.vlgmr.msra.gmra.mrb[4].mxu0 %vm267_vm1, %v170_v29 }
 0x31a   :  { %16672 = vmatmul.mubr.msk.bf16.vlgmr.msra.gmra.mrb[4].mxu1 %vm267_vm1, %v171_v22  ;;  %16676 = vmatpush3.bf16.msra.mxu0 %v20062_v9  ;;  %v172_v22 = vld [vmem:[%s24085_s0 + $0x8d] sm:$0x1] }
 0x31b   :  { %16686 = vmatpush3.bf16.msra.mxu1 %v20062_v9  ;;  %16677 = vmatprep.subr.bf16.mxu0 %v24106_v1 }
 0x31c   :  { %16687 = vmatprep.subr.bf16.mxu1 %v24106_v1  ;;  %16681 = vmatprep.mubr.msk.bf16.mxu0 %vm17980_vm0, %v24106_v1  ;;  %v20181_v25 = vpop.permute.xlu0 %9250 }
 0x31d   :  { %16691 = vmatprep.mubr.msk.bf16.mxu1 %vm17980_vm0, %v24106_v1 }
 0x31e   :  { %16678 = vmatpush3.bf16.msra.mxu0 %v20030_v52 }
 0x31f   :  { %16688 = vmatpush3.bf16.msra.mxu1 %v20030_v52  ;;  %16679 = vmatprep.subr.bf16.mxu0 %v24106_v1 }
 0x320   :  { %v20176_v0 = vpop.f32.mrb[192].mxu0  ;;  %16689 = vmatprep.subr.bf16.mxu1 %v24106_v1 }
 0x321   :  { %v16323_v29 = vpop.f32.mrb[193].mxu0  ;;  %v20179_v5 = vpop.f32.mrb[192].mxu1 }
 0x322   :  { %16680 = vmatpush3.bf16.msra.mxu0 %v20003_v36  ;;  %v4436_v13 = vpop.f32.mrb[194].mxu0  ;;  %v16333_v30 = vpop.f32.mrb[193].mxu1  ;;  %v173_v29 = vld [vmem:[%s24085_s0 + $0x8e] sm:$0x1] }
 0x323   :  { %16690 = vmatpush3.bf16.msra.mxu1 %v20003_v36  ;;  %16695 = vmatprep.subr.bf16.mxu0 %v24106_v1  ;;  %v16324_v8 = vpop.f32.mrb[195].mxu0  ;;  %v4479_v43 = vpop.f32.mrb[194].mxu1 }
 0x324   :  { %16705 = vmatprep.subr.bf16.mxu1 %v24106_v1  ;;  %v16334_v14 = vpop.f32.mrb[195].mxu1  ;;  %v20198_v30 = vpop.permute.xlu1 %9244 }
 0x325   :  { %16682 = vmatmul.mubr.msk.bf16.vlgmr.msra.gmra.mrb[8].mxu0 %vm267_vm1, %v172_v22  ;;  %v20200_v13 = vpop.permute.xlu0 %9328 }
 0x326   :  { %16692 = vmatmul.mubr.msk.bf16.vlgmr.msra.gmra.mrb[8].mxu1 %vm267_vm1, %v173_v29  ;;  %16696 = vmatpush3.bf16.msra.mxu0 %v20062_v9 }
 0x327   :  { %16706 = vmatpush3.bf16.msra.mxu1 %v20062_v9  ;;  %16697 = vmatprep.subr.bf16.mxu0 %v24106_v1 }
 0x328   :  { %16707 = vmatprep.subr.bf16.mxu1 %v24106_v1  ;;  %16701 = vmatprep.mubr.msk.bf16.mxu0 %vm17980_vm0, %v24106_v1  ;;  %v20212_v29 = vpop.permute.xlu1 %9322 }
 0x329   :  { %16711 = vmatprep.mubr.msk.bf16.mxu1 %vm17980_vm0, %v24106_v1  ;;  %v20214_v18 = vpop.permute.xlu0 %9144 }
 0x32a   :  { %16698 = vmatpush3.bf16.msra.mxu0 %v20030_v52  ;;  %24172 = vst [vmem:[#allocation37_spill] sm:$0xff] %v20214_v18 }
 0x32b   :  { %16708 = vmatpush3.bf16.msra.mxu1 %v20030_v52  ;;  %16699 = vmatprep.subr.bf16.mxu0 %v24106_v1 }
 0x32c   :  { %v4519_v8 = vpop.f32.mrb[196].mxu0  ;;  %16709 = vmatprep.subr.bf16.mxu1 %v24106_v1 }
 0x32d   :  { %v4520_v14 = vadd.f32 %v19941_v62, %v4519_v8  ;;  %v16343_v43 = vpop.f32.mrb[197].mxu0  ;;  %v4562_v22 = vpop.f32.mrb[196].mxu1  ;;  %v24173_v8 = vmov 0.0  }
 0x32e   :  { %v4563_v47 = vadd.f32 %v19941_v62, %v4562_v22  ;;  %16700 = vmatpush3.bf16.msra.mxu0 %v20003_v36  ;;  %v4522_v1 = vpop.f32.mrb[198].mxu0  ;;  %v16353_v55 = vpop.f32.mrb[197].mxu1  ;;  %v175_v43 = vld [vmem:[%s24085_s0 + $0x90] sm:$0x1] }
 0x32f   :  { %17592 = vtanh.f32 %v4520_v14  ;;  %16710 = vmatpush3.bf16.msra.mxu1 %v20003_v36  ;;  %16715 = vmatprep.subr.bf16.mxu0 %v24173_v8  ;;  %v16344_v44 = vpop.f32.mrb[199].mxu0  ;;  %v4565_v22 = vpop.f32.mrb[198].mxu1 }
 0x330   :  { %17594 = vtanh.f32 %v4563_v47  ;;  %16725 = vmatprep.subr.bf16.mxu1 %v24173_v8  ;;  %v16354_v51 = vpop.f32.mrb[199].mxu1  ;;  %v20232_v1 = vpop.permute.xlu1 %9248 }
 0x331   :  { %16702 = vmatmul.mubr.msk.bf16.vlgmr.msra.gmra.mrb[12].mxu0 %vm267_vm1, %v174_v46  ;;  %v20239_v55 = vpop.permute.xlu0 %9146 }
 0x332   :  { %16712 = vmatmul.mubr.msk.bf16.vlgmr.msra.gmra.mrb[12].mxu1 %vm267_vm1, %v175_v43  ;;  %16716 = vmatpush3.bf16.msra.mxu0 %v20062_v9  ;;  %24174 = vst [vmem:[#allocation38_spill] sm:$0xff] %v20239_v55 }
 0x333   :  { %16726 = vmatpush3.bf16.msra.mxu1 %v20062_v9  ;;  %16717 = vmatprep.subr.bf16.mxu0 %v24173_v8 }
 0x334   :  { %16727 = vmatprep.subr.bf16.mxu1 %v24173_v8  ;;  %16721 = vmatprep.mubr.msk.bf16.mxu0 %vm17980_vm0, %v24173_v8  ;;  %v20246_v22 = vpop.permute.xlu1 %9326 }
 0x335   :  { %16731 = vmatprep.mubr.msk.bf16.mxu1 %vm17980_vm0, %v24173_v8  ;;  %v20248_v11 = vpop.permute.xlu0 %9432 }
 0x336   :  { %16718 = vmatpush3.bf16.msra.mxu0 %v20030_v52 }
 0x337   :  { %16728 = vmatpush3.bf16.msra.mxu1 %v20030_v52  ;;  %16719 = vmatprep.subr.bf16.mxu0 %v24173_v8 }
 0x338   :  { %v4605_v44 = vpop.f32.mrb[200].mxu0  ;;  %16729 = vmatprep.subr.bf16.mxu1 %v24173_v8 }
 0x339   :  { %v17593_v51 = vpop.eup %17592  ;;  %v4606_v47 = vadd.f32 %v19941_v62, %v4605_v44  ;;  %v16363_v46 = vpop.f32.mrb[201].mxu0 }
 0x33a   :  { %v4648_v14 = vpop.f32.mrb[200].mxu1  ;;  %v17595_v43 = vpop.eup %17594  ;;  %v8990_v55 = vpack.c.bf16 %v17593_v51, %v17593_v51  ;;  %16720 = vmatpush3.bf16.msra.mxu0 %v20003_v36 }
 0x33b   :  { %v4649_v18 = vadd.f32 %v19941_v62, %v4648_v14  ;;  %17596 = vtanh.f32 %v4606_v47  ;;  %16730 = vmatpush3.bf16.msra.mxu1 %v20003_v36  ;;  %v4608_v44 = vpop.f32.mrb[202].mxu0  ;;  %v16373_v46 = vpop.f32.mrb[201].mxu1  ;;  %16735 = vmatprep.subr.bf16.mxu0 %v24173_v8  ;;  %v8991_v51 = vpack.c.bf16 %v17595_v43, %v17595_v43 }
 0x33c   :  { %v16364_v14 = vpop.f32.mrb[203].mxu0  ;;  %v4651_v37 = vpop.f32.mrb[202].mxu1  ;;  %9454 = vrot.lane.b32.xlu0 %v8990_v55, %s17984_s13  ;;  %16745 = vmatprep.subr.bf16.mxu1 %v24173_v8 }
 0x33d   :  { %17598 = vtanh.f32 %v4649_v18  ;;  %v16374_v49 = vpop.f32.mrb[203].mxu1  ;;  %16722 = vmatmul.mubr.msk.bf16.vlgmr.msra.gmra.mrb[16].mxu0 %vm267_vm1, %v176_v53  ;;  %v20267_v47 = vpop.permute.xlu1 %9430  ;;  %v4176_v37 = vadd.f32 %v19941_v62, %v20078_v12  ;;  %v4219_v18 = vadd.f32 %v19941_v62, %v20081_v10 }
 0x33e   :  { %16732 = vmatmul.mubr.msk.bf16.vlgmr.msra.gmra.mrb[16].mxu1 %vm267_vm1, %v177_v6  ;;  %16736 = vmatpush3.bf16.msra.mxu0 %v20062_v9  ;;  %v20277_v49 = vpop.permute.xlu0 %9540 }
 0x33f   :  { %16746 = vmatpush3.bf16.msra.mxu1 %v20062_v9  ;;  %16737 = vmatprep.subr.bf16.mxu0 %v24173_v8  ;;  %17600 = vtanh.f32 %v4176_v37  ;;  %v178_v37 = vld [vmem:[%s24085_s0 + $0x93] sm:$0x1] }
 0x340   :  { %9562 = vrot.lane.b32.xlu0 %v8991_v51, %s17985_s14  ;;  %16747 = vmatprep.subr.bf16.mxu1 %v24173_v8 }
 0x341   :  { %16741 = vmatprep.mubr.msk.bf16.mxu0 %vm17980_vm0, %v24173_v8  ;;  %16751 = vmatprep.mubr.msk.bf16.mxu1 %vm17980_vm0, %v24173_v8  ;;  %v20286_v46 = vpop.permute.xlu1 %9538 }
 0x342   :  { %16738 = vmatpush3.bf16.msra.mxu0 %v20030_v52  ;;  %v20288_v51 = vpop.permute.xlu0 %9618 }
 0x343   :  { %16748 = vmatpush3.bf16.msra.mxu1 %v20030_v52  ;;  %16739 = vmatprep.subr.bf16.mxu0 %v24173_v8 }
 0x344   :  { %v4691_v6 = vpop.f32.mrb[204].mxu0  ;;  %16749 = vmatprep.subr.bf16.mxu1 %v24173_v8 }
 0x345   :  { %v17597_v53 = vpop.eup %17596  ;;  %v4692_v12 = vadd.f32 %v19941_v62, %v4691_v6  ;;  %v16383_v55 = vpop.f32.mrb[205].mxu0 }
 0x346   :  { %v4734_v43 = vpop.f32.mrb[204].mxu1  ;;  %v8992_v14 = vpack.c.bf16 %v17597_v53, %v17597_v53  ;;  %16740 = vmatpush3.bf16.msra.mxu0 %v20003_v36  ;;  %v4694_v10 = vpop.f32.mrb[206].mxu0  ;;  %v179_v55 = vld [vmem:[%s24085_s0 + $0x94] sm:$0x1] }
 0x347   :  { %v17599_v44 = vpop.eup %17598  ;;  %v4735_v20 = vadd.f32 %v19941_v62, %v4734_v43  ;;  %17602 = vtanh.f32 %v4692_v12  ;;  %16750 = vmatpush3.bf16.msra.mxu1 %v20003_v36  ;;  %v16393_v6 = vpop.f32.mrb[205].mxu1  ;;  %16755 = vmatprep.subr.bf16.mxu0 %v24173_v8 }
 0x348   :  { %v8993_v53 = vpack.c.bf16 %v17599_v44, %v17599_v44  ;;  %v16384_v43 = vpop.f32.mrb[207].mxu0  ;;  %v4737_v50 = vpop.f32.mrb[206].mxu1  ;;  %9640 = vrot.lane.b32.xlu0 %v8992_v14, %s17986_s19  ;;  %9456 = vrot.lane.b32.xlu1 %v8992_v14, %s17984_s13 }
 0x349   :  { %17604 = vtanh.f32 %v4735_v20  ;;  %v16394_v12 = vpop.f32.mrb[207].mxu1  ;;  %16742 = vmatmul.mubr.msk.bf16.vlgmr.msra.gmra.mrb[20].mxu0 %vm267_vm1, %v178_v37  ;;  %16765 = vmatprep.subr.bf16.mxu1 %v24173_v8  ;;  %v20304_v10 = vpop.permute.xlu1 %9616  ;;  %v4262_v50 = vadd.f32 %v19941_v62, %v20118_v33  ;;  %v4305_v33 = vadd.f32 %v19941_v62, %v20121_v38 }
 0x34a   :  { %17606 = vtanh.f32 %v4219_v18  ;;  %16752 = vmatmul.mubr.msk.bf16.vlgmr.msra.gmra.mrb[20].mxu1 %vm267_vm1, %v179_v55  ;;  %16756 = vmatpush3.bf16.msra.mxu0 %v20062_v9  ;;  %v20317_v20 = vpop.permute.xlu0 %9696  ;;  %v17601_v18 = vpop.eup %17600 }
 0x34b   :  { %16766 = vmatpush3.bf16.msra.mxu1 %v20062_v9  ;;  %16757 = vmatprep.subr.bf16.mxu0 %v24173_v8  ;;  %17608 = vtanh.f32 %v4262_v50  ;;  %v20332_v12 = vpack.c.bf16 %v17601_v18, %v17601_v18 }
 0x34c   :  { %9718 = vrot.lane.b32.xlu0 %v8993_v53, %s17987_s20  ;;  %9564 = vrot.lane.b32.xlu1 %v8993_v53, %s17985_s14  ;;  %17610 = vtanh.f32 %v4305_v33 }
 0x34d   :  { %16767 = vmatprep.subr.bf16.mxu1 %v24173_v8  ;;  %16761 = vmatprep.mubr.msk.bf16.mxu0 %vm17980_vm0, %v24173_v8  ;;  %v20324_v44 = vpop.permute.xlu1 %9694  ;;  %24175 = vst [vmem:[#allocation39_spill] sm:$0xff] %v20332_v12 }
 0x34e   :  { %16758 = vmatpush3.bf16.msra.mxu0 %v20030_v52  ;;  %16771 = vmatprep.mubr.msk.bf16.mxu1 %vm17980_vm0, %v24173_v8  ;;  %v20343_v18 = vpop.permute.xlu0 %9134 }
 0x34f   :  { %16768 = vmatpush3.bf16.msra.mxu1 %v20030_v52  ;;  %16759 = vmatprep.subr.bf16.mxu0 %v24173_v8  ;;  %24176 = vst [vmem:[#allocation40_spill] sm:$0xff] %v20343_v18 }
 0x350   :  { %9164 = vrot.lane.b32.xlu0 %v20096_v31, %s17981_s29  ;;  %v4777_v14 = vpop.f32.mrb[208].mxu0  ;;  %16769 = vmatprep.subr.bf16.mxu1 %v24173_v8  ;;  %v180_v31 = vld [vmem:[%s24085_s0 + $0x96] sm:$0x1] }
 0x351   :  { %v17603_v37 = vpop.eup %17602  ;;  %v4778_v6 = vadd.f32 %v19941_v62, %v4777_v14  ;;  %v16403_v55 = vpop.f32.mrb[209].mxu0  ;;  %v181_v14 = vld [vmem:[%s24085_s0 + $0x97] sm:$0x1] }
 0x352   :  { %v4820_v53 = vpop.f32.mrb[208].mxu1  ;;  %v8994_v61 = vpack.c.bf16 %v17603_v37, %v17603_v37  ;;  %16760 = vmatpush3.bf16.msra.mxu0 %v20003_v36  ;;  %v4780_v32 = vpop.f32.mrb[210].mxu0 }
 0x353   :  { %v17605_v43 = vpop.eup %17604  ;;  %16770 = vmatpush3.bf16.msra.mxu1 %v20003_v36  ;;  %v16404_v7 = vpop.f32.mrb[211].mxu0  ;;  %16775 = vmatprep.subr.bf16.mxu0 %v24173_v8  ;;  %17612 = vtanh.f32 %v4778_v6 }
 0x354   :  { %v17607_v38 = vpop.eup %17606  ;;  %v16413_v50 = vpop.f32.mrb[209].mxu1  ;;  %v8995_v37 = vpack.c.bf16 %v17605_v43, %v17605_v43  ;;  %9272 = vrot.lane.b32.xlu0 %v20332_v12, %s17982_s21  ;;  %9642 = vrot.lane.b32.xlu1 %v8994_v61, %s17986_s19  ;;  %v4821_v7 = vadd.f32 %v19941_v62, %v4820_v53  ;;  %v4348_v43 = vadd.f32 %v19941_v62, %v20146_v23 }
 0x355   :  { %v4823_v32 = vpop.f32.mrb[210].mxu1  ;;  %16762 = vmatmul.mubr.msk.bf16.vlgmr.msra.gmra.mrb[24].mxu0 %vm267_vm1, %v180_v31  ;;  %16785 = vmatprep.subr.bf16.mxu1 %v24173_v8  ;;  %v20351_v50 = vpop.permute.xlu1 %9252  ;;  %v8983_v60 = vpack.c.bf16 %v17607_v38, %v17607_v38 }
 0x356   :  { %v16414_v55 = vpop.f32.mrb[211].mxu1  ;;  %24177 = vst [vmem:[#allocation41_spill] sm:$0xff] %v20351_v50  ;;  %16772 = vmatmul.mubr.msk.bf16.vlgmr.msra.gmra.mrb[24].mxu1 %vm267_vm1, %v181_v14  ;;  %16776 = vmatpush3.bf16.msra.mxu0 %v20062_v9  ;;  %17614 = vtanh.f32 %v4821_v7  ;;  %v20362_v33 = vpop.permute.xlu0 %9254 }
 0x357   :  { %16786 = vmatpush3.bf16.msra.mxu1 %v20062_v9  ;;  %16777 = vmatprep.subr.bf16.mxu0 %v24173_v8  ;;  %24178 = vst [vmem:[#allocation42_spill] sm:$0xff] %v20362_v33  ;;  %v17609_v6 = vpop.eup %17608  ;;  %17616 = vtanh.f32 %v4348_v43 }
 0x358   :  { %9350 = vrot.lane.b32.xlu0 %v8983_v60, %s17983_s22  ;;  %9720 = vrot.lane.b32.xlu1 %v8995_v37, %s17987_s20  ;;  %v17611_v7 = vpop.eup %17610  ;;  %v20377_v55 = vpack.c.bf16 %v17609_v6, %v17609_v6 }
 0x359   :  { %16787 = vmatprep.subr.bf16.mxu1 %v24173_v8  ;;  %16781 = vmatprep.mubr.msk.bf16.mxu0 %vm17980_vm0, %v24173_v8  ;;  %v20369_v53 = vpop.permute.xlu1 %9240 }
 0x35a   :  { %16778 = vmatpush3.bf16.msra.mxu0 %v20030_v52  ;;  %16791 = vmatprep.mubr.msk.bf16.mxu1 %vm17980_vm0, %v24173_v8  ;;  %24179 = vst [vmem:[#allocation43_spill] sm:$0xff] %v20369_v53  ;;  %24180 = vst [vmem:[#allocation44_spill] sm:$0xff] %v20377_v55  ;;  %v20388_v6 = vpop.permute.xlu0 %9242 }
 0x35b   :  { %16788 = vmatpush3.bf16.msra.mxu1 %v20030_v52  ;;  %16779 = vmatprep.subr.bf16.mxu0 %v24173_v8  ;;  %24181 = vst [vmem:[#allocation45_spill] sm:$0xff] %v20388_v6  ;;  %v8985_v6 = vpack.c.bf16 %v17611_v7, %v17611_v7 }
 0x35c   :  { %9458 = vrot.lane.b32.xlu0 %v8994_v61, %s17984_s13  ;;  %9166 = vrot.lane.b32.xlu1 %v8983_v60, %s17981_s29  ;;  %v4863_v31 = vpop.f32.mrb[212].mxu0  ;;  %v182_v61 = vld [vmem:[%s24085_s0 + $0x98] sm:$0x1] }
 0x35d   :  { %v4864_v38 = vadd.f32 %v19941_v62, %v4863_v31  ;;  %v16423_v14 = vpop.f32.mrb[213].mxu0  ;;  %16789 = vmatprep.subr.bf16.mxu1 %v24173_v8  ;;  %v4906_v32 = vpop.f32.mrb[212].mxu1 }
 0x35e   :  { %v4866_v12 = vpop.f32.mrb[214].mxu0  ;;  %16780 = vmatpush3.bf16.msra.mxu0 %v20003_v36  ;;  %v16433_v18 = vpop.f32.mrb[213].mxu1  ;;  %v183_v14 = vld [vmem:[%s24085_s0 + $0x99] sm:$0x1] }
 0x35f   :  { %v17613_v23 = vpop.eup %17612  ;;  %16790 = vmatpush3.bf16.msra.mxu1 %v20003_v36  ;;  %v16424_v60 = vpop.f32.mrb[215].mxu0  ;;  %16795 = vmatprep.subr.bf16.mxu0 %v24173_v8  ;;  %v4391_v12 = vadd.f32 %v19941_v62, %v20149_v2  ;;  %17618 = vtanh.f32 %v4864_v38 }
 0x360   :  { %v4909_v31 = vpop.f32.mrb[214].mxu1  ;;  %9566 = vrot.lane.b32.xlu0 %v8995_v37, %s17985_s14  ;;  %9274 = vrot.lane.b32.xlu1 %v20377_v55, %s17982_s21  ;;  %v4907_v60 = vadd.f32 %v19941_v62, %v4906_v32  ;;  %v8996_v43 = vpack.c.bf16 %v17613_v23, %v17613_v23  ;;  %v17615_v2 = vpop.eup %17614 }
 0x361   :  { %v16434_v18 = vpop.f32.mrb[215].mxu1  ;;  %16782 = vmatmul.mubr.msk.bf16.vlgmr.msra.gmra.mrb[28].mxu0 %vm267_vm1, %v182_v61  ;;  %16805 = vmatprep.subr.bf16.mxu1 %v24173_v8  ;;  %v20398_v31 = vpop.permute.xlu1 %9330  ;;  %17620 = vtanh.f32 %v4391_v12  ;;  %v8997_v38 = vpack.c.bf16 %v17615_v2, %v17615_v2  ;;  %v4434_v61 = vadd.f32 %v19941_v62, %v20176_v0  ;;  %v185_v0 = vld [vmem:[%s24085_s0 + $0x9b] sm:$0x1] }
 0x362   :  { %24182 = vst [vmem:[#allocation46_spill] sm:$0xff] %v20398_v31  ;;  %16792 = vmatmul.mubr.msk.bf16.vlgmr.msra.gmra.mrb[28].mxu1 %vm267_vm1, %v183_v14  ;;  %16796 = vmatpush3.bf16.msra.mxu0 %v20062_v9  ;;  %17622 = vtanh.f32 %v4907_v60  ;;  %v20409_v37 = vpop.permute.xlu0 %9332  ;;  %v17617_v12 = vpop.eup %17616  ;;  %v184_v60 = vld [vmem:[%s24085_s0 + $0x9a] sm:$0x1] }
 0x363   :  { %16806 = vmatpush3.bf16.msra.mxu1 %v20062_v9  ;;  %16797 = vmatprep.subr.bf16.mxu0 %v24173_v8  ;;  %24183 = vst [vmem:[#allocation47_spill] sm:$0xff] %v20409_v37  ;;  %17624 = vtanh.f32 %v4434_v61  ;;  %v20443_v33 = vpack.c.bf16 %v17617_v12, %v17617_v12 }
 0x364   :  { %9352 = vrot.lane.b32.xlu1 %v8985_v6, %s17983_s22  ;;  %9644 = vrot.lane.b32.xlu0 %v8996_v43, %s17986_s19 }
 0x365   :  { %16807 = vmatprep.subr.bf16.mxu1 %v24173_v8  ;;  %16801 = vmatprep.mubr.msk.bf16.mxu0 %vm17980_vm0, %v24173_v8  ;;  %v20416_v32 = vpop.permute.xlu1 %9318  ;;  %24187 = vst [vmem:[#allocation51_spill] sm:$0xff] %v20443_v33 }
 0x366   :  { %16798 = vmatpush3.bf16.msra.mxu0 %v20030_v52  ;;  %16811 = vmatprep.mubr.msk.bf16.mxu1 %vm17980_vm0, %v24173_v8  ;;  %24184 = vst [vmem:[#allocation48_spill] sm:$0xff] %v20416_v32 }
 0x367   :  { %16808 = vmatpush3.bf16.msra.mxu1 %v20030_v52  ;;  %16799 = vmatprep.subr.bf16.mxu0 %v24173_v8 }
 0x368   :  { %9722 = vrot.lane.b32.xlu0 %v8997_v38, %s17987_s20  ;;  %9460 = vrot.lane.b32.xlu1 %v8996_v43, %s17984_s13  ;;  %v4949_v7 = vpop.f32.mrb[216].mxu0 }
 0x369   :  { %v16443_v23 = vpop.f32.mrb[217].mxu0  ;;  %16809 = vmatprep.subr.bf16.mxu1 %v24173_v8  ;;  %v4992_v14 = vpop.f32.mrb[216].mxu1 }
 0x36a   :  { %16800 = vmatpush3.bf16.msra.mxu0 %v20003_v36  ;;  %v4952_v18 = vpop.f32.mrb[218].mxu0  ;;  %v17619_v2 = vpop.eup %17618 }
 0x36b   :  { %16810 = vmatpush3.bf16.msra.mxu1 %v20003_v36  ;;  %v16444_v43 = vpop.f32.mrb[219].mxu0  ;;  %v16453_v55 = vpop.f32.mrb[217].mxu1  ;;  %16815 = vmatprep.subr.bf16.mxu0 %v24173_v8  ;;  %v4477_v18 = vadd.f32 %v19941_v62, %v20179_v5  ;;  %v8998_v31 = vpack.c.bf16 %v17619_v2, %v17619_v2 }
 0x36c   :  { %v20432_v23 = vpop.permute.xlu0 %9436  ;;  %v4995_v32 = vpop.f32.mrb[218].mxu1  ;;  %9168 = vrot.lane.b32.xlu0 %v8985_v6, %s17981_s29  ;;  %9568 = vrot.lane.b32.xlu1 %v8997_v38, %s17985_s14  ;;  %v4950_v43 = vadd.f32 %v19941_v62, %v4949_v7  ;;  %v4993_v6 = vadd.f32 %v19941_v62, %v4992_v14 }
 0x36d   :  { %24185 = vst [vmem:[#allocation49_spill] sm:$0xff] %v20432_v23  ;;  %v16454_v55 = vpop.f32.mrb[219].mxu1  ;;  %16802 = vmatmul.mubr.msk.bf16.vlgmr.msra.gmra.mrb[32].mxu0 %vm267_vm1, %v184_v60  ;;  %16825 = vmatprep.subr.bf16.mxu1 %v24173_v8  ;;  %v17621_v53 = vpop.eup %17620  ;;  %17626 = vtanh.f32 %v4477_v18  ;;  %v186_v60 = vld [vmem:[%s24085_s0 + $0x9c] sm:$0x1] }
 0x36e   :  { %v20441_v37 = vpop.permute.xlu1 %9434  ;;  %16812 = vmatmul.mubr.msk.bf16.vlgmr.msra.gmra.mrb[32].mxu1 %vm267_vm1, %v185_v0  ;;  %16816 = vmatpush3.bf16.msra.mxu0 %v20062_v9  ;;  %v17623_v5 = vpop.eup %17622  ;;  %17628 = vtanh.f32 %v4950_v43  ;;  %v8987_v32 = vpack.c.bf16 %v17621_v53, %v17621_v53  ;;  %v187_v43 = vld [vmem:[%s24085_s0 + $0x9d] sm:$0x1] }
 0x36f   :  { %24186 = vst [vmem:[#allocation50_spill] sm:$0xff] %v20441_v37  ;;  %16826 = vmatpush3.bf16.msra.mxu1 %v20062_v9  ;;  %16817 = vmatprep.subr.bf16.mxu0 %v24173_v8  ;;  %v8999_v7 = vpack.c.bf16 %v17623_v5, %v17623_v5  ;;  %17630 = vtanh.f32 %v4993_v6  ;;  %v17625_v2 = vpop.eup %17624  ;;  %v20484_v6 = vld [vmem:[%s24087_s2] ss:$0 sm:$0xff] }
 0x370   :  { %9276 = vrot.lane.b32.xlu0 %v20443_v33, %s17982_s21  ;;  %9646 = vrot.lane.b32.xlu1 %v8998_v31, %s17986_s19  ;;  %v20456_v38 = vpop.permute.xlu0 %9544 }
 0x371   :  { %16827 = vmatprep.subr.bf16.mxu1 %v24173_v8  ;;  %16821 = vmatprep.mubr.msk.bf16.mxu0 %vm17980_vm0, %v24173_v8  ;;  %24188 = vst [vmem:[#allocation52_spill] sm:$0xff] %v20456_v38 }
 0x372   :  { %16818 = vmatpush3.bf16.msra.mxu0 %v20030_v52  ;;  %16831 = vmatprep.mubr.msk.bf16.mxu1 %vm17980_vm0, %v24173_v8  ;;  %v20463_v61 = vpop.permute.xlu1 %9542 }
 0x373   :  { %16828 = vmatpush3.bf16.msra.mxu1 %v20030_v52  ;;  %16819 = vmatprep.subr.bf16.mxu0 %v24173_v8  ;;  %24189 = vst [vmem:[#allocation53_spill] sm:$0xff] %v20463_v61 }
 0x374   :  { %9354 = vrot.lane.b32.xlu0 %v8987_v32, %s17983_s22  ;;  %9724 = vrot.lane.b32.xlu1 %v8999_v7, %s17987_s20  ;;  %v5035_v62 = vpop.f32.mrb[220].mxu0  ;;  %v20477_v55 = vpop.permute.xlu0 %9622 }
 0x375   :  { %v16463_v14 = vpop.f32.mrb[221].mxu0  ;;  %16829 = vmatprep.subr.bf16.mxu1 %v24173_v8  ;;  %v5078_v53 = vpop.f32.mrb[220].mxu1  ;;  %24190 = vst [vmem:[#allocation54_spill] sm:$0xff] %v20477_v55 }
 0x376   :  { %16820 = vmatpush3.bf16.msra.mxu0 %v20003_v36  ;;  %v5038_v12 = vpop.f32.mrb[222].mxu0  ;;  %v16473_v18 = vpop.f32.mrb[221].mxu1  ;;  %v5036_v14 = vadd.f32 %v20484_v6, %v5035_v62 }
 0x377   :  { %16830 = vmatpush3.bf16.msra.mxu1 %v20003_v36  ;;  %v16464_v0 = vpop.f32.mrb[223].mxu0  ;;  %16835 = vmatprep.subr.bf16.mxu0 %v24173_v8  ;;  %v5081_v5 = vpop.f32.mrb[222].mxu1 }
 0x378   :  { %9462 = vrot.lane.b32.xlu0 %v8998_v31, %s17984_s13  ;;  %9170 = vrot.lane.b32.xlu1 %v8987_v32, %s17981_s29  ;;  %v16474_v12 = vpop.f32.mrb[223].mxu1  ;;  %v17627_v0 = vpop.eup %17626  ;;  %v8988_v5 = vpack.c.bf16 %v17625_v2, %v17625_v2  ;;  %17632 = vtanh.f32 %v5036_v14  ;;  %v5079_v32 = vadd.f32 %v20484_v6, %v5078_v53 }
 0x379   :  { %16822 = vmatmul.mubr.msk.bf16.vlgmr.msra.gmra.mrb[36].mxu0 %vm267_vm1, %v186_v60  ;;  %16845 = vmatprep.subr.bf16.mxu1 %v24173_v8  ;;  %v20489_v18 = vpop.permute.xlu1 %9620  ;;  %v17629_v31 = vpop.eup %17628  ;;  %v8989_v60 = vpack.c.bf16 %v17627_v0, %v17627_v0 }
 0x37a   :  { %24191 = vst [vmem:[#allocation55_spill] sm:$0xff] %v20489_v18  ;;  %16832 = vmatmul.mubr.msk.bf16.vlgmr.msra.gmra.mrb[36].mxu1 %vm267_vm1, %v187_v43  ;;  %16836 = vmatpush3.bf16.msra.mxu0 %v20062_v9  ;;  %v20501_v62 = vpop.permute.xlu0 %9700  ;;  %v9000_v2 = vpack.c.bf16 %v17629_v31, %v17629_v31  ;;  %17634 = vtanh.f32 %v5079_v32  ;;  %v202_v18 = vld [vmem:[%s24085_s0 + $0xad] sm:$0x1] }
 0x37b   :  { %16846 = vmatpush3.bf16.msra.mxu1 %v20062_v9  ;;  %16837 = vmatprep.subr.bf16.mxu0 %v24173_v8  ;;  %24192 = vst [vmem:[#allocation56_spill] sm:$0xff] %v20501_v62 }
 0x37c   :  { %9570 = vrot.lane.b32.xlu0 %v8999_v7, %s17985_s14  ;;  %9278 = vrot.lane.b32.xlu1 %v8988_v5, %s17982_s21  ;;  %v17631_v7 = vpop.eup %17630 }
 0x37d   :  { %16847 = vmatprep.subr.bf16.mxu1 %v24173_v8  ;;  %16841 = vmatprep.mubr.msk.bf16.mxu0 %vm17980_vm0, %v24173_v8  ;;  %v20508_v53 = vpop.permute.xlu1 %9698  ;;  %v9001_v0 = vpack.c.bf16 %v17631_v7, %v17631_v7 }
 0x37e   :  { %16838 = vmatpush3.bf16.msra.mxu0 %v20030_v52  ;;  %16851 = vmatprep.mubr.msk.bf16.mxu1 %vm17980_vm0, %v24173_v8  ;;  %24193 = vst [vmem:[#allocation57_spill] sm:$0xff] %v20508_v53  ;;  %v20530_v7 = vpop.permute.xlu0 %9320 }
 0x37f   :  { %16848 = vmatpush3.bf16.msra.mxu1 %v20030_v52  ;;  %16839 = vmatprep.subr.bf16.mxu0 %v24173_v8  ;;  %24195 = vst [vmem:[#allocation59_spill] sm:$0xff] %v20530_v7 }
 0x380   :  { %9356 = vrot.lane.b32.xlu1 %v8989_v60, %s17983_s22  ;;  %9648 = vrot.lane.b32.xlu0 %v9000_v2, %s17986_s19  ;;  %v20512_v43 = vpop.f32.mrb[224].mxu0  ;;  %v188_v60 = vld [vmem:[%s24085_s0 + $0x9e] sm:$0x1] }
 0x381   :  { %24194 = vst [vmem:[#allocation58_spill] sm:$0xff] %v20512_v43  ;;  %v5164_v14 = vpop.f32.mrb[224].mxu1  ;;  %v16483_v12 = vpop.f32.mrb[225].mxu0  ;;  %16849 = vmatprep.subr.bf16.mxu1 %v24173_v8  ;;  %v20523_v43 = vld [vmem:[%s24086_s1 + $0x10] sm:$0xff]  }
 0x382   :  { %v5165_v5 = vadd.f32 %v20484_v6, %v5164_v14  ;;  %v5124_v31 = vpop.f32.mrb[226].mxu0  ;;  %16840 = vmatpush3.bf16.msra.mxu0 %v20003_v36  ;;  %v16493_v52 = vpop.f32.mrb[225].mxu1  ;;  %v189_v36 = vld [vmem:[%s24085_s0 + $0x9f] sm:$0x1] }
 0x383   :  { %16850 = vmatpush3.bf16.msra.mxu1 %v20523_v43  ;;  %v16484_v32 = vpop.f32.mrb[227].mxu0  ;;  %v5167_v12 = vpop.f32.mrb[226].mxu1  ;;  %16855 = vmatprep.subr.bf16.mxu0 %v24173_v8  ;;  %v20551_v52 = vld [vmem:[%s24086_s1 + $0x8] sm:$0xff]  }
 0x384   :  { %17636 = vtanh.f32 %v5165_v5  ;;  %9726 = vrot.lane.b32.xlu0 %v9001_v0, %s17987_s20  ;;  %9464 = vrot.lane.b32.xlu1 %v9000_v2, %s17984_s13  ;;  %v16494_v14 = vpop.f32.mrb[227].mxu1  ;;  %v17633_v31 = vpop.eup %17632 }
 0x385   :  { %16842 = vmatmul.mubr.msk.bf16.vlgmr.msra.gmra.mrb[40].mxu0 %vm267_vm1, %v188_v60  ;;  %16865 = vmatprep.subr.bf16.mxu1 %v24173_v8  ;;  %v20546_v2 = vpop.permute.xlu1 %9426  ;;  %v9002_v5 = vpack.c.bf16 %v17633_v31, %v17633_v31 }
 0x386   :  { %16852 = vmatmul.mubr.msk.bf16.vlgmr.msra.gmra.mrb[40].mxu1 %vm267_vm1, %v189_v36  ;;  %16856 = vmatpush3.bf16.msra.mxu0 %v20062_v9  ;;  %24196 = vst [vmem:[#allocation60_spill] sm:$0xff] %v20546_v2  ;;  %v190_v2 = vld [vmem:[%s24085_s0 + $0xa0] sm:$0x1] }
 0x387   :  { %16866 = vmatpush3.bf16.msra.mxu1 %v20062_v9  ;;  %16857 = vmatprep.subr.bf16.mxu0 %v24173_v8  ;;  %v17635_v9 = vpop.eup %17634 }
 0x388   :  { %9572 = vrot.lane.b32.xlu1 %v9001_v0, %s17985_s14  ;;  %16867 = vmatprep.subr.bf16.mxu1 %v24173_v8  ;;  %v9003_v14 = vpack.c.bf16 %v17635_v9, %v17635_v9  ;;  %v191_v9 = vld [vmem:[%s24085_s0 + $0xa1] sm:$0x1] }
 0x389   :  { %16861 = vmatprep.mubr.msk.bf16.mxu0 %vm17980_vm0, %v24173_v8  ;;  %16871 = vmatprep.mubr.msk.bf16.mxu1 %vm17980_vm0, %v24173_v8 }
 0x38a   :  { %16858 = vmatpush3.bf16.msra.mxu0 %v20551_v52 }
 0x38b   :  { %16868 = vmatpush3.bf16.msra.mxu1 %v20551_v52  ;;  %16859 = vmatprep.subr.bf16.mxu0 %v24173_v8 }
 0x38c   :  { %9650 = vrot.lane.b32.xlu1 %v9002_v5, %s17986_s19  ;;  %v5207_v0 = vpop.f32.mrb[228].mxu0  ;;  %16869 = vmatprep.subr.bf16.mxu1 %v24173_v8 }
 0x38d   :  { %v5250_v60 = vpop.f32.mrb[228].mxu1  ;;  %v5208_v32 = vadd.f32 %v20484_v6, %v5207_v0  ;;  %v16503_v12 = vpop.f32.mrb[229].mxu0 }
 0x38e   :  { %v17637_v36 = vpop.eup %17636  ;;  %v5251_v31 = vadd.f32 %v20484_v6, %v5250_v60  ;;  %v5210_v33 = vpop.f32.mrb[230].mxu0  ;;  %16860 = vmatpush3.bf16.msra.mxu0 %v20523_v43 }
 0x38f   :  { %v16513_v7 = vpop.f32.mrb[229].mxu1  ;;  %v9005_v5 = vpack.c.bf16 %v17637_v36, %v17637_v36  ;;  %17638 = vtanh.f32 %v5208_v32  ;;  %16870 = vmatpush3.bf16.msra.mxu1 %v20523_v43  ;;  %v16504_v50 = vpop.f32.mrb[231].mxu0  ;;  %16875 = vmatprep.subr.bf16.mxu0 %v24173_v8 }
 0x390   :  { %v5253_v62 = vpop.f32.mrb[230].mxu1  ;;  %v20569_v33 = vpop.permute.xlu1 %9534  ;;  %17640 = vtanh.f32 %v5251_v31  ;;  %9728 = vrot.lane.b32.xlu1 %v9003_v14, %s17987_s20  ;;  %16885 = vmatprep.subr.bf16.mxu1 %v24173_v8  ;;  %v20581_v50 = vld [vmem:[%s24086_s1] sm:$0xff]  }
 0x391   :  { %24197 = vst [vmem:[#allocation61_spill] sm:$0xff] %v20569_v33  ;;  %v16514_v7 = vpop.f32.mrb[231].mxu1  ;;  %v20573_v0 = vpop.permute.xlu0 %9428  ;;  %9172 = vrot.lane.b32.xlu0 %v9005_v5, %s17981_s29  ;;  %16862 = vmatmul.mubr.msk.bf16.vlgmr.msra.gmra.mrb[44].mxu0 %vm267_vm1, %v190_v2 }
 0x392   :  { %24198 = vst [vmem:[#allocation62_spill] sm:$0xff] %v20573_v0  ;;  %16872 = vmatmul.mubr.msk.bf16.vlgmr.msra.gmra.mrb[44].mxu1 %vm267_vm1, %v191_v9  ;;  %16876 = vmatpush3.bf16.msra.mxu0 %v20581_v50 }
 0x393   :  { %16886 = vmatpush3.bf16.msra.mxu1 %v20581_v50  ;;  %16877 = vmatprep.subr.bf16.mxu0 %v24173_v8 }
 0x394   :  { %16887 = vmatprep.subr.bf16.mxu1 %v24173_v8  ;;  %16881 = vmatprep.mubr.msk.bf16.mxu0 %vm17980_vm0, %v24173_v8 }
 0x395   :  { %16891 = vmatprep.mubr.msk.bf16.mxu1 %vm17980_vm0, %v24173_v8  ;;  %v20594_v62 = vpop.permute.xlu0 %9536 }
 0x396   :  { %16878 = vmatpush3.bf16.msra.mxu0 %v20551_v52  ;;  %24199 = vst [vmem:[#allocation63_spill] sm:$0xff] %v20594_v62  ;;  %v192_v62 = vld [vmem:[%s24085_s0 + $0xa2] sm:$0x1] }
 0x397   :  { %16888 = vmatpush3.bf16.msra.mxu1 %v20551_v52  ;;  %16879 = vmatprep.subr.bf16.mxu0 %v24173_v8 }
 0x398   :  { %v5293_v2 = vpop.f32.mrb[232].mxu0  ;;  %16889 = vmatprep.subr.bf16.mxu1 %v24173_v8 }
 0x399   :  { %v17639_v60 = vpop.eup %17638  ;;  %v5294_v32 = vadd.f32 %v20484_v6, %v5293_v2  ;;  %v16523_v12 = vpop.f32.mrb[233].mxu0 }
 0x39a   :  { %v5336_v36 = vpop.f32.mrb[232].mxu1  ;;  %v17641_v14 = vpop.eup %17640  ;;  %v20598_v31 = vpack.c.bf16 %v17639_v60, %v17639_v60  ;;  %16880 = vmatpush3.bf16.msra.mxu0 %v20523_v43  ;;  %v193_v60 = vld [vmem:[%s24085_s0 + $0xa3] sm:$0x1] }
 0x39b   :  { %v5296_v5 = vpop.f32.mrb[234].mxu0  ;;  %v5337_v9 = vadd.f32 %v20484_v6, %v5336_v36  ;;  %v16533_v7 = vpop.f32.mrb[233].mxu1  ;;  %v9007_v0 = vpack.c.bf16 %v17641_v14, %v17641_v14  ;;  %17642 = vtanh.f32 %v5294_v32  ;;  %16890 = vmatpush3.bf16.msra.mxu1 %v20523_v43  ;;  %16895 = vmatprep.subr.bf16.mxu0 %v24173_v8 }
 0x39c   :  { %24200 = vst [vmem:[#allocation64_spill] sm:$0xff] %v20598_v31  ;;  %v16524_v2 = vpop.f32.mrb[235].mxu0  ;;  %v5339_v12 = vpop.f32.mrb[234].mxu1  ;;  %9280 = vrot.lane.b32.xlu0 %v20598_v31, %s17982_s21  ;;  %16905 = vmatprep.subr.bf16.mxu1 %v24173_v8  ;;  %v194_v31 = vld [vmem:[%s24085_s0 + $0xa5] sm:$0x1] }
 0x39d   :  { %17644 = vtanh.f32 %v5337_v9  ;;  %v16534_v36 = vpop.f32.mrb[235].mxu1  ;;  %v20613_v5 = vpop.permute.xlu1 %9612  ;;  %9174 = vrot.lane.b32.xlu1 %v9007_v0, %s17981_s29  ;;  %16882 = vmatmul.mubr.msk.bf16.vlgmr.msra.gmra.mrb[48].mxu0 %vm267_vm1, %v192_v62 }
 0x39e   :  { %24201 = vst [vmem:[#allocation65_spill] sm:$0xff] %v20613_v5  ;;  %16892 = vmatmul.mubr.msk.bf16.vlgmr.msra.gmra.mrb[48].mxu1 %vm267_vm1, %v193_v60  ;;  %16896 = vmatpush3.bf16.msra.mxu0 %v20581_v50  ;;  %v20621_v32 = vpop.permute.xlu0 %9614  ;;  %v197_v5 = vld [vmem:[%s24085_s0 + $0xa8] sm:$0x1] }
 0x39f   :  { %16906 = vmatpush3.bf16.msra.mxu1 %v20581_v50  ;;  %16897 = vmatprep.subr.bf16.mxu0 %v24173_v8  ;;  %24202 = vst [vmem:[#allocation66_spill] sm:$0xff] %v20621_v32 }
 0x3a0   :  { %9358 = vrot.lane.b32.xlu0 %v9007_v0, %s17983_s22  ;;  %16907 = vmatprep.subr.bf16.mxu1 %v24173_v8 }
 0x3a1   :  { %16901 = vmatprep.mubr.msk.bf16.mxu0 %vm17980_vm0, %v24173_v8  ;;  %16911 = vmatprep.mubr.msk.bf16.mxu1 %vm17980_vm0, %v24173_v8  ;;  %v20632_v62 = vpop.permute.xlu1 %9690 }
 0x3a2   :  { %16898 = vmatpush3.bf16.msra.mxu0 %v20551_v52  ;;  %24203 = vst [vmem:[#allocation67_spill] sm:$0xff] %v20632_v62 }
 0x3a3   :  { %16908 = vmatpush3.bf16.msra.mxu1 %v20551_v52  ;;  %16899 = vmatprep.subr.bf16.mxu0 %v24173_v8 }
 0x3a4   :  { %v20634_v14 = vpop.f32.mrb[236].mxu0  ;;  %16909 = vmatprep.subr.bf16.mxu1 %v24173_v8 }
 0x3a5   :  { %v17643_v0 = vpop.eup %17642  ;;  %v16543_v9 = vpop.f32.mrb[237].mxu0 }
 0x3a6   :  { %v20637_v7 = vpop.f32.mrb[236].mxu1  ;;  %v20639_v12 = vpack.c.bf16 %v17643_v0, %v17643_v0  ;;  %v5382_v60 = vpop.f32.mrb[238].mxu0  ;;  %16900 = vmatpush3.bf16.msra.mxu0 %v20523_v43  ;;  %v195_v9 = vld [vmem:[%s24085_s0 + $0xa6] sm:$0x1] }
 0x3a7   :  { %v17645_v2 = vpop.eup %17644  ;;  %v16553_v36 = vpop.f32.mrb[237].mxu1  ;;  %16910 = vmatpush3.bf16.msra.mxu1 %v20523_v43  ;;  %16915 = vmatprep.subr.bf16.mxu0 %v24173_v8 }
 0x3a8   :  { %24204 = vst [vmem:[#allocation68_spill] sm:$0xff] %v20639_v12  ;;  %v16544_v32 = vpop.f32.mrb[239].mxu0  ;;  %v5425_v62 = vpop.f32.mrb[238].mxu1  ;;  %v20650_v0 = vpack.c.bf16 %v17645_v2, %v17645_v2  ;;  %9282 = vrot.lane.b32.xlu1 %v20639_v12, %s17982_s21  ;;  %16925 = vmatprep.subr.bf16.mxu1 %v24173_v8 }
 0x3a9   :  { %v16554_v60 = vpop.f32.mrb[239].mxu1  ;;  %16902 = vmatmul.mubr.msk.bf16.vlgmr.msra.gmra.mrb[52].mxu0 %vm267_vm1, %v194_v31  ;;  %v20660_v32 = vpop.permute.xlu1 %9438 }
 0x3aa   :  { %16912 = vmatmul.mubr.msk.bf16.vlgmr.msra.gmra.mrb[52].mxu1 %vm267_vm1, %v195_v9  ;;  %16916 = vmatpush3.bf16.msra.mxu0 %v20581_v50  ;;  %24205 = vst [vmem:[#allocation69_spill] sm:$0xff] %v20660_v32  ;;  %v196_v9 = vld [vmem:[%s24085_s0 + $0xa7] sm:$0x1] }
 0x3ab   :  { %16926 = vmatpush3.bf16.msra.mxu1 %v20581_v50  ;;  %16917 = vmatprep.subr.bf16.mxu0 %v24173_v8 }
 0x3ac   :  { %9360 = vrot.lane.b32.xlu1 %v20650_v0, %s17983_s22  ;;  %16927 = vmatprep.subr.bf16.mxu1 %v24173_v8 }
 0x3ad   :  { %16921 = vmatprep.mubr.msk.bf16.mxu0 %vm17980_vm0, %v24173_v8  ;;  %16931 = vmatprep.mubr.msk.bf16.mxu1 %vm17980_vm0, %v24173_v8 }
 0x3ae   :  { %16918 = vmatpush3.bf16.msra.mxu0 %v20551_v52 }
 0x3af   :  { %16928 = vmatpush3.bf16.msra.mxu1 %v20551_v52  ;;  %16919 = vmatprep.subr.bf16.mxu0 %v24173_v8 }
 0x3b0   :  { %v20672_v31 = vpop.f32.mrb[240].mxu0  ;;  %16929 = vmatprep.subr.bf16.mxu1 %v24173_v8 }
 0x3b1   :  { %v16563_v62 = vpop.f32.mrb[241].mxu0  ;;  %v20675_v2 = vpop.f32.mrb[240].mxu1 }
 0x3b2   :  { %16920 = vmatpush3.bf16.msra.mxu0 %v20523_v43  ;;  %v5468_v36 = vpop.f32.mrb[242].mxu0  ;;  %v16573_v12 = vpop.f32.mrb[241].mxu1 }
 0x3b3   :  { %16930 = vmatpush3.bf16.msra.mxu1 %v20523_v43  ;;  %v16564_v60 = vpop.f32.mrb[243].mxu0  ;;  %16935 = vmatprep.subr.bf16.mxu0 %v24173_v8  ;;  %v5511_v62 = vpop.f32.mrb[242].mxu1  ;;  %v198_v36 = vld [vmem:[%s24085_s0 + $0xa9] sm:$0x1] }
 0x3b4   :  { %16945 = vmatprep.subr.bf16.mxu1 %v24173_v8  ;;  %v16574_v33 = vpop.f32.mrb[243].mxu1  ;;  %v199_v62 = vld [vmem:[%s24085_s0 + $0xaa] sm:$0x1] }
 0x3b5   :  { %16922 = vmatmul.mubr.msk.bf16.vlgmr.msra.gmra.mrb[56].mxu0 %vm267_vm1, %v196_v9 }
 0x3b6   :  { %16932 = vmatmul.mubr.msk.bf16.vlgmr.msra.gmra.mrb[56].mxu1 %vm267_vm1, %v197_v5  ;;  %16936 = vmatpush3.bf16.msra.mxu0 %v20581_v50 }
 0x3b7   :  { %16946 = vmatpush3.bf16.msra.mxu1 %v20581_v50  ;;  %16937 = vmatprep.subr.bf16.mxu0 %v24173_v8 }
 0x3b8   :  { %16947 = vmatprep.subr.bf16.mxu1 %v24173_v8  ;;  %16941 = vmatprep.mubr.msk.bf16.mxu0 %vm17980_vm0, %v24173_v8 }
 0x3b9   :  { %16951 = vmatprep.mubr.msk.bf16.mxu1 %vm17980_vm0, %v24173_v8 }
 0x3ba   :  { %16938 = vmatpush3.bf16.msra.mxu0 %v20551_v52 }
 0x3bb   :  { %16948 = vmatpush3.bf16.msra.mxu1 %v20551_v52  ;;  %16939 = vmatprep.subr.bf16.mxu0 %v24173_v8 }
 0x3bc   :  { %v20700_v33 = vpop.f32.mrb[244].mxu0  ;;  %16949 = vmatprep.subr.bf16.mxu1 %v24173_v8 }
 0x3bd   :  { %v16583_v5 = vpop.f32.mrb[245].mxu0  ;;  %v20703_v12 = vpop.f32.mrb[244].mxu1 }
 0x3be   :  { %16940 = vmatpush3.bf16.msra.mxu0 %v20523_v43  ;;  %v5554_v9 = vpop.f32.mrb[246].mxu0  ;;  %v16593_v60 = vpop.f32.mrb[245].mxu1 }
 0x3bf   :  { %16950 = vmatpush3.bf16.msra.mxu1 %v20523_v43  ;;  %16955 = vmatprep.subr.bf16.mxu0 %v24173_v8  ;;  %v16584_v32 = vpop.f32.mrb[247].mxu0  ;;  %v5597_v5 = vpop.f32.mrb[246].mxu1 }
 0x3c0   :  { %16965 = vmatprep.subr.bf16.mxu1 %v24173_v8  ;;  %v16594_v53 = vpop.f32.mrb[247].mxu1  ;;  %v20720_v9 = vpop.permute.xlu0 %9440 }
 0x3c1   :  { %16942 = vmatmul.mubr.msk.bf16.vlgmr.msra.gmra.mrb[60].mxu0 %vm267_vm1, %v198_v36  ;;  %24206 = vst [vmem:[#allocation70_spill] sm:$0xff] %v20720_v9 }
 0x3c2   :  { %16952 = vmatmul.mubr.msk.bf16.vlgmr.msra.gmra.mrb[60].mxu1 %vm267_vm1, %v199_v62  ;;  %16956 = vmatpush3.bf16.msra.mxu0 %v20581_v50  ;;  %v200_v62 = vld [vmem:[%s24085_s0 + $0xab] sm:$0x1] }
 0x3c3   :  { %16966 = vmatpush3.bf16.msra.mxu1 %v20581_v50  ;;  %16957 = vmatprep.subr.bf16.mxu0 %v24173_v8 }
 0x3c4   :  { %16967 = vmatprep.subr.bf16.mxu1 %v24173_v8  ;;  %16961 = vmatprep.mubr.msk.bf16.mxu0 %vm17980_vm0, %v24173_v8  ;;  %v20735_v60 = vpop.permute.xlu0 %9548 }
 0x3c5   :  { %16971 = vmatprep.mubr.msk.bf16.mxu1 %vm17980_vm0, %v24173_v8  ;;  %24207 = vst [vmem:[#allocation71_spill] sm:$0xff] %v20735_v60 }
 0x3c6   :  { %16958 = vmatpush3.bf16.msra.mxu0 %v20551_v52 }
 0x3c7   :  { %16968 = vmatpush3.bf16.msra.mxu1 %v20551_v52  ;;  %16959 = vmatprep.subr.bf16.mxu0 %v24173_v8 }
 0x3c8   :  { %v20730_v53 = vpop.f32.mrb[248].mxu0  ;;  %16969 = vmatprep.subr.bf16.mxu1 %v24173_v8 }
 0x3c9   :  { %v16603_v32 = vpop.f32.mrb[249].mxu0  ;;  %v20733_v36 = vpop.f32.mrb[248].mxu1 }
 0x3ca   :  { %16960 = vmatpush3.bf16.msra.mxu0 %v20523_v43  ;;  %v5640_v5 = vpop.f32.mrb[250].mxu0  ;;  %v16613_v9 = vpop.f32.mrb[249].mxu1  ;;  %v201_v32 = vld [vmem:[%s24085_s0 + $0xac] sm:$0x1] }
 0x3cb   :  { %16970 = vmatpush3.bf16.msra.mxu1 %v20523_v43  ;;  %16975 = vmatprep.subr.bf16.mxu0 %v24173_v8  ;;  %v16604_v55 = vpop.f32.mrb[251].mxu0  ;;  %v5683_v38 = vpop.f32.mrb[250].mxu1 }
 0x3cc   :  { %16985 = vmatprep.subr.bf16.mxu1 %v24173_v8  ;;  %v16614_v60 = vpop.f32.mrb[251].mxu1  ;;  %v20752_v9 = vpop.permute.xlu0 %9626 }
 0x3cd   :  { %16962 = vmatmul.mubr.msk.bf16.vlgmr.msra.gmra.mrb[64].mxu0 %vm267_vm1, %v200_v62  ;;  %24208 = vst [vmem:[#allocation72_spill] sm:$0xff] %v20752_v9  ;;  %v20764_v5 = vpop.permute.xlu1 %9546 }
 0x3ce   :  { %16972 = vmatmul.mubr.msk.bf16.vlgmr.msra.gmra.mrb[64].mxu1 %vm267_vm1, %v201_v32  ;;  %16976 = vmatpush3.bf16.msra.mxu0 %v20581_v50  ;;  %24209 = vst [vmem:[#allocation73_spill] sm:$0xff] %v20764_v5 }
 0x3cf   :  { %16986 = vmatpush3.bf16.msra.mxu1 %v20581_v50  ;;  %16977 = vmatprep.subr.bf16.mxu0 %v24173_v8 }
 0x3d0   :  { %16987 = vmatprep.subr.bf16.mxu1 %v24173_v8  ;;  %16981 = vmatprep.mubr.msk.bf16.mxu0 %vm17980_vm0, %v24173_v8  ;;  %v20766_v32 = vpop.permute.xlu0 %9704 }
 0x3d1   :  { %16991 = vmatprep.mubr.msk.bf16.mxu1 %vm17980_vm0, %v24173_v8  ;;  %24210 = vst [vmem:[#allocation74_spill] sm:$0xff] %v20766_v32 }
 0x3d2   :  { %16978 = vmatpush3.bf16.msra.mxu0 %v20551_v52 }
 0x3d3   :  { %16988 = vmatpush3.bf16.msra.mxu1 %v20551_v52  ;;  %16979 = vmatprep.subr.bf16.mxu0 %v24173_v8 }
 0x3d4   :  { %v5723_v38 = vpop.f32.mrb[252].mxu0  ;;  %16989 = vmatprep.subr.bf16.mxu1 %v24173_v8 }
 0x3d5   :  { %v5724_v55 = vadd.f32 %v20484_v6, %v5723_v38  ;;  %v16623_v60 = vpop.f32.mrb[253].mxu0  ;;  %v5766_v62 = vpop.f32.mrb[252].mxu1  ;;  %v203_v38 = vld [vmem:[%s24085_s0 + $0xae] sm:$0x1] }
 0x3d6   :  { %v5767_v9 = vadd.f32 %v20484_v6, %v5766_v62  ;;  %16980 = vmatpush3.bf16.msra.mxu0 %v20523_v43  ;;  %v5726_v23 = vpop.f32.mrb[254].mxu0  ;;  %v16633_v61 = vpop.f32.mrb[253].mxu1 }
 0x3d7   :  { %17646 = vtanh.f32 %v5724_v55  ;;  %16990 = vmatpush3.bf16.msra.mxu1 %v20523_v43  ;;  %16995 = vmatprep.subr.bf16.mxu0 %v24173_v8  ;;  %v16624_v60 = vpop.f32.mrb[255].mxu0  ;;  %v5769_v62 = vpop.f32.mrb[254].mxu1 }
 0x3d8   :  { %17648 = vtanh.f32 %v5767_v9  ;;  %17005 = vmatprep.subr.bf16.mxu1 %v24173_v8  ;;  %v16634_v32 = vpop.f32.mrb[255].mxu1  ;;  %v20784_v23 = vpop.permute.xlu1 %9624 }
 0x3d9   :  { %16982 = vmatmul.mubr.msk.bf16.vlgmr.msra.gmra.mrb[68].mxu0 %vm267_vm1, %v202_v18  ;;  %24211 = vst [vmem:[#allocation75_spill] sm:$0xff] %v20784_v23  ;;  %v20786_v61 = vpop.permute.xlu0 %9148 }
 0x3da   :  { %16992 = vmatmul.mubr.msk.bf16.vlgmr.msra.gmra.mrb[68].mxu1 %vm267_vm1, %v203_v38  ;;  %16996 = vmatpush3.bf16.msra.mxu0 %v20581_v50  ;;  %24212 = vst [vmem:[#allocation76_spill] sm:$0xff] %v20786_v61 }
 0x3db   :  { %17006 = vmatpush3.bf16.msra.mxu1 %v20581_v50  ;;  %16997 = vmatprep.subr.bf16.mxu0 %v24173_v8 }
 0x3dc   :  { %17007 = vmatprep.subr.bf16.mxu1 %v24173_v8  ;;  %17001 = vmatprep.mubr.msk.bf16.mxu0 %vm17980_vm0, %v24173_v8  ;;  %v20798_v62 = vpop.permute.xlu1 %9702 }
 0x3dd   :  { %17011 = vmatprep.mubr.msk.bf16.mxu1 %vm17980_vm0, %v24173_v8  ;;  %24213 = vst [vmem:[#allocation77_spill] sm:$0xff] %v20798_v62  ;;  %v20800_v61 = vpop.permute.xlu0 %9256 }
 0x3de   :  { %16998 = vmatpush3.bf16.msra.mxu0 %v20551_v52  ;;  %24214 = vst [vmem:[#allocation78_spill] sm:$0xff] %v20800_v61  ;;  %v205_v61 = vld [vmem:[%s24085_s0 + $0xb0] sm:$0x1] }
 0x3df   :  { %17008 = vmatpush3.bf16.msra.mxu1 %v20551_v52  ;;  %16999 = vmatprep.subr.bf16.mxu0 %v24173_v8 }
 0x3e0   :  { %v5809_v18 = vpop.f32.mrb[0].mxu0  ;;  %17009 = vmatprep.subr.bf16.mxu1 %v24173_v8 }
 0x3e1   :  { %v17647_v9 = vpop.eup %17646  ;;  %v5810_v55 = vadd.f32 %v20484_v6, %v5809_v18  ;;  %v16643_v32 = vpop.f32.mrb[1].mxu0 }
 0x3e2   :  { %v5852_v38 = vpop.f32.mrb[0].mxu1  ;;  %v17649_v60 = vpop.eup %17648  ;;  %v9018_v23 = vpack.c.bf16 %v17647_v9, %v17647_v9  ;;  %17000 = vmatpush3.bf16.msra.mxu0 %v20523_v43 }
 0x3e3   :  { %v5853_v5 = vadd.f32 %v20484_v6, %v5852_v38  ;;  %17650 = vtanh.f32 %v5810_v55  ;;  %17010 = vmatpush3.bf16.msra.mxu1 %v20523_v43  ;;  %v5812_v18 = vpop.f32.mrb[2].mxu0  ;;  %v16653_v32 = vpop.f32.mrb[1].mxu1  ;;  %17015 = vmatprep.subr.bf16.mxu0 %v24173_v8  ;;  %v9019_v9 = vpack.c.bf16 %v17649_v60, %v17649_v60 }
 0x3e4   :  { %v16644_v38 = vpop.f32.mrb[3].mxu0  ;;  %v5855_v62 = vpop.f32.mrb[2].mxu1  ;;  %9466 = vrot.lane.b32.xlu0 %v9018_v23, %s17984_s13  ;;  %17025 = vmatprep.subr.bf16.mxu1 %v24173_v8 }
 0x3e5   :  { %17652 = vtanh.f32 %v5853_v5  ;;  %v16654_v37 = vpop.f32.mrb[3].mxu1  ;;  %17002 = vmatmul.mubr.msk.bf16.vlgmr.msra.gmra.mrb[72].mxu0 %vm267_vm1, %v204_v40  ;;  %v20819_v55 = vpop.permute.xlu1 %9692  ;;  %v5380_v5 = vadd.f32 %v20484_v6, %v20634_v14 }
 0x3e6   :  { %17012 = vmatmul.mubr.msk.bf16.vlgmr.msra.gmra.mrb[72].mxu1 %vm267_vm1, %v205_v61  ;;  %17016 = vmatpush3.bf16.msra.mxu0 %v20581_v50  ;;  %24215 = vst [vmem:[#allocation79_spill] sm:$0xff] %v20819_v55  ;;  %v20829_v40 = vpop.permute.xlu0 %9334  ;;  %v5423_v61 = vadd.f32 %v20484_v6, %v20637_v7 }
 0x3e7   :  { %17026 = vmatpush3.bf16.msra.mxu1 %v20581_v50  ;;  %17017 = vmatprep.subr.bf16.mxu0 %v24173_v8  ;;  %24216 = vst [vmem:[#allocation80_spill] sm:$0xff] %v20829_v40  ;;  %17654 = vtanh.f32 %v5380_v5  ;;  %v206_v40 = vld [vmem:[%s24085_s0 + $0xb1] sm:$0x1] }
 0x3e8   :  { %9574 = vrot.lane.b32.xlu0 %v9019_v9, %s17985_s14  ;;  %17027 = vmatprep.subr.bf16.mxu1 %v24173_v8 }
 0x3e9   :  { %17021 = vmatprep.mubr.msk.bf16.mxu0 %vm17980_vm0, %v24173_v8  ;;  %17031 = vmatprep.mubr.msk.bf16.mxu1 %vm17980_vm0, %v24173_v8  ;;  %v20834_v37 = vpop.permute.xlu1 %9150 }
 0x3ea   :  { %17018 = vmatpush3.bf16.msra.mxu0 %v20551_v52  ;;  %v20840_v9 = vpop.permute.xlu0 %9442 }
 0x3eb   :  { %17028 = vmatpush3.bf16.msra.mxu1 %v20551_v52  ;;  %17019 = vmatprep.subr.bf16.mxu0 %v24173_v8  ;;  %24217 = vst [vmem:[#allocation81_spill] sm:$0xff] %v20840_v9 }
 0x3ec   :  { %v5895_v23 = vpop.f32.mrb[4].mxu0  ;;  %17029 = vmatprep.subr.bf16.mxu1 %v24173_v8 }
 0x3ed   :  { %v17651_v14 = vpop.eup %17650  ;;  %v5896_v60 = vadd.f32 %v20484_v6, %v5895_v23  ;;  %v16663_v62 = vpop.f32.mrb[5].mxu0  ;;  %v207_v23 = vld [vmem:[%s24085_s0 + $0xb2] sm:$0x1] }
 0x3ee   :  { %v5938_v18 = vpop.f32.mrb[4].mxu1  ;;  %v9020_v38 = vpack.c.bf16 %v17651_v14, %v17651_v14  ;;  %17020 = vmatpush3.bf16.msra.mxu0 %v20523_v43  ;;  %v5898_v7 = vpop.f32.mrb[6].mxu0 }
 0x3ef   :  { %v17653_v32 = vpop.eup %17652  ;;  %v5939_v55 = vadd.f32 %v20484_v6, %v5938_v18  ;;  %17656 = vtanh.f32 %v5896_v60  ;;  %17030 = vmatpush3.bf16.msra.mxu1 %v20523_v43  ;;  %v16673_v5 = vpop.f32.mrb[5].mxu1  ;;  %17035 = vmatprep.subr.bf16.mxu0 %v24173_v8 }
 0x3f0   :  { %v9021_v14 = vpack.c.bf16 %v17653_v32, %v17653_v32  ;;  %v16664_v62 = vpop.f32.mrb[7].mxu0  ;;  %v5941_v18 = vpop.f32.mrb[6].mxu1  ;;  %9652 = vrot.lane.b32.xlu0 %v9020_v38, %s17986_s19  ;;  %9468 = vrot.lane.b32.xlu1 %v9020_v38, %s17984_s13 }
 0x3f1   :  { %17658 = vtanh.f32 %v5939_v55  ;;  %v20854_v9 = vpop.permute.xlu1 %9258  ;;  %v16674_v60 = vpop.f32.mrb[7].mxu1  ;;  %17022 = vmatmul.mubr.msk.bf16.vlgmr.msra.gmra.mrb[76].mxu0 %vm267_vm1, %v206_v40  ;;  %17045 = vmatprep.subr.bf16.mxu1 %v24173_v8 }
 0x3f2   :  { %24218 = vst [vmem:[#allocation82_spill] sm:$0xff] %v20854_v9  ;;  %17660 = vtanh.f32 %v5423_v61  ;;  %17032 = vmatmul.mubr.msk.bf16.vlgmr.msra.gmra.mrb[76].mxu1 %vm267_vm1, %v207_v23  ;;  %17036 = vmatpush3.bf16.msra.mxu0 %v20581_v50  ;;  %v20862_v55 = vpop.permute.xlu0 %9550  ;;  %v5466_v61 = vadd.f32 %v20484_v6, %v20672_v31  ;;  %v17655_v40 = vpop.eup %17654  ;;  %v5509_v31 = vadd.f32 %v20484_v6, %v20675_v2 }
 0x3f3   :  { %17046 = vmatpush3.bf16.msra.mxu1 %v20581_v50  ;;  %17037 = vmatprep.subr.bf16.mxu0 %v24173_v8  ;;  %24219 = vst [vmem:[#allocation83_spill] sm:$0xff] %v20862_v55  ;;  %v20886_v60 = vpack.c.bf16 %v17655_v40, %v17655_v40 }
 0x3f4   :  { %9730 = vrot.lane.b32.xlu0 %v9021_v14, %s17987_s20  ;;  %9576 = vrot.lane.b32.xlu1 %v9021_v14, %s17985_s14  ;;  %17662 = vtanh.f32 %v5466_v61 }
 0x3f5   :  { %17047 = vmatprep.subr.bf16.mxu1 %v24173_v8  ;;  %17041 = vmatprep.mubr.msk.bf16.mxu0 %vm17980_vm0, %v24173_v8  ;;  %v20874_v32 = vpop.permute.xlu1 %9336  ;;  %24222 = vst [vmem:[#allocation86_spill] sm:$0xff] %v20886_v60  ;;  %17664 = vtanh.f32 %v5509_v31 }
 0x3f6   :  { %17038 = vmatpush3.bf16.msra.mxu0 %v20551_v52  ;;  %17051 = vmatprep.mubr.msk.bf16.mxu1 %vm17980_vm0, %v24173_v8  ;;  %24220 = vst [vmem:[#allocation84_spill] sm:$0xff] %v20874_v32  ;;  %v20878_v38 = vpop.permute.xlu0 %9628 }
 0x3f7   :  { %17048 = vmatpush3.bf16.msra.mxu1 %v20551_v52  ;;  %17039 = vmatprep.subr.bf16.mxu0 %v24173_v8  ;;  %24221 = vst [vmem:[#allocation85_spill] sm:$0xff] %v20878_v38 }
 0x3f8   :  { %9176 = vrot.lane.b32.xlu0 %v20650_v0, %s17981_s29  ;;  %v5981_v7 = vpop.f32.mrb[8].mxu0  ;;  %17049 = vmatprep.subr.bf16.mxu1 %v24173_v8  ;;  %v208_v0 = vld [vmem:[%s24085_s0 + $0xb4] sm:$0x1] }
 0x3f9   :  { %v17657_v5 = vpop.eup %17656  ;;  %v5982_v23 = vadd.f32 %v20484_v6, %v5981_v7  ;;  %v16683_v14 = vpop.f32.mrb[9].mxu0  ;;  %v209_v7 = vld [vmem:[%s24085_s0 + $0xb5] sm:$0x1] }
 0x3fa   :  { %v6024_v62 = vpop.f32.mrb[8].mxu1  ;;  %v9022_v55 = vpack.c.bf16 %v17657_v5, %v17657_v5  ;;  %17040 = vmatpush3.bf16.msra.mxu0 %v20523_v43  ;;  %v5984_v38 = vpop.f32.mrb[10].mxu0 }
 0x3fb   :  { %v17659_v18 = vpop.eup %17658  ;;  %17050 = vmatpush3.bf16.msra.mxu1 %v20523_v43  ;;  %v16684_v32 = vpop.f32.mrb[11].mxu0  ;;  %17055 = vmatprep.subr.bf16.mxu0 %v24173_v8  ;;  %17666 = vtanh.f32 %v5982_v23 }
 0x3fc   :  { %v17661_v2 = vpop.eup %17660  ;;  %v16693_v61 = vpop.f32.mrb[9].mxu1  ;;  %v9023_v40 = vpack.c.bf16 %v17659_v18, %v17659_v18  ;;  %9284 = vrot.lane.b32.xlu0 %v20886_v60, %s17982_s21  ;;  %9654 = vrot.lane.b32.xlu1 %v9022_v55, %s17986_s19  ;;  %v6025_v32 = vadd.f32 %v20484_v6, %v6024_v62 }
 0x3fd   :  { %v6027_v5 = vpop.f32.mrb[10].mxu1  ;;  %v20900_v38 = vpop.permute.xlu1 %9444  ;;  %17042 = vmatmul.mubr.msk.bf16.vlgmr.msra.gmra.mrb[80].mxu0 %vm267_vm1, %v208_v0  ;;  %17065 = vmatprep.subr.bf16.mxu1 %v24173_v8  ;;  %v9011_v31 = vpack.c.bf16 %v17661_v2, %v17661_v2  ;;  %v5552_v0 = vadd.f32 %v20484_v6, %v20700_v33  ;;  %v210_v33 = vld [vmem:[%s24085_s0 + $0xb6] sm:$0x1] }
 0x3fe   :  { %24223 = vst [vmem:[#allocation87_spill] sm:$0xff] %v20900_v38  ;;  %v16694_v14 = vpop.f32.mrb[11].mxu1  ;;  %v20905_v61 = vpop.permute.xlu0 %9706  ;;  %17052 = vmatmul.mubr.msk.bf16.vlgmr.msra.gmra.mrb[80].mxu1 %vm267_vm1, %v209_v7  ;;  %17056 = vmatpush3.bf16.msra.mxu0 %v20581_v50  ;;  %17668 = vtanh.f32 %v6025_v32 }
 0x3ff   :  { %24224 = vst [vmem:[#allocation88_spill] sm:$0xff] %v20905_v61  ;;  %17066 = vmatpush3.bf16.msra.mxu1 %v20581_v50  ;;  %17057 = vmatprep.subr.bf16.mxu0 %v24173_v8  ;;  %v17663_v23 = vpop.eup %17662  ;;  %17670 = vtanh.f32 %v5552_v0 }
 0x400   :  { %9362 = vrot.lane.b32.xlu0 %v9011_v31, %s17983_s22  ;;  %9732 = vrot.lane.b32.xlu1 %v9023_v40, %s17987_s20  ;;  %v17665_v14 = vpop.eup %17664  ;;  %v20931_v60 = vpack.c.bf16 %v17663_v23, %v17663_v23 }
 0x401   :  { %17067 = vmatprep.subr.bf16.mxu1 %v24173_v8  ;;  %17061 = vmatprep.mubr.msk.bf16.mxu0 %vm17980_vm0, %v24173_v8  ;;  %v20919_v62 = vpop.permute.xlu1 %9552 }
 0x402   :  { %17058 = vmatpush3.bf16.msra.mxu0 %v20551_v52  ;;  %17071 = vmatprep.mubr.msk.bf16.mxu1 %vm17980_vm0, %v24173_v8  ;;  %24225 = vst [vmem:[#allocation89_spill] sm:$0xff] %v20919_v62  ;;  %v20923_v18 = vpop.permute.xlu0 %9152  ;;  %24227 = vst [vmem:[#allocation91_spill] sm:$0xff] %v20931_v60 }
 0x403   :  { %17068 = vmatpush3.bf16.msra.mxu1 %v20551_v52  ;;  %17059 = vmatprep.subr.bf16.mxu0 %v24173_v8  ;;  %24226 = vst [vmem:[#allocation90_spill] sm:$0xff] %v20923_v18 }
 0x404   :  { %9470 = vrot.lane.b32.xlu0 %v9022_v55, %s17984_s13  ;;  %9178 = vrot.lane.b32.xlu1 %v9011_v31, %s17981_s29  ;;  %v6067_v2 = vpop.f32.mrb[12].mxu0 }
 0x405   :  { %v6068_v7 = vadd.f32 %v20484_v6, %v6067_v2  ;;  %v16703_v5 = vpop.f32.mrb[13].mxu0  ;;  %17069 = vmatprep.subr.bf16.mxu1 %v24173_v8  ;;  %v6110_v32 = vpop.f32.mrb[12].mxu1 }
 0x406   :  { %v6070_v61 = vpop.f32.mrb[14].mxu0  ;;  %17060 = vmatpush3.bf16.msra.mxu0 %v20523_v43  ;;  %v16713_v18 = vpop.f32.mrb[13].mxu1  ;;  %v211_v5 = vld [vmem:[%s24085_s0 + $0xb7] sm:$0x1] }
 0x407   :  { %v17667_v55 = vpop.eup %17666  ;;  %17070 = vmatpush3.bf16.msra.mxu1 %v20523_v43  ;;  %v16704_v31 = vpop.f32.mrb[15].mxu0  ;;  %17075 = vmatprep.subr.bf16.mxu0 %v24173_v8  ;;  %v5595_v61 = vadd.f32 %v20484_v6, %v20703_v12  ;;  %17672 = vtanh.f32 %v6068_v7 }
 0x408   :  { %v6113_v2 = vpop.f32.mrb[14].mxu1  ;;  %v20942_v23 = vpop.permute.xlu1 %9630  ;;  %9578 = vrot.lane.b32.xlu0 %v9023_v40, %s17985_s14  ;;  %9286 = vrot.lane.b32.xlu1 %v20931_v60, %s17982_s21  ;;  %v6111_v31 = vadd.f32 %v20484_v6, %v6110_v32  ;;  %v9024_v0 = vpack.c.bf16 %v17667_v55, %v17667_v55 }
 0x409   :  { %24228 = vst [vmem:[#allocation92_spill] sm:$0xff] %v20942_v23  ;;  %v16714_v18 = vpop.f32.mrb[15].mxu1  ;;  %17062 = vmatmul.mubr.msk.bf16.vlgmr.msra.gmra.mrb[84].mxu0 %vm267_vm1, %v210_v33  ;;  %17085 = vmatprep.subr.bf16.mxu1 %v24173_v8  ;;  %v20952_v2 = vpop.permute.xlu0 %9260  ;;  %v9013_v23 = vpack.c.bf16 %v17665_v14, %v17665_v14  ;;  %17674 = vtanh.f32 %v5595_v61  ;;  %v5638_v33 = vadd.f32 %v20484_v6, %v20730_v53  ;;  %v213_v53 = vld [vmem:[%s24085_s0 + $0xb9] sm:$0x1] }
 0x40a   :  { %24229 = vst [vmem:[#allocation93_spill] sm:$0xff] %v20952_v2  ;;  %17072 = vmatmul.mubr.msk.bf16.vlgmr.msra.gmra.mrb[84].mxu1 %vm267_vm1, %v211_v5  ;;  %17076 = vmatpush3.bf16.msra.mxu0 %v20581_v50  ;;  %v17669_v12 = vpop.eup %17668  ;;  %17676 = vtanh.f32 %v6111_v31  ;;  %v212_v31 = vld [vmem:[%s24085_s0 + $0xb8] sm:$0x1] }
 0x40b   :  { %17086 = vmatpush3.bf16.msra.mxu1 %v20581_v50  ;;  %17077 = vmatprep.subr.bf16.mxu0 %v24173_v8  ;;  %v9025_v7 = vpack.c.bf16 %v17669_v12, %v17669_v12  ;;  %v17671_v61 = vpop.eup %17670  ;;  %17678 = vtanh.f32 %v5638_v33 }
 0x40c   :  { %9364 = vrot.lane.b32.xlu1 %v9013_v23, %s17983_s22  ;;  %9656 = vrot.lane.b32.xlu0 %v9024_v0, %s17986_s19  ;;  %v20963_v40 = vpop.permute.xlu1 %9708 }
 0x40d   :  { %17087 = vmatprep.subr.bf16.mxu1 %v24173_v8  ;;  %17081 = vmatprep.mubr.msk.bf16.mxu0 %vm17980_vm0, %v24173_v8  ;;  %24230 = vst [vmem:[#allocation94_spill] sm:$0xff] %v20963_v40  ;;  %v20970_v32 = vpop.permute.xlu0 %9338 }
 0x40e   :  { %17078 = vmatpush3.bf16.msra.mxu0 %v20551_v52  ;;  %17091 = vmatprep.mubr.msk.bf16.mxu1 %vm17980_vm0, %v24173_v8  ;;  %24231 = vst [vmem:[#allocation95_spill] sm:$0xff] %v20970_v32 }
 0x40f   :  { %17088 = vmatpush3.bf16.msra.mxu1 %v20551_v52  ;;  %17079 = vmatprep.subr.bf16.mxu0 %v24173_v8 }
 0x410   :  { %9734 = vrot.lane.b32.xlu0 %v9025_v7, %s17987_s20  ;;  %9472 = vrot.lane.b32.xlu1 %v9024_v0, %s17984_s13  ;;  %v6153_v14 = vpop.f32.mrb[16].mxu0 }
 0x411   :  { %v16723_v55 = vpop.f32.mrb[17].mxu0  ;;  %17089 = vmatprep.subr.bf16.mxu1 %v24173_v8  ;;  %v6196_v5 = vpop.f32.mrb[16].mxu1 }
 0x412   :  { %17080 = vmatpush3.bf16.msra.mxu0 %v20523_v43  ;;  %v6156_v18 = vpop.f32.mrb[18].mxu0  ;;  %v17673_v12 = vpop.eup %17672 }
 0x413   :  { %17090 = vmatpush3.bf16.msra.mxu1 %v20523_v43  ;;  %v16724_v0 = vpop.f32.mrb[19].mxu0  ;;  %v16733_v60 = vpop.f32.mrb[17].mxu1  ;;  %17095 = vmatprep.subr.bf16.mxu0 %v24173_v8  ;;  %v5681_v18 = vadd.f32 %v20484_v6, %v20733_v36  ;;  %v9026_v62 = vpack.c.bf16 %v17673_v12, %v17673_v12 }
 0x414   :  { %v20986_v55 = vpop.permute.xlu1 %9154  ;;  %v6199_v32 = vpop.f32.mrb[18].mxu1  ;;  %9180 = vrot.lane.b32.xlu0 %v9013_v23, %s17981_s29  ;;  %9580 = vrot.lane.b32.xlu1 %v9025_v7, %s17985_s14  ;;  %v6154_v0 = vadd.f32 %v20484_v6, %v6153_v14  ;;  %v21009_v6 = vld [vmem:[%s24087_s2] ss:$0 sm:$0xff] }
 0x415   :  { %24232 = vst [vmem:[#allocation96_spill] sm:$0xff] %v20986_v55  ;;  %v16734_v60 = vpop.f32.mrb[19].mxu1  ;;  %17082 = vmatmul.mubr.msk.bf16.vlgmr.msra.gmra.mrb[88].mxu0 %vm267_vm1, %v212_v31  ;;  %17105 = vmatprep.subr.bf16.mxu1 %v24173_v8  ;;  %v17675_v2 = vpop.eup %17674  ;;  %v20997_v55 = vpack.c.bf16 %v17671_v61, %v17671_v61  ;;  %17680 = vtanh.f32 %v5681_v18  ;;  %v6197_v23 = vadd.f32 %v21009_v6, %v6196_v5 }
 0x416   :  { %v20995_v40 = vpop.permute.xlu0 %9446  ;;  %17092 = vmatmul.mubr.msk.bf16.vlgmr.msra.gmra.mrb[88].mxu1 %vm267_vm1, %v213_v53  ;;  %17096 = vmatpush3.bf16.msra.mxu0 %v20581_v50  ;;  %v17677_v36 = vpop.eup %17676  ;;  %17682 = vtanh.f32 %v6154_v0  ;;  %v9015_v32 = vpack.c.bf16 %v17675_v2, %v17675_v2  ;;  %v215_v0 = vld [vmem:[%s24085_s0 + $0xbb] sm:$0x1] }
 0x417   :  { %24233 = vst [vmem:[#allocation97_spill] sm:$0xff] %v20995_v40  ;;  %24234 = vst [vmem:[#allocation98_spill] sm:$0xff] %v20997_v55  ;;  %17106 = vmatpush3.bf16.msra.mxu1 %v20581_v50  ;;  %17097 = vmatprep.subr.bf16.mxu0 %v24173_v8  ;;  %v9027_v14 = vpack.c.bf16 %v17677_v36, %v17677_v36  ;;  %17684 = vtanh.f32 %v6197_v23  ;;  %v17679_v12 = vpop.eup %17678  ;;  %v230_v40 = vld [vmem:[%s24085_s0 + $0xcb] sm:$0x1] }
 0x418   :  { %9288 = vrot.lane.b32.xlu0 %v20997_v55, %s17982_s21  ;;  %9658 = vrot.lane.b32.xlu1 %v9026_v62, %s17986_s19  ;;  %v21015_v7 = vpop.permute.xlu1 %9262 }
 0x419   :  { %17107 = vmatprep.subr.bf16.mxu1 %v24173_v8  ;;  %17101 = vmatprep.mubr.msk.bf16.mxu0 %vm17980_vm0, %v24173_v8  ;;  %24235 = vst [vmem:[#allocation99_spill] sm:$0xff] %v21015_v7 }
 0x41a   :  { %17098 = vmatpush3.bf16.msra.mxu0 %v20551_v52  ;;  %17111 = vmatprep.mubr.msk.bf16.mxu1 %vm17980_vm0, %v24173_v8  ;;  %v21022_v33 = vpop.permute.xlu0 %9554 }
 0x41b   :  { %17108 = vmatpush3.bf16.msra.mxu1 %v20551_v52  ;;  %17099 = vmatprep.subr.bf16.mxu0 %v24173_v8  ;;  %24236 = vst [vmem:[#allocation100_spill] sm:$0xff] %v21022_v33  ;;  %v214_v52 = vld [vmem:[%s24085_s0 + $0xba] sm:$0x1] }
 0x41c   :  { %9366 = vrot.lane.b32.xlu0 %v9015_v32, %s17983_s22  ;;  %9736 = vrot.lane.b32.xlu1 %v9027_v14, %s17987_s20  ;;  %v6239_v5 = vpop.f32.mrb[20].mxu0  ;;  %v21036_v60 = vpop.permute.xlu1 %9340 }
 0x41d   :  { %v16743_v61 = vpop.f32.mrb[21].mxu0  ;;  %17109 = vmatprep.subr.bf16.mxu1 %v24173_v8  ;;  %v6282_v2 = vpop.f32.mrb[20].mxu1  ;;  %24237 = vst [vmem:[#allocation101_spill] sm:$0xff] %v21036_v60  ;;  %v6240_v23 = vadd.f32 %v21009_v6, %v6239_v5 }
 0x41e   :  { %17100 = vmatpush3.bf16.msra.mxu0 %v20523_v43  ;;  %v6242_v31 = vpop.f32.mrb[22].mxu0  ;;  %v16753_v18 = vpop.f32.mrb[21].mxu1 }
 0x41f   :  { %17110 = vmatpush3.bf16.msra.mxu1 %v20523_v43  ;;  %v16744_v53 = vpop.f32.mrb[23].mxu0  ;;  %17115 = vmatprep.subr.bf16.mxu0 %v24173_v8  ;;  %v6285_v36 = vpop.f32.mrb[22].mxu1  ;;  %17686 = vtanh.f32 %v6240_v23 }
 0x420   :  { %9474 = vrot.lane.b32.xlu0 %v9026_v62, %s17984_s13  ;;  %9182 = vrot.lane.b32.xlu1 %v9015_v32, %s17981_s29  ;;  %v16754_v61 = vpop.f32.mrb[23].mxu1  ;;  %v17681_v43 = vpop.eup %17680  ;;  %v9016_v53 = vpack.c.bf16 %v17679_v12, %v17679_v12  ;;  %v6283_v62 = vadd.f32 %v21009_v6, %v6282_v2 }
 0x421   :  { %17102 = vmatmul.mubr.msk.bf16.vlgmr.msra.gmra.mrb[92].mxu0 %vm267_vm1, %v214_v52  ;;  %17125 = vmatprep.subr.bf16.mxu1 %v24173_v8  ;;  %v21043_v31 = vpop.permute.xlu0 %9632  ;;  %v17683_v18 = vpop.eup %17682  ;;  %v9017_v5 = vpack.c.bf16 %v17681_v43, %v17681_v43 }
 0x422   :  { %24238 = vst [vmem:[#allocation102_spill] sm:$0xff] %v21043_v31  ;;  %17112 = vmatmul.mubr.msk.bf16.vlgmr.msra.gmra.mrb[92].mxu1 %vm267_vm1, %v215_v0  ;;  %17116 = vmatpush3.bf16.msra.mxu0 %v20581_v50  ;;  %v21055_v32 = vpop.permute.xlu1 %9448  ;;  %v9028_v52 = vpack.c.bf16 %v17683_v18, %v17683_v18  ;;  %17688 = vtanh.f32 %v6283_v62  ;;  %v216_v62 = vld [vmem:[%s24085_s0 + $0xbc] sm:$0x1] }
 0x423   :  { %17126 = vmatpush3.bf16.msra.mxu1 %v20581_v50  ;;  %17117 = vmatprep.subr.bf16.mxu0 %v24173_v8  ;;  %24239 = vst [vmem:[#allocation103_spill] sm:$0xff] %v21055_v32  ;;  %v21060_v50 = vld [vmem:[%s24086_s1 + $0x8] sm:$0xff]  }
 0x424   :  { %9582 = vrot.lane.b32.xlu0 %v9027_v14, %s17985_s14  ;;  %9290 = vrot.lane.b32.xlu1 %v9016_v53, %s17982_s21  ;;  %v17685_v14 = vpop.eup %17684  ;;  %v21078_v53 = vld [vmem:[%s24086_s1 + $0x10] sm:$0xff]  }
 0x425   :  { %17127 = vmatprep.subr.bf16.mxu1 %v24173_v8  ;;  %17121 = vmatprep.mubr.msk.bf16.mxu0 %vm17980_vm0, %v24173_v8  ;;  %v21067_v2 = vpop.permute.xlu0 %9710  ;;  %v9029_v23 = vpack.c.bf16 %v17685_v14, %v17685_v14  ;;  %v217_v14 = vld [vmem:[%s24085_s0 + $0xbd] sm:$0x1] }
 0x426   :  { %17118 = vmatpush3.bf16.msra.mxu0 %v21060_v50  ;;  %17131 = vmatprep.mubr.msk.bf16.mxu1 %vm17980_vm0, %v24173_v8  ;;  %24240 = vst [vmem:[#allocation104_spill] sm:$0xff] %v21067_v2 }
 0x427   :  { %17128 = vmatpush3.bf16.msra.mxu1 %v21060_v50  ;;  %17119 = vmatprep.subr.bf16.mxu0 %v24173_v8 }
 0x428   :  { %9368 = vrot.lane.b32.xlu1 %v9017_v5, %s17983_s22  ;;  %9660 = vrot.lane.b32.xlu0 %v9028_v52, %s17986_s19  ;;  %v21071_v12 = vpop.f32.mrb[24].mxu0 }
 0x429   :  { %24241 = vst [vmem:[#allocation105_spill] sm:$0xff] %v21071_v12  ;;  %v6368_v0 = vpop.f32.mrb[24].mxu1  ;;  %v16763_v36 = vpop.f32.mrb[25].mxu0  ;;  %17129 = vmatprep.subr.bf16.mxu1 %v24173_v8 }
 0x42a   :  { %v6369_v61 = vadd.f32 %v21009_v6, %v6368_v0  ;;  %v6328_v43 = vpop.f32.mrb[26].mxu0  ;;  %17120 = vmatpush3.bf16.msra.mxu0 %v21078_v53  ;;  %v16773_v18 = vpop.f32.mrb[25].mxu1 }
 0x42b   :  { %17130 = vmatpush3.bf16.msra.mxu1 %v21078_v53  ;;  %v16764_v5 = vpop.f32.mrb[27].mxu0  ;;  %v6371_v36 = vpop.f32.mrb[26].mxu1  ;;  %17135 = vmatprep.subr.bf16.mxu0 %v24173_v8  ;;  %v21099_v18 = vld [vmem:[%s24086_s1] sm:$0xff]  }
 0x42c   :  { %v21089_v0 = vpop.permute.xlu1 %9556  ;;  %17690 = vtanh.f32 %v6369_v61  ;;  %9738 = vrot.lane.b32.xlu0 %v9029_v23, %s17987_s20  ;;  %9476 = vrot.lane.b32.xlu1 %v9028_v52, %s17984_s13  ;;  %v16774_v43 = vpop.f32.mrb[27].mxu1 }
 0x42d   :  { %24242 = vst [vmem:[#allocation106_spill] sm:$0xff] %v21089_v0  ;;  %17122 = vmatmul.mubr.msk.bf16.vlgmr.msra.gmra.mrb[96].mxu0 %vm267_vm1, %v216_v62  ;;  %17145 = vmatprep.subr.bf16.mxu1 %v24173_v8  ;;  %v17687_v5 = vpop.eup %17686  ;;  %v218_v0 = vld [vmem:[%s24085_s0 + $0xbe] sm:$0x1] }
 0x42e   :  { %17132 = vmatmul.mubr.msk.bf16.vlgmr.msra.gmra.mrb[96].mxu1 %vm267_vm1, %v217_v14  ;;  %17136 = vmatpush3.bf16.msra.mxu0 %v21099_v18  ;;  %v9030_v61 = vpack.c.bf16 %v17687_v5, %v17687_v5  ;;  %v17689_v62 = vpop.eup %17688 }
 0x42f   :  { %17146 = vmatpush3.bf16.msra.mxu1 %v21099_v18  ;;  %17137 = vmatprep.subr.bf16.mxu0 %v24173_v8  ;;  %v9031_v55 = vpack.c.bf16 %v17689_v62, %v17689_v62  ;;  %v219_v62 = vld [vmem:[%s24085_s0 + $0xbf] sm:$0x1] }
 0x430   :  { %9584 = vrot.lane.b32.xlu1 %v9029_v23, %s17985_s14  ;;  %17147 = vmatprep.subr.bf16.mxu1 %v24173_v8  ;;  %v21110_v52 = vpop.permute.xlu1 %9634 }
 0x431   :  { %17141 = vmatprep.mubr.msk.bf16.mxu0 %vm17980_vm0, %v24173_v8  ;;  %17151 = vmatprep.mubr.msk.bf16.mxu1 %vm17980_vm0, %v24173_v8  ;;  %24243 = vst [vmem:[#allocation107_spill] sm:$0xff] %v21110_v52 }
 0x432   :  { %17138 = vmatpush3.bf16.msra.mxu0 %v21060_v50 }
 0x433   :  { %17148 = vmatpush3.bf16.msra.mxu1 %v21060_v50  ;;  %17139 = vmatprep.subr.bf16.mxu0 %v24173_v8 }
 0x434   :  { %9662 = vrot.lane.b32.xlu1 %v9030_v61, %s17986_s19  ;;  %v6411_v23 = vpop.f32.mrb[28].mxu0  ;;  %17149 = vmatprep.subr.bf16.mxu1 %v24173_v8 }
 0x435   :  { %v6454_v36 = vpop.f32.mrb[28].mxu1  ;;  %v6412_v14 = vadd.f32 %v21009_v6, %v6411_v23  ;;  %v16783_v43 = vpop.f32.mrb[29].mxu0 }
 0x436   :  { %v17691_v12 = vpop.eup %17690  ;;  %v6455_v5 = vadd.f32 %v21009_v6, %v6454_v36  ;;  %v6414_v2 = vpop.f32.mrb[30].mxu0  ;;  %17140 = vmatpush3.bf16.msra.mxu0 %v21078_v53 }
 0x437   :  { %v16793_v52 = vpop.f32.mrb[29].mxu1  ;;  %v9033_v61 = vpack.c.bf16 %v17691_v12, %v17691_v12  ;;  %17692 = vtanh.f32 %v6412_v14  ;;  %17150 = vmatpush3.bf16.msra.mxu1 %v21078_v53  ;;  %v16784_v31 = vpop.f32.mrb[31].mxu0  ;;  %17155 = vmatprep.subr.bf16.mxu0 %v24173_v8 }
 0x438   :  { %v6457_v32 = vpop.f32.mrb[30].mxu1  ;;  %v21128_v2 = vpop.permute.xlu1 %9712  ;;  %17694 = vtanh.f32 %v6455_v5  ;;  %9740 = vrot.lane.b32.xlu1 %v9031_v55, %s17987_s20  ;;  %17165 = vmatprep.subr.bf16.mxu1 %v24173_v8 }
 0x439   :  { %24244 = vst [vmem:[#allocation108_spill] sm:$0xff] %v21128_v2  ;;  %v16794_v52 = vpop.f32.mrb[31].mxu1  ;;  %v21132_v12 = vpop.permute.xlu0 %9156  ;;  %9184 = vrot.lane.b32.xlu0 %v9033_v61, %s17981_s29  ;;  %17142 = vmatmul.mubr.msk.bf16.vlgmr.msra.gmra.mrb[100].mxu0 %vm267_vm1, %v218_v0 }
 0x43a   :  { %24245 = vst [vmem:[#allocation109_spill] sm:$0xff] %v21132_v12  ;;  %17152 = vmatmul.mubr.msk.bf16.vlgmr.msra.gmra.mrb[100].mxu1 %vm267_vm1, %v219_v62  ;;  %17156 = vmatpush3.bf16.msra.mxu0 %v21099_v18  ;;  %v220_v52 = vld [vmem:[%s24085_s0 + $0xc0] sm:$0x1] }
 0x43b   :  { %17166 = vmatpush3.bf16.msra.mxu1 %v21099_v18  ;;  %17157 = vmatprep.subr.bf16.mxu0 %v24173_v8 }
 0x43c   :  { %17167 = vmatprep.subr.bf16.mxu1 %v24173_v8  ;;  %17161 = vmatprep.mubr.msk.bf16.mxu0 %vm17980_vm0, %v24173_v8 }
 0x43d   :  { %17171 = vmatprep.mubr.msk.bf16.mxu1 %vm17980_vm0, %v24173_v8  ;;  %v21148_v55 = vpop.permute.xlu0 %9264 }
 0x43e   :  { %17158 = vmatpush3.bf16.msra.mxu0 %v21060_v50  ;;  %24246 = vst [vmem:[#allocation110_spill] sm:$0xff] %v21148_v55 }
 0x43f   :  { %17168 = vmatpush3.bf16.msra.mxu1 %v21060_v50  ;;  %17159 = vmatprep.subr.bf16.mxu0 %v24173_v8 }
 0x440   :  { %v6497_v31 = vpop.f32.mrb[32].mxu0  ;;  %17169 = vmatprep.subr.bf16.mxu1 %v24173_v8 }
 0x441   :  { %v17693_v32 = vpop.eup %17692  ;;  %v6498_v0 = vadd.f32 %v21009_v6, %v6497_v31  ;;  %v16803_v23 = vpop.f32.mrb[33].mxu0 }
 0x442   :  { %v6540_v36 = vpop.f32.mrb[32].mxu1  ;;  %v17695_v14 = vpop.eup %17694  ;;  %v21152_v43 = vpack.c.bf16 %v17693_v32, %v17693_v32  ;;  %17160 = vmatpush3.bf16.msra.mxu0 %v21078_v53  ;;  %v221_v32 = vld [vmem:[%s24085_s0 + $0xc1] sm:$0x1] }
 0x443   :  { %v6500_v5 = vpop.f32.mrb[34].mxu0  ;;  %v6541_v61 = vadd.f32 %v21009_v6, %v6540_v36  ;;  %v16813_v62 = vpop.f32.mrb[33].mxu1  ;;  %v9035_v55 = vpack.c.bf16 %v17695_v14, %v17695_v14  ;;  %17696 = vtanh.f32 %v6498_v0  ;;  %17170 = vmatpush3.bf16.msra.mxu1 %v21078_v53  ;;  %17175 = vmatprep.subr.bf16.mxu0 %v24173_v8 }
 0x444   :  { %24247 = vst [vmem:[#allocation111_spill] sm:$0xff] %v21152_v43  ;;  %v16804_v31 = vpop.f32.mrb[35].mxu0  ;;  %v6543_v23 = vpop.f32.mrb[34].mxu1  ;;  %9292 = vrot.lane.b32.xlu0 %v21152_v43, %s17982_s21  ;;  %17185 = vmatprep.subr.bf16.mxu1 %v24173_v8  ;;  %v222_v43 = vld [vmem:[%s24085_s0 + $0xc3] sm:$0x1] }
 0x445   :  { %17698 = vtanh.f32 %v6541_v61  ;;  %v16814_v36 = vpop.f32.mrb[35].mxu1  ;;  %v21167_v5 = vpop.permute.xlu1 %9158  ;;  %9186 = vrot.lane.b32.xlu1 %v9035_v55, %s17981_s29  ;;  %17162 = vmatmul.mubr.msk.bf16.vlgmr.msra.gmra.mrb[104].mxu0 %vm267_vm1, %v220_v52 }
 0x446   :  { %24248 = vst [vmem:[#allocation112_spill] sm:$0xff] %v21167_v5  ;;  %17172 = vmatmul.mubr.msk.bf16.vlgmr.msra.gmra.mrb[104].mxu1 %vm267_vm1, %v221_v32  ;;  %17176 = vmatpush3.bf16.msra.mxu0 %v21099_v18  ;;  %v21175_v0 = vpop.permute.xlu0 %9342 }
 0x447   :  { %17186 = vmatpush3.bf16.msra.mxu1 %v21099_v18  ;;  %17177 = vmatprep.subr.bf16.mxu0 %v24173_v8  ;;  %24249 = vst [vmem:[#allocation113_spill] sm:$0xff] %v21175_v0 }
 0x448   :  { %9370 = vrot.lane.b32.xlu0 %v9035_v55, %s17983_s22  ;;  %17187 = vmatprep.subr.bf16.mxu1 %v24173_v8 }
 0x449   :  { %17181 = vmatprep.mubr.msk.bf16.mxu0 %vm17980_vm0, %v24173_v8  ;;  %17191 = vmatprep.mubr.msk.bf16.mxu1 %vm17980_vm0, %v24173_v8  ;;  %v21186_v14 = vpop.permute.xlu1 %9266 }
 0x44a   :  { %17178 = vmatpush3.bf16.msra.mxu0 %v21060_v50  ;;  %24250 = vst [vmem:[#allocation114_spill] sm:$0xff] %v21186_v14 }
 0x44b   :  { %17188 = vmatpush3.bf16.msra.mxu1 %v21060_v50  ;;  %17179 = vmatprep.subr.bf16.mxu0 %v24173_v8 }
 0x44c   :  { %v21188_v61 = vpop.f32.mrb[36].mxu0  ;;  %17189 = vmatprep.subr.bf16.mxu1 %v24173_v8 }
 0x44d   :  { %v17697_v55 = vpop.eup %17696  ;;  %v16823_v62 = vpop.f32.mrb[37].mxu0 }
 0x44e   :  { %v21191_v52 = vpop.f32.mrb[36].mxu1  ;;  %v21193_v23 = vpack.c.bf16 %v17697_v55, %v17697_v55  ;;  %v6586_v32 = vpop.f32.mrb[38].mxu0  ;;  %17180 = vmatpush3.bf16.msra.mxu0 %v21078_v53  ;;  %v223_v62 = vld [vmem:[%s24085_s0 + $0xc4] sm:$0x1] }
 0x44f   :  { %v17699_v31 = vpop.eup %17698  ;;  %v16833_v36 = vpop.f32.mrb[37].mxu1  ;;  %17190 = vmatpush3.bf16.msra.mxu1 %v21078_v53  ;;  %17195 = vmatprep.subr.bf16.mxu0 %v24173_v8 }
 0x450   :  { %24251 = vst [vmem:[#allocation115_spill] sm:$0xff] %v21193_v23  ;;  %v16824_v14 = vpop.f32.mrb[39].mxu0  ;;  %v6629_v0 = vpop.f32.mrb[38].mxu1  ;;  %v21204_v55 = vpack.c.bf16 %v17699_v31, %v17699_v31  ;;  %9294 = vrot.lane.b32.xlu1 %v21193_v23, %s17982_s21  ;;  %17205 = vmatprep.subr.bf16.mxu1 %v24173_v8 }
 0x451   :  { %v16834_v32 = vpop.f32.mrb[39].mxu1  ;;  %17182 = vmatmul.mubr.msk.bf16.vlgmr.msra.gmra.mrb[108].mxu0 %vm267_vm1, %v222_v43  ;;  %v21214_v0 = vpop.permute.xlu1 %9344 }
 0x452   :  { %17192 = vmatmul.mubr.msk.bf16.vlgmr.msra.gmra.mrb[108].mxu1 %vm267_vm1, %v223_v62  ;;  %17196 = vmatpush3.bf16.msra.mxu0 %v21099_v18  ;;  %24252 = vst [vmem:[#allocation116_spill] sm:$0xff] %v21214_v0  ;;  %v224_v62 = vld [vmem:[%s24085_s0 + $0xc5] sm:$0x1]  ;;  %v225_v0 = vld [vmem:[%s24085_s0 + $0xc6] sm:$0x1] }
 0x453   :  { %17206 = vmatpush3.bf16.msra.mxu1 %v21099_v18  ;;  %17197 = vmatprep.subr.bf16.mxu0 %v24173_v8 }
 0x454   :  { %9372 = vrot.lane.b32.xlu1 %v21204_v55, %s17983_s22  ;;  %17207 = vmatprep.subr.bf16.mxu1 %v24173_v8 }
 0x455   :  { %17201 = vmatprep.mubr.msk.bf16.mxu0 %vm17980_vm0, %v24173_v8  ;;  %17211 = vmatprep.mubr.msk.bf16.mxu1 %vm17980_vm0, %v24173_v8 }
 0x456   :  { %17198 = vmatpush3.bf16.msra.mxu0 %v21060_v50 }
 0x457   :  { %17208 = vmatpush3.bf16.msra.mxu1 %v21060_v50  ;;  %17199 = vmatprep.subr.bf16.mxu0 %v24173_v8 }
 0x458   :  { %v21226_v43 = vpop.f32.mrb[40].mxu0  ;;  %17209 = vmatprep.subr.bf16.mxu1 %v24173_v8 }
 0x459   :  { %v16843_v14 = vpop.f32.mrb[41].mxu0  ;;  %v21229_v31 = vpop.f32.mrb[40].mxu1 }
 0x45a   :  { %17200 = vmatpush3.bf16.msra.mxu0 %v21078_v53  ;;  %v6672_v36 = vpop.f32.mrb[42].mxu0  ;;  %v16853_v23 = vpop.f32.mrb[41].mxu1 }
 0x45b   :  { %17210 = vmatpush3.bf16.msra.mxu1 %v21078_v53  ;;  %v16844_v32 = vpop.f32.mrb[43].mxu0  ;;  %17215 = vmatprep.subr.bf16.mxu0 %v24173_v8  ;;  %v6715_v14 = vpop.f32.mrb[42].mxu1  ;;  %v226_v36 = vld [vmem:[%s24085_s0 + $0xc7] sm:$0x1] }
 0x45c   :  { %17225 = vmatprep.subr.bf16.mxu1 %v24173_v8  ;;  %v16854_v5 = vpop.f32.mrb[43].mxu1  ;;  %v227_v14 = vld [vmem:[%s24085_s0 + $0xc8] sm:$0x1] }
 0x45d   :  { %17202 = vmatmul.mubr.msk.bf16.vlgmr.msra.gmra.mrb[112].mxu0 %vm267_vm1, %v224_v62 }
 0x45e   :  { %17212 = vmatmul.mubr.msk.bf16.vlgmr.msra.gmra.mrb[112].mxu1 %vm267_vm1, %v225_v0  ;;  %17216 = vmatpush3.bf16.msra.mxu0 %v21099_v18 }
 0x45f   :  { %17226 = vmatpush3.bf16.msra.mxu1 %v21099_v18  ;;  %17217 = vmatprep.subr.bf16.mxu0 %v24173_v8 }
 0x460   :  { %17227 = vmatprep.subr.bf16.mxu1 %v24173_v8  ;;  %17221 = vmatprep.mubr.msk.bf16.mxu0 %vm17980_vm0, %v24173_v8 }
 0x461   :  { %17231 = vmatprep.mubr.msk.bf16.mxu1 %vm17980_vm0, %v24173_v8 }
 0x462   :  { %17218 = vmatpush3.bf16.msra.mxu0 %v21060_v50 }
 0x463   :  { %17228 = vmatpush3.bf16.msra.mxu1 %v21060_v50  ;;  %17219 = vmatprep.subr.bf16.mxu0 %v24173_v8 }
 0x464   :  { %v21254_v5 = vpop.f32.mrb[44].mxu0  ;;  %17229 = vmatprep.subr.bf16.mxu1 %v24173_v8 }
 0x465   :  { %v16863_v23 = vpop.f32.mrb[45].mxu0  ;;  %v21257_v0 = vpop.f32.mrb[44].mxu1 }
 0x466   :  { %17220 = vmatpush3.bf16.msra.mxu0 %v21078_v53  ;;  %v6758_v62 = vpop.f32.mrb[46].mxu0  ;;  %v16873_v32 = vpop.f32.mrb[45].mxu1 }
 0x467   :  { %17230 = vmatpush3.bf16.msra.mxu1 %v21078_v53  ;;  %17235 = vmatprep.subr.bf16.mxu0 %v24173_v8  ;;  %v16864_v12 = vpop.f32.mrb[47].mxu0  ;;  %v6801_v23 = vpop.f32.mrb[46].mxu1  ;;  %v228_v32 = vld [vmem:[%s24085_s0 + $0xc9] sm:$0x1] }
 0x468   :  { %17245 = vmatprep.subr.bf16.mxu1 %v24173_v8  ;;  %v16874_v2 = vpop.f32.mrb[47].mxu1  ;;  %v21287_v62 = vpop.permute.xlu0 %9450 }
 0x469   :  { %17222 = vmatmul.mubr.msk.bf16.vlgmr.msra.gmra.mrb[116].mxu0 %vm267_vm1, %v226_v36  ;;  %24253 = vst [vmem:[#allocation117_spill] sm:$0xff] %v21287_v62 }
 0x46a   :  { %17232 = vmatmul.mubr.msk.bf16.vlgmr.msra.gmra.mrb[116].mxu1 %vm267_vm1, %v227_v14  ;;  %17236 = vmatpush3.bf16.msra.mxu0 %v21099_v18 }
 0x46b   :  { %17246 = vmatpush3.bf16.msra.mxu1 %v21099_v18  ;;  %17237 = vmatprep.subr.bf16.mxu0 %v24173_v8 }
 0x46c   :  { %17247 = vmatprep.subr.bf16.mxu1 %v24173_v8  ;;  %17241 = vmatprep.mubr.msk.bf16.mxu0 %vm17980_vm0, %v24173_v8 }
 0x46d   :  { %17251 = vmatprep.mubr.msk.bf16.mxu1 %vm17980_vm0, %v24173_v8 }
 0x46e   :  { %17238 = vmatpush3.bf16.msra.mxu0 %v21060_v50 }
 0x46f   :  { %17248 = vmatpush3.bf16.msra.mxu1 %v21060_v50  ;;  %17239 = vmatprep.subr.bf16.mxu0 %v24173_v8 }
 0x470   :  { %v21282_v2 = vpop.f32.mrb[48].mxu0  ;;  %17249 = vmatprep.subr.bf16.mxu1 %v24173_v8 }
 0x471   :  { %v16883_v12 = vpop.f32.mrb[49].mxu0  ;;  %v21285_v36 = vpop.f32.mrb[48].mxu1 }
 0x472   :  { %17240 = vmatpush3.bf16.msra.mxu0 %v21078_v53  ;;  %v6844_v14 = vpop.f32.mrb[50].mxu0  ;;  %v16893_v23 = vpop.f32.mrb[49].mxu1  ;;  %v229_v12 = vld [vmem:[%s24085_s0 + $0xca] sm:$0x1] }
 0x473   :  { %17250 = vmatpush3.bf16.msra.mxu1 %v21078_v53  ;;  %17255 = vmatprep.subr.bf16.mxu0 %v24173_v8  ;;  %v16884_v33 = vpop.f32.mrb[51].mxu0  ;;  %v6887_v60 = vpop.f32.mrb[50].mxu1 }
 0x474   :  { %17265 = vmatprep.subr.bf16.mxu1 %v24173_v8  ;;  %v16894_v62 = vpop.f32.mrb[51].mxu1  ;;  %v21304_v14 = vpop.permute.xlu0 %9558 }
 0x475   :  { %17242 = vmatmul.mubr.msk.bf16.vlgmr.msra.gmra.mrb[120].mxu0 %vm267_vm1, %v228_v32  ;;  %24254 = vst [vmem:[#allocation118_spill] sm:$0xff] %v21304_v14 }
 0x476   :  { %17252 = vmatmul.mubr.msk.bf16.vlgmr.msra.gmra.mrb[120].mxu1 %vm267_vm1, %v229_v12  ;;  %17256 = vmatpush3.bf16.msra.mxu0 %v21099_v18  ;;  %v21318_v12 = vpop.permute.xlu1 %9452 }
 0x477   :  { %17266 = vmatpush3.bf16.msra.mxu1 %v21099_v18  ;;  %17257 = vmatprep.subr.bf16.mxu0 %v24173_v8  ;;  %24256 = vst [vmem:[#allocation120_spill] sm:$0xff] %v21318_v12 }
 0x478   :  { %17267 = vmatprep.subr.bf16.mxu1 %v24173_v8  ;;  %17261 = vmatprep.mubr.msk.bf16.mxu0 %vm17980_vm0, %v24173_v8  ;;  %v21316_v23 = vpop.permute.xlu0 %9636 }
 0x479   :  { %17271 = vmatprep.mubr.msk.bf16.mxu1 %vm17980_vm0, %v24173_v8  ;;  %24255 = vst [vmem:[#allocation119_spill] sm:$0xff] %v21316_v23  ;;  %v1510_v23 = vadd.f32 %v21009_v6, %v18949_v21 }
 0x47a   :  { %17258 = vmatpush3.bf16.msra.mxu0 %v21060_v50 }
 0x47b   :  { %17268 = vmatpush3.bf16.msra.mxu1 %v21060_v50  ;;  %17259 = vmatprep.subr.bf16.mxu0 %v24173_v8 }
 0x47c   :  { %v6927_v33 = vpop.f32.mrb[52].mxu0  ;;  %17269 = vmatprep.subr.bf16.mxu1 %v24173_v8  ;;  %v21345_v21 = vpop.permute.xlu0 %9714 }
 0x47d   :  { %v6928_v60 = vadd.f32 %v21009_v6, %v6927_v33  ;;  %v16903_v62 = vpop.f32.mrb[53].mxu0  ;;  %v6970_v32 = vpop.f32.mrb[52].mxu1  ;;  %v231_v33 = vld [vmem:[%s24085_s0 + $0xcc] sm:$0x1]  ;;  %24258 = vst [vmem:[#allocation122_spill] sm:$0xff] %v21345_v21 }
 0x47e   :  { %v6971_v14 = vadd.f32 %v21009_v6, %v6970_v32  ;;  %17260 = vmatpush3.bf16.msra.mxu0 %v21078_v53  ;;  %v6930_v7 = vpop.f32.mrb[54].mxu0  ;;  %v16913_v38 = vpop.f32.mrb[53].mxu1 }
 0x47f   :  { %17700 = vtanh.f32 %v6928_v60  ;;  %17270 = vmatpush3.bf16.msra.mxu1 %v21078_v53  ;;  %17275 = vmatprep.subr.bf16.mxu0 %v24173_v8  ;;  %v16904_v62 = vpop.f32.mrb[55].mxu0  ;;  %v6973_v32 = vpop.f32.mrb[54].mxu1 }
 0x480   :  { %17702 = vtanh.f32 %v6971_v14  ;;  %17285 = vmatprep.subr.bf16.mxu1 %v24173_v8  ;;  %v16914_v12 = vpop.f32.mrb[55].mxu1  ;;  %v21338_v38 = vpop.permute.xlu1 %9560 }
 0x481   :  { %17262 = vmatmul.mubr.msk.bf16.vlgmr.msra.gmra.mrb[124].mxu0 %vm267_vm1, %v230_v40  ;;  %24257 = vst [vmem:[#allocation121_spill] sm:$0xff] %v21338_v38  ;;  %17704 = vtanh.f32 %v1510_v23  ;;  %v21354_v62 = vpop.permute.xlu0 %9160  ;;  %v232_v38 = vld [vmem:[%s24085_s0 + $0xcd] sm:$0x1] }
 0x482   :  { %17272 = vmatmul.mubr.msk.bf16.vlgmr.msra.gmra.mrb[124].mxu1 %vm267_vm1, %v231_v33  ;;  %17276 = vmatpush3.bf16.msra.mxu0 %v21099_v18  ;;  %24260 = vst [vmem:[#allocation124_spill] sm:$0xff] %v21354_v62  ;;  %v233_v62 = vld [vmem:[%s24085_s0 + $0xce] sm:$0x1] }
 0x483   :  { %17286 = vmatpush3.bf16.msra.mxu1 %v21099_v18  ;;  %17277 = vmatprep.subr.bf16.mxu0 %v24173_v8 }
 0x484   :  { %17287 = vmatprep.subr.bf16.mxu1 %v24173_v8  ;;  %17281 = vmatprep.mubr.msk.bf16.mxu0 %vm17980_vm0, %v24173_v8  ;;  %v21352_v33 = vpop.permute.xlu1 %9638 }
 0x485   :  { %17291 = vmatprep.mubr.msk.bf16.mxu1 %vm17980_vm0, %v24173_v8  ;;  %24259 = vst [vmem:[#allocation123_spill] sm:$0xff] %v21352_v33 }
 0x486   :  { %17278 = vmatpush3.bf16.msra.mxu0 %v21060_v50 }
 0x487   :  { %17288 = vmatpush3.bf16.msra.mxu1 %v21060_v50  ;;  %17279 = vmatprep.subr.bf16.mxu0 %v24173_v8 }
 0x488   :  { %v7013_v40 = vpop.f32.mrb[56].mxu0  ;;  %17289 = vmatprep.subr.bf16.mxu1 %v24173_v8 }
 0x489   :  { %v17701_v7 = vpop.eup %17700  ;;  %v7014_v14 = vadd.f32 %v21009_v6, %v7013_v40  ;;  %v16923_v60 = vpop.f32.mrb[57].mxu0 }
 0x48a   :  { %v7056_v12 = vpop.f32.mrb[56].mxu1  ;;  %v17703_v23 = vpop.eup %17702  ;;  %v9046_v32 = vpack.c.bf16 %v17701_v7, %v17701_v7  ;;  %17280 = vmatpush3.bf16.msra.mxu0 %v21078_v53 }
 0x48b   :  { %v7057_v21 = vadd.f32 %v21009_v6, %v7056_v12  ;;  %17706 = vtanh.f32 %v7014_v14  ;;  %17290 = vmatpush3.bf16.msra.mxu1 %v21078_v53  ;;  %v7016_v40 = vpop.f32.mrb[58].mxu0  ;;  %v16933_v60 = vpop.f32.mrb[57].mxu1  ;;  %17295 = vmatprep.subr.bf16.mxu0 %v24173_v8  ;;  %v9047_v7 = vpack.c.bf16 %v17703_v23, %v17703_v23 }
 0x48c   :  { %v16924_v12 = vpop.f32.mrb[59].mxu0  ;;  %v7059_v33 = vpop.f32.mrb[58].mxu1  ;;  %9478 = vrot.lane.b32.xlu0 %v9046_v32, %s17984_s13  ;;  %17305 = vmatprep.subr.bf16.mxu1 %v24173_v8  ;;  %v6627_v40 = vadd.f32 %v21009_v6, %v21191_v52  ;;  %v234_v52 = vld [vmem:[%s24085_s0 + $0xcf] sm:$0x1] }
 0x48d   :  { %17708 = vtanh.f32 %v7057_v21  ;;  %v16934_v9 = vpop.f32.mrb[59].mxu1  ;;  %17282 = vmatmul.mubr.msk.bf16.vlgmr.msra.gmra.mrb[128].mxu0 %vm267_vm1, %v232_v38  ;;  %v17705_v14 = vpop.eup %17704  ;;  %v9889_v33 = vsel %vm9865_vm2, %v19026_v17, %v20106_v3 }
 0x48e   :  { %17292 = vmatmul.mubr.msk.bf16.vlgmr.msra.gmra.mrb[128].mxu1 %vm267_vm1, %v233_v62  ;;  %17296 = vmatpush3.bf16.msra.mxu0 %v21099_v18  ;;  %v21373_v23 = vpop.permute.xlu0 %9268  ;;  %v6584_v9 = vadd.f32 %v21009_v6, %v21188_v61  ;;  %v8920_v38 = vpack.c.bf16 %v17705_v14, %v17705_v14  ;;  %v21383_v21 = vpop.permute.xlu1 %9716  ;;  %v9990_v17 = vsel %vm9974_vm3, %v9889_v33, %v20014_v19 }
 0x48f   :  { %17306 = vmatpush3.bf16.msra.mxu1 %v21099_v18  ;;  %17297 = vmatprep.subr.bf16.mxu0 %v24173_v8  ;;  %v21391_v18 = vld [vmem:[%s24088_s3 + $0x40] sm:$0xff]   ;;  %v10062_v19 = vsel %vm267_vm1, %v9990_v17, %v20035_v58 }
 0x490   :  { %9586 = vrot.lane.b32.xlu0 %v9047_v7, %s17985_s14  ;;  %17307 = vmatprep.subr.bf16.mxu1 %v24173_v8  ;;  %v9886_v61 = vsel %vm9865_vm2, %v8920_v38, %v19971_v24  ;;  %17710 = vtanh.f32 %v6584_v9  ;;  %v10135_v58 = vsel %vm10119_vm4, %v10062_v19, %v20248_v11  ;;  %v21446_v11 = vld [vmem:[%s24088_s3 + $0x48] sm:$0xff]  }
 0x491   :  { %17301 = vmatprep.mubr.msk.bf16.mxu0 %vm17980_vm0, %v24173_v8  ;;  %17311 = vmatprep.mubr.msk.bf16.mxu1 %vm17980_vm0, %v24173_v8  ;;  %v9988_v32 = vsel %vm9974_vm3, %v9886_v61, %v20198_v30 }
 0x492   :  { %17298 = vmatpush3.bf16.msra.mxu0 %v21060_v50  ;;  %v10060_v14 = vsel %vm267_vm1, %v9988_v32, %v20212_v29  ;;  %v21408_v3 = vpop.permute.xlu1 %9162  ;;  %v21410_v38 = vpop.permute.xlu0 %9346  ;;  %v21420_v29 = vld [vmem:[%s24088_s3] sm:$0xff]  }
 0x493   :  { %17308 = vmatpush3.bf16.msra.mxu1 %v21060_v50  ;;  %17299 = vmatprep.subr.bf16.mxu0 %v24173_v8  ;;  %v10133_v61 = vsel %vm10119_vm4, %v10060_v14, %v20267_v47 }
 0x494   :  { %v7099_v62 = vpop.f32.mrb[60].mxu0  ;;  %17309 = vmatprep.subr.bf16.mxu1 %v24173_v8  ;;  %v10206_v32 = vsel %vm10192_vm5, %v10133_v61, %v20286_v46 }
 0x495   :  { %v17707_v50 = vpop.eup %17706  ;;  %v7100_v60 = vadd.f32 %v21009_v6, %v7099_v62  ;;  %v16943_v7 = vpop.f32.mrb[61].mxu0 }
 0x496   :  { %v7142_v12 = vpop.f32.mrb[60].mxu1  ;;  %v9048_v30 = vpack.c.bf16 %v17707_v50, %v17707_v50  ;;  %17300 = vmatpush3.bf16.msra.mxu0 %v21078_v53  ;;  %v7102_v33 = vpop.f32.mrb[62].mxu0  ;;  %v235_v50 = vld [vmem:[%s24085_s0 + $0xd0] sm:$0x1] }
 0x497   :  { %v17709_v24 = vpop.eup %17708  ;;  %v7143_v9 = vadd.f32 %v21009_v6, %v7142_v12  ;;  %17712 = vtanh.f32 %v7100_v60  ;;  %17310 = vmatpush3.bf16.msra.mxu1 %v21078_v53  ;;  %v16953_v62 = vpop.f32.mrb[61].mxu1  ;;  %14356 = vmatprep.subr.bf16.mxu0 %v21391_v18  ;;  %v10279_v53 = vsel %vm10265_vm6, %v10206_v32, %v20304_v10  ;;  %v10208_v12 = vsel %vm10192_vm5, %v10135_v58, %v20277_v49  ;;  %v21461_v10 = vld [vmem:[%s24088_s3 + $0x8] sm:$0xff]  }
 0x498   :  { %v9049_v7 = vpack.c.bf16 %v17709_v24, %v17709_v24  ;;  %v16944_v47 = vpop.f32.mrb[63].mxu0  ;;  %v7145_v60 = vpop.f32.mrb[62].mxu1  ;;  %9664 = vrot.lane.b32.xlu0 %v9048_v30, %s17986_s19  ;;  %9480 = vrot.lane.b32.xlu1 %v9048_v30, %s17984_s13  ;;  %v10281_v24 = vsel %vm10265_vm6, %v10208_v12, %v20288_v51  ;;  %v21456_v49 = vsel %vm10338_vm7, %v10279_v53, %v20324_v44 }
 0x499   :  { %17714 = vtanh.f32 %v7143_v9  ;;  %v16954_v46 = vpop.f32.mrb[63].mxu1  ;;  %17302 = vmatmul.mubr.msk.bf16.vlgmr.msra.gmra.mrb[132].mxu0 %vm267_vm1, %v234_v52  ;;  %14378 = vmatprep.subr.bf16.mxu1 %v21391_v18  ;;  %v21450_v14 = vpop.permute.xlu0 %9454  ;;  %v21467_v51 = vsel %vm10338_vm7, %v10281_v24, %v20317_v20  ;;  %v306_v44 = vadd.f32 %v21009_v6, %v18515_v41  ;;  %v6670_v30 = vadd.f32 %v21009_v6, %v21226_v43  ;;  %v21489_v41 = vld [vmem:[%s24088_s3 + $0x10] sm:$0xff]   ;;  %v21496_v43 = vld [vmem:[%s24088_s3 + $0x58] sm:$0xff]  }
 0x49a   :  { %17716 = vtanh.f32 %v6627_v40  ;;  %17312 = vmatmul.mubr.msk.bf16.vlgmr.msra.gmra.mrb[132].mxu1 %vm267_vm1, %v235_v50  ;;  %14357 = vmatpush3.bf16.msra.mxu0 %v21420_v29  ;;  %v21472_v40 = vld [vmem:[%s24088_s3 + $0x50] sm:$0xff]   ;;  %v21476_v17 = vpop.permute.xlu1 %9270  ;;  %v17711_v20 = vpop.eup %17710  ;;  %v6713_v52 = vadd.f32 %v21009_v6, %v21229_v31  ;;  %v21521_v46 = vld [vmem:[%s24088_s3 + $0x60] sm:$0xff]  }
 0x49b   :  { %10710 = vmatprep.mubr.bf16.mxu0 %v21456_v49  ;;  %14379 = vmatpush3.bf16.msra.mxu1 %v21420_v29  ;;  %17718 = vtanh.f32 %v306_v44 }
 0x49c   :  { %10750 = vmatprep.mubr.bf16.mxu1 %v21467_v51  ;;  %9742 = vrot.lane.b32.xlu0 %v9049_v7, %s17987_s20  ;;  %17720 = vtanh.f32 %v6670_v30 }
 0x49d   :  { %9588 = vrot.lane.b32.xlu1 %v9049_v7, %s17985_s14  ;;  %14358 = vmatprep.subr.bf16.mxu0 %v21446_v11  ;;  %v21498_v9 = vpop.permute.xlu0 %9562  ;;  %v21508_v7 = vpack.c.bf16 %v17711_v20, %v17711_v20  ;;  %17722 = vtanh.f32 %v6713_v52  ;;  %v21536_v52 = vld [vmem:[%s24088_s3 + $0x20] sm:$0xff]  }
 0x49e   :  { %14380 = vmatprep.subr.bf16.mxu1 %v21446_v11  ;;  %14359 = vmatpush3.bf16.msra.mxu0 %v21461_v10  ;;  %24261 = vst [vmem:[#allocation125_spill] sm:$0xff] %v21498_v9  ;;  %v21506_v58 = vpop.permute.xlu1 %9348 }
 0x49f   :  { %14381 = vmatpush3.bf16.msra.mxu1 %v21461_v10  ;;  %14360 = vmatprep.subr.bf16.mxu0 %v21472_v40  ;;  %24262 = vst [vmem:[#allocation126_spill] sm:$0xff] %v21508_v7 }
 0x4a0   :  { %9188 = vrot.lane.b32.xlu0 %v21204_v55, %s17981_s29  ;;  %v7185_v19 = vpop.f32.mrb[64].mxu0  ;;  %14382 = vmatprep.subr.bf16.mxu1 %v21472_v40  ;;  %v21514_v55 = vld [vmem:[%s24088_s3 + $0x18] sm:$0xff]  }
 0x4a1   :  { %v17713_v61 = vpop.eup %17712  ;;  %v7186_v33 = vadd.f32 %v21009_v6, %v7185_v19  ;;  %v16963_v62 = vpop.f32.mrb[65].mxu0 }
 0x4a2   :  { %v7228_v50 = vpop.f32.mrb[64].mxu1  ;;  %v9050_v47 = vpack.c.bf16 %v17713_v61, %v17713_v61  ;;  %14361 = vmatpush3.bf16.msra.mxu0 %v21489_v41  ;;  %v7188_v31 = vpop.f32.mrb[66].mxu0 }
 0x4a3   :  { %v17715_v32 = vpop.eup %17714  ;;  %14383 = vmatpush3.bf16.msra.mxu1 %v21489_v41  ;;  %v16964_v53 = vpop.f32.mrb[67].mxu0  ;;  %14362 = vmatprep.subr.bf16.mxu0 %v21496_v43  ;;  %17724 = vtanh.f32 %v7186_v33  ;;  %v7229_v20 = vadd.f32 %v21009_v6, %v7228_v50  ;;  %v21543_v33 = vld [vmem:[%s24088_s3 + $0x68] sm:$0xff]  }
 0x4a4   :  { %v17717_v60 = vpop.eup %17716  ;;  %v16973_v12 = vpop.f32.mrb[65].mxu1  ;;  %v9051_v44 = vpack.c.bf16 %v17715_v32, %v17715_v32  ;;  %9296 = vrot.lane.b32.xlu0 %v21508_v7, %s17982_s21  ;;  %9666 = vrot.lane.b32.xlu1 %v9050_v47, %s17986_s19  ;;  %v21554_v31 = vld [vmem:[%s24088_s3 + $0x28] sm:$0xff]   ;;  %v21561_v53 = vld [vmem:[%s24088_s3 + $0x70] sm:$0xff]  }
 0x4a5   :  { %v21523_v24 = vpop.permute.xlu0 %9640  ;;  %v7231_v30 = vpop.f32.mrb[66].mxu1  ;;  %14384 = vmatprep.subr.bf16.mxu1 %v21496_v43  ;;  %v9039_v62 = vpack.c.bf16 %v17717_v60, %v17717_v60  ;;  %17726 = vtanh.f32 %v7229_v20 }
 0x4a6   :  { %24263 = vst [vmem:[#allocation127_spill] sm:$0xff] %v21523_v24  ;;  %v16974_v19 = vpop.f32.mrb[67].mxu1  ;;  %v21530_v61 = vpop.permute.xlu1 %9456  ;;  %14363 = vmatpush3.bf16.msra.mxu0 %v21514_v55 }
 0x4a7   :  { %24264 = vst [vmem:[#allocation128_spill] sm:$0xff] %v21530_v61  ;;  %14385 = vmatpush3.bf16.msra.mxu1 %v21514_v55  ;;  %14364 = vmatprep.subr.bf16.mxu0 %v21521_v46  ;;  %v17719_v50 = vpop.eup %17718  ;;  %v6756_v19 = vadd.f32 %v21009_v6, %v21254_v5  ;;  %v9871_v5 = vsel %vm9865_vm2, %v18587_v16, %v19746_v4 }
 0x4a8   :  { %9374 = vrot.lane.b32.xlu0 %v9039_v62, %s17983_s22  ;;  %9744 = vrot.lane.b32.xlu1 %v9051_v44, %s17987_s20  ;;  %v17721_v60 = vpop.eup %17720  ;;  %v8892_v20 = vpack.c.bf16 %v17719_v50, %v17719_v50 }
 0x4a9   :  { %14386 = vmatprep.subr.bf16.mxu1 %v21521_v46  ;;  %v21548_v32 = vpop.permute.xlu0 %9718  ;;  %v21570_v61 = vpack.c.bf16 %v17721_v60, %v17721_v60  ;;  %v21589_v60 = vld [vmem:[%s24088_s3 + $0x78] sm:$0xff]   ;;  %17728 = vtanh.f32 %v6756_v19 }
 0x4aa   :  { %24265 = vst [vmem:[#allocation129_spill] sm:$0xff] %v21548_v32  ;;  %14365 = vmatpush3.bf16.msra.mxu0 %v21536_v52  ;;  %v21563_v12 = vpop.permute.xlu1 %9564  ;;  %v17723_v32 = vpop.eup %17722 }
 0x4ab   :  { %14387 = vmatpush3.bf16.msra.mxu1 %v21536_v52  ;;  %14366 = vmatprep.subr.bf16.mxu0 %v21543_v33  ;;  %24266 = vst [vmem:[#allocation130_spill] sm:$0xff] %v21570_v61 }
 0x4ac   :  { %9482 = vrot.lane.b32.xlu0 %v9050_v47, %s17984_s13  ;;  %9190 = vrot.lane.b32.xlu1 %v9039_v62, %s17981_s29  ;;  %v7271_v30 = vpop.f32.mrb[68].mxu0  ;;  %v21577_v62 = vld [vmem:[%s24088_s3 + $0x30] sm:$0xff]  }
 0x4ad   :  { %v16983_v8 = vpop.f32.mrb[69].mxu0  ;;  %14388 = vmatprep.subr.bf16.mxu1 %v21543_v33  ;;  %v7314_v7 = vpop.f32.mrb[68].mxu1  ;;  %v7272_v24 = vadd.f32 %v21009_v6, %v7271_v30 }
 0x4ae   :  { %v7274_v9 = vpop.f32.mrb[70].mxu0  ;;  %14367 = vmatpush3.bf16.msra.mxu0 %v21554_v31  ;;  %v16993_v47 = vpop.f32.mrb[69].mxu1  ;;  %v9868_v8 = vsel %vm9865_vm2, %v8892_v20, %v19724_v57  ;;  %v9978_v57 = vsel %vm9974_vm3, %v9871_v5, %v19762_v27 }
 0x4af   :  { %v17725_v50 = vpop.eup %17724  ;;  %14389 = vmatpush3.bf16.msra.mxu1 %v21554_v31  ;;  %v16984_v6 = vpop.f32.mrb[71].mxu0  ;;  %14368 = vmatprep.subr.bf16.mxu0 %v21561_v53  ;;  %v9976_v30 = vsel %vm9974_vm3, %v9868_v8, %v19726_v39  ;;  %v10050_v47 = vsel %vm267_vm1, %v9978_v57, %v19789_v48  ;;  %v21609_v39 = vld [vmem:[%s24087_s2] ss:$0 sm:$0xff]  ;;  %17730 = vtanh.f32 %v7272_v24  ;;  %v21619_v48 = vld [vmem:[%s24088_s3 + $0x38] sm:$0xff]  }
 0x4b0   :  { %v7317_v9 = vpop.f32.mrb[70].mxu1  ;;  %v21595_v20 = vpop.permute.xlu0 %9164  ;;  %9590 = vrot.lane.b32.xlu0 %v9051_v44, %s17985_s14  ;;  %9298 = vrot.lane.b32.xlu1 %v21570_v61, %s17982_s21  ;;  %v10048_v4 = vsel %vm267_vm1, %v9976_v30, %v19755_v26  ;;  %v6799_v27 = vadd.f32 %v21609_v39, %v21257_v0  ;;  %v9041_v44 = vpack.c.bf16 %v17723_v32, %v17723_v32  ;;  %v24269_v30 = vld [vmem:[#allocation53_spill] sm:$0xff] }
 0x4b1   :  { %v16994_v16 = vpop.f32.mrb[71].mxu1  ;;  %v21604_v6 = vpop.permute.xlu1 %9642  ;;  %14390 = vmatprep.subr.bf16.mxu1 %v21561_v53  ;;  %v9052_v8 = vpack.c.bf16 %v17725_v50, %v17725_v50  ;;  %v7315_v26 = vadd.f32 %v21609_v39, %v7314_v7  ;;  %v10121_v5 = vsel %vm10119_vm4, %v10048_v4, %v19846_v42  ;;  %v10123_v0 = vsel %vm10119_vm4, %v10050_v47, %v19858_v45  ;;  %v24271_v4 = vld [vmem:[#allocation26_spill] sm:$0xff] }
 0x4b2   :  { %14369 = vmatpush3.bf16.msra.mxu0 %v21577_v62  ;;  %v17727_v19 = vpop.eup %17726  ;;  %v10194_v7 = vsel %vm10192_vm5, %v10121_v5, %v19865_v63  ;;  %v10196_v24 = vsel %vm10192_vm5, %v10123_v0, %v19885_v35  ;;  %v9892_v32 = vsel %vm9865_vm2, %v19049_v28, %v20067_v56  ;;  %v9895_v45 = vsel %vm9865_vm2, %v19095_v54, %v20171_v15  ;;  %v24267_v15 = vld [vmem:[#allocation50_spill] sm:$0xff]  ;;  %v24270_v16 = vld [vmem:[#allocation49_spill] sm:$0xff] }
 0x4b3   :  { %14391 = vmatpush3.bf16.msra.mxu1 %v21577_v62  ;;  %14370 = vmatprep.subr.bf16.mxu0 %v21589_v60  ;;  %v10269_v42 = vsel %vm10265_vm6, %v10196_v24, %v19900_v34  ;;  %v9992_v63 = vsel %vm9974_vm3, %v9892_v32, %v20232_v1  ;;  %17732 = vtanh.f32 %v6799_v27  ;;  %v9994_v35 = vsel %vm9974_vm3, %v9895_v45, %v20181_v25  ;;  %v24268_v25 = vld [vmem:[#allocation24_spill] sm:$0xff]  ;;  %v24272_v27 = vld [vmem:[#allocation55_spill] sm:$0xff]  ;;  %v24274_v24 = vld [vmem:[#allocation54_spill] sm:$0xff] }
 0x4b4   :  { %9376 = vrot.lane.b32.xlu1 %v9041_v44, %s17983_s22  ;;  %9668 = vrot.lane.b32.xlu0 %v9052_v8, %s17986_s19  ;;  %v10064_v28 = vsel %vm267_vm1, %v9992_v63, %v20246_v22  ;;  %v21648_v56 = vpop.permute.xlu0 %9272  ;;  %v9053_v50 = vpack.c.bf16 %v17727_v19, %v17727_v19  ;;  %17734 = vtanh.f32 %v7315_v26  ;;  %v10267_v54 = vsel %vm10265_vm6, %v10194_v7, %v19883_v59  ;;  %v24273_v19 = vld [vmem:[#allocation52_spill] sm:$0xff] }
 0x4b5   :  { %14392 = vmatprep.subr.bf16.mxu1 %v21589_v60  ;;  %v10066_v34 = vsel %vm267_vm1, %v9994_v35, %v20200_v13  ;;  %v10137_v1 = vsel %vm10119_vm4, %v10064_v28, %v24267_v15  ;;  %v21657_v9 = vpop.permute.xlu1 %9720  ;;  %v10340_v22 = vsel %vm10338_vm7, %v10267_v54, %v24268_v25  ;;  %v10343_v47 = vsel %vm10338_vm7, %v10269_v42, %v24271_v4  ;;  %v24275_v42 = vld [vmem:[#allocation57_spill] sm:$0xff]  ;;  %v17729_v28 = vpop.eup %17728  ;;  %v24276_v35 = vld [vmem:[#allocation56_spill] sm:$0xff] }
 0x4b6   :  { %14371 = vmatpush3.bf16.msra.mxu0 %v21619_v48  ;;  %v10210_v57 = vsel %vm10192_vm5, %v10137_v1, %v24269_v30  ;;  %v10139_v59 = vsel %vm10119_vm4, %v10066_v34, %v24270_v16  ;;  %v21700_v16 = vpack.c.bf16 %v17729_v28, %v17729_v28 }
 0x4b7   :  { %14393 = vmatpush3.bf16.msra.mxu1 %v21619_v48  ;;  %14400 = vmatprep.subr.bf16.mxu0 %v21391_v18  ;;  %v10283_v26 = vsel %vm10265_vm6, %v10210_v57, %v24272_v27  ;;  %v10212_v5 = vsel %vm10192_vm5, %v10139_v59, %v24273_v19  ;;  %v6885_v59 = vadd.f32 %v21609_v39, %v21285_v36 }
 0x4b8   :  { %9746 = vrot.lane.b32.xlu0 %v9053_v50, %s17987_s20  ;;  %9484 = vrot.lane.b32.xlu1 %v9052_v8, %s17984_s13  ;;  %v7357_v13 = vpop.f32.mrb[72].mxu0  ;;  %v10285_v32 = vsel %vm10265_vm6, %v10212_v5, %v24274_v24  ;;  %v6842_v8 = vadd.f32 %v21609_v39, %v21282_v2  ;;  %v21683_v45 = vsel %vm10338_vm7, %v10283_v26, %v24275_v42  ;;  %v21691_v1 = vpop.permute.xlu0 %9350 }
 0x4b9   :  { %v17003_v0 = vpop.f32.mrb[73].mxu0  ;;  %10711 = vmatmul.mubr.bf16.vlgmr.msra.gmra.mrb[136].mxu0 %v10340_v22  ;;  %14422 = vmatprep.subr.bf16.mxu1 %v21391_v18  ;;  %v7400_v7 = vpop.f32.mrb[72].mxu1  ;;  %v21689_v54 = vsel %vm10338_vm7, %v10285_v32, %v24276_v35  ;;  %v7358_v30 = vadd.f32 %v21609_v39, %v7357_v13  ;;  %24277 = vst [vmem:[#allocation50_spill] sm:$0xff] %v21700_v16 }
 0x4ba   :  { %10751 = vmatmul.mubr.bf16.vlgmr.msra.gmra.mrb[136].mxu1 %v10343_v47  ;;  %14401 = vmatpush3.bf16.msra.mxu0 %v21420_v29  ;;  %v7360_v63 = vpop.f32.mrb[74].mxu0  ;;  %v17013_v15 = vpop.f32.mrb[73].mxu1  ;;  %17736 = vtanh.f32 %v6842_v8  ;;  %v7401_v13 = vadd.f32 %v21609_v39, %v7400_v7 }
 0x4bb   :  { %10790 = vmatprep.mubr.bf16.mxu0 %v21683_v45  ;;  %14423 = vmatpush3.bf16.msra.mxu1 %v21420_v29  ;;  %v17004_v34 = vpop.f32.mrb[75].mxu0  ;;  %v17731_v2 = vpop.eup %17730  ;;  %17738 = vtanh.f32 %v7358_v30 }
 0x4bc   :  { %10830 = vmatprep.mubr.bf16.mxu1 %v21689_v54  ;;  %v7403_v25 = vpop.f32.mrb[74].mxu1  ;;  %9192 = vrot.lane.b32.xlu0 %v9041_v44, %s17981_s29  ;;  %v21695_v22 = vpop.permute.xlu1 %9166  ;;  %v9054_v4 = vpack.c.bf16 %v17731_v2, %v17731_v2  ;;  %17740 = vtanh.f32 %v6885_v59 }
 0x4bd   :  { %9592 = vrot.lane.b32.xlu1 %v9053_v50, %s17985_s14  ;;  %v17014_v57 = vpop.f32.mrb[75].mxu1  ;;  %14402 = vmatprep.subr.bf16.mxu0 %v21446_v11  ;;  %v17733_v44 = vpop.eup %17732  ;;  %17742 = vtanh.f32 %v7401_v13 }
 0x4be   :  { %14424 = vmatprep.subr.bf16.mxu1 %v21446_v11  ;;  %14403 = vmatpush3.bf16.msra.mxu0 %v21461_v10  ;;  %v17735_v50 = vpop.eup %17734  ;;  %v21713_v36 = vpop.permute.xlu0 %9458  ;;  %v9043_v47 = vpack.c.bf16 %v17733_v44, %v17733_v44 }
 0x4bf   :  { %14425 = vmatpush3.bf16.msra.mxu1 %v21461_v10  ;;  %14404 = vmatprep.subr.bf16.mxu0 %v21472_v40  ;;  %v9055_v26 = vpack.c.bf16 %v17735_v50, %v17735_v50 }
 0x4c0   :  { %9300 = vrot.lane.b32.xlu0 %v21700_v16, %s17982_s21  ;;  %14426 = vmatprep.subr.bf16.mxu1 %v21472_v40  ;;  %v21716_v27 = vpop.permute.xlu1 %9274 }
 0x4c1   :  { %9670 = vrot.lane.b32.xlu1 %v9054_v4, %s17986_s19 }
 0x4c2   :  { %14405 = vmatpush3.bf16.msra.mxu0 %v21489_v41  ;;  %v21726_v42 = vpop.permute.xlu0 %9566 }
 0x4c3   :  { %14427 = vmatpush3.bf16.msra.mxu1 %v21489_v41  ;;  %14406 = vmatprep.subr.bf16.mxu0 %v21496_v43 }
 0x4c4   :  { %9378 = vrot.lane.b32.xlu0 %v9043_v47, %s17983_s22  ;;  %v7443_v19 = vpop.f32.mrb[76].mxu0  ;;  %14428 = vmatprep.subr.bf16.mxu1 %v21496_v43  ;;  %v17737_v8 = vpop.eup %17736 }
 0x4c5   :  { %9748 = vrot.lane.b32.xlu1 %v9055_v26, %s17987_s20  ;;  %v17023_v5 = vpop.f32.mrb[77].mxu0  ;;  %v7486_v0 = vpop.f32.mrb[76].mxu1  ;;  %v7444_v34 = vadd.f32 %v21609_v39, %v7443_v19  ;;  %v9044_v2 = vpack.c.bf16 %v17737_v8, %v17737_v8  ;;  %v24284_v8 = vld [vmem:[#allocation19_spill] sm:$0xff] }
 0x4c6   :  { %14407 = vmatpush3.bf16.msra.mxu0 %v21514_v55  ;;  %v7446_v7 = vpop.f32.mrb[78].mxu0  ;;  %v17033_v32 = vpop.f32.mrb[77].mxu1  ;;  %v7487_v59 = vadd.f32 %v21609_v39, %v7486_v0  ;;  %v24282_v5 = vld [vmem:[#allocation17_spill] sm:$0xff]  ;;  %v24283_v0 = vld [vmem:[#allocation6_spill] sm:$0xff] }
 0x4c7   :  { %14429 = vmatpush3.bf16.msra.mxu1 %v21514_v55  ;;  %v17024_v24 = vpop.f32.mrb[79].mxu0  ;;  %14408 = vmatprep.subr.bf16.mxu0 %v21521_v46  ;;  %v7489_v63 = vpop.f32.mrb[78].mxu1  ;;  %17744 = vtanh.f32 %v7444_v34  ;;  %v9877_v7 = vsel %vm9865_vm2, %v24283_v0, %v24282_v5 }
 0x4c8   :  { %9486 = vrot.lane.b32.xlu0 %v9054_v4, %s17984_s13  ;;  %14430 = vmatprep.subr.bf16.mxu1 %v21521_v46  ;;  %v21730_v28 = vpop.permute.xlu1 %9352  ;;  %v17034_v35 = vpop.f32.mrb[79].mxu1  ;;  %v9982_v63 = vsel %vm9974_vm3, %v9877_v7, %v24284_v8  ;;  %17746 = vtanh.f32 %v7487_v59  ;;  %v24288_v7 = vld [vmem:[#allocation25_spill] sm:$0xff]  ;;  %v24290_v8 = vld [vmem:[#allocation8_spill] sm:$0xff] }
 0x4c9   :  { %9194 = vrot.lane.b32.xlu1 %v9043_v47, %s17981_s29  ;;  %v17739_v15 = vpop.eup %17738  ;;  %v21740_v30 = vpop.permute.xlu0 %9644  ;;  %v24280_v47 = vld [vmem:[#allocation14_spill] sm:$0xff] }
 0x4ca   :  { %14409 = vmatpush3.bf16.msra.mxu0 %v21536_v52  ;;  %v17741_v25 = vpop.eup %17740  ;;  %24278 = vst [vmem:[#allocation24_spill] sm:$0xff] %v21740_v30  ;;  %v9056_v57 = vpack.c.bf16 %v17739_v15, %v17739_v15  ;;  %v24345_v30 = vld [vmem:[#allocation81_spill] sm:$0xff] }
 0x4cb   :  { %14431 = vmatpush3.bf16.msra.mxu1 %v21536_v52  ;;  %14410 = vmatprep.subr.bf16.mxu0 %v21543_v33  ;;  %v17743_v44 = vpop.eup %17742  ;;  %v9045_v50 = vpack.c.bf16 %v17741_v25, %v17741_v25  ;;  %v24285_v25 = vld [vmem:[#allocation16_spill] sm:$0xff] }
 0x4cc   :  { %9594 = vrot.lane.b32.xlu0 %v9055_v26, %s17985_s14  ;;  %14432 = vmatprep.subr.bf16.mxu1 %v21543_v33  ;;  %v21744_v4 = vpop.permute.xlu1 %9460  ;;  %v24281_v26 = vld [vmem:[#allocation5_spill] sm:$0xff]  ;;  %v9057_v35 = vpack.c.bf16 %v17743_v44, %v17743_v44  ;;  %v24287_v44 = vld [vmem:[#allocation18_spill] sm:$0xff] }
 0x4cd   :  { %9302 = vrot.lane.b32.xlu1 %v9044_v2, %s17982_s21  ;;  %v9874_v19 = vsel %vm9865_vm2, %v24281_v26, %v24280_v47  ;;  %v24286_v26 = vld [vmem:[#allocation22_spill] sm:$0xff] }
 0x4ce   :  { %14411 = vmatpush3.bf16.msra.mxu0 %v21554_v31  ;;  %v9980_v47 = vsel %vm9974_vm3, %v9874_v19, %v24285_v25  ;;  %v10054_v5 = vsel %vm267_vm1, %v9982_v63, %v24286_v26  ;;  %v21776_v19 = vpop.permute.xlu0 %9722  ;;  %v24293_v26 = vld [vmem:[#allocation27_spill] sm:$0xff] }
 0x4cf   :  { %14433 = vmatpush3.bf16.msra.mxu1 %v21554_v31  ;;  %14412 = vmatprep.subr.bf16.mxu0 %v21561_v53  ;;  %v10052_v59 = vsel %vm267_vm1, %v9980_v47, %v24287_v44  ;;  %24291 = vst [vmem:[#allocation49_spill] sm:$0xff] %v21776_v19  ;;  %v24296_v44 = vld [vmem:[#allocation41_spill] sm:$0xff] }
 0x4d0   :  { %9672 = vrot.lane.b32.xlu0 %v9056_v57, %s17986_s19  ;;  %v21749_v13 = vpop.f32.mrb[80].mxu0  ;;  %14434 = vmatprep.subr.bf16.mxu1 %v21561_v53 }
 0x4d1   :  { %24279 = vst [vmem:[#allocation53_spill] sm:$0xff] %v21749_v13  ;;  %v7572_v24 = vpop.f32.mrb[80].mxu1  ;;  %9380 = vrot.lane.b32.xlu1 %v9045_v50, %s17983_s22  ;;  %v17043_v32 = vpop.f32.mrb[81].mxu0 }
 0x4d2   :  { %v7573_v34 = vadd.f32 %v21609_v39, %v7572_v24  ;;  %v7532_v15 = vpop.f32.mrb[82].mxu0  ;;  %14413 = vmatpush3.bf16.msra.mxu0 %v21577_v62  ;;  %v17053_v2 = vpop.f32.mrb[81].mxu1  ;;  %v10127_v24 = vsel %vm10119_vm4, %v10054_v5, %v24288_v7  ;;  %v24289_v32 = vld [vmem:[#allocation37_spill] sm:$0xff] }
 0x4d3   :  { %14435 = vmatpush3.bf16.msra.mxu1 %v21577_v62  ;;  %v17044_v50 = vpop.f32.mrb[83].mxu0  ;;  %v7575_v0 = vpop.f32.mrb[82].mxu1  ;;  %14414 = vmatprep.subr.bf16.mxu0 %v21589_v60  ;;  %v9898_v15 = vsel %vm9865_vm2, %v24290_v8, %v24289_v32  ;;  %v24292_v2 = vld [vmem:[#allocation28_spill] sm:$0xff]  ;;  %v10200_v47 = vsel %vm10192_vm5, %v10127_v24, %v24293_v26  ;;  %v24295_v5 = vld [vmem:[#allocation9_spill] sm:$0xff]  ;;  %v24301_v26 = vld [vmem:[#allocation42_spill] sm:$0xff] }
 0x4d4   :  { %17748 = vtanh.f32 %v7573_v34  ;;  %9750 = vrot.lane.b32.xlu0 %v9057_v35, %s17987_s20  ;;  %v17054_v63 = vpop.f32.mrb[83].mxu1  ;;  %14436 = vmatprep.subr.bf16.mxu1 %v21589_v60  ;;  %v10125_v25 = vsel %vm10119_vm4, %v10052_v59, %v24292_v2  ;;  %v24294_v50 = vld [vmem:[#allocation38_spill] sm:$0xff]  ;;  %v9996_v7 = vsel %vm9974_vm3, %v9898_v15, %v24296_v44  ;;  %v21789_v32 = vpop.permute.xlu1 %9568  ;;  %v24298_v34 = vld [vmem:[#allocation31_spill] sm:$0xff]  ;;  %v24304_v44 = vld [vmem:[#allocation69_spill] sm:$0xff] }
 0x4d5   :  { %v9901_v0 = vsel %vm9865_vm2, %v24295_v5, %v24294_v50  ;;  %24297 = vst [vmem:[#allocation26_spill] sm:$0xff] %v21789_v32  ;;  %9488 = vrot.lane.b32.xlu1 %v9056_v57, %s17984_s13  ;;  %v10198_v8 = vsel %vm10192_vm5, %v10125_v25, %v24298_v34  ;;  %v24299_v63 = vld [vmem:[#allocation29_spill] sm:$0xff]  ;;  %v24300_v2 = vld [vmem:[#allocation46_spill] sm:$0xff]  ;;  %v24302_v50 = vld [vmem:[#allocation32_spill] sm:$0xff] }
 0x4d6   :  { %v10273_v59 = vsel %vm10265_vm6, %v10200_v47, %v24299_v63  ;;  %v10068_v24 = vsel %vm267_vm1, %v9996_v7, %v24300_v2  ;;  %v9998_v13 = vsel %vm9974_vm3, %v9901_v0, %v24301_v26  ;;  %14415 = vmatpush3.bf16.msra.mxu0 %v21619_v48  ;;  %v10271_v15 = vsel %vm10265_vm6, %v10198_v8, %v24302_v50  ;;  %v24303_v5 = vld [vmem:[#allocation47_spill] sm:$0xff]  ;;  %v17745_v47 = vpop.eup %17744  ;;  %v24305_v7 = vld [vmem:[#allocation34_spill] sm:$0xff]  ;;  %v24306_v0 = vld [vmem:[#allocation73_spill] sm:$0xff] }
 0x4d7   :  { %v10070_v57 = vsel %vm267_vm1, %v9998_v13, %v24303_v5  ;;  %v10141_v25 = vsel %vm10119_vm4, %v10068_v24, %v24304_v44  ;;  %14437 = vmatpush3.bf16.msra.mxu1 %v21619_v48  ;;  %14444 = vmatprep.subr.bf16.mxu0 %v21391_v18  ;;  %v10346_v34 = vsel %vm10338_vm7, %v10271_v15, %v24305_v7  ;;  %v24307_v2 = vld [vmem:[#allocation70_spill] sm:$0xff]  ;;  %v24308_v13 = vld [vmem:[#allocation36_spill] sm:$0xff]  ;;  %v24309_v24 = vld [vmem:[#allocation75_spill] sm:$0xff] }
 0x4d8   :  { %v10214_v63 = vsel %vm10192_vm5, %v10141_v25, %v24306_v0  ;;  %v10143_v8 = vsel %vm10119_vm4, %v10070_v57, %v24307_v2  ;;  %14466 = vmatprep.subr.bf16.mxu1 %v21391_v18  ;;  %v10349_v26 = vsel %vm10338_vm7, %v10273_v59, %v24308_v13  ;;  %v24310_v5 = vld [vmem:[#allocation71_spill] sm:$0xff]  ;;  %v24311_v15 = vld [vmem:[#allocation72_spill] sm:$0xff]  ;;  %v24312_v57 = vld [vmem:[#allocation77_spill] sm:$0xff]  ;;  %v21830_v59 = vpop.permute.xlu1 %9646  ;;  %v9058_v0 = vpack.c.bf16 %v17745_v47, %v17745_v47 }
 0x4d9   :  { %v10287_v50 = vsel %vm10265_vm6, %v10214_v63, %v24309_v24  ;;  %v10216_v44 = vsel %vm10192_vm5, %v10143_v8, %v24310_v5  ;;  %9596 = vrot.lane.b32.xlu1 %v9057_v35, %s17985_s14  ;;  %10791 = vmatmul.mubr.bf16.vlgmr.msra.gmra.mrb[140].mxu0 %v10346_v34  ;;  %24313 = vst [vmem:[#allocation55_spill] sm:$0xff] %v21830_v59  ;;  %v24314_v63 = vld [vmem:[#allocation74_spill] sm:$0xff]  ;;  %v17747_v34 = vpop.eup %17746  ;;  %v24340_v59 = vld [vmem:[#allocation80_spill] sm:$0xff] }
 0x4da   :  { %v10289_v25 = vsel %vm10265_vm6, %v10216_v44, %v24311_v15  ;;  %10831 = vmatmul.mubr.bf16.vlgmr.msra.gmra.mrb[140].mxu1 %v10349_v26  ;;  %14445 = vmatpush3.bf16.msra.mxu0 %v21420_v29  ;;  %v21828_v7 = vsel %vm10338_vm7, %v10287_v50, %v24312_v57  ;;  %v9059_v44 = vpack.c.bf16 %v17747_v34, %v17747_v34 }
 0x4db   :  { %10870 = vmatprep.mubr.bf16.mxu0 %v21828_v7  ;;  %14467 = vmatpush3.bf16.msra.mxu1 %v21420_v29  ;;  %v21836_v35 = vsel %vm10338_vm7, %v10289_v25, %v24314_v63  ;;  %v24315_v63 = vld [vmem:[#allocation11_spill] sm:$0xff] }
 0x4dc   :  { %10910 = vmatprep.mubr.bf16.mxu1 %v21836_v35  ;;  %v7615_v2 = vpop.f32.mrb[84].mxu0  ;;  %14446 = vmatprep.subr.bf16.mxu0 %v21446_v11 }
 0x4dd   :  { %v7658_v8 = vpop.f32.mrb[84].mxu1  ;;  %9674 = vrot.lane.b32.xlu1 %v9058_v0, %s17986_s19  ;;  %v7616_v13 = vadd.f32 %v21609_v39, %v7615_v2  ;;  %v17063_v47 = vpop.f32.mrb[85].mxu0  ;;  %14468 = vmatprep.subr.bf16.mxu1 %v21446_v11  ;;  %v2714_v2 = vadd.f32 %v21609_v39, %v24315_v63 }
 0x4de   :  { %v17749_v26 = vpop.eup %17748  ;;  %v7659_v24 = vadd.f32 %v21609_v39, %v7658_v8  ;;  %v7618_v50 = vpop.f32.mrb[86].mxu0  ;;  %14447 = vmatpush3.bf16.msra.mxu0 %v21461_v10 }
 0x4df   :  { %v17073_v5 = vpop.f32.mrb[85].mxu1  ;;  %v9061_v15 = vpack.c.bf16 %v17749_v26, %v17749_v26  ;;  %17750 = vtanh.f32 %v7616_v13  ;;  %14469 = vmatpush3.bf16.msra.mxu1 %v21461_v10  ;;  %v17064_v25 = vpop.f32.mrb[87].mxu0  ;;  %14448 = vmatprep.subr.bf16.mxu0 %v21472_v40 }
 0x4e0   :  { %v7661_v57 = vpop.f32.mrb[86].mxu1  ;;  %17752 = vtanh.f32 %v7659_v24  ;;  %14470 = vmatprep.subr.bf16.mxu1 %v21472_v40  ;;  %v21850_v8 = vpop.permute.xlu0 %9168 }
 0x4e1   :  { %v17074_v0 = vpop.f32.mrb[87].mxu1  ;;  %24316 = vst [vmem:[#allocation52_spill] sm:$0xff] %v21850_v8  ;;  %v21852_v47 = vpop.permute.xlu1 %9724  ;;  %9760 = vrot.lane.b32.xlu0 %v9061_v15, %s17981_s29  ;;  %9752 = vrot.lane.b32.xlu1 %v9059_v44, %s17987_s20  ;;  %17754 = vtanh.f32 %v2714_v2 }
 0x4e2   :  { %24317 = vst [vmem:[#allocation54_spill] sm:$0xff] %v21852_v47  ;;  %14449 = vmatpush3.bf16.msra.mxu0 %v21489_v41  ;;  %v24339_v47 = vld [vmem:[#allocation63_spill] sm:$0xff] }
 0x4e3   :  { %14471 = vmatpush3.bf16.msra.mxu1 %v21489_v41  ;;  %14450 = vmatprep.subr.bf16.mxu0 %v21496_v43 }
 0x4e4   :  { %14472 = vmatprep.subr.bf16.mxu1 %v21496_v43  ;;  %v21863_v34 = vpop.permute.xlu0 %9276 }
 0x4e5   :  { %24318 = vst [vmem:[#allocation57_spill] sm:$0xff] %v21863_v34 }
 0x4e6   :  { %14451 = vmatpush3.bf16.msra.mxu0 %v21514_v55 }
 0x4e7   :  { %14473 = vmatpush3.bf16.msra.mxu1 %v21514_v55  ;;  %14452 = vmatprep.subr.bf16.mxu0 %v21521_v46 }
 0x4e8   :  { %v7701_v13 = vpop.f32.mrb[88].mxu0  ;;  %14474 = vmatprep.subr.bf16.mxu1 %v21521_v46 }
 0x4e9   :  { %v17751_v26 = vpop.eup %17750  ;;  %v7702_v24 = vadd.f32 %v21609_v39, %v7701_v13  ;;  %v17083_v50 = vpop.f32.mrb[89].mxu0 }
 0x4ea   :  { %v7744_v5 = vpop.f32.mrb[88].mxu1  ;;  %v17753_v44 = vpop.eup %17752  ;;  %v21867_v15 = vpack.c.bf16 %v17751_v26, %v17751_v26  ;;  %14453 = vmatpush3.bf16.msra.mxu0 %v21536_v52  ;;  %v24321_v50 = vld [vmem:[#allocation21_spill] sm:$0xff] }
 0x4eb   :  { %v7704_v25 = vpop.f32.mrb[90].mxu0  ;;  %v7745_v57 = vadd.f32 %v21609_v39, %v7744_v5  ;;  %v17093_v0 = vpop.f32.mrb[89].mxu1  ;;  %v9063_v63 = vpack.c.bf16 %v17753_v44, %v17753_v44  ;;  %17756 = vtanh.f32 %v7702_v24  ;;  %14475 = vmatpush3.bf16.msra.mxu1 %v21536_v52  ;;  %14454 = vmatprep.subr.bf16.mxu0 %v21543_v33  ;;  %v24322_v5 = vld [vmem:[#allocation7_spill] sm:$0xff] }
 0x4ec   :  { %24319 = vst [vmem:[#allocation56_spill] sm:$0xff] %v21867_v15  ;;  %v17084_v2 = vpop.f32.mrb[91].mxu0  ;;  %v7747_v16 = vpop.f32.mrb[90].mxu1  ;;  %9778 = vrot.lane.b32.xlu0 %v21867_v15, %s17982_s21  ;;  %14476 = vmatprep.subr.bf16.mxu1 %v21543_v33  ;;  %v24323_v44 = vld [vmem:[#allocation43_spill] sm:$0xff]  ;;  %v24325_v0 = vld [vmem:[#allocation48_spill] sm:$0xff]  ;;  %v24327_v15 = vld [vmem:[#allocation10_spill] sm:$0xff] }
 0x4ed   :  { %17758 = vtanh.f32 %v7745_v57  ;;  %v17094_v13 = vpop.f32.mrb[91].mxu1  ;;  %v21876_v26 = vpop.permute.xlu1 %9170  ;;  %9762 = vrot.lane.b32.xlu1 %v9063_v63, %s17981_s29  ;;  %v9880_v16 = vsel %vm9865_vm2, %v24322_v5, %v24321_v50  ;;  %v24328_v5 = vld [vmem:[#allocation60_spill] sm:$0xff] }
 0x4ee   :  { %24320 = vst [vmem:[#allocation14_spill] sm:$0xff] %v21876_v26  ;;  %14455 = vmatpush3.bf16.msra.mxu0 %v21554_v31  ;;  %v17755_v24 = vpop.eup %17754  ;;  %v9984_v25 = vsel %vm9974_vm3, %v9880_v16, %v24323_v44  ;;  %v21887_v57 = vpop.permute.xlu0 %9354  ;;  %v24326_v13 = vld [vmem:[#allocation40_spill] sm:$0xff]  ;;  %v24329_v16 = vld [vmem:[#allocation45_spill] sm:$0xff] }
 0x4ef   :  { %14477 = vmatpush3.bf16.msra.mxu1 %v21554_v31  ;;  %14456 = vmatprep.subr.bf16.mxu0 %v21561_v53  ;;  %24324 = vst [vmem:[#allocation5_spill] sm:$0xff] %v21887_v57  ;;  %v10056_v2 = vsel %vm267_vm1, %v9984_v25, %v24325_v0  ;;  %v9883_v50 = vsel %vm9865_vm2, %v24327_v15, %v24326_v13  ;;  %v24330_v57 = vld [vmem:[#allocation61_spill] sm:$0xff]  ;;  %v24332_v15 = vld [vmem:[#allocation59_spill] sm:$0xff] }
 0x4f0   :  { %9791 = vrot.lane.b32.xlu0 %v9063_v63, %s17983_s22  ;;  %14478 = vmatprep.subr.bf16.mxu1 %v21561_v53  ;;  %v10129_v61 = vsel %vm10119_vm4, %v10056_v2, %v24328_v5  ;;  %v8948_v26 = vpack.c.bf16 %v17755_v24, %v17755_v24  ;;  %v9986_v44 = vsel %vm9974_vm3, %v9883_v50, %v24329_v16  ;;  %v24331_v25 = vld [vmem:[#allocation65_spill] sm:$0xff]  ;;  %v24333_v2 = vld [vmem:[#allocation76_spill] sm:$0xff]  ;;  %v24336_v16 = vld [vmem:[#allocation62_spill] sm:$0xff] }
 0x4f1   :  { %v10202_v63 = vsel %vm10192_vm5, %v10129_v61, %v24330_v57  ;;  %v10058_v13 = vsel %vm267_vm1, %v9986_v44, %v24332_v15  ;;  %v21911_v5 = vpop.permute.xlu1 %9278  ;;  %v24335_v57 = vld [vmem:[#allocation67_spill] sm:$0xff] }
 0x4f2   :  { %14457 = vmatpush3.bf16.msra.mxu0 %v21577_v62  ;;  %v10275_v0 = vsel %vm10265_vm6, %v10202_v63, %v24331_v25  ;;  %v9904_v24 = vsel %vm9865_vm2, %v8948_v26, %v24333_v2  ;;  %24334 = vst [vmem:[#allocation17_spill] sm:$0xff] %v21911_v5  ;;  %v10131_v8 = vsel %vm10119_vm4, %v10058_v13, %v24336_v16  ;;  %v24337_v63 = vld [vmem:[#allocation12_spill] sm:$0xff]  ;;  %v24338_v25 = vld [vmem:[#allocation78_spill] sm:$0xff] }
 0x4f3   :  { %14479 = vmatpush3.bf16.msra.mxu1 %v21577_v62  ;;  %14458 = vmatprep.subr.bf16.mxu0 %v21589_v60  ;;  %v10352_v50 = vsel %vm10338_vm7, %v10275_v0, %v24335_v57  ;;  %v9907_v44 = vsel %vm9865_vm2, %v24337_v63, %v20834_v37  ;;  %v10000_v26 = vsel %vm9974_vm3, %v9904_v24, %v24338_v25  ;;  %v24341_v57 = vld [vmem:[#allocation82_spill] sm:$0xff]  ;;  %v24344_v25 = vld [vmem:[#allocation84_spill] sm:$0xff] }
 0x4f4   :  { %v21913_v34 = vpop.f32.mrb[92].mxu0  ;;  %14480 = vmatprep.subr.bf16.mxu1 %v21589_v60  ;;  %v10204_v19 = vsel %vm10192_vm5, %v10131_v8, %v24339_v47  ;;  %v10072_v0 = vsel %vm267_vm1, %v10000_v26, %v24340_v59  ;;  %v10002_v13 = vsel %vm9974_vm3, %v9907_v44, %v24341_v57  ;;  %v24343_v24 = vld [vmem:[#allocation66_spill] sm:$0xff]  ;;  %v24347_v44 = vld [vmem:[#allocation87_spill] sm:$0xff] }
 0x4f5   :  { %v17757_v61 = vpop.eup %17756  ;;  %v17103_v15 = vpop.f32.mrb[93].mxu0  ;;  %v10277_v63 = vsel %vm10265_vm6, %v10204_v19, %v24343_v24  ;;  %v10145_v8 = vsel %vm10119_vm4, %v10072_v0, %v24345_v30  ;;  %v24348_v30 = vld [vmem:[#allocation79_spill] sm:$0xff]  ;;  %v24350_v24 = vld [vmem:[#allocation89_spill] sm:$0xff] }
 0x4f6   :  { %v21925_v2 = vpop.f32.mrb[92].mxu1  ;;  %v21933_v16 = vpack.c.bf16 %v17757_v61, %v17757_v61  ;;  %v7790_v32 = vpop.f32.mrb[94].mxu0  ;;  %14459 = vmatpush3.bf16.msra.mxu0 %v21619_v48  ;;  %v10074_v15 = vsel %vm267_vm1, %v10002_v13, %v24344_v25  ;;  %v24346_v61 = vld [vmem:[#allocation83_spill] sm:$0xff]  ;;  %v10355_v0 = vsel %vm10338_vm7, %v10277_v63, %v24348_v30  ;;  %v24349_v13 = vld [vmem:[#allocation85_spill] sm:$0xff] }
 0x4f7   :  { %v17759_v5 = vpop.eup %17758  ;;  %v17113_v37 = vpop.f32.mrb[93].mxu1  ;;  %14481 = vmatpush3.bf16.msra.mxu1 %v21619_v48  ;;  %14488 = vmatprep.subr.bf16.mxu0 %v21391_v18  ;;  %v10218_v32 = vsel %vm10192_vm5, %v10145_v8, %v24346_v61  ;;  %v10147_v26 = vsel %vm10119_vm4, %v10074_v15, %v24347_v44  ;;  %v24351_v8 = vld [vmem:[#allocation92_spill] sm:$0xff] }
 0x4f8   :  { %24342 = vst [vmem:[#allocation6_spill] sm:$0xff] %v21933_v16  ;;  %v17104_v59 = vpop.f32.mrb[95].mxu0  ;;  %v7833_v47 = vpop.f32.mrb[94].mxu1  ;;  %v21948_v57 = vpack.c.bf16 %v17759_v5, %v17759_v5  ;;  %9780 = vrot.lane.b32.xlu1 %v21933_v16, %s17982_s21  ;;  %14510 = vmatprep.subr.bf16.mxu1 %v21391_v18  ;;  %v10291_v37 = vsel %vm10265_vm6, %v10218_v32, %v24349_v13  ;;  %v24352_v15 = vld [vmem:[#allocation88_spill] sm:$0xff]  ;;  %v24353_v18 = vld [vmem:[#allocation94_spill] sm:$0xff] }
 0x4f9   :  { %v17114_v19 = vpop.f32.mrb[95].mxu1  ;;  %v10220_v25 = vsel %vm10192_vm5, %v10147_v26, %v24350_v24  ;;  %10871 = vmatmul.mubr.bf16.vlgmr.msra.gmra.mrb[144].mxu0 %v10352_v50  ;;  %v21964_v59 = vsel %vm10338_vm7, %v10291_v37, %v24352_v15  ;;  %v21972_v47 = vpop.permute.xlu1 %9356 }
 0x4fa   :  { %v10293_v5 = vsel %vm10265_vm6, %v10220_v25, %v24351_v8  ;;  %10911 = vmatmul.mubr.bf16.vlgmr.msra.gmra.mrb[144].mxu1 %v10355_v0  ;;  %14489 = vmatpush3.bf16.msra.mxu0 %v21420_v29  ;;  %24354 = vst [vmem:[#allocation19_spill] sm:$0xff] %v21972_v47  ;;  %v24368_v47 = vld [vmem:[#allocation107_spill] sm:$0xff] }
 0x4fb   :  { %10950 = vmatprep.mubr.bf16.mxu0 %v21964_v59  ;;  %14511 = vmatpush3.bf16.msra.mxu1 %v21420_v29  ;;  %v21970_v63 = vsel %vm10338_vm7, %v10293_v5, %v24353_v18  ;;  %v24355_v18 = vld [vmem:[#allocation90_spill] sm:$0xff] }
 0x4fc   :  { %10990 = vmatprep.mubr.bf16.mxu1 %v21970_v63  ;;  %9793 = vrot.lane.b32.xlu1 %v21948_v57, %s17983_s22 }
 0x4fd   :  { %14490 = vmatprep.subr.bf16.mxu0 %v21446_v11  ;;  %14512 = vmatprep.subr.bf16.mxu1 %v21446_v11 }
 0x4fe   :  { %14491 = vmatpush3.bf16.msra.mxu0 %v21461_v10 }
 0x4ff   :  { %14513 = vmatpush3.bf16.msra.mxu1 %v21461_v10  ;;  %14492 = vmatprep.subr.bf16.mxu0 %v21472_v40 }
 0x500   :  { %v21982_v29 = vpop.f32.mrb[96].mxu0  ;;  %14514 = vmatprep.subr.bf16.mxu1 %v21472_v40 }
 0x501   :  { %v17123_v50 = vpop.f32.mrb[97].mxu0  ;;  %v21985_v61 = vpop.f32.mrb[96].mxu1 }
 0x502   :  { %14493 = vmatpush3.bf16.msra.mxu0 %v21489_v41  ;;  %v7876_v32 = vpop.f32.mrb[98].mxu0  ;;  %v17133_v26 = vpop.f32.mrb[97].mxu1  ;;  %v24356_v50 = vld [vmem:[#allocation13_spill] sm:$0xff] }
 0x503   :  { %14515 = vmatpush3.bf16.msra.mxu1 %v21489_v41  ;;  %v17124_v44 = vpop.f32.mrb[99].mxu0  ;;  %14494 = vmatprep.subr.bf16.mxu0 %v21496_v43  ;;  %v7919_v19 = vpop.f32.mrb[98].mxu1  ;;  %v9910_v32 = vsel %vm9865_vm2, %v24356_v50, %v24355_v18  ;;  %v24363_v50 = vld [vmem:[#allocation101_spill] sm:$0xff] }
 0x504   :  { %14516 = vmatprep.subr.bf16.mxu1 %v21496_v43  ;;  %v17134_v30 = vpop.f32.mrb[99].mxu1  ;;  %v24357_v44 = vld [vmem:[#allocation93_spill] sm:$0xff]  ;;  %v24358_v19 = vld [vmem:[#allocation96_spill] sm:$0xff] }
 0x505   :  { %v10004_v26 = vsel %vm9974_vm3, %v9910_v32, %v24357_v44  ;;  %v24359_v30 = vld [vmem:[#allocation15_spill] sm:$0xff]  ;;  %v22032_v32 = vld [vmem:[%s24088_s3 + $0x40] sm:$0xff]  }
 0x506   :  { %14495 = vmatpush3.bf16.msra.mxu0 %v21514_v55  ;;  %v24364_v44 = vld [vmem:[#allocation100_spill] sm:$0xff] }
 0x507   :  { %14517 = vmatpush3.bf16.msra.mxu1 %v21514_v55  ;;  %14496 = vmatprep.subr.bf16.mxu0 %v21521_v46 }
 0x508   :  { %14518 = vmatprep.subr.bf16.mxu1 %v21521_v46 }
 0x50a   :  { %14497 = vmatpush3.bf16.msra.mxu0 %v21536_v52 }
 0x50b   :  { %14519 = vmatpush3.bf16.msra.mxu1 %v21536_v52  ;;  %14498 = vmatprep.subr.bf16.mxu0 %v21543_v33 }
 0x50c   :  { %v21998_v0 = vpop.f32.mrb[100].mxu0  ;;  %14520 = vmatprep.subr.bf16.mxu1 %v21543_v33 }
 0x50d   :  { %v17143_v13 = vpop.f32.mrb[101].mxu0  ;;  %v22001_v37 = vpop.f32.mrb[100].mxu1 }
 0x50e   :  { %14499 = vmatpush3.bf16.msra.mxu0 %v21554_v31  ;;  %v7962_v24 = vpop.f32.mrb[102].mxu0  ;;  %v17153_v8 = vpop.f32.mrb[101].mxu1  ;;  %v9913_v13 = vsel %vm9865_vm2, %v24359_v30, %v24358_v19  ;;  %v24365_v19 = vld [vmem:[#allocation103_spill] sm:$0xff] }
 0x50f   :  { %14521 = vmatpush3.bf16.msra.mxu1 %v21554_v31  ;;  %v17144_v25 = vpop.f32.mrb[103].mxu0  ;;  %14500 = vmatprep.subr.bf16.mxu0 %v21561_v53  ;;  %v8005_v5 = vpop.f32.mrb[102].mxu1  ;;  %v24360_v24 = vld [vmem:[#allocation95_spill] sm:$0xff] }
 0x510   :  { %14522 = vmatprep.subr.bf16.mxu1 %v21561_v53  ;;  %v17154_v15 = vpop.f32.mrb[103].mxu1  ;;  %v10076_v25 = vsel %vm267_vm1, %v10004_v26, %v24360_v24  ;;  %v24361_v8 = vld [vmem:[#allocation99_spill] sm:$0xff]  ;;  %v24366_v24 = vld [vmem:[#allocation102_spill] sm:$0xff] }
 0x511   :  { %v10006_v5 = vsel %vm9974_vm3, %v9913_v13, %v24361_v8  ;;  %v24362_v15 = vld [vmem:[#allocation97_spill] sm:$0xff]  ;;  %v24367_v8 = vld [vmem:[#allocation106_spill] sm:$0xff] }
 0x512   :  { %14501 = vmatpush3.bf16.msra.mxu0 %v21577_v62  ;;  %v10149_v18 = vsel %vm10119_vm4, %v10076_v25, %v24362_v15  ;;  %v10078_v16 = vsel %vm267_vm1, %v10006_v5, %v24363_v50 }
 0x513   :  { %14523 = vmatpush3.bf16.msra.mxu1 %v21577_v62  ;;  %14502 = vmatprep.subr.bf16.mxu0 %v21589_v60  ;;  %v10222_v26 = vsel %vm10192_vm5, %v10149_v18, %v24364_v44  ;;  %v10151_v30 = vsel %vm10119_vm4, %v10078_v16, %v24365_v19  ;;  %v22055_v16 = vld [vmem:[%s24088_s3] sm:$0xff]  }
 0x514   :  { %14524 = vmatprep.subr.bf16.mxu1 %v21589_v60  ;;  %v10295_v25 = vsel %vm10265_vm6, %v10222_v26, %v24366_v24  ;;  %v10224_v5 = vsel %vm10192_vm5, %v10151_v30, %v24367_v8  ;;  %v24369_v44 = vld [vmem:[#allocation104_spill] sm:$0xff] }
 0x515   :  { %v10297_v18 = vsel %vm10265_vm6, %v10224_v5, %v24368_v47  ;;  %v22060_v26 = vsel %vm10338_vm7, %v10295_v25, %v24369_v44  ;;  %v22073_v25 = vld [vmem:[%s24088_s3 + $0x48] sm:$0xff]   ;;  %v22076_v5 = vpop.permute.xlu0 %9462 }
 0x516   :  { %14503 = vmatpush3.bf16.msra.mxu0 %v21619_v48 }
 0x517   :  { %14525 = vmatpush3.bf16.msra.mxu1 %v21619_v48  ;;  %14532 = vmatprep.subr.bf16.mxu0 %v22032_v32 }
 0x518   :  { %v22039_v13 = vpop.f32.mrb[104].mxu0  ;;  %14554 = vmatprep.subr.bf16.mxu1 %v22032_v32 }
 0x519   :  { %v17163_v15 = vpop.f32.mrb[105].mxu0  ;;  %10951 = vmatmul.mubr.bf16.vlgmr.msra.gmra.mrb[148].mxu0 %v21456_v49  ;;  %v22047_v50 = vpop.f32.mrb[104].mxu1  ;;  %v24370_v49 = vld [vmem:[#allocation108_spill] sm:$0xff] }
 0x51a   :  { %10991 = vmatmul.mubr.bf16.vlgmr.msra.gmra.mrb[148].mxu1 %v21467_v51  ;;  %14533 = vmatpush3.bf16.msra.mxu0 %v22055_v16  ;;  %v22066_v47 = vsel %vm10338_vm7, %v10297_v18, %v24370_v49  ;;  %v8048_v51 = vpop.f32.mrb[106].mxu0  ;;  %v17173_v19 = vpop.f32.mrb[105].mxu1 }
 0x51b   :  { %11030 = vmatprep.mubr.bf16.mxu0 %v22060_v26  ;;  %14555 = vmatpush3.bf16.msra.mxu1 %v22055_v16  ;;  %v17164_v30 = vpop.f32.mrb[107].mxu0  ;;  %v8091_v24 = vpop.f32.mrb[106].mxu1 }
 0x51c   :  { %11070 = vmatprep.mubr.bf16.mxu1 %v22066_v47  ;;  %14534 = vmatprep.subr.bf16.mxu0 %v21446_v11  ;;  %v17174_v8 = vpop.f32.mrb[107].mxu1  ;;  %v22085_v11 = vpop.permute.xlu0 %9570 }
 0x51d   :  { %14556 = vmatprep.subr.bf16.mxu1 %v22073_v25 }
 0x51e   :  { %14535 = vmatpush3.bf16.msra.mxu0 %v21461_v10 }
 0x51f   :  { %14557 = vmatpush3.bf16.msra.mxu1 %v21461_v10  ;;  %14536 = vmatprep.subr.bf16.mxu0 %v21472_v40  ;;  %v22089_v10 = vpop.permute.xlu1 %9464 }
 0x520   :  { %14558 = vmatprep.subr.bf16.mxu1 %v21472_v40  ;;  %v22096_v24 = vpop.permute.xlu0 %9648 }
 0x522   :  { %14537 = vmatpush3.bf16.msra.mxu0 %v21489_v41 }
 0x523   :  { %14559 = vmatpush3.bf16.msra.mxu1 %v21489_v41  ;;  %14538 = vmatprep.subr.bf16.mxu0 %v21496_v43  ;;  %v22101_v8 = vpop.permute.xlu1 %9572 }
 0x524   :  { %v8131_v15 = vpop.f32.mrb[108].mxu0  ;;  %14560 = vmatprep.subr.bf16.mxu1 %v21496_v43 }
 0x525   :  { %v8132_v18 = vadd.f32 %v21609_v39, %v8131_v15  ;;  %v17183_v44 = vpop.f32.mrb[109].mxu0  ;;  %v8174_v49 = vpop.f32.mrb[108].mxu1 }
 0x526   :  { %v8175_v51 = vadd.f32 %v21609_v39, %v8174_v49  ;;  %14539 = vmatpush3.bf16.msra.mxu0 %v21514_v55  ;;  %v8134_v40 = vpop.f32.mrb[110].mxu0  ;;  %v17193_v41 = vpop.f32.mrb[109].mxu1 }
 0x527   :  { %17760 = vtanh.f32 %v8132_v18  ;;  %14561 = vmatpush3.bf16.msra.mxu1 %v21514_v55  ;;  %14540 = vmatprep.subr.bf16.mxu0 %v21521_v46  ;;  %v17184_v19 = vpop.f32.mrb[111].mxu0  ;;  %v8177_v43 = vpop.f32.mrb[110].mxu1 }
 0x528   :  { %17762 = vtanh.f32 %v8175_v51  ;;  %14562 = vmatprep.subr.bf16.mxu1 %v21521_v46  ;;  %v17194_v30 = vpop.f32.mrb[111].mxu1  ;;  %v22107_v55 = vpop.permute.xlu0 %9726  ;;  %v24373_v19 = vld [vmem:[#allocation20_spill] sm:$0xff] }
 0x529   :  { %24371 = vst [vmem:[#allocation16_spill] sm:$0xff] %v22107_v55  ;;  %v22111_v51 = vpop.permute.xlu1 %9650  ;;  %v24378_v55 = vld [vmem:[#allocation113_spill] sm:$0xff] }
 0x52a   :  { %14541 = vmatpush3.bf16.msra.mxu0 %v21536_v52 }
 0x52b   :  { %14563 = vmatpush3.bf16.msra.mxu1 %v21536_v52  ;;  %14542 = vmatprep.subr.bf16.mxu0 %v21543_v33 }
 0x52c   :  { %14564 = vmatprep.subr.bf16.mxu1 %v21543_v33  ;;  %v22120_v30 = vpop.permute.xlu0 %9172 }
 0x52d   :  { %24374 = vst [vmem:[#allocation22_spill] sm:$0xff] %v22120_v30 }
 0x52e   :  { %14543 = vmatpush3.bf16.msra.mxu0 %v21554_v31 }
 0x52f   :  { %14565 = vmatpush3.bf16.msra.mxu1 %v21554_v31  ;;  %14544 = vmatprep.subr.bf16.mxu0 %v21561_v53 }
 0x530   :  { %v8217_v46 = vpop.f32.mrb[112].mxu0  ;;  %14566 = vmatprep.subr.bf16.mxu1 %v21561_v53  ;;  %v24372_v53 = vld [vmem:[#allocation109_spill] sm:$0xff] }
 0x531   :  { %v17761_v15 = vpop.eup %17760  ;;  %v8218_v52 = vadd.f32 %v21609_v39, %v8217_v46  ;;  %v17203_v18 = vpop.f32.mrb[113].mxu0  ;;  %v9916_v43 = vsel %vm9865_vm2, %v24373_v19, %v24372_v53  ;;  %v24379_v19 = vld [vmem:[#allocation114_spill] sm:$0xff] }
 0x532   :  { %v8260_v44 = vpop.f32.mrb[112].mxu1  ;;  %v17763_v49 = vpop.eup %17762  ;;  %v9074_v33 = vpack.c.bf16 %v17761_v15, %v17761_v15  ;;  %14545 = vmatpush3.bf16.msra.mxu0 %v21577_v62  ;;  %v24375_v18 = vld [vmem:[#allocation110_spill] sm:$0xff] }
 0x533   :  { %v8261_v40 = vadd.f32 %v21609_v39, %v8260_v44  ;;  %v8220_v31 = vpop.f32.mrb[114].mxu0  ;;  %17764 = vtanh.f32 %v8218_v52  ;;  %14567 = vmatpush3.bf16.msra.mxu1 %v21577_v62  ;;  %14546 = vmatprep.subr.bf16.mxu0 %v21589_v60  ;;  %v9075_v46 = vpack.c.bf16 %v17763_v49, %v17763_v49  ;;  %v17213_v15 = vpop.f32.mrb[113].mxu1  ;;  %v10008_v52 = vsel %vm9974_vm3, %v9916_v43, %v24375_v18  ;;  %v24376_v62 = vld [vmem:[#allocation112_spill] sm:$0xff]  ;;  %v24377_v44 = vld [vmem:[#allocation23_spill] sm:$0xff]  ;;  %v24382_v18 = vld [vmem:[#allocation118_spill] sm:$0xff] }
 0x534   :  { %v17204_v41 = vpop.f32.mrb[115].mxu0  ;;  %9809 = vrot.lane.b32.xlu0 %v9074_v33, %s17984_s13  ;;  %14568 = vmatprep.subr.bf16.mxu1 %v21589_v60  ;;  %v9919_v31 = vsel %vm9865_vm2, %v24377_v44, %v24376_v62  ;;  %v10080_v53 = vsel %vm267_vm1, %v10008_v52, %v24378_v55  ;;  %v24380_v33 = vld [vmem:[#allocation117_spill] sm:$0xff]  ;;  %v24381_v15 = vld [vmem:[#allocation116_spill] sm:$0xff]  ;;  %v22144_v44 = vpop.permute.xlu1 %9728 }
 0x535   :  { %17766 = vtanh.f32 %v8261_v40  ;;  %v8263_v41 = vpop.f32.mrb[114].mxu1  ;;  %v10010_v49 = vsel %vm9974_vm3, %v9919_v31, %v24379_v19  ;;  %v10153_v60 = vsel %vm10119_vm4, %v10080_v53, %v24380_v33  ;;  %v24383_v55 = vld [vmem:[#allocation120_spill] sm:$0xff]  ;;  %24384 = vst [vmem:[#allocation18_spill] sm:$0xff] %v22144_v44  ;;  %v22146_v31 = vpop.permute.xlu0 %9280 }
 0x536   :  { %v17214_v40 = vpop.f32.mrb[115].mxu1  ;;  %14547 = vmatpush3.bf16.msra.mxu0 %v21619_v48  ;;  %v10082_v43 = vsel %vm267_vm1, %v10010_v49, %v24381_v15  ;;  %v10226_v62 = vsel %vm10192_vm5, %v10153_v60, %v24382_v18  ;;  %24385 = vst [vmem:[#allocation25_spill] sm:$0xff] %v22146_v31  ;;  %v24386_v41 = vld [vmem:[#allocation119_spill] sm:$0xff]  ;;  %v7788_v49 = vadd.f32 %v21609_v39, %v21913_v34 }
 0x537   :  { %14569 = vmatpush3.bf16.msra.mxu1 %v21619_v48  ;;  %14576 = vmatprep.subr.bf16.mxu0 %v22032_v32  ;;  %v10155_v52 = vsel %vm10119_vm4, %v10082_v43, %v24383_v55  ;;  %v10299_v53 = vsel %vm10265_vm6, %v10226_v62, %v24386_v41  ;;  %v24387_v48 = vld [vmem:[#allocation121_spill] sm:$0xff]  ;;  %v24388_v40 = vld [vmem:[#allocation123_spill] sm:$0xff]  ;;  %v7831_v43 = vadd.f32 %v21609_v39, %v21925_v2 }
 0x538   :  { %9827 = vrot.lane.b32.xlu0 %v9075_v46, %s17985_s14  ;;  %14598 = vmatprep.subr.bf16.mxu1 %v22032_v32  ;;  %v10228_v19 = vsel %vm10192_vm5, %v10155_v52, %v24387_v48  ;;  %v24389_v46 = vld [vmem:[#allocation122_spill] sm:$0xff]  ;;  %17768 = vtanh.f32 %v7788_v49 }
 0x539   :  { %11031 = vmatmul.mubr.bf16.vlgmr.msra.gmra.mrb[152].mxu0 %v21683_v45  ;;  %v10301_v33 = vsel %vm10265_vm6, %v10228_v19, %v24388_v40  ;;  %v22163_v60 = vsel %vm10338_vm7, %v10299_v53, %v24389_v46  ;;  %v22171_v45 = vpop.permute.xlu1 %9174  ;;  %v22179_v52 = vpop.permute.xlu0 %9358  ;;  %v22185_v48 = vld [vmem:[%s24088_s3 + $0x8] sm:$0xff]   ;;  %v22192_v49 = vld [vmem:[%s24088_s3 + $0x50] sm:$0xff]  }
 0x53a   :  { %11071 = vmatmul.mubr.bf16.vlgmr.msra.gmra.mrb[152].mxu1 %v21689_v54  ;;  %14577 = vmatpush3.bf16.msra.mxu0 %v22055_v16  ;;  %24390 = vst [vmem:[#allocation37_spill] sm:$0xff] %v22163_v60  ;;  %v22169_v34 = vsel %vm10338_vm7, %v10301_v33, %v21383_v21  ;;  %24392 = vst [vmem:[#allocation28_spill] sm:$0xff] %v22171_v45  ;;  %v24394_v40 = vld [vmem:[#allocation30_spill] sm:$0xff] }
 0x53b   :  { %11110 = vmatprep.mubr.bf16.mxu0 %v22163_v60  ;;  %14599 = vmatpush3.bf16.msra.mxu1 %v22055_v16  ;;  %24391 = vst [vmem:[#allocation8_spill] sm:$0xff] %v22169_v34  ;;  %24393 = vst [vmem:[#allocation27_spill] sm:$0xff] %v22179_v52  ;;  %v3918_v33 = vadd.f32 %v21609_v39, %v24394_v40  ;;  %v22239_v40 = vld [vmem:[%s24088_s3 + $0x60] sm:$0xff]  }
 0x53c   :  { %11150 = vmatprep.mubr.bf16.mxu1 %v22169_v34  ;;  %v8303_v15 = vpop.f32.mrb[116].mxu0  ;;  %14578 = vmatprep.subr.bf16.mxu0 %v22073_v25 }
 0x53d   :  { %v17765_v54 = vpop.eup %17764  ;;  %v8304_v18 = vadd.f32 %v21609_v39, %v8303_v15  ;;  %v17223_v62 = vpop.f32.mrb[117].mxu0  ;;  %14600 = vmatprep.subr.bf16.mxu1 %v22073_v25 }
 0x53e   :  { %v8346_v55 = vpop.f32.mrb[116].mxu1  ;;  %v9076_v41 = vpack.c.bf16 %v17765_v54, %v17765_v54  ;;  %14579 = vmatpush3.bf16.msra.mxu0 %v22185_v48  ;;  %v8306_v2 = vpop.f32.mrb[118].mxu0 }
 0x53f   :  { %v17767_v21 = vpop.eup %17766  ;;  %v8347_v53 = vadd.f32 %v21609_v39, %v8346_v55  ;;  %17770 = vtanh.f32 %v8304_v18  ;;  %14601 = vmatpush3.bf16.msra.mxu1 %v22185_v48  ;;  %v17224_v19 = vpop.f32.mrb[119].mxu0  ;;  %14580 = vmatprep.subr.bf16.mxu0 %v22192_v49  ;;  %v22207_v39 = vld [vmem:[%s24088_s3 + $0x10] sm:$0xff]  }
 0x540   :  { %v9077_v46 = vpack.c.bf16 %v17767_v21, %v17767_v21  ;;  %v17233_v15 = vpop.f32.mrb[117].mxu1  ;;  %9840 = vrot.lane.b32.xlu0 %v9076_v41, %s17986_s19  ;;  %9811 = vrot.lane.b32.xlu1 %v9076_v41, %s17984_s13  ;;  %v22199_v54 = vpop.permute.xlu1 %9282  ;;  %v22214_v21 = vld [vmem:[%s24088_s3 + $0x58] sm:$0xff]  }
 0x541   :  { %17772 = vtanh.f32 %v8347_v53  ;;  %24395 = vst [vmem:[#allocation38_spill] sm:$0xff] %v22199_v54  ;;  %v8349_v18 = vpop.f32.mrb[118].mxu1  ;;  %14602 = vmatprep.subr.bf16.mxu1 %v22192_v49  ;;  %v22202_v62 = vpop.permute.xlu0 %9466  ;;  %v22230_v53 = vld [vmem:[%s24088_s3 + $0x18] sm:$0xff]  }
 0x542   :  { %17774 = vtanh.f32 %v7831_v43  ;;  %24396 = vst [vmem:[#allocation9_spill] sm:$0xff] %v22202_v62  ;;  %v17234_v55 = vpop.f32.mrb[119].mxu1  ;;  %14581 = vmatpush3.bf16.msra.mxu0 %v22207_v39  ;;  %v22222_v43 = vld [vmem:[%s24087_s2] ss:$0 sm:$0xff]  ;;  %v17769_v2 = vpop.eup %17768 }
 0x543   :  { %14603 = vmatpush3.bf16.msra.mxu1 %v22207_v39  ;;  %14582 = vmatprep.subr.bf16.mxu0 %v22214_v21  ;;  %17776 = vtanh.f32 %v3918_v33  ;;  %v7874_v41 = vadd.f32 %v22222_v43, %v21982_v29  ;;  %v7917_v15 = vadd.f32 %v22222_v43, %v21985_v61  ;;  %v22249_v60 = vpack.c.bf16 %v17769_v2, %v17769_v2  ;;  %v22262_v2 = vld [vmem:[%s24088_s3 + $0x68] sm:$0xff]  }
 0x544   :  { %9853 = vrot.lane.b32.xlu0 %v9077_v46, %s17987_s20  ;;  %9829 = vrot.lane.b32.xlu1 %v9077_v46, %s17985_s14  ;;  %v22233_v19 = vpop.permute.xlu1 %9360 }
 0x545   :  { %14604 = vmatprep.subr.bf16.mxu1 %v22214_v21  ;;  %24397 = vst [vmem:[#allocation41_spill] sm:$0xff] %v22233_v19  ;;  %v22242_v29 = vpop.permute.xlu0 %9574  ;;  %17778 = vtanh.f32 %v7874_v41  ;;  %24399 = vst [vmem:[#allocation29_spill] sm:$0xff] %v22249_v60 }
 0x546   :  { %14583 = vmatpush3.bf16.msra.mxu0 %v22230_v53  ;;  %24398 = vst [vmem:[#allocation31_spill] sm:$0xff] %v22242_v29  ;;  %17780 = vtanh.f32 %v7917_v15  ;;  %v22284_v15 = vld [vmem:[%s24088_s3 + $0x70] sm:$0xff]  }
 0x547   :  { %14605 = vmatpush3.bf16.msra.mxu1 %v22230_v53  ;;  %14584 = vmatprep.subr.bf16.mxu0 %v22239_v40 }
 0x548   :  { %9764 = vrot.lane.b32.xlu0 %v21948_v57, %s17981_s29  ;;  %v8389_v33 = vpop.f32.mrb[120].mxu0  ;;  %14606 = vmatprep.subr.bf16.mxu1 %v22239_v40  ;;  %v22255_v57 = vld [vmem:[%s24088_s3 + $0x20] sm:$0xff]  }
 0x549   :  { %v17771_v46 = vpop.eup %17770  ;;  %v17243_v18 = vpop.f32.mrb[121].mxu0  ;;  %v8390_v19 = vadd.f32 %v22222_v43, %v8389_v33 }
 0x54a   :  { %v8432_v55 = vpop.f32.mrb[120].mxu1  ;;  %v9078_v62 = vpack.c.bf16 %v17771_v46, %v17771_v46  ;;  %14585 = vmatpush3.bf16.msra.mxu0 %v22255_v57  ;;  %v8392_v29 = vpop.f32.mrb[122].mxu0 }
 0x54b   :  { %v17773_v34 = vpop.eup %17772  ;;  %v17253_v41 = vpop.f32.mrb[121].mxu1  ;;  %14607 = vmatpush3.bf16.msra.mxu1 %v22255_v57  ;;  %14586 = vmatprep.subr.bf16.mxu0 %v22262_v2  ;;  %17782 = vtanh.f32 %v8390_v19  ;;  %v8433_v31 = vadd.f32 %v22222_v43, %v8432_v55  ;;  %v22293_v19 = vld [vmem:[%s24088_s3 + $0x30] sm:$0xff]  }
 0x54c   :  { %v17775_v54 = vpop.eup %17774  ;;  %v17244_v61 = vpop.f32.mrb[123].mxu0  ;;  %v9079_v33 = vpack.c.bf16 %v17773_v34, %v17773_v34  ;;  %9782 = vrot.lane.b32.xlu0 %v22249_v60, %s17982_s21  ;;  %9842 = vrot.lane.b32.xlu1 %v9078_v62, %s17986_s19  ;;  %v22277_v34 = vld [vmem:[%s24088_s3 + $0x28] sm:$0xff]  }
 0x54d   :  { %v8435_v46 = vpop.f32.mrb[122].mxu1  ;;  %v22268_v29 = vpop.permute.xlu0 %9652  ;;  %14608 = vmatprep.subr.bf16.mxu1 %v22262_v2  ;;  %v9067_v52 = vpack.c.bf16 %v17775_v54, %v17775_v54  ;;  %17784 = vtanh.f32 %v8433_v31 }
 0x54e   :  { %24400 = vst [vmem:[#allocation46_spill] sm:$0xff] %v22268_v29  ;;  %v17254_v18 = vpop.f32.mrb[123].mxu1  ;;  %v17777_v41 = vpop.eup %17776  ;;  %14587 = vmatpush3.bf16.msra.mxu0 %v22277_v34  ;;  %v24402_v46 = vld [vmem:[#allocation124_spill] sm:$0xff] }
 0x54f   :  { %v22271_v61 = vpop.permute.xlu1 %9468  ;;  %14609 = vmatpush3.bf16.msra.mxu1 %v22277_v34  ;;  %14588 = vmatprep.subr.bf16.mxu0 %v22284_v15  ;;  %v8976_v54 = vpack.c.bf16 %v17777_v41, %v17777_v41  ;;  %v17779_v55 = vpop.eup %17778  ;;  %v22304_v41 = vld [vmem:[%s24088_s3 + $0x78] sm:$0xff]  }
 0x550   :  { %24401 = vst [vmem:[#allocation42_spill] sm:$0xff] %v22271_v61  ;;  %9795 = vrot.lane.b32.xlu0 %v9067_v52, %s17983_s22  ;;  %9855 = vrot.lane.b32.xlu1 %v9079_v33, %s17987_s20 }
 0x551   :  { %14610 = vmatprep.subr.bf16.mxu1 %v22284_v15  ;;  %v9922_v18 = vsel %vm9865_vm2, %v8976_v54, %v24402_v46  ;;  %v22298_v60 = vpop.permute.xlu0 %9730  ;;  %v24405_v46 = vld [vmem:[#allocation33_spill] sm:$0xff] }
 0x552   :  { %14589 = vmatpush3.bf16.msra.mxu0 %v22293_v19  ;;  %24403 = vst [vmem:[#allocation32_spill] sm:$0xff] %v22298_v60  ;;  %v10012_v31 = vsel %vm9974_vm3, %v9922_v18, %v21373_v23  ;;  %v9925_v60 = vsel %vm9865_vm2, %v24405_v46, %v21408_v3  ;;  %v7960_v3 = vadd.f32 %v22222_v43, %v21998_v0 }
 0x553   :  { %14611 = vmatpush3.bf16.msra.mxu1 %v22293_v19  ;;  %14590 = vmatprep.subr.bf16.mxu0 %v22304_v41  ;;  %v22309_v29 = vpop.permute.xlu1 %9576  ;;  %v10084_v61 = vsel %vm267_vm1, %v10012_v31, %v21410_v38  ;;  %v10014_v18 = vsel %vm9974_vm3, %v9925_v60, %v21476_v17  ;;  %v22331_v38 = vld [vmem:[%s24088_s3 + $0x38] sm:$0xff]   ;;  %v17781_v31 = vpop.eup %17780  ;;  %v24407_v60 = vld [vmem:[#allocation125_spill] sm:$0xff] }
 0x554   :  { %24404 = vst [vmem:[#allocation47_spill] sm:$0xff] %v22309_v29  ;;  %9813 = vrot.lane.b32.xlu0 %v9078_v62, %s17984_s13  ;;  %9766 = vrot.lane.b32.xlu1 %v9067_v52, %s17981_s29  ;;  %v8475_v54 = vpop.f32.mrb[124].mxu0  ;;  %v10157_v52 = vsel %vm10119_vm4, %v10084_v61, %v21450_v14  ;;  %v22324_v62 = vpack.c.bf16 %v17779_v55, %v17779_v55  ;;  %v24409_v29 = vld [vmem:[#allocation128_spill] sm:$0xff] }
 0x555   :  { %v8476_v45 = vadd.f32 %v22222_v43, %v8475_v54  ;;  %v17263_v30 = vpop.f32.mrb[125].mxu0  ;;  %14612 = vmatprep.subr.bf16.mxu1 %v22304_v41  ;;  %v8518_v23 = vpop.f32.mrb[124].mxu1  ;;  %v10086_v17 = vsel %vm267_vm1, %v10014_v18, %v21506_v58  ;;  %v10230_v14 = vsel %vm10192_vm5, %v10157_v52, %v24407_v60  ;;  %v24408_v54 = vld [vmem:[#allocation127_spill] sm:$0xff] }
 0x556   :  { %24406 = vst [vmem:[#allocation69_spill] sm:$0xff] %v22324_v62  ;;  %v8478_v46 = vpop.f32.mrb[126].mxu0  ;;  %14591 = vmatpush3.bf16.msra.mxu0 %v22331_v38  ;;  %v17273_v30 = vpop.f32.mrb[125].mxu1  ;;  %v8519_v60 = vadd.f32 %v22222_v43, %v8518_v23 }
 0x557   :  { %14613 = vmatpush3.bf16.msra.mxu1 %v22331_v38  ;;  %v17264_v61 = vpop.f32.mrb[127].mxu0  ;;  %v8521_v0 = vpop.f32.mrb[126].mxu1  ;;  %14620 = vmatprep.subr.bf16.mxu0 %v22032_v32  ;;  %v10303_v46 = vsel %vm10265_vm6, %v10230_v14, %v24408_v54  ;;  %v10159_v30 = vsel %vm10119_vm4, %v10086_v17, %v24409_v29  ;;  %17786 = vtanh.f32 %v8476_v45  ;;  %v24410_v29 = vld [vmem:[#allocation129_spill] sm:$0xff]  ;;  %v9069_v14 = vpack.c.bf16 %v17781_v31, %v17781_v31 }
 0x558   :  { %v17783_v55 = vpop.eup %17782  ;;  %v22344_v44 = vpop.permute.xlu1 %9654  ;;  %9831 = vrot.lane.b32.xlu0 %v9079_v33, %s17985_s14  ;;  %9784 = vrot.lane.b32.xlu1 %v22324_v62, %s17982_s21  ;;  %v10232_v18 = vsel %vm10192_vm5, %v10159_v30, %v21563_v12  ;;  %v22358_v17 = vsel %vm10338_vm7, %v10303_v46, %v24410_v29  ;;  %17788 = vtanh.f32 %v7960_v3  ;;  %v8003_v12 = vadd.f32 %v22222_v43, %v22001_v37 }
 0x559   :  { %v17274_v58 = vpop.f32.mrb[127].mxu1  ;;  %v22351_v52 = vpop.permute.xlu0 %9176  ;;  %11111 = vmatmul.mubr.bf16.vlgmr.msra.gmra.mrb[156].mxu0 %v21828_v7  ;;  %14642 = vmatprep.subr.bf16.mxu1 %v22032_v32  ;;  %v10305_v33 = vsel %vm10265_vm6, %v10232_v18, %v21604_v6  ;;  %v9080_v45 = vpack.c.bf16 %v17783_v55, %v17783_v55  ;;  %17790 = vtanh.f32 %v8519_v60  ;;  %v8046_v3 = vadd.f32 %v22222_v43, %v22039_v13 }
 0x55a   :  { %11151 = vmatmul.mubr.bf16.vlgmr.msra.gmra.mrb[156].mxu1 %v21836_v35  ;;  %14621 = vmatpush3.bf16.msra.mxu0 %v22055_v16  ;;  %v22370_v7 = vsel %vm10338_vm7, %v10305_v33, %v21657_v9  ;;  %v17785_v23 = vpop.eup %17784  ;;  %17792 = vtanh.f32 %v8003_v12  ;;  %v8089_v60 = vadd.f32 %v22222_v43, %v22047_v50 }
 0x55b   :  { %11190 = vmatprep.mubr.bf16.mxu0 %v22358_v17  ;;  %14643 = vmatpush3.bf16.msra.mxu1 %v22055_v16  ;;  %v9081_v9 = vpack.c.bf16 %v17785_v23, %v17785_v23  ;;  %17794 = vtanh.f32 %v8046_v3 }
 0x55c   :  { %11230 = vmatprep.mubr.bf16.mxu1 %v22370_v7  ;;  %9797 = vrot.lane.b32.xlu1 %v9069_v14, %s17983_s22  ;;  %v22376_v6 = vpop.permute.xlu1 %9732  ;;  %17796 = vtanh.f32 %v8089_v60 }
 0x55d   :  { %9844 = vrot.lane.b32.xlu0 %v9080_v45, %s17986_s19  ;;  %14622 = vmatprep.subr.bf16.mxu0 %v22073_v25  ;;  %v22380_v35 = vpop.permute.xlu0 %9284 }
 0x55e   :  { %14644 = vmatprep.subr.bf16.mxu1 %v22073_v25  ;;  %14623 = vmatpush3.bf16.msra.mxu0 %v22185_v48 }
 0x55f   :  { %14645 = vmatpush3.bf16.msra.mxu1 %v22185_v48  ;;  %14624 = vmatprep.subr.bf16.mxu0 %v22192_v49 }
 0x560   :  { %9815 = vrot.lane.b32.xlu1 %v9080_v45, %s17984_s13  ;;  %v8561_v37 = vpop.f32.mrb[128].mxu0  ;;  %14646 = vmatprep.subr.bf16.mxu1 %v22192_v49  ;;  %v22392_v58 = vpop.permute.xlu1 %9178 }
 0x561   :  { %9857 = vrot.lane.b32.xlu0 %v9081_v9, %s17987_s20  ;;  %v17283_v31 = vpop.f32.mrb[129].mxu0  ;;  %v8604_v61 = vpop.f32.mrb[128].mxu1  ;;  %v8562_v12 = vadd.f32 %v22222_v43, %v8561_v37 }
 0x562   :  { %14625 = vmatpush3.bf16.msra.mxu0 %v22207_v39  ;;  %v8564_v0 = vpop.f32.mrb[130].mxu0  ;;  %v17787_v55 = vpop.eup %17786  ;;  %v8605_v37 = vadd.f32 %v22222_v43, %v8604_v61 }
 0x563   :  { %14647 = vmatpush3.bf16.msra.mxu1 %v22207_v39  ;;  %v17284_v54 = vpop.f32.mrb[131].mxu0  ;;  %v17293_v46 = vpop.f32.mrb[129].mxu1  ;;  %14626 = vmatprep.subr.bf16.mxu0 %v22214_v21  ;;  %v9082_v33 = vpack.c.bf16 %v17787_v55, %v17787_v55  ;;  %17798 = vtanh.f32 %v8562_v12 }
 0x564   :  { %v17789_v30 = vpop.eup %17788  ;;  %v8607_v18 = vpop.f32.mrb[130].mxu1  ;;  %9833 = vrot.lane.b32.xlu1 %v9081_v9, %s17985_s14  ;;  %14648 = vmatprep.subr.bf16.mxu1 %v22214_v21  ;;  %17800 = vtanh.f32 %v8605_v37 }
 0x565   :  { %v22396_v13 = vpop.permute.xlu0 %9362  ;;  %9768 = vrot.lane.b32.xlu0 %v9069_v14, %s17981_s29  ;;  %v17294_v29 = vpop.f32.mrb[131].mxu1  ;;  %v22403_v23 = vpack.c.bf16 %v17789_v30, %v17789_v30 }
 0x566   :  { %14627 = vmatpush3.bf16.msra.mxu0 %v22230_v53  ;;  %v17791_v45 = vpop.eup %17790  ;;  %v22411_v50 = vpop.permute.xlu1 %9286 }
 0x567   :  { %24411 = vst [vmem:[#allocation34_spill] sm:$0xff] %v22403_v23  ;;  %14649 = vmatpush3.bf16.msra.mxu1 %v22230_v53  ;;  %14628 = vmatprep.subr.bf16.mxu0 %v22239_v40  ;;  %v17793_v9 = vpop.eup %17792  ;;  %v9083_v14 = vpack.c.bf16 %v17791_v45, %v17791_v45 }
 0x568   :  { %9846 = vrot.lane.b32.xlu1 %v9082_v33, %s17986_s19  ;;  %14650 = vmatprep.subr.bf16.mxu1 %v22239_v40  ;;  %v9071_v31 = vpack.c.bf16 %v17793_v9, %v17793_v9  ;;  %v17795_v46 = vpop.eup %17794 }
 0x569   :  { %9786 = vrot.lane.b32.xlu0 %v22403_v23, %s17982_s21  ;;  %v22415_v3 = vpop.permute.xlu0 %9470  ;;  %v9072_v37 = vpack.c.bf16 %v17795_v46, %v17795_v46 }
 0x56a   :  { %14629 = vmatpush3.bf16.msra.mxu0 %v22255_v57  ;;  %v22425_v60 = vpop.permute.xlu1 %9364 }
 0x56b   :  { %14651 = vmatpush3.bf16.msra.mxu1 %v22255_v57  ;;  %14630 = vmatprep.subr.bf16.mxu0 %v22262_v2 }
 0x56c   :  { %9859 = vrot.lane.b32.xlu1 %v9083_v14, %s17987_s20  ;;  %v8647_v0 = vpop.f32.mrb[132].mxu0  ;;  %14652 = vmatprep.subr.bf16.mxu1 %v22262_v2 }
 0x56d   :  { %9799 = vrot.lane.b32.xlu0 %v9071_v31, %s17983_s22  ;;  %v17303_v55 = vpop.f32.mrb[133].mxu0  ;;  %v8690_v54 = vpop.f32.mrb[132].mxu1  ;;  %v8648_v45 = vadd.f32 %v22222_v43, %v8647_v0  ;;  %v24413_v0 = vld [vmem:[#allocation39_spill] sm:$0xff] }
 0x56e   :  { %14631 = vmatpush3.bf16.msra.mxu0 %v22277_v34  ;;  %v8650_v61 = vpop.f32.mrb[134].mxu0  ;;  %v17313_v18 = vpop.f32.mrb[133].mxu1  ;;  %v9931_v46 = vsel %vm9865_vm2, %v24413_v0, %v21695_v22  ;;  %v24418_v0 = vld [vmem:[#allocation54_spill] sm:$0xff] }
 0x56f   :  { %14653 = vmatpush3.bf16.msra.mxu1 %v22277_v34  ;;  %v17304_v30 = vpop.f32.mrb[135].mxu0  ;;  %14632 = vmatprep.subr.bf16.mxu0 %v22284_v15  ;;  %v8693_v29 = vpop.f32.mrb[134].mxu1  ;;  %17802 = vtanh.f32 %v8648_v45  ;;  %v8691_v18 = vadd.f32 %v22222_v43, %v8690_v54 }
 0x570   :  { %9770 = vrot.lane.b32.xlu1 %v9071_v31, %s17981_s29  ;;  %14654 = vmatprep.subr.bf16.mxu1 %v22284_v15  ;;  %v22429_v12 = vpop.permute.xlu0 %9578  ;;  %v17314_v9 = vpop.f32.mrb[135].mxu1  ;;  %v24412_v31 = vld [vmem:[#allocation35_spill] sm:$0xff] }
 0x571   :  { %9817 = vrot.lane.b32.xlu0 %v9082_v33, %s17984_s13  ;;  %v17797_v55 = vpop.eup %17796  ;;  %v9928_v30 = vsel %vm9865_vm2, %v24412_v31, %v21595_v20  ;;  %v10018_v20 = vsel %vm9974_vm3, %v9931_v46, %v21716_v27  ;;  %v22452_v9 = vpop.permute.xlu1 %9472  ;;  %17804 = vtanh.f32 %v8691_v18  ;;  %v24416_v31 = vld [vmem:[#allocation55_spill] sm:$0xff] }
 0x572   :  { %14633 = vmatpush3.bf16.msra.mxu0 %v22293_v19  ;;  %v17799_v61 = vpop.eup %17798  ;;  %v10016_v33 = vsel %vm9974_vm3, %v9928_v30, %v21648_v56  ;;  %v10090_v22 = vsel %vm267_vm1, %v10018_v20, %v21730_v28 }
 0x573   :  { %14655 = vmatpush3.bf16.msra.mxu1 %v22293_v19  ;;  %14634 = vmatprep.subr.bf16.mxu0 %v22304_v41  ;;  %v10088_v29 = vsel %vm267_vm1, %v10016_v33, %v21691_v1  ;;  %v17801_v1 = vpop.eup %17800  ;;  %v10163_v45 = vsel %vm10119_vm4, %v10090_v22, %v21744_v4  ;;  %v24417_v4 = vld [vmem:[#allocation49_spill] sm:$0xff] }
 0x574   :  { %9788 = vrot.lane.b32.xlu1 %v9072_v37, %s17982_s21  ;;  %14656 = vmatprep.subr.bf16.mxu1 %v22304_v41  ;;  %v9073_v37 = vpack.c.bf16 %v17797_v55, %v17797_v55  ;;  %v10161_v56 = vsel %vm10119_vm4, %v10088_v29, %v21713_v36  ;;  %v22459_v54 = vpop.permute.xlu0 %9656  ;;  %v24414_v36 = vld [vmem:[#allocation24_spill] sm:$0xff]  ;;  %v24415_v55 = vld [vmem:[#allocation26_spill] sm:$0xff]  ;;  %v9085_v33 = vpack.c.bf16 %v17801_v1, %v17801_v1 }
 0x575   :  { %9835 = vrot.lane.b32.xlu0 %v9083_v14, %s17985_s14  ;;  %v9084_v14 = vpack.c.bf16 %v17799_v61, %v17799_v61  ;;  %v10234_v27 = vsel %vm10192_vm5, %v10161_v56, %v21726_v42  ;;  %v10236_v61 = vsel %vm10192_vm5, %v10163_v45, %v24415_v55  ;;  %v22524_v45 = vld [vmem:[%s24089_s4] ss:$0 sm:$0xff] }
 0x576   :  { %14635 = vmatpush3.bf16.msra.mxu0 %v22331_v38  ;;  %v10307_v28 = vsel %vm10265_vm6, %v10234_v27, %v24414_v36  ;;  %v10309_v42 = vsel %vm10265_vm6, %v10236_v61, %v24416_v31 }
 0x577   :  { %14657 = vmatpush3.bf16.msra.mxu1 %v22331_v38  ;;  %14664 = vmatprep.subr.bf16.mxu0 %v22032_v32  ;;  %v22481_v30 = vsel %vm10338_vm7, %v10307_v28, %v24417_v4  ;;  %v22487_v46 = vsel %vm10338_vm7, %v10309_v42, %v24418_v0  ;;  %v24420_v0 = vld [vmem:[#allocation52_spill] sm:$0xff] }
 0x578   :  { %9801 = vrot.lane.b32.xlu1 %v9073_v37, %s17983_s22  ;;  %14686 = vmatprep.subr.bf16.mxu1 %v22032_v32 }
 0x579   :  { %9848 = vrot.lane.b32.xlu0 %v9084_v14, %s17986_s19  ;;  %11191 = vmatmul.mubr.bf16.vlgmr.msra.gmra.mrb[160].mxu0 %v21964_v59  ;;  %v22489_v59 = vpop.permute.xlu1 %9580  ;;  %v17803_v18 = vpop.eup %17802 }
 0x57a   :  { %11231 = vmatmul.mubr.bf16.vlgmr.msra.gmra.mrb[160].mxu1 %v21970_v63  ;;  %14665 = vmatpush3.bf16.msra.mxu0 %v22055_v16  ;;  %v22493_v63 = vpop.permute.xlu0 %9734  ;;  %v9086_v20 = vpack.c.bf16 %v17803_v18, %v17803_v18  ;;  %v24421_v18 = vld [vmem:[#allocation44_spill] sm:$0xff] }
 0x57b   :  { %11270 = vmatprep.mubr.bf16.mxu0 %v22481_v30  ;;  %14687 = vmatpush3.bf16.msra.mxu1 %v22055_v16  ;;  %v17805_v37 = vpop.eup %17804 }
 0x57c   :  { %11310 = vmatprep.mubr.bf16.mxu1 %v22487_v46  ;;  %9819 = vrot.lane.b32.xlu1 %v9084_v14, %s17984_s13  ;;  %v9087_v56 = vpack.c.bf16 %v17805_v37, %v17805_v37  ;;  %v24422_v37 = vld [vmem:[#allocation57_spill] sm:$0xff] }
 0x57d   :  { %9861 = vrot.lane.b32.xlu0 %v9085_v33, %s17987_s20  ;;  %14666 = vmatprep.subr.bf16.mxu0 %v22073_v25  ;;  %v22503_v29 = vpop.permute.xlu1 %9658 }
 0x57e   :  { %14688 = vmatprep.subr.bf16.mxu1 %v22073_v25  ;;  %14667 = vmatpush3.bf16.msra.mxu0 %v22185_v48 }
 0x57f   :  { %14689 = vmatpush3.bf16.msra.mxu1 %v22185_v48  ;;  %14668 = vmatprep.subr.bf16.mxu0 %v22192_v49 }
 0x580   :  { %9837 = vrot.lane.b32.xlu1 %v9085_v33, %s17985_s14  ;;  %14690 = vmatprep.subr.bf16.mxu1 %v22192_v49 }
 0x581   :  { %v22513_v22 = vpop.permute.xlu1 %9736 }
 0x582   :  { %14669 = vmatpush3.bf16.msra.mxu0 %v22207_v39 }
 0x583   :  { %14691 = vmatpush3.bf16.msra.mxu1 %v22207_v39  ;;  %14670 = vmatprep.subr.bf16.mxu0 %v22214_v21 }
 0x584   :  { %9850 = vrot.lane.b32.xlu1 %v9086_v20, %s17986_s19  ;;  %14692 = vmatprep.subr.bf16.mxu1 %v22214_v21  ;;  %v9934_v20 = vsel %vm9865_vm2, %v24421_v18, %v24420_v0 }
 0x586   :  { %14671 = vmatpush3.bf16.msra.mxu0 %v22230_v53 }
 0x587   :  { %14693 = vmatpush3.bf16.msra.mxu1 %v22230_v53  ;;  %14672 = vmatprep.subr.bf16.mxu0 %v22239_v40 }
 0x588   :  { %9863 = vrot.lane.b32.xlu1 %v9087_v56, %s17987_s20  ;;  %14694 = vmatprep.subr.bf16.mxu1 %v22239_v40  ;;  %v10020_v56 = vsel %vm9974_vm3, %v9934_v20, %v24422_v37  ;;  %v22565_v37 = vpop.permute.xlu0 %9180 }
 0x58a   :  { %14673 = vmatpush3.bf16.msra.mxu0 %v22255_v57 }
 0x58b   :  { %14695 = vmatpush3.bf16.msra.mxu1 %v22255_v57  ;;  %14674 = vmatprep.subr.bf16.mxu0 %v22262_v2 }
 0x58c   :  { %v14372_v14 = vpop.f32.mrb[136].mxu0  ;;  %14696 = vmatprep.subr.bf16.mxu1 %v22262_v2 }
 0x58d   :  { %v14394_v1 = vpop.f32.mrb[136].mxu1  ;;  %v14373_v27 = vpop.f32.mrb[137].mxu0 }
 0x58e   :  { %v22526_v36 = vadd.f32 %v14373_v27, %v14372_v14  ;;  %v14395_v28 = vpop.f32.mrb[137].mxu1  ;;  %v14375_v55 = vpop.f32.mrb[138].mxu0  ;;  %14675 = vmatpush3.bf16.msra.mxu0 %v22277_v34  ;;  %v24423_v14 = vld [vmem:[#allocation14_spill] sm:$0xff] }
 0x58f   :  { %v14396_v61 = vadd.f32 %v14395_v28, %v14394_v1  ;;  %v14397_v31 = vpop.f32.mrb[138].mxu1  ;;  %14697 = vmatpush3.bf16.msra.mxu1 %v22277_v34  ;;  %v14376_v42 = vpop.f32.mrb[139].mxu0  ;;  %14676 = vmatprep.subr.bf16.mxu0 %v22284_v15  ;;  %v24424_v1 = vld [vmem:[#allocation51_spill] sm:$0xff]  ;;  %v24425_v28 = vld [vmem:[#allocation5_spill] sm:$0xff] }
 0x590   :  { %24419 = vst [vmem:[#allocation73_spill] sm:$0xff] %v22526_v36  ;;  %v14398_v4 = vpop.f32.mrb[139].mxu1  ;;  %14698 = vmatprep.subr.bf16.mxu1 %v22284_v15  ;;  %v9937_v27 = vsel %vm9865_vm2, %v24424_v1, %v24423_v14  ;;  %v10092_v55 = vsel %vm267_vm1, %v10020_v56, %v24425_v28 }
 0x591   :  { %v10753_v33 = vadd.f32 %v14396_v61, %v22524_v45  ;;  %v24426_v61 = vld [vmem:[#allocation17_spill] sm:$0xff]  ;;  %v10165_v42 = vsel %vm10119_vm4, %v10092_v55, %v22076_v5  ;;  %v24427_v4 = vld [vmem:[#allocation19_spill] sm:$0xff] }
 0x592   :  { %14677 = vmatpush3.bf16.msra.mxu0 %v22293_v19  ;;  %v10022_v31 = vsel %vm9974_vm3, %v9937_v27, %v24426_v61  ;;  %v10238_v0 = vsel %vm10192_vm5, %v10165_v42, %v22085_v11  ;;  %v24428_v11 = vld [vmem:[#allocation16_spill] sm:$0xff] }
 0x593   :  { %17806 = vtanh.f32 %v10753_v33  ;;  %14699 = vmatpush3.bf16.msra.mxu1 %v22293_v19  ;;  %14678 = vmatprep.subr.bf16.mxu0 %v22304_v41  ;;  %v10094_v33 = vsel %vm267_vm1, %v10022_v31, %v24427_v4  ;;  %v10311_v20 = vsel %vm10265_vm6, %v10238_v0, %v22096_v24 }
 0x594   :  { %14700 = vmatprep.subr.bf16.mxu1 %v22304_v41  ;;  %v10167_v18 = vsel %vm10119_vm4, %v10094_v33, %v22089_v10  ;;  %v24430_v10 = vld [vmem:[#allocation18_spill] sm:$0xff] }
 0x595   :  { %v10240_v5 = vsel %vm10192_vm5, %v10167_v18, %v22101_v8  ;;  %v22586_v8 = vpop.permute.xlu0 %9288 }
 0x596   :  { %14679 = vmatpush3.bf16.msra.mxu0 %v22331_v38  ;;  %v10313_v56 = vsel %vm10265_vm6, %v10240_v5, %v22111_v51  ;;  %v24432_v51 = vld [vmem:[#allocation58_spill] sm:$0xff] }
 0x597   :  { %14701 = vmatpush3.bf16.msra.mxu1 %v22331_v38  ;;  %14708 = vmatprep.subr.bf16.mxu0 %v22032_v32  ;;  %v22580_v24 = vsel %vm10338_vm7, %v10313_v56, %v24430_v10  ;;  %v5122_v14 = vadd.f32 %v22222_v43, %v24432_v51 }
 0x598   :  { %14730 = vmatprep.subr.bf16.mxu1 %v22032_v32  ;;  %v22574_v32 = vsel %vm10338_vm7, %v10311_v20, %v24428_v11  ;;  %24431 = vst [vmem:[#allocation36_spill] sm:$0xff] %v22580_v24 }
 0x599   :  { %11271 = vmatmul.mubr.bf16.vlgmr.msra.gmra.mrb[164].mxu0 %v22060_v26  ;;  %24429 = vst [vmem:[#allocation70_spill] sm:$0xff] %v22574_v32  ;;  %17808 = vtanh.f32 %v5122_v14 }
 0x59a   :  { %11311 = vmatmul.mubr.bf16.vlgmr.msra.gmra.mrb[164].mxu1 %v22066_v47  ;;  %14709 = vmatpush3.bf16.msra.mxu0 %v22055_v16 }
 0x59b   :  { %11350 = vmatprep.mubr.bf16.mxu0 %v22574_v32  ;;  %14731 = vmatpush3.bf16.msra.mxu1 %v22055_v16  ;;  %v22590_v16 = vpop.permute.xlu1 %9182 }
 0x59c   :  { %11390 = vmatprep.mubr.bf16.mxu1 %v22580_v24  ;;  %14710 = vmatprep.subr.bf16.mxu0 %v22073_v25 }
 0x59d   :  { %v17807_v26 = vpop.eup %17806  ;;  %14732 = vmatprep.subr.bf16.mxu1 %v22073_v25  ;;  %v22600_v25 = vpop.permute.xlu0 %9366 }
 0x59e   :  { %v12155_v47 = vpack.c.bf16 %v17807_v26, %v17807_v26  ;;  %14711 = vmatpush3.bf16.msra.mxu0 %v22185_v48 }
 0x59f   :  { %14733 = vmatpush3.bf16.msra.mxu1 %v22185_v48  ;;  %14712 = vmatprep.subr.bf16.mxu0 %v22192_v49  ;;  %v22602_v1 = vpop.permute.xlu1 %9290 }
 0x5a0   :  { %12194 = vrot.lane.b32.xlu1 %v12155_v47, %s17982_s21  ;;  %14734 = vmatprep.subr.bf16.mxu1 %v22192_v49  ;;  %v24433_v47 = vld [vmem:[#allocation22_spill] sm:$0xff] }
 0x5a1   :  { %v22609_v43 = vpop.permute.xlu0 %9474 }
 0x5a2   :  { %14713 = vmatpush3.bf16.msra.mxu0 %v22207_v39 }
 0x5a3   :  { %14735 = vmatpush3.bf16.msra.mxu1 %v22207_v39  ;;  %14714 = vmatprep.subr.bf16.mxu0 %v22214_v21  ;;  %v22613_v27 = vpop.permute.xlu1 %9368  ;;  %v17809_v33 = vpop.eup %17808 }
 0x5a4   :  { %14736 = vmatprep.subr.bf16.mxu1 %v22214_v21  ;;  %v9004_v26 = vpack.c.bf16 %v17809_v33, %v17809_v33 }
 0x5a5   :  { %v22621_v11 = vpop.permute.xlu0 %9582 }
 0x5a6   :  { %14715 = vmatpush3.bf16.msra.mxu0 %v22230_v53  ;;  %v9940_v51 = vsel %vm9865_vm2, %v9004_v26, %v24433_v47  ;;  %v22652_v47 = vld [vmem:[%s24088_s3 + $0x40] sm:$0xff]  }
 0x5a7   :  { %14737 = vmatpush3.bf16.msra.mxu1 %v22230_v53  ;;  %14716 = vmatprep.subr.bf16.mxu0 %v22239_v40  ;;  %v22629_v14 = vpop.permute.xlu1 %9476 }
 0x5a8   :  { %14738 = vmatprep.subr.bf16.mxu1 %v22239_v40 }
 0x5a9   :  { %v22646_v26 = vpop.permute.xlu0 %9660 }
 0x5aa   :  { %14717 = vmatpush3.bf16.msra.mxu0 %v22255_v57 }
 0x5ab   :  { %14739 = vmatpush3.bf16.msra.mxu1 %v22255_v57  ;;  %14718 = vmatprep.subr.bf16.mxu0 %v22262_v2 }
 0x5ac   :  { %v14416_v28 = vpop.f32.mrb[140].mxu0  ;;  %14740 = vmatprep.subr.bf16.mxu1 %v22262_v2 }
 0x5ad   :  { %v14438_v55 = vpop.f32.mrb[140].mxu1  ;;  %v14417_v61 = vpop.f32.mrb[141].mxu0 }
 0x5ae   :  { %v14418_v31 = vadd.f32 %v14417_v61, %v14416_v28  ;;  %v14439_v42 = vpop.f32.mrb[141].mxu1  ;;  %v14419_v4 = vpop.f32.mrb[142].mxu0  ;;  %14719 = vmatpush3.bf16.msra.mxu0 %v22277_v34  ;;  %v24434_v28 = vld [vmem:[#allocation28_spill] sm:$0xff] }
 0x5af   :  { %v14440_v0 = vadd.f32 %v14439_v42, %v14438_v55  ;;  %v14441_v18 = vpop.f32.mrb[142].mxu1  ;;  %14741 = vmatpush3.bf16.msra.mxu1 %v22277_v34  ;;  %v14420_v20 = vpop.f32.mrb[143].mxu0  ;;  %14720 = vmatprep.subr.bf16.mxu0 %v22284_v15  ;;  %v24435_v55 = vld [vmem:[#allocation64_spill] sm:$0xff]  ;;  %v24437_v4 = vld [vmem:[#allocation27_spill] sm:$0xff] }
 0x5b0   :  { %v10793_v5 = vadd.f32 %v14418_v31, %v22524_v45  ;;  %v14442_v56 = vpop.f32.mrb[143].mxu1  ;;  %14742 = vmatprep.subr.bf16.mxu1 %v22284_v15  ;;  %v9943_v61 = vsel %vm9865_vm2, %v24435_v55, %v24434_v28  ;;  %v24436_v31 = vld [vmem:[#allocation25_spill] sm:$0xff]  ;;  %v24442_v55 = vld [vmem:[#allocation42_spill] sm:$0xff] }
 0x5b1   :  { %v10833_v10 = vadd.f32 %v14440_v0, %v22524_v45  ;;  %v10024_v42 = vsel %vm9974_vm3, %v9940_v51, %v24436_v31  ;;  %v24438_v0 = vld [vmem:[#allocation38_spill] sm:$0xff]  ;;  %v24439_v20 = vld [vmem:[#allocation41_spill] sm:$0xff]  ;;  %v24441_v51 = vld [vmem:[#allocation31_spill] sm:$0xff] }
 0x5b2   :  { %17810 = vtanh.f32 %v10793_v5  ;;  %14721 = vmatpush3.bf16.msra.mxu0 %v22293_v19  ;;  %v10096_v33 = vsel %vm267_vm1, %v10024_v42, %v24437_v4  ;;  %v10026_v18 = vsel %vm9974_vm3, %v9943_v61, %v24438_v0  ;;  %v24440_v56 = vld [vmem:[#allocation9_spill] sm:$0xff]  ;;  %v24443_v31 = vld [vmem:[#allocation46_spill] sm:$0xff]  ;;  %v24444_v4 = vld [vmem:[#allocation47_spill] sm:$0xff] }
 0x5b3   :  { %14743 = vmatpush3.bf16.msra.mxu1 %v22293_v19  ;;  %14722 = vmatprep.subr.bf16.mxu0 %v22304_v41  ;;  %17812 = vtanh.f32 %v10833_v10  ;;  %v10098_v5 = vsel %vm267_vm1, %v10026_v18, %v24439_v20  ;;  %v10169_v10 = vsel %vm10119_vm4, %v10096_v33, %v24440_v56  ;;  %v24445_v0 = vld [vmem:[#allocation37_spill] sm:$0xff]  ;;  %v22667_v20 = vpop.permute.xlu1 %9584  ;;  %v24446_v56 = vld [vmem:[#allocation8_spill] sm:$0xff] }
 0x5b4   :  { %14744 = vmatprep.subr.bf16.mxu1 %v22304_v41  ;;  %v10242_v28 = vsel %vm10192_vm5, %v10169_v10, %v24441_v51  ;;  %v10171_v61 = vsel %vm10119_vm4, %v10098_v5, %v24442_v55  ;;  %v22673_v5 = vld [vmem:[%s24088_s3] sm:$0xff]   ;;  %v22690_v55 = vld [vmem:[%s24088_s3 + $0x48] sm:$0xff]  }
 0x5b5   :  { %v10315_v42 = vsel %vm10265_vm6, %v10242_v28, %v24443_v31  ;;  %v10244_v33 = vsel %vm10192_vm5, %v10171_v61, %v24444_v4  ;;  %v24447_v10 = vld [vmem:[#allocation32_spill] sm:$0xff]  ;;  %v22693_v61 = vpop.permute.xlu0 %9738 }
 0x5b6   :  { %14723 = vmatpush3.bf16.msra.mxu0 %v22331_v38  ;;  %v10317_v18 = vsel %vm10265_vm6, %v10244_v33, %v22344_v44  ;;  %v22678_v51 = vsel %vm10338_vm7, %v10315_v42, %v24447_v10 }
 0x5b7   :  { %14745 = vmatpush3.bf16.msra.mxu1 %v22331_v38  ;;  %14752 = vmatprep.subr.bf16.mxu0 %v22652_v47  ;;  %24448 = vst [vmem:[#allocation75_spill] sm:$0xff] %v22678_v51  ;;  %v22684_v44 = vsel %vm10338_vm7, %v10317_v18, %v22376_v6  ;;  %v22702_v6 = vpop.permute.xlu1 %9662 }
 0x5b8   :  { %14774 = vmatprep.subr.bf16.mxu1 %v22652_v47  ;;  %24449 = vst [vmem:[#allocation71_spill] sm:$0xff] %v22684_v44 }
 0x5b9   :  { %11351 = vmatmul.mubr.bf16.vlgmr.msra.gmra.mrb[168].mxu0 %v24445_v0  ;;  %v22706_v4 = vpop.permute.xlu0 %9184 }
 0x5ba   :  { %11391 = vmatmul.mubr.bf16.vlgmr.msra.gmra.mrb[168].mxu1 %v24446_v56  ;;  %14753 = vmatpush3.bf16.msra.mxu0 %v22673_v5 }
 0x5bb   :  { %11430 = vmatprep.mubr.bf16.mxu0 %v22678_v51  ;;  %14775 = vmatpush3.bf16.msra.mxu1 %v22673_v5  ;;  %v22718_v18 = vpop.permute.xlu1 %9740 }
 0x5bc   :  { %v17811_v28 = vpop.eup %17810  ;;  %11470 = vmatprep.mubr.bf16.mxu1 %v22684_v44  ;;  %14754 = vmatprep.subr.bf16.mxu0 %v22690_v55 }
 0x5bd   :  { %v22695_v31 = vpack.c.bf16 %v17811_v28, %v17811_v28  ;;  %14776 = vmatprep.subr.bf16.mxu1 %v22690_v55  ;;  %v17813_v42 = vpop.eup %17812  ;;  %v22716_v0 = vpop.permute.xlu0 %9292 }
 0x5be   :  { %14755 = vmatpush3.bf16.msra.mxu0 %v22185_v48  ;;  %v22708_v33 = vpack.c.bf16 %v17813_v42, %v17813_v42 }
 0x5bf   :  { %24450 = vst [vmem:[#allocation72_spill] sm:$0xff] %v22695_v31  ;;  %14777 = vmatpush3.bf16.msra.mxu1 %v22185_v48  ;;  %12206 = vrot.lane.b32.xlu1 %v22695_v31, %s17984_s13  ;;  %v22724_v56 = vpop.permute.xlu1 %9186 }
 0x5c0   :  { %14756 = vmatprep.subr.bf16.mxu0 %v22192_v49  ;;  %14778 = vmatprep.subr.bf16.mxu1 %v22192_v49  ;;  %24451 = vst [vmem:[#allocation77_spill] sm:$0xff] %v22708_v33 }
 0x5c1   :  { %v22727_v10 = vpop.permute.xlu0 %9370 }
 0x5c2   :  { %14757 = vmatpush3.bf16.msra.mxu0 %v22207_v39  ;;  %24452 = vst [vmem:[#allocation74_spill] sm:$0xff] %v22727_v10 }
 0x5c3   :  { %14779 = vmatpush3.bf16.msra.mxu1 %v22207_v39  ;;  %12216 = vrot.lane.b32.xlu1 %v22708_v33, %s17986_s19  ;;  %v22732_v36 = vpop.permute.xlu1 %9294 }
 0x5c4   :  { %14758 = vmatprep.subr.bf16.mxu0 %v22214_v21  ;;  %14780 = vmatprep.subr.bf16.mxu1 %v22214_v21 }
 0x5c5   :  { %v22737_v33 = vpop.permute.xlu0 %9478 }
 0x5c6   :  { %14759 = vmatpush3.bf16.msra.mxu0 %v22230_v53 }
 0x5c7   :  { %14781 = vmatpush3.bf16.msra.mxu1 %v22230_v53  ;;  %14760 = vmatprep.subr.bf16.mxu0 %v22239_v40 }
 0x5c8   :  { %14782 = vmatprep.subr.bf16.mxu1 %v22239_v40 }
 0x5ca   :  { %14761 = vmatpush3.bf16.msra.mxu0 %v22255_v57 }
 0x5cb   :  { %14783 = vmatpush3.bf16.msra.mxu1 %v22255_v57  ;;  %14762 = vmatprep.subr.bf16.mxu0 %v22262_v2 }
 0x5cc   :  { %v14460_v28 = vpop.f32.mrb[144].mxu0  ;;  %14784 = vmatprep.subr.bf16.mxu1 %v22262_v2 }
 0x5cd   :  { %v14482_v42 = vpop.f32.mrb[144].mxu1  ;;  %v14461_v31 = vpop.f32.mrb[145].mxu0 }
 0x5ce   :  { %v22734_v23 = vadd.f32 %v14461_v31, %v14460_v28  ;;  %v14483_v62 = vpop.f32.mrb[145].mxu1  ;;  %14763 = vmatpush3.bf16.msra.mxu0 %v22277_v34  ;;  %v14463_v24 = vpop.f32.mrb[146].mxu0  ;;  %v24454_v31 = vld [vmem:[#allocation68_spill] sm:$0xff] }
 0x5cf   :  { %v22739_v44 = vadd.f32 %v14483_v62, %v14482_v42  ;;  %v14485_v51 = vpop.f32.mrb[146].mxu1  ;;  %14785 = vmatpush3.bf16.msra.mxu1 %v22277_v34  ;;  %14764 = vmatprep.subr.bf16.mxu0 %v22284_v15  ;;  %v14464_v10 = vpop.f32.mrb[147].mxu0  ;;  %v9946_v62 = vsel %vm9865_vm2, %v24454_v31, %v22351_v52  ;;  %v24455_v24 = vld [vmem:[#allocation86_spill] sm:$0xff] }
 0x5d0   :  { %v14486_v32 = vpop.f32.mrb[147].mxu1  ;;  %14786 = vmatprep.subr.bf16.mxu1 %v22284_v15  ;;  %v22750_v51 = vpop.permute.xlu1 %9372  ;;  %v9949_v10 = vsel %vm9865_vm2, %v24455_v24, %v22392_v58 }
 0x5d1   :  { %24453 = vst [vmem:[#allocation11_spill] sm:$0xff] %v22739_v44  ;;  %v10028_v32 = vsel %vm9974_vm3, %v9946_v62, %v22380_v35  ;;  %v10030_v42 = vsel %vm9974_vm3, %v9949_v10, %v22411_v50  ;;  %v22762_v44 = vpop.permute.xlu0 %9586 }
 0x5d2   :  { %14765 = vmatpush3.bf16.msra.mxu0 %v22293_v19  ;;  %v10100_v28 = vsel %vm267_vm1, %v10028_v32, %v22396_v13  ;;  %v10102_v35 = vsel %vm267_vm1, %v10030_v42, %v22425_v60 }
 0x5d3   :  { %14787 = vmatpush3.bf16.msra.mxu1 %v22293_v19  ;;  %14766 = vmatprep.subr.bf16.mxu0 %v22304_v41  ;;  %v10173_v52 = vsel %vm10119_vm4, %v10100_v28, %v22415_v3  ;;  %v10175_v13 = vsel %vm10119_vm4, %v10102_v35, %v22452_v9  ;;  %v24457_v35 = vld [vmem:[#allocation98_spill] sm:$0xff] }
 0x5d4   :  { %14788 = vmatprep.subr.bf16.mxu1 %v22304_v41  ;;  %v10246_v58 = vsel %vm10192_vm5, %v10173_v52, %v22429_v12  ;;  %v22775_v50 = vpop.permute.xlu1 %9480  ;;  %v10248_v60 = vsel %vm10192_vm5, %v10175_v13, %v22489_v59 }
 0x5d5   :  { %v10319_v3 = vsel %vm10265_vm6, %v10246_v58, %v22459_v54  ;;  %v10321_v31 = vsel %vm10265_vm6, %v10248_v60, %v22503_v29  ;;  %v22785_v62 = vpop.permute.xlu0 %9664  ;;  %v9955_v58 = vsel %vm9865_vm2, %v24457_v35, %v22590_v16 }
 0x5d6   :  { %14767 = vmatpush3.bf16.msra.mxu0 %v22331_v38  ;;  %v22791_v12 = vsel %vm10338_vm7, %v10319_v3, %v22493_v63  ;;  %v10034_v13 = vsel %vm9974_vm3, %v9955_v58, %v22602_v1  ;;  %v24458_v3 = vld [vmem:[#allocation105_spill] sm:$0xff] }
 0x5d7   :  { %14789 = vmatpush3.bf16.msra.mxu1 %v22331_v38  ;;  %14796 = vmatprep.subr.bf16.mxu0 %v22652_v47 }
 0x5d8   :  { %14818 = vmatprep.subr.bf16.mxu1 %v22652_v47 }
 0x5d9   :  { %11431 = vmatmul.mubr.bf16.vlgmr.msra.gmra.mrb[172].mxu0 %v22358_v17  ;;  %v22797_v17 = vsel %vm10338_vm7, %v10321_v31, %v22513_v22  ;;  %v22807_v9 = vpop.permute.xlu0 %9742  ;;  %v22926_v31 = vld [vmem:[%s24088_s3 + $0x10] sm:$0xff]  }
 0x5da   :  { %11471 = vmatmul.mubr.bf16.vlgmr.msra.gmra.mrb[172].mxu1 %v22370_v7  ;;  %14797 = vmatpush3.bf16.msra.mxu0 %v22673_v5  ;;  %v22802_v7 = vpop.permute.xlu1 %9588 }
 0x5db   :  { %11510 = vmatprep.mubr.bf16.mxu0 %v22791_v12  ;;  %14819 = vmatpush3.bf16.msra.mxu1 %v22673_v5 }
 0x5dc   :  { %11550 = vmatprep.mubr.bf16.mxu1 %v22797_v17  ;;  %14798 = vmatprep.subr.bf16.mxu0 %v22690_v55 }
 0x5dd   :  { %14820 = vmatprep.subr.bf16.mxu1 %v22690_v55  ;;  %v22816_v59 = vpop.permute.xlu0 %9188 }
 0x5de   :  { %14799 = vmatpush3.bf16.msra.mxu0 %v22185_v48  ;;  %v22810_v54 = vpop.permute.xlu1 %9666 }
 0x5df   :  { %14821 = vmatpush3.bf16.msra.mxu1 %v22185_v48  ;;  %14800 = vmatprep.subr.bf16.mxu0 %v22192_v49 }
 0x5e0   :  { %14822 = vmatprep.subr.bf16.mxu1 %v22192_v49 }
 0x5e1   :  { %v22827_v49 = vpop.permute.xlu0 %9296 }
 0x5e2   :  { %14801 = vmatpush3.bf16.msra.mxu0 %v22207_v39  ;;  %v22821_v48 = vpop.permute.xlu1 %9744 }
 0x5e3   :  { %14823 = vmatpush3.bf16.msra.mxu1 %v22207_v39  ;;  %14802 = vmatprep.subr.bf16.mxu0 %v22214_v21 }
 0x5e4   :  { %14824 = vmatprep.subr.bf16.mxu1 %v22214_v21 }
 0x5e5   :  { %v22840_v28 = vpop.permute.xlu0 %9374 }
 0x5e6   :  { %14803 = vmatpush3.bf16.msra.mxu0 %v22230_v53 }
 0x5e7   :  { %14825 = vmatpush3.bf16.msra.mxu1 %v22230_v53  ;;  %14804 = vmatprep.subr.bf16.mxu0 %v22239_v40  ;;  %v22830_v53 = vpop.permute.xlu1 %9190 }
 0x5e8   :  { %14826 = vmatprep.subr.bf16.mxu1 %v22239_v40 }
 0x5ea   :  { %14805 = vmatpush3.bf16.msra.mxu0 %v22255_v57 }
 0x5eb   :  { %14827 = vmatpush3.bf16.msra.mxu1 %v22255_v57  ;;  %14806 = vmatprep.subr.bf16.mxu0 %v22262_v2  ;;  %v22847_v52 = vpop.permute.xlu1 %9298 }
 0x5ec   :  { %v14504_v39 = vpop.f32.mrb[148].mxu0  ;;  %14828 = vmatprep.subr.bf16.mxu1 %v22262_v2 }
 0x5ed   :  { %v14526_v21 = vpop.f32.mrb[148].mxu1  ;;  %v14505_v63 = vpop.f32.mrb[149].mxu0 }
 0x5ee   :  { %v22832_v29 = vadd.f32 %v14505_v63, %v14504_v39  ;;  %v14527_v22 = vpop.f32.mrb[149].mxu1  ;;  %14807 = vmatpush3.bf16.msra.mxu0 %v22277_v34  ;;  %v14507_v57 = vpop.f32.mrb[150].mxu0  ;;  %v22933_v39 = vld [vmem:[%s24088_s3 + $0x58] sm:$0xff]  }
 0x5ef   :  { %v14528_v40 = vadd.f32 %v14527_v22, %v14526_v21  ;;  %v14529_v32 = vpop.f32.mrb[150].mxu1  ;;  %14829 = vmatpush3.bf16.msra.mxu1 %v22277_v34  ;;  %14808 = vmatprep.subr.bf16.mxu0 %v22284_v15  ;;  %v14508_v10 = vpop.f32.mrb[151].mxu0  ;;  %v24456_v34 = vld [vmem:[#allocation91_spill] sm:$0xff] }
 0x5f0   :  { %v14530_v24 = vpop.f32.mrb[151].mxu1  ;;  %14830 = vmatprep.subr.bf16.mxu1 %v22284_v15  ;;  %v9952_v42 = vsel %vm9865_vm2, %v24456_v34, %v22565_v37  ;;  %v22944_v22 = vld [vmem:[%s24088_s3 + $0x18] sm:$0xff]   ;;  %v22958_v32 = vld [vmem:[%s24088_s3 + $0x20] sm:$0xff]  }
 0x5f1   :  { %v10993_v2 = vadd.f32 %v14528_v40, %v22524_v45  ;;  %v10032_v15 = vsel %vm9974_vm3, %v9952_v42, %v22586_v8  ;;  %v22951_v40 = vld [vmem:[%s24088_s3 + $0x60] sm:$0xff]   ;;  %v22967_v24 = vld [vmem:[%s24088_s3 + $0x68] sm:$0xff]  }
 0x5f2   :  { %14809 = vmatpush3.bf16.msra.mxu0 %v22293_v19 }
 0x5f3   :  { %17814 = vtanh.f32 %v10993_v2  ;;  %14831 = vmatpush3.bf16.msra.mxu1 %v22293_v19  ;;  %14810 = vmatprep.subr.bf16.mxu0 %v22304_v41  ;;  %v10104_v19 = vsel %vm267_vm1, %v10032_v15, %v22600_v25 }
 0x5f4   :  { %14832 = vmatprep.subr.bf16.mxu1 %v22304_v41  ;;  %v10177_v37 = vsel %vm10119_vm4, %v10104_v19, %v22609_v43  ;;  %v10106_v41 = vsel %vm267_vm1, %v10034_v13, %v22613_v27  ;;  %v22875_v43 = vpop.permute.xlu0 %9482  ;;  %v22880_v27 = vpop.permute.xlu1 %9376  ;;  %v22976_v19 = vld [vmem:[%s24088_s3 + $0x28] sm:$0xff]  }
 0x5f5   :  { %v10250_v8 = vsel %vm10192_vm5, %v10177_v37, %v22621_v11  ;;  %v10179_v16 = vsel %vm10119_vm4, %v10106_v41, %v22629_v14 }
 0x5f6   :  { %14811 = vmatpush3.bf16.msra.mxu0 %v22331_v38  ;;  %v10323_v25 = vsel %vm10265_vm6, %v10250_v8, %v22646_v26  ;;  %v10252_v1 = vsel %vm10192_vm5, %v10179_v16, %v22667_v20  ;;  %v22900_v26 = vld [vmem:[%s24088_s3 + $0x8] sm:$0xff]   ;;  %v22983_v16 = vld [vmem:[%s24088_s3 + $0x70] sm:$0xff]  }
 0x5f7   :  { %14833 = vmatpush3.bf16.msra.mxu1 %v22331_v38  ;;  %14840 = vmatprep.subr.bf16.mxu0 %v22652_v47  ;;  %v10325_v38 = vsel %vm10265_vm6, %v10252_v1, %v22702_v6  ;;  %v22886_v11 = vsel %vm10338_vm7, %v10323_v25, %v22693_v61  ;;  %v22909_v61 = vld [vmem:[%s24088_s3 + $0x50] sm:$0xff]  }
 0x5f8   :  { %14862 = vmatprep.subr.bf16.mxu1 %v22652_v47  ;;  %v22903_v20 = vpop.permute.xlu0 %9590  ;;  %v22912_v6 = vpop.permute.xlu1 %9484 }
 0x5f9   :  { %11511 = vmatmul.mubr.bf16.vlgmr.msra.gmra.mrb[176].mxu0 %v22481_v30  ;;  %v22892_v30 = vsel %vm10338_vm7, %v10325_v38, %v22718_v18  ;;  %v22919_v18 = vld [vmem:[%s24087_s2] ss:$0 sm:$0xff] }
 0x5fa   :  { %11551 = vmatmul.mubr.bf16.vlgmr.msra.gmra.mrb[176].mxu1 %v22487_v46  ;;  %14841 = vmatpush3.bf16.msra.mxu0 %v22673_v5  ;;  %v6326_v60 = vadd.f32 %v22919_v18, %v24458_v3 }
 0x5fb   :  { %11590 = vmatprep.mubr.bf16.mxu0 %v22886_v11  ;;  %14863 = vmatpush3.bf16.msra.mxu1 %v22673_v5 }
 0x5fc   :  { %11630 = vmatprep.mubr.bf16.mxu1 %v22892_v30  ;;  %14842 = vmatprep.subr.bf16.mxu0 %v22690_v55  ;;  %17816 = vtanh.f32 %v6326_v60  ;;  %v22937_v21 = vpop.permute.xlu0 %9668  ;;  %v22939_v63 = vpop.permute.xlu1 %9592  ;;  %v23001_v60 = vld [vmem:[%s24088_s3 + $0x78] sm:$0xff]  }
 0x5fd   :  { %v17815_v14 = vpop.eup %17814  ;;  %14864 = vmatprep.subr.bf16.mxu1 %v22690_v55 }
 0x5fe   :  { %v12161_v46 = vpack.c.bf16 %v17815_v14, %v17815_v14  ;;  %14843 = vmatpush3.bf16.msra.mxu0 %v22900_v26 }
 0x5ff   :  { %14865 = vmatpush3.bf16.msra.mxu1 %v22900_v26  ;;  %14844 = vmatprep.subr.bf16.mxu0 %v22909_v61 }
 0x600   :  { %12228 = vrot.lane.b32.xlu0 %v12161_v46, %s17982_s21  ;;  %14866 = vmatprep.subr.bf16.mxu1 %v22909_v61  ;;  %v22961_v57 = vpop.permute.xlu0 %9746  ;;  %v22970_v2 = vpop.permute.xlu1 %9670  ;;  %v22992_v46 = vld [vmem:[%s24088_s3 + $0x30] sm:$0xff]  }
 0x602   :  { %14845 = vmatpush3.bf16.msra.mxu0 %v22926_v31 }
 0x603   :  { %14867 = vmatpush3.bf16.msra.mxu1 %v22926_v31  ;;  %14846 = vmatprep.subr.bf16.mxu0 %v22933_v39 }
 0x604   :  { %14868 = vmatprep.subr.bf16.mxu1 %v22933_v39  ;;  %v22995_v3 = vpop.permute.xlu1 %9748 }
 0x606   :  { %14847 = vmatpush3.bf16.msra.mxu0 %v22944_v22  ;;  %v17817_v13 = vpop.eup %17816 }
 0x607   :  { %14869 = vmatpush3.bf16.msra.mxu1 %v22944_v22  ;;  %14848 = vmatprep.subr.bf16.mxu0 %v22951_v40  ;;  %v9032_v14 = vpack.c.bf16 %v17817_v13, %v17817_v13 }
 0x608   :  { %14870 = vmatprep.subr.bf16.mxu1 %v22951_v40 }
 0x60a   :  { %14849 = vmatpush3.bf16.msra.mxu0 %v22958_v32 }
 0x60b   :  { %14871 = vmatpush3.bf16.msra.mxu1 %v22958_v32  ;;  %14850 = vmatprep.subr.bf16.mxu0 %v22967_v24 }
 0x60c   :  { %v14548_v10 = vpop.f32.mrb[152].mxu0  ;;  %14872 = vmatprep.subr.bf16.mxu1 %v22967_v24 }
 0x60d   :  { %v14570_v34 = vpop.f32.mrb[152].mxu1  ;;  %v14549_v42 = vpop.f32.mrb[153].mxu0 }
 0x60e   :  { %v14550_v15 = vadd.f32 %v14549_v42, %v14548_v10  ;;  %v14571_v35 = vpop.f32.mrb[153].mxu1  ;;  %v14551_v58 = vpop.f32.mrb[154].mxu0  ;;  %14851 = vmatpush3.bf16.msra.mxu0 %v22976_v19  ;;  %v9958_v10 = vsel %vm9865_vm2, %v9032_v14, %v22706_v4  ;;  %v24459_v42 = vld [vmem:[#allocation111_spill] sm:$0xff] }
 0x60f   :  { %v14572_v37 = vadd.f32 %v14571_v35, %v14570_v34  ;;  %v14573_v41 = vpop.f32.mrb[154].mxu1  ;;  %14873 = vmatpush3.bf16.msra.mxu1 %v22976_v19  ;;  %v14552_v8 = vpop.f32.mrb[155].mxu0  ;;  %14852 = vmatprep.subr.bf16.mxu0 %v22983_v16  ;;  %v10036_v35 = vsel %vm9974_vm3, %v9958_v10, %v22716_v0  ;;  %v24460_v58 = vld [vmem:[#allocation74_spill] sm:$0xff]  ;;  %v23021_v4 = vld [vmem:[%s24088_s3 + $0x38] sm:$0xff]  }
 0x610   :  { %v11033_v25 = vadd.f32 %v14550_v15, %v22524_v45  ;;  %v14574_v1 = vpop.f32.mrb[155].mxu1  ;;  %14874 = vmatprep.subr.bf16.mxu1 %v22983_v16  ;;  %v23006_v34 = vpop.permute.xlu0 %9192  ;;  %v9961_v15 = vsel %vm9865_vm2, %v24459_v42, %v22724_v56  ;;  %v10108_v13 = vsel %vm267_vm1, %v10036_v35, %v24460_v58 }
 0x611   :  { %v11073_v38 = vadd.f32 %v14572_v37, %v22524_v45  ;;  %v10038_v37 = vsel %vm9974_vm3, %v9961_v15, %v22732_v36  ;;  %v10181_v56 = vsel %vm10119_vm4, %v10108_v13, %v22737_v33  ;;  %v24461_v33 = vld [vmem:[#allocation70_spill] sm:$0xff] }
 0x612   :  { %17818 = vtanh.f32 %v11033_v25  ;;  %14853 = vmatpush3.bf16.msra.mxu0 %v22992_v46  ;;  %v10110_v41 = vsel %vm267_vm1, %v10038_v37, %v22750_v51  ;;  %v10254_v36 = vsel %vm10192_vm5, %v10181_v56, %v22762_v44  ;;  %v23039_v25 = vpop.permute.xlu1 %9194  ;;  %v24462_v44 = vld [vmem:[#allocation36_spill] sm:$0xff] }
 0x613   :  { %17820 = vtanh.f32 %v11073_v38  ;;  %14875 = vmatpush3.bf16.msra.mxu1 %v22992_v46  ;;  %14854 = vmatprep.subr.bf16.mxu0 %v23001_v60  ;;  %v10183_v0 = vsel %vm10119_vm4, %v10110_v41, %v22775_v50  ;;  %v10327_v8 = vsel %vm10265_vm6, %v10254_v36, %v22785_v62 }
 0x614   :  { %14876 = vmatprep.subr.bf16.mxu1 %v23001_v60  ;;  %v10256_v51 = vsel %vm10192_vm5, %v10183_v0, %v22802_v7  ;;  %v23044_v38 = vpop.permute.xlu0 %9300  ;;  %v23050_v50 = vsel %vm10338_vm7, %v10327_v8, %v22807_v9 }
 0x615   :  { %v10329_v1 = vsel %vm10265_vm6, %v10256_v51, %v22810_v54 }
 0x616   :  { %14855 = vmatpush3.bf16.msra.mxu0 %v23021_v4  ;;  %v23056_v62 = vsel %vm10338_vm7, %v10329_v1, %v22821_v48  ;;  %v23066_v10 = vpop.permute.xlu1 %9302 }
 0x617   :  { %14877 = vmatpush3.bf16.msra.mxu1 %v23021_v4  ;;  %14884 = vmatprep.subr.bf16.mxu0 %v22652_v47 }
 0x618   :  { %14906 = vmatprep.subr.bf16.mxu1 %v22652_v47  ;;  %v23071_v48 = vpop.permute.xlu0 %9378 }
 0x619   :  { %11591 = vmatmul.mubr.bf16.vlgmr.msra.gmra.mrb[180].mxu0 %v24461_v33 }
 0x61a   :  { %11631 = vmatmul.mubr.bf16.vlgmr.msra.gmra.mrb[180].mxu1 %v24462_v44  ;;  %14885 = vmatpush3.bf16.msra.mxu0 %v22673_v5  ;;  %v23081_v42 = vpop.permute.xlu1 %9380 }
 0x61b   :  { %11670 = vmatprep.mubr.bf16.mxu0 %v23050_v50  ;;  %14907 = vmatpush3.bf16.msra.mxu1 %v22673_v5 }
 0x61c   :  { %v17819_v7 = vpop.eup %17818  ;;  %11710 = vmatprep.mubr.bf16.mxu1 %v23056_v62  ;;  %14886 = vmatprep.subr.bf16.mxu0 %v22690_v55  ;;  %v23083_v15 = vpop.permute.xlu0 %9486 }
 0x61d   :  { %v17821_v54 = vpop.eup %17820  ;;  %v23060_v14 = vpack.c.bf16 %v17819_v7, %v17819_v7  ;;  %14908 = vmatprep.subr.bf16.mxu1 %v22690_v55  ;;  %v24464_v7 = vld [vmem:[#allocation115_spill] sm:$0xff] }
 0x61e   :  { %v23063_v9 = vpack.c.bf16 %v17821_v54, %v17821_v54  ;;  %14887 = vmatpush3.bf16.msra.mxu0 %v22900_v26  ;;  %v23090_v35 = vpop.permute.xlu1 %9488  ;;  %v9964_v54 = vsel %vm9865_vm2, %v24464_v7, %v22816_v59 }
 0x61f   :  { %24463 = vst [vmem:[#allocation21_spill] sm:$0xff] %v23060_v14  ;;  %14909 = vmatpush3.bf16.msra.mxu1 %v22900_v26  ;;  %12240 = vrot.lane.b32.xlu0 %v23060_v14, %s17984_s13 }
 0x620   :  { %12250 = vrot.lane.b32.xlu1 %v23063_v9, %s17986_s19  ;;  %14888 = vmatprep.subr.bf16.mxu0 %v22909_v61  ;;  %v23094_v58 = vpop.permute.xlu0 %9594 }
 0x621   :  { %14910 = vmatprep.subr.bf16.mxu1 %v22909_v61 }
 0x622   :  { %14889 = vmatpush3.bf16.msra.mxu0 %v22926_v31  ;;  %v23105_v44 = vpop.permute.xlu1 %9596 }
 0x623   :  { %14911 = vmatpush3.bf16.msra.mxu1 %v22926_v31  ;;  %14890 = vmatprep.subr.bf16.mxu0 %v22933_v39 }
 0x624   :  { %14912 = vmatprep.subr.bf16.mxu1 %v22933_v39 }
 0x626   :  { %14891 = vmatpush3.bf16.msra.mxu0 %v22944_v22 }
 0x627   :  { %14913 = vmatpush3.bf16.msra.mxu1 %v22944_v22  ;;  %14892 = vmatprep.subr.bf16.mxu0 %v22951_v40 }
 0x628   :  { %14914 = vmatprep.subr.bf16.mxu1 %v22951_v40 }
 0x62a   :  { %14893 = vmatpush3.bf16.msra.mxu0 %v22958_v32 }
 0x62b   :  { %14915 = vmatpush3.bf16.msra.mxu1 %v22958_v32  ;;  %14894 = vmatprep.subr.bf16.mxu0 %v22967_v24 }
 0x62c   :  { %v14592_v13 = vpop.f32.mrb[156].mxu0  ;;  %14916 = vmatprep.subr.bf16.mxu1 %v22967_v24 }
 0x62d   :  { %v14614_v37 = vpop.f32.mrb[156].mxu1  ;;  %v14593_v41 = vpop.f32.mrb[157].mxu0 }
 0x62e   :  { %v23097_v56 = vadd.f32 %v14593_v41, %v14592_v13  ;;  %v14615_v36 = vpop.f32.mrb[157].mxu1  ;;  %v14595_v0 = vpop.f32.mrb[158].mxu0  ;;  %14895 = vmatpush3.bf16.msra.mxu0 %v22976_v19  ;;  %v24465_v41 = vld [vmem:[#allocation126_spill] sm:$0xff] }
 0x62f   :  { %v23100_v8 = vadd.f32 %v14615_v36, %v14614_v37  ;;  %v14617_v51 = vpop.f32.mrb[158].mxu1  ;;  %14917 = vmatpush3.bf16.msra.mxu1 %v22976_v19  ;;  %v14596_v33 = vpop.f32.mrb[159].mxu0  ;;  %14896 = vmatprep.subr.bf16.mxu0 %v22983_v16  ;;  %v10040_v37 = vsel %vm9974_vm3, %v9964_v54, %v22827_v49  ;;  %v9967_v36 = vsel %vm9865_vm2, %v24465_v41, %v22830_v53  ;;  %v24467_v54 = vld [vmem:[#allocation71_spill] sm:$0xff] }
 0x630   :  { %v14618_v1 = vpop.f32.mrb[159].mxu1  ;;  %14918 = vmatprep.subr.bf16.mxu1 %v22983_v16  ;;  %v23113_v13 = vpop.permute.xlu0 %9672  ;;  %v10112_v0 = vsel %vm267_vm1, %v10040_v37, %v22840_v28  ;;  %v10042_v51 = vsel %vm9974_vm3, %v9967_v36, %v22847_v52 }
 0x631   :  { %v10185_v59 = vsel %vm10119_vm4, %v10112_v0, %v22875_v43  ;;  %v10114_v33 = vsel %vm267_vm1, %v10042_v51, %v22880_v27  ;;  %v23130_v1 = vpop.permute.xlu1 %9674  ;;  %v24466_v43 = vld [vmem:[#allocation75_spill] sm:$0xff] }
 0x632   :  { %14897 = vmatpush3.bf16.msra.mxu0 %v22992_v46  ;;  %v10258_v49 = vsel %vm10192_vm5, %v10185_v59, %v22903_v20  ;;  %v10187_v53 = vsel %vm10119_vm4, %v10114_v33, %v22912_v6 }
 0x633   :  { %14919 = vmatpush3.bf16.msra.mxu1 %v22992_v46  ;;  %14898 = vmatprep.subr.bf16.mxu0 %v23001_v60  ;;  %v10331_v28 = vsel %vm10265_vm6, %v10258_v49, %v22937_v21  ;;  %v10260_v52 = vsel %vm10192_vm5, %v10187_v53, %v22939_v63 }
 0x634   :  { %14920 = vmatprep.subr.bf16.mxu1 %v23001_v60  ;;  %v10333_v27 = vsel %vm10265_vm6, %v10260_v52, %v22970_v2  ;;  %v23146_v7 = vpop.permute.xlu0 %9750  ;;  %v23152_v20 = vsel %vm10338_vm7, %v10331_v28, %v22961_v57 }
 0x635   :  { %v23158_v6 = vsel %vm10338_vm7, %v10333_v27, %v22995_v3  ;;  %v23162_v21 = vpop.permute.xlu1 %9752 }
 0x636   :  { %14899 = vmatpush3.bf16.msra.mxu0 %v23021_v4 }
 0x637   :  { %14921 = vmatpush3.bf16.msra.mxu1 %v23021_v4  ;;  %14928 = vmatprep.subr.bf16.mxu0 %v22652_v47 }
 0x638   :  { %14950 = vmatprep.subr.bf16.mxu1 %v22652_v47  ;;  %v23165_v63 = vpop.permute.xlu0 %9760 }
 0x639   :  { %11671 = vmatmul.mubr.bf16.vlgmr.msra.gmra.mrb[184].mxu0 %v24466_v43  ;;  %v23171_v57 = vpop.permute.xlu1 %9762 }
 0x63a   :  { %11711 = vmatmul.mubr.bf16.vlgmr.msra.gmra.mrb[184].mxu1 %v24467_v54  ;;  %14929 = vmatpush3.bf16.msra.mxu0 %v22673_v5 }
 0x63b   :  { %11750 = vmatprep.mubr.bf16.mxu0 %v23152_v20  ;;  %14951 = vmatpush3.bf16.msra.mxu1 %v22673_v5 }
 0x63c   :  { %11790 = vmatprep.mubr.bf16.mxu1 %v23158_v6  ;;  %14930 = vmatprep.subr.bf16.mxu0 %v22690_v55  ;;  %v23173_v2 = vpop.permute.xlu0 %9778 }
 0x63d   :  { %14952 = vmatprep.subr.bf16.mxu1 %v22690_v55  ;;  %v23179_v3 = vpop.permute.xlu1 %9780 }
 0x63e   :  { %14931 = vmatpush3.bf16.msra.mxu0 %v22900_v26 }
 0x63f   :  { %14953 = vmatpush3.bf16.msra.mxu1 %v22900_v26  ;;  %14932 = vmatprep.subr.bf16.mxu0 %v22909_v61 }
 0x640   :  { %14954 = vmatprep.subr.bf16.mxu1 %v22909_v61  ;;  %v23184_v37 = vpop.permute.xlu0 %9791 }
 0x641   :  { %v23188_v41 = vpop.permute.xlu1 %9793 }
 0x642   :  { %14933 = vmatpush3.bf16.msra.mxu0 %v22926_v31 }
 0x643   :  { %14955 = vmatpush3.bf16.msra.mxu1 %v22926_v31  ;;  %14934 = vmatprep.subr.bf16.mxu0 %v22933_v39 }
 0x644   :  { %14956 = vmatprep.subr.bf16.mxu1 %v22933_v39  ;;  %v23192_v36 = vpop.permute.xlu0 %9809 }
 0x645   :  { %v23200_v27 = vpop.permute.xlu1 %9811 }
 0x646   :  { %14935 = vmatpush3.bf16.msra.mxu0 %v22944_v22 }
 0x647   :  { %14957 = vmatpush3.bf16.msra.mxu1 %v22944_v22  ;;  %14936 = vmatprep.subr.bf16.mxu0 %v22951_v40 }
 0x648   :  { %14958 = vmatprep.subr.bf16.mxu1 %v22951_v40 }
 0x64a   :  { %14937 = vmatpush3.bf16.msra.mxu0 %v22958_v32 }
 0x64b   :  { %14959 = vmatpush3.bf16.msra.mxu1 %v22958_v32  ;;  %14938 = vmatprep.subr.bf16.mxu0 %v22967_v24 }
 0x64c   :  { %v14636_v0 = vpop.f32.mrb[160].mxu0  ;;  %14960 = vmatprep.subr.bf16.mxu1 %v22967_v24 }
 0x64d   :  { %v14658_v51 = vpop.f32.mrb[160].mxu1  ;;  %v14637_v59 = vpop.f32.mrb[161].mxu0 }
 0x64e   :  { %v23195_v33 = vadd.f32 %v14637_v59, %v14636_v0  ;;  %v14659_v49 = vpop.f32.mrb[161].mxu1  ;;  %v14639_v53 = vpop.f32.mrb[162].mxu0  ;;  %14939 = vmatpush3.bf16.msra.mxu0 %v22976_v19  ;;  %v24468_v0 = vld [vmem:[#allocation130_spill] sm:$0xff] }
 0x64f   :  { %v14660_v28 = vadd.f32 %v14659_v49, %v14658_v51  ;;  %v14661_v52 = vpop.f32.mrb[162].mxu1  ;;  %14961 = vmatpush3.bf16.msra.mxu1 %v22976_v19  ;;  %v14640_v43 = vpop.f32.mrb[163].mxu0  ;;  %14940 = vmatprep.subr.bf16.mxu0 %v22983_v16  ;;  %v9970_v51 = vsel %vm9865_vm2, %v24468_v0, %v23006_v34  ;;  %v24469_v49 = vld [vmem:[#allocation50_spill] sm:$0xff] }
 0x650   :  { %v14662_v54 = vpop.f32.mrb[163].mxu1  ;;  %14962 = vmatprep.subr.bf16.mxu1 %v22983_v16  ;;  %v10044_v59 = vsel %vm9974_vm3, %v9970_v51, %v23044_v38  ;;  %v23216_v53 = vpop.permute.xlu0 %9827 }
 0x651   :  { %v11233_v14 = vadd.f32 %v14660_v28, %v22524_v45  ;;  %v9973_v45 = vsel %vm9865_vm2, %v24469_v49, %v23039_v25  ;;  %v23222_v52 = vpop.permute.xlu1 %9829 }
 0x652   :  { %14941 = vmatpush3.bf16.msra.mxu0 %v22992_v46  ;;  %v10046_v28 = vsel %vm9974_vm3, %v9973_v45, %v23066_v10 }
 0x653   :  { %17822 = vtanh.f32 %v11233_v14  ;;  %14963 = vmatpush3.bf16.msra.mxu1 %v22992_v46  ;;  %14942 = vmatprep.subr.bf16.mxu0 %v23001_v60  ;;  %v10116_v14 = vsel %vm267_vm1, %v10044_v59, %v23071_v48  ;;  %v10118_v38 = vsel %vm267_vm1, %v10046_v28, %v23081_v42 }
 0x654   :  { %14964 = vmatprep.subr.bf16.mxu1 %v23001_v60  ;;  %v10189_v34 = vsel %vm10119_vm4, %v10116_v14, %v23083_v15  ;;  %v10191_v10 = vsel %vm10119_vm4, %v10118_v38, %v23090_v35  ;;  %v23240_v43 = vpop.permute.xlu0 %9840 }
 0x655   :  { %v10262_v25 = vsel %vm10192_vm5, %v10189_v34, %v23094_v58  ;;  %v10264_v15 = vsel %vm10192_vm5, %v10191_v10, %v23105_v44  ;;  %v23245_v54 = vpop.permute.xlu1 %9842 }
 0x656   :  { %14943 = vmatpush3.bf16.msra.mxu0 %v23021_v4  ;;  %v10335_v48 = vsel %vm10265_vm6, %v10262_v25, %v23113_v13  ;;  %v10337_v42 = vsel %vm10265_vm6, %v10264_v15, %v23130_v1  ;;  %v24470_v1 = vld [vmem:[#allocation53_spill] sm:$0xff]  ;;  %v23299_v15 = vld [vmem:[%s24089_s4] ss:$0 sm:$0xff] }
 0x657   :  { %14965 = vmatpush3.bf16.msra.mxu1 %v23021_v4  ;;  %14972 = vmatprep.subr.bf16.mxu0 %v22652_v47  ;;  %v23251_v35 = vsel %vm10338_vm7, %v10335_v48, %v23146_v7  ;;  %v7530_v7 = vadd.f32 %v22919_v18, %v24470_v1 }
 0x658   :  { %14994 = vmatprep.subr.bf16.mxu1 %v22652_v47  ;;  %v23263_v44 = vpop.permute.xlu0 %9853 }
 0x659   :  { %11751 = vmatmul.mubr.bf16.vlgmr.msra.gmra.mrb[188].mxu0 %v22791_v12  ;;  %v23257_v12 = vsel %vm10338_vm7, %v10337_v42, %v23162_v21  ;;  %v23267_v13 = vpop.permute.xlu1 %9855  ;;  %17824 = vtanh.f32 %v7530_v7 }
 0x65a   :  { %11791 = vmatmul.mubr.bf16.vlgmr.msra.gmra.mrb[188].mxu1 %v22797_v17  ;;  %14973 = vmatpush3.bf16.msra.mxu0 %v22673_v5 }
 0x65b   :  { %11830 = vmatprep.mubr.bf16.mxu0 %v23251_v35  ;;  %14995 = vmatpush3.bf16.msra.mxu1 %v22673_v5 }
 0x65c   :  { %11870 = vmatprep.mubr.bf16.mxu1 %v23257_v12  ;;  %14974 = vmatprep.subr.bf16.mxu0 %v22690_v55  ;;  %v23277_v21 = vpop.permute.xlu0 %9764 }
 0x65d   :  { %v17823_v58 = vpop.eup %17822  ;;  %14996 = vmatprep.subr.bf16.mxu1 %v22690_v55  ;;  %v23279_v0 = vpop.permute.xlu1 %9766 }
 0x65e   :  { %v12167_v17 = vpack.c.bf16 %v17823_v58, %v17823_v58  ;;  %14975 = vmatpush3.bf16.msra.mxu0 %v22900_v26 }
 0x65f   :  { %14997 = vmatpush3.bf16.msra.mxu1 %v22900_v26  ;;  %14976 = vmatprep.subr.bf16.mxu0 %v22909_v61 }
 0x660   :  { %12198 = vrot.lane.b32.xlu0 %v12167_v17, %s17982_s21  ;;  %14998 = vmatprep.subr.bf16.mxu1 %v22909_v61  ;;  %v23286_v18 = vpop.permute.xlu0 %9782 }
 0x661   :  { %v23290_v51 = vpop.permute.xlu1 %9784 }
 0x662   :  { %14977 = vmatpush3.bf16.msra.mxu0 %v22926_v31 }
 0x663   :  { %14999 = vmatpush3.bf16.msra.mxu1 %v22926_v31  ;;  %14978 = vmatprep.subr.bf16.mxu0 %v22933_v39  ;;  %v17825_v38 = vpop.eup %17824 }
 0x664   :  { %15000 = vmatprep.subr.bf16.mxu1 %v22933_v39  ;;  %v9060_v1 = vpack.c.bf16 %v17825_v38, %v17825_v38  ;;  %v23305_v7 = vpop.permute.xlu0 %9795 }
 0x666   :  { %14979 = vmatpush3.bf16.msra.mxu0 %v22944_v22 }
 0x667   :  { %15001 = vmatpush3.bf16.msra.mxu1 %v22944_v22  ;;  %14980 = vmatprep.subr.bf16.mxu0 %v22951_v40 }
 0x668   :  { %15002 = vmatprep.subr.bf16.mxu1 %v22951_v40 }
 0x66a   :  { %14981 = vmatpush3.bf16.msra.mxu0 %v22958_v32 }
 0x66b   :  { %15003 = vmatpush3.bf16.msra.mxu1 %v22958_v32  ;;  %14982 = vmatprep.subr.bf16.mxu0 %v22967_v24 }
 0x66c   :  { %v14680_v59 = vpop.f32.mrb[164].mxu0  ;;  %15004 = vmatprep.subr.bf16.mxu1 %v22967_v24 }
 0x66d   :  { %v14702_v49 = vpop.f32.mrb[164].mxu1  ;;  %v14681_v45 = vpop.f32.mrb[165].mxu0 }
 0x66e   :  { %v14682_v14 = vadd.f32 %v14681_v45, %v14680_v59  ;;  %v14703_v28 = vpop.f32.mrb[165].mxu1  ;;  %v14683_v34 = vpop.f32.mrb[166].mxu0  ;;  %14983 = vmatpush3.bf16.msra.mxu0 %v22976_v19  ;;  %v10449_v59 = vsel %vm9865_vm2, %v9060_v1, %v23165_v63  ;;  %v24471_v45 = vld [vmem:[#allocation56_spill] sm:$0xff] }
 0x66f   :  { %v14704_v25 = vadd.f32 %v14703_v28, %v14702_v49  ;;  %v14705_v10 = vpop.f32.mrb[166].mxu1  ;;  %15005 = vmatpush3.bf16.msra.mxu1 %v22976_v19  ;;  %v14684_v48 = vpop.f32.mrb[167].mxu0  ;;  %14984 = vmatprep.subr.bf16.mxu0 %v22983_v16  ;;  %v10466_v28 = vsel %vm9974_vm3, %v10449_v59, %v23173_v2 }
 0x670   :  { %v11273_v42 = vadd.f32 %v23299_v15, %v14682_v14  ;;  %v14706_v58 = vpop.f32.mrb[167].mxu1  ;;  %15006 = vmatprep.subr.bf16.mxu1 %v22983_v16  ;;  %v23311_v49 = vpop.permute.xlu1 %9797  ;;  %v10452_v14 = vsel %vm9865_vm2, %v24471_v45, %v23171_v57  ;;  %v10478_v34 = vsel %vm267_vm1, %v10466_v28, %v23184_v37 }
 0x671   :  { %v11313_v17 = vadd.f32 %v23299_v15, %v14704_v25  ;;  %v10468_v38 = vsel %vm9974_vm3, %v10452_v14, %v23179_v3  ;;  %v10490_v25 = vsel %vm10119_vm4, %v10478_v34, %v23192_v36  ;;  %v10873_v3 = vadd.f32 %v23299_v15, %v22734_v23  ;;  %v23341_v36 = vpop.permute.xlu0 %9813 }
 0x672   :  { %17826 = vtanh.f32 %v11273_v42  ;;  %14985 = vmatpush3.bf16.msra.mxu0 %v22992_v46  ;;  %v10480_v63 = vsel %vm267_vm1, %v10468_v38, %v23188_v41  ;;  %v10502_v57 = vsel %vm10192_vm5, %v10490_v25, %v23216_v53  ;;  %v24473_v42 = vld [vmem:[#allocation77_spill] sm:$0xff] }
 0x673   :  { %15007 = vmatpush3.bf16.msra.mxu1 %v22992_v46  ;;  %14986 = vmatprep.subr.bf16.mxu0 %v23001_v60  ;;  %17828 = vtanh.f32 %v11313_v17  ;;  %v10492_v2 = vsel %vm10119_vm4, %v10480_v63, %v23200_v27  ;;  %v10514_v37 = vsel %vm10265_vm6, %v10502_v57, %v23240_v43 }
 0x674   :  { %15008 = vmatprep.subr.bf16.mxu1 %v23001_v60  ;;  %v10504_v41 = vsel %vm10192_vm5, %v10492_v2, %v23222_v52  ;;  %v23346_v10 = vpop.permute.xlu1 %9815  ;;  %v10526_v23 = vsel %vm10338_vm7, %v10514_v37, %v23263_v44  ;;  %17830 = vtanh.f32 %v10873_v3 }
 0x675   :  { %v10516_v53 = vsel %vm10265_vm6, %v10504_v41, %v23245_v54  ;;  %v23362_v43 = vpop.permute.xlu0 %9831 }
 0x676   :  { %14987 = vmatpush3.bf16.msra.mxu0 %v23021_v4 }
 0x677   :  { %15009 = vmatpush3.bf16.msra.mxu1 %v23021_v4  ;;  %15016 = vmatprep.subr.bf16.mxu0 %v22652_v47 }
 0x678   :  { %15038 = vmatprep.subr.bf16.mxu1 %v22652_v47  ;;  %v10529_v47 = vsel %vm10338_vm7, %v10516_v53, %v23267_v13  ;;  %v23369_v54 = vpop.permute.xlu1 %9833 }
 0x679   :  { %11831 = vmatmul.mubr.bf16.vlgmr.msra.gmra.mrb[192].mxu0 %v22886_v11  ;;  %v11153_v11 = vadd.f32 %v23299_v15, %v23100_v8  ;;  %v9845_v44 = vpop.permute.xlu0 %9844 }
 0x67a   :  { %11871 = vmatmul.mubr.bf16.vlgmr.msra.gmra.mrb[192].mxu1 %v22892_v30  ;;  %15017 = vmatpush3.bf16.msra.mxu0 %v22673_v5 }
 0x67b   :  { %11910 = vmatprep.mubr.bf16.mxu0 %v10526_v23  ;;  %15039 = vmatpush3.bf16.msra.mxu1 %v22673_v5  ;;  %v24472_v5 = vld [vmem:[#allocation11_spill] sm:$0xff]  ;;  %17832 = vtanh.f32 %v11153_v11  ;;  %v24474_v11 = vld [vmem:[#allocation6_spill] sm:$0xff] }
 0x67c   :  { %v17827_v27 = vpop.eup %17826  ;;  %11950 = vmatprep.mubr.bf16.mxu1 %v10529_v47  ;;  %15018 = vmatprep.subr.bf16.mxu0 %v22690_v55  ;;  %v10913_v8 = vadd.f32 %v23299_v15, %v24472_v5  ;;  %v23381_v48 = vpop.permute.xlu1 %9846 }
 0x67d   :  { %v23358_v30 = vpack.c.bf16 %v17827_v27, %v17827_v27  ;;  %15040 = vmatprep.subr.bf16.mxu1 %v22690_v55  ;;  %v17829_v52 = vpop.eup %17828  ;;  %v9858_v1 = vpop.permute.xlu0 %9857 }
 0x67e   :  { %15019 = vmatpush3.bf16.msra.mxu0 %v22900_v26  ;;  %v23373_v55 = vpack.c.bf16 %v17829_v52, %v17829_v52  ;;  %17834 = vtanh.f32 %v10913_v8  ;;  %v17831_v13 = vpop.eup %17830  ;;  %v10455_v52 = vsel %vm9865_vm2, %v24474_v11, %v23277_v21 }
 0x67f   :  { %15041 = vmatpush3.bf16.msra.mxu1 %v22900_v26  ;;  %12210 = vrot.lane.b32.xlu1 %v23358_v30, %s17984_s13  ;;  %v12158_v58 = vpack.c.bf16 %v17831_v13, %v17831_v13  ;;  %v10470_v8 = vsel %vm9974_vm3, %v10455_v52, %v23286_v18  ;;  %v24475_v13 = vld [vmem:[#allocation29_spill] sm:$0xff] }
 0x680   :  { %15020 = vmatprep.subr.bf16.mxu0 %v22909_v61  ;;  %15042 = vmatprep.subr.bf16.mxu1 %v22909_v61  ;;  %v9860_v59 = vpop.permute.xlu1 %9859 }
 0x681   :  { %v23402_v27 = vpop.permute.xlu0 %9768 }
 0x682   :  { %15021 = vmatpush3.bf16.msra.mxu0 %v22926_v31 }
 0x683   :  { %15043 = vmatpush3.bf16.msra.mxu1 %v22926_v31  ;;  %12220 = vrot.lane.b32.xlu1 %v23373_v55, %s17986_s19 }
 0x684   :  { %15022 = vmatprep.subr.bf16.mxu0 %v22933_v39  ;;  %15044 = vmatprep.subr.bf16.mxu1 %v22933_v39  ;;  %v23409_v5 = vpop.permute.xlu1 %9770 }
 0x685   :  { %v17833_v17 = vpop.eup %17832 }
 0x686   :  { %15023 = vmatpush3.bf16.msra.mxu0 %v22944_v22  ;;  %v12165_v14 = vpack.c.bf16 %v17833_v17, %v17833_v17 }
 0x687   :  { %15045 = vmatpush3.bf16.msra.mxu1 %v22944_v22  ;;  %12196 = vrot.lane.b32.xlu1 %v24473_v42, %s17982_s21  ;;  %v10458_v42 = vsel %vm9865_vm2, %v24475_v13, %v23279_v0  ;;  %v23431_v0 = vld [vmem:[%s24088_s3 + $0x40] sm:$0xff]  }
 0x688   :  { %15024 = vmatprep.subr.bf16.mxu0 %v22951_v40  ;;  %15046 = vmatprep.subr.bf16.mxu1 %v22951_v40  ;;  %v17835_v38 = vpop.eup %17834  ;;  %v10472_v21 = vsel %vm9974_vm3, %v10458_v42, %v23290_v51 }
 0x689   :  { %v12159_v23 = vpack.c.bf16 %v17835_v38, %v17835_v38 }
 0x68a   :  { %15025 = vmatpush3.bf16.msra.mxu0 %v22958_v32 }
 0x68b   :  { %15047 = vmatpush3.bf16.msra.mxu1 %v22958_v32  ;;  %12208 = vrot.lane.b32.xlu1 %v12158_v58, %s17984_s13  ;;  %v10482_v58 = vsel %vm267_vm1, %v10470_v8, %v23305_v7 }
 0x68c   :  { %v14724_v45 = vpop.f32.mrb[168].mxu0  ;;  %15026 = vmatprep.subr.bf16.mxu0 %v22967_v24  ;;  %15048 = vmatprep.subr.bf16.mxu1 %v22967_v24  ;;  %v10494_v17 = vsel %vm10119_vm4, %v10482_v58, %v23341_v36  ;;  %v23442_v36 = vpop.permute.xlu0 %9786 }
 0x68d   :  { %v14746_v28 = vpop.f32.mrb[168].mxu1  ;;  %v14725_v34 = vpop.f32.mrb[169].mxu0  ;;  %v10506_v18 = vsel %vm10192_vm5, %v10494_v17, %v23362_v43 }
 0x68e   :  { %v14726_v63 = vadd.f32 %v14725_v34, %v14724_v45  ;;  %v14747_v25 = vpop.f32.mrb[169].mxu1  ;;  %v14727_v57 = vpop.f32.mrb[170].mxu0  ;;  %15027 = vmatpush3.bf16.msra.mxu0 %v22976_v19  ;;  %v10484_v45 = vsel %vm267_vm1, %v10472_v21, %v23311_v49  ;;  %v10518_v7 = vsel %vm10265_vm6, %v10506_v18, %v9845_v44  ;;  %v24476_v21 = vld [vmem:[#allocation69_spill] sm:$0xff]  ;;  %v24477_v18 = vld [vmem:[#allocation34_spill] sm:$0xff] }
 0x68f   :  { %v14748_v2 = vadd.f32 %v14747_v25, %v14746_v28  ;;  %v14749_v3 = vpop.f32.mrb[170].mxu1  ;;  %15049 = vmatpush3.bf16.msra.mxu1 %v22976_v19  ;;  %v14728_v37 = vpop.f32.mrb[171].mxu0  ;;  %12252 = vrot.lane.b32.xlu1 %v12165_v14, %s17986_s19  ;;  %v10496_v51 = vsel %vm10119_vm4, %v10484_v45, %v23346_v10  ;;  %v23453_v10 = vld [vmem:[%s24088_s3] sm:$0xff]   ;;  %v10532_v43 = vsel %vm10338_vm7, %v10518_v7, %v9858_v1 }
 0x690   :  { %v11353_v41 = vadd.f32 %v23299_v15, %v14726_v63  ;;  %v14750_v53 = vpop.f32.mrb[171].mxu1  ;;  %15028 = vmatprep.subr.bf16.mxu0 %v22983_v16  ;;  %15050 = vmatprep.subr.bf16.mxu1 %v22983_v16  ;;  %v10508_v49 = vsel %vm10192_vm5, %v10496_v51, %v23369_v54  ;;  %v23447_v28 = vpop.permute.xlu1 %9788  ;;  %v10461_v17 = vsel %vm9865_vm2, %v24476_v21, %v23402_v27  ;;  %v23631_v21 = vld [vmem:[%s24090_s5 + $0x10] sm:$0xff]  }
 0x691   :  { %v11393_v47 = vadd.f32 %v23299_v15, %v14748_v2  ;;  %v10520_v14 = vsel %vm10265_vm6, %v10508_v49, %v23381_v48  ;;  %v9800_v1 = vpop.permute.xlu0 %9799  ;;  %v10474_v45 = vsel %vm9974_vm3, %v10461_v17, %v23442_v36  ;;  %v10464_v51 = vsel %vm9865_vm2, %v24477_v18, %v23409_v5  ;;  %v23639_v17 = vld [vmem:[%s24090_s5 + $0x58] sm:$0xff]  }
 0x692   :  { %17836 = vtanh.f32 %v11353_v41  ;;  %15029 = vmatpush3.bf16.msra.mxu0 %v22992_v46  ;;  %v10486_v7 = vsel %vm267_vm1, %v10474_v45, %v9800_v1  ;;  %v10476_v49 = vsel %vm9974_vm3, %v10464_v51, %v23447_v28  ;;  %v23645_v45 = vld [vmem:[%s24090_s5 + $0x90] sm:$0xff]   ;;  %v23651_v51 = vld [vmem:[%s24090_s5 + $0xd8] sm:$0xff]  }
 0x693   :  { %15051 = vmatpush3.bf16.msra.mxu1 %v22992_v46  ;;  %12218 = vrot.lane.b32.xlu1 %v12159_v23, %s17986_s19  ;;  %17838 = vtanh.f32 %v11393_v47 }
 0x694   :  { %15030 = vmatprep.subr.bf16.mxu0 %v23001_v60  ;;  %15052 = vmatprep.subr.bf16.mxu1 %v23001_v60 }
 0x695   :  { %v9818_v38 = vpop.permute.xlu0 %9817 }
 0x696   :  { %15031 = vmatpush3.bf16.msra.mxu0 %v23021_v4 }
 0x697   :  { %15053 = vmatpush3.bf16.msra.mxu1 %v23021_v4  ;;  %15060 = vmatprep.subr.bf16.mxu0 %v23431_v0 }
 0x698   :  { %15082 = vmatprep.subr.bf16.mxu1 %v23431_v0 }
 0x699   :  { %11911 = vmatmul.mubr.bf16.vlgmr.msra.gmra.mrb[196].mxu0 %v23050_v50  ;;  %v10535_v50 = vsel %vm10338_vm7, %v10520_v14, %v9860_v59  ;;  %v9802_v59 = vpop.permute.xlu1 %9801  ;;  %v9836_v25 = vpop.permute.xlu0 %9835  ;;  %v10498_v14 = vsel %vm10119_vm4, %v10486_v7, %v9818_v38  ;;  %v23657_v7 = vld [vmem:[%s24090_s5 + $0x18] sm:$0xff]  }
 0x69a   :  { %11951 = vmatmul.mubr.bf16.vlgmr.msra.gmra.mrb[196].mxu1 %v23056_v62  ;;  %15061 = vmatpush3.bf16.msra.mxu0 %v23453_v10  ;;  %v23462_v62 = vld [vmem:[%s24088_s3 + $0x48] sm:$0xff]   ;;  %v10488_v27 = vsel %vm267_vm1, %v10476_v49, %v9802_v59  ;;  %v10510_v36 = vsel %vm10192_vm5, %v10498_v14, %v9836_v25 }
 0x69b   :  { %11990 = vmatprep.mubr.bf16.mxu0 %v10532_v43  ;;  %15083 = vmatpush3.bf16.msra.mxu1 %v23453_v10  ;;  %v24478_v49 = vld [vmem:[#allocation73_spill] sm:$0xff] }
 0x69c   :  { %v17837_v54 = vpop.eup %17836  ;;  %12030 = vmatprep.mubr.bf16.mxu1 %v10535_v50  ;;  %15062 = vmatprep.subr.bf16.mxu0 %v23462_v62  ;;  %v10713_v14 = vadd.f32 %v23299_v15, %v24478_v49 }
 0x69d   :  { %v12170_v44 = vpack.c.bf16 %v17837_v54, %v17837_v54  ;;  %15084 = vmatprep.subr.bf16.mxu1 %v23462_v62  ;;  %v17839_v48 = vpop.eup %17838  ;;  %v9820_v63 = vpop.permute.xlu1 %9819 }
 0x69e   :  { %15063 = vmatpush3.bf16.msra.mxu0 %v22900_v26  ;;  %v12171_v34 = vpack.c.bf16 %v17839_v48, %v17839_v48  ;;  %v9849_v13 = vpop.permute.xlu0 %9848  ;;  %v10500_v5 = vsel %vm10119_vm4, %v10488_v27, %v9820_v63  ;;  %v23666_v27 = vld [vmem:[%s24090_s5 + $0x60] sm:$0xff]  }
 0x69f   :  { %15085 = vmatpush3.bf16.msra.mxu1 %v22900_v26  ;;  %12212 = vrot.lane.b32.xlu1 %v12170_v44, %s17984_s13  ;;  %v10522_v28 = vsel %vm10265_vm6, %v10510_v36, %v9849_v13  ;;  %v23678_v36 = vld [vmem:[%s24090_s5 + $0xe0] sm:$0xff]  }
 0x6a0   :  { %15064 = vmatprep.subr.bf16.mxu0 %v22909_v61  ;;  %15086 = vmatprep.subr.bf16.mxu1 %v22909_v61 }
 0x6a1   :  { %v9838_v57 = vpop.permute.xlu1 %9837 }
 0x6a2   :  { %15065 = vmatpush3.bf16.msra.mxu0 %v22926_v31  ;;  %v9862_v43 = vpop.permute.xlu0 %9861  ;;  %v10512_v54 = vsel %vm10192_vm5, %v10500_v5, %v9838_v57 }
 0x6a3   :  { %15087 = vmatpush3.bf16.msra.mxu1 %v22926_v31  ;;  %12222 = vrot.lane.b32.xlu1 %v12171_v34, %s17986_s19  ;;  %v10538_v48 = vsel %vm10338_vm7, %v10522_v28, %v9862_v43  ;;  %v23672_v43 = vld [vmem:[%s24090_s5 + $0x98] sm:$0xff]   ;;  %v23692_v28 = vld [vmem:[%s24090_s5 + $0x68] sm:$0xff]  }
 0x6a4   :  { %15066 = vmatprep.subr.bf16.mxu0 %v22933_v39  ;;  %15088 = vmatprep.subr.bf16.mxu1 %v22933_v39 }
 0x6a5   :  { %v9851_v58 = vpop.permute.xlu1 %9850 }
 0x6a6   :  { %15067 = vmatpush3.bf16.msra.mxu0 %v22944_v22  ;;  %v10524_v44 = vsel %vm10265_vm6, %v10512_v54, %v9851_v58  ;;  %v23698_v54 = vld [vmem:[%s24090_s5 + $0xa0] sm:$0xff]  }
 0x6a7   :  { %15089 = vmatpush3.bf16.msra.mxu1 %v22944_v22  ;;  %15068 = vmatprep.subr.bf16.mxu0 %v22951_v40 }
 0x6a8   :  { %15090 = vmatprep.subr.bf16.mxu1 %v22951_v40 }
 0x6a9   :  { %v9864_v50 = vpop.permute.xlu1 %9863 }
 0x6aa   :  { %15069 = vmatpush3.bf16.msra.mxu0 %v22958_v32  ;;  %v10541_v1 = vsel %vm10338_vm7, %v10524_v44, %v9864_v50  ;;  %v23684_v50 = vld [vmem:[%s24090_s5 + $0x20] sm:$0xff]  }
 0x6ab   :  { %15091 = vmatpush3.bf16.msra.mxu1 %v22958_v32  ;;  %15070 = vmatprep.subr.bf16.mxu0 %v22967_v24 }
 0x6ac   :  { %v14768_v2 = vpop.f32.mrb[172].mxu0  ;;  %15092 = vmatprep.subr.bf16.mxu1 %v22967_v24 }
 0x6ad   :  { %v14790_v3 = vpop.f32.mrb[172].mxu1  ;;  %v14769_v37 = vpop.f32.mrb[173].mxu0 }
 0x6ae   :  { %v23484_v41 = vadd.f32 %v14769_v37, %v14768_v2  ;;  %v14791_v53 = vpop.f32.mrb[173].mxu1  ;;  %v14771_v23 = vpop.f32.mrb[174].mxu0  ;;  %15071 = vmatpush3.bf16.msra.mxu0 %v22976_v19 }
 0x6af   :  { %v14792_v47 = vadd.f32 %v14791_v53, %v14790_v3  ;;  %v14793_v11 = vpop.f32.mrb[174].mxu1  ;;  %15093 = vmatpush3.bf16.msra.mxu1 %v22976_v19  ;;  %v14772_v52 = vpop.f32.mrb[175].mxu0  ;;  %15072 = vmatprep.subr.bf16.mxu0 %v22983_v16 }
 0x6b0   :  { %v14794_v8 = vpop.f32.mrb[175].mxu1  ;;  %15094 = vmatprep.subr.bf16.mxu1 %v22983_v16  ;;  %v23591_v11 = vld [vmem:[%s24090_s5 + $0x80] sm:$0xff]   ;;  %v23605_v52 = vld [vmem:[%s24090_s5 + $0x8] sm:$0xff]  }
 0x6b1   :  { %v11473_v42 = vadd.f32 %v23299_v15, %v14792_v47  ;;  %v11113_v47 = vadd.f32 %v23299_v15, %v23097_v56 }
 0x6b2   :  { %15073 = vmatpush3.bf16.msra.mxu0 %v22992_v46 }
 0x6b3   :  { %17840 = vtanh.f32 %v11473_v42  ;;  %15095 = vmatpush3.bf16.msra.mxu1 %v22992_v46  ;;  %15074 = vmatprep.subr.bf16.mxu0 %v23001_v60  ;;  %v23625_v42 = vld [vmem:[%s24090_s5 + $0xd0] sm:$0xff]  }
 0x6b4   :  { %15096 = vmatprep.subr.bf16.mxu1 %v23001_v60 }
 0x6b6   :  { %15075 = vmatpush3.bf16.msra.mxu0 %v23021_v4 }
 0x6b7   :  { %15097 = vmatpush3.bf16.msra.mxu1 %v23021_v4  ;;  %15104 = vmatprep.subr.bf16.mxu0 %v23431_v0 }
 0x6b8   :  { %15126 = vmatprep.subr.bf16.mxu1 %v23431_v0 }
 0x6b9   :  { %11991 = vmatmul.mubr.bf16.vlgmr.msra.gmra.mrb[200].mxu0 %v23152_v20 }
 0x6ba   :  { %12031 = vmatmul.mubr.bf16.vlgmr.msra.gmra.mrb[200].mxu1 %v23158_v6  ;;  %15105 = vmatpush3.bf16.msra.mxu0 %v23453_v10  ;;  %v10953_v6 = vadd.f32 %v23299_v15, %v22832_v29 }
 0x6bb   :  { %12070 = vmatprep.mubr.bf16.mxu0 %v10538_v48  ;;  %15127 = vmatpush3.bf16.msra.mxu1 %v23453_v10  ;;  %v23710_v48 = vld [vmem:[%s24090_s5 + $0x28] sm:$0xff]  }
 0x6bc   :  { %12110 = vmatprep.mubr.bf16.mxu1 %v10541_v1  ;;  %15106 = vmatprep.subr.bf16.mxu0 %v23462_v62  ;;  %17842 = vtanh.f32 %v10953_v6  ;;  %v23717_v1 = vld [vmem:[%s24090_s5 + $0x70] sm:$0xff]  }
 0x6bd   :  { %v17841_v0 = vpop.eup %17840  ;;  %15128 = vmatprep.subr.bf16.mxu1 %v23462_v62 }
 0x6be   :  { %v12173_v20 = vpack.c.bf16 %v17841_v0, %v17841_v0  ;;  %15107 = vmatpush3.bf16.msra.mxu0 %v22900_v26 }
 0x6bf   :  { %15129 = vmatpush3.bf16.msra.mxu1 %v22900_v26  ;;  %15108 = vmatprep.subr.bf16.mxu0 %v22909_v61  ;;  %v23539_v26 = vpop.permute.xlu1 %12194 }
 0x6c0   :  { %12232 = vrot.lane.b32.xlu0 %v12173_v20, %s17982_s21  ;;  %15130 = vmatprep.subr.bf16.mxu1 %v22909_v61  ;;  %v23723_v20 = vld [vmem:[%s24090_s5 + $0xa8] sm:$0xff]  }
 0x6c2   :  { %15109 = vmatpush3.bf16.msra.mxu0 %v22926_v31 }
 0x6c3   :  { %15131 = vmatpush3.bf16.msra.mxu1 %v22926_v31  ;;  %15110 = vmatprep.subr.bf16.mxu0 %v22933_v39  ;;  %v23545_v29 = vpop.permute.xlu1 %12206 }
 0x6c4   :  { %15132 = vmatprep.subr.bf16.mxu1 %v22933_v39 }
 0x6c6   :  { %15111 = vmatpush3.bf16.msra.mxu0 %v22944_v22 }
 0x6c7   :  { %15133 = vmatpush3.bf16.msra.mxu1 %v22944_v22  ;;  %15112 = vmatprep.subr.bf16.mxu0 %v22951_v40  ;;  %v23555_v57 = vpop.permute.xlu1 %12216 }
 0x6c8   :  { %15134 = vmatprep.subr.bf16.mxu1 %v22951_v40 }
 0x6ca   :  { %15113 = vmatpush3.bf16.msra.mxu0 %v22958_v32 }
 0x6cb   :  { %15135 = vmatpush3.bf16.msra.mxu1 %v22958_v32  ;;  %15114 = vmatprep.subr.bf16.mxu0 %v22967_v24  ;;  %v12229_v32 = vpop.permute.xlu0 %12228  ;;  %v12251_v23 = vpop.permute.xlu1 %12250 }
 0x6cc   :  { %v14812_v61 = vpop.f32.mrb[176].mxu0  ;;  %15136 = vmatprep.subr.bf16.mxu1 %v22967_v24  ;;  %v17843_v24 = vpop.eup %17842 }
 0x6cd   :  { %v14834_v31 = vpop.f32.mrb[176].mxu1  ;;  %v14813_v39 = vpop.f32.mrb[177].mxu0  ;;  %v12160_v2 = vpack.c.bf16 %v17843_v24, %v17843_v24  ;;  %v23750_v24 = vld [vmem:[%s24090_s5 + $0xb0] sm:$0xff]  }
 0x6ce   :  { %v14814_v22 = vadd.f32 %v14813_v39, %v14812_v61  ;;  %v14835_v10 = vpop.f32.mrb[177].mxu1  ;;  %v14815_v62 = vpop.f32.mrb[178].mxu0  ;;  %15115 = vmatpush3.bf16.msra.mxu0 %v22976_v19 }
 0x6cf   :  { %v14836_v59 = vadd.f32 %v14835_v10, %v14834_v31  ;;  %v14837_v40 = vpop.f32.mrb[178].mxu1  ;;  %15137 = vmatpush3.bf16.msra.mxu1 %v22976_v19  ;;  %v14816_v34 = vpop.f32.mrb[179].mxu0  ;;  %15116 = vmatprep.subr.bf16.mxu0 %v22983_v16  ;;  %v23562_v19 = vld [vmem:[%s24090_s5 + $0x40] sm:$0xff]   ;;  %v12326_v37 = vsel %vm9974_vm3, %v12160_v2, %v12229_v32  ;;  %v23729_v31 = vld [vmem:[%s24090_s5 + $0xf0] sm:$0xff]   ;;  %v23743_v32 = vld [vmem:[%s24090_s5 + $0x78] sm:$0xff]  }
 0x6d0   :  { %v11513_v38 = vadd.f32 %v23299_v15, %v14814_v22  ;;  %v14838_v63 = vpop.f32.mrb[179].mxu1  ;;  %15138 = vmatprep.subr.bf16.mxu1 %v22983_v16  ;;  %v12241_v3 = vpop.permute.xlu0 %12240  ;;  %v23568_v16 = vld [vmem:[%s24090_s5 + $0xc0] sm:$0xff]   ;;  %v23735_v62 = vld [vmem:[%s24090_s5 + $0x30] sm:$0xff]   ;;  %v23757_v2 = vld [vmem:[%s24090_s5 + $0xf8] sm:$0xff]  }
 0x6d1   :  { %v11553_v25 = vadd.f32 %v23299_v15, %v14836_v59  ;;  %v12337_v53 = vsel %vm10119_vm4, %v12326_v37, %v12241_v3  ;;  %v23763_v3 = vld [vmem:[%s24090_s5 + $0x38] sm:$0xff]  }
 0x6d2   :  { %17844 = vtanh.f32 %v11513_v38  ;;  %15117 = vmatpush3.bf16.msra.mxu0 %v22992_v46  ;;  %v12345_v56 = vsel %vm10265_vm6, %v12337_v53, %v12251_v23  ;;  %v23771_v53 = vld [vmem:[%s24090_s5 + $0xb8] sm:$0xff]  }
 0x6d3   :  { %15139 = vmatpush3.bf16.msra.mxu1 %v22992_v46  ;;  %15118 = vmatprep.subr.bf16.mxu0 %v23001_v60  ;;  %17846 = vtanh.f32 %v11553_v25  ;;  %v23575_v46 = vld [vmem:[%s24090_s5] sm:$0xff]  }
 0x6d4   :  { %15140 = vmatprep.subr.bf16.mxu1 %v23001_v60  ;;  %v23583_v60 = vld [vmem:[%s24090_s5 + $0x48] sm:$0xff]   ;;  %17848 = vtanh.f32 %v11113_v47 }
 0x6d5   :  { %17850 = vtanh.f32 %v10713_v14 }
 0x6d6   :  { %15119 = vmatpush3.bf16.msra.mxu0 %v23021_v4 }
 0x6d7   :  { %15141 = vmatpush3.bf16.msra.mxu1 %v23021_v4  ;;  %15148 = vmatprep.subr.bf16.mxu0 %v23562_v19  ;;  %v23597_v4 = vld [vmem:[%s24090_s5 + $0xc8] sm:$0xff]  }
 0x6d8   :  { %15170 = vmatprep.subr.bf16.mxu1 %v23568_v16 }
 0x6d9   :  { %12071 = vmatmul.mubr.bf16.vlgmr.msra.gmra.mrb[204].mxu0 %v23251_v35  ;;  %v23611_v35 = vld [vmem:[%s24090_s5 + $0x50] sm:$0xff]  }
 0x6da   :  { %12111 = vmatmul.mubr.bf16.vlgmr.msra.gmra.mrb[204].mxu1 %v23257_v12  ;;  %15149 = vmatpush3.bf16.msra.mxu0 %v23575_v46  ;;  %v23617_v12 = vld [vmem:[%s24090_s5 + $0x88] sm:$0xff]  }
 0x6db   :  { %12683 = vmatprep.mubr.bf16.mxu0 %v12345_v56  ;;  %15150 = vmatprep.subr.bf16.mxu0 %v23583_v60 }
 0x6dc   :  { %v17845_v8 = vpop.eup %17844  ;;  %15171 = vmatpush3.bf16.msra.mxu1 %v23591_v11 }
 0x6dd   :  { %v23619_v13 = vpack.c.bf16 %v17845_v8, %v17845_v8  ;;  %15172 = vmatprep.subr.bf16.mxu1 %v23597_v4  ;;  %v17847_v58 = vpop.eup %17846 }
 0x6de   :  { %15151 = vmatpush3.bf16.msra.mxu0 %v23605_v52  ;;  %v12175_v18 = vpack.c.bf16 %v17847_v58, %v17847_v58  ;;  %v17849_v5 = vpop.eup %17848 }
 0x6df   :  { %12244 = vrot.lane.b32.xlu0 %v23619_v13, %s17984_s13  ;;  %15152 = vmatprep.subr.bf16.mxu0 %v23611_v35  ;;  %v12164_v44 = vpack.c.bf16 %v17849_v5, %v17849_v5  ;;  %v17851_v25 = vpop.eup %17850 }
 0x6e0   :  { %15173 = vmatpush3.bf16.msra.mxu1 %v23617_v12  ;;  %v12154_v37 = vpack.c.bf16 %v17851_v25, %v17851_v25 }
 0x6e1   :  { %15174 = vmatprep.subr.bf16.mxu1 %v23625_v42 }
 0x6e2   :  { %15153 = vmatpush3.bf16.msra.mxu0 %v23631_v21  ;;  %v12294_v23 = vsel %vm9974_vm3, %v12154_v37, %v23539_v26 }
 0x6e3   :  { %12254 = vrot.lane.b32.xlu0 %v12175_v18, %s17986_s19  ;;  %15154 = vmatprep.subr.bf16.mxu0 %v23639_v17  ;;  %v12305_v47 = vsel %vm10119_vm4, %v12294_v23, %v23545_v29 }
 0x6e4   :  { %15175 = vmatpush3.bf16.msra.mxu1 %v23645_v45  ;;  %v12313_v56 = vsel %vm10265_vm6, %v12305_v47, %v23555_v57 }
 0x6e5   :  { %15176 = vmatprep.subr.bf16.mxu1 %v23651_v51 }
 0x6e6   :  { %15155 = vmatpush3.bf16.msra.mxu0 %v23657_v7 }
 0x6e7   :  { %12230 = vrot.lane.b32.xlu0 %v23063_v9, %s17982_s21  ;;  %15156 = vmatprep.subr.bf16.mxu0 %v23666_v27  ;;  %v23704_v9 = vld [vmem:[%s24090_s5 + $0xe8] sm:$0xff]  }
 0x6e8   :  { %15177 = vmatpush3.bf16.msra.mxu1 %v23672_v43 }
 0x6e9   :  { %15178 = vmatprep.subr.bf16.mxu1 %v23678_v36 }
 0x6ea   :  { %15157 = vmatpush3.bf16.msra.mxu0 %v23684_v50 }
 0x6eb   :  { %12242 = vrot.lane.b32.xlu0 %v12164_v44, %s17984_s13  ;;  %15158 = vmatprep.subr.bf16.mxu0 %v23692_v28 }
 0x6ec   :  { %v14856_v0 = vpop.f32.mrb[180].mxu0  ;;  %15179 = vmatpush3.bf16.msra.mxu1 %v23698_v54 }
 0x6ed   :  { %v14878_v6 = vpop.f32.mrb[180].mxu1  ;;  %v14857_v61 = vpop.f32.mrb[181].mxu0  ;;  %15180 = vmatprep.subr.bf16.mxu1 %v23704_v9 }
 0x6ee   :  { %v14858_v39 = vadd.f32 %v14857_v61, %v14856_v0  ;;  %v14879_v22 = vpop.f32.mrb[181].mxu1  ;;  %v14859_v10 = vpop.f32.mrb[182].mxu0  ;;  %15159 = vmatpush3.bf16.msra.mxu0 %v23710_v48 }
 0x6ef   :  { %v14880_v59 = vadd.f32 %v14879_v22, %v14878_v6  ;;  %v14881_v40 = vpop.f32.mrb[182].mxu1  ;;  %v14860_v34 = vpop.f32.mrb[183].mxu0  ;;  %12200 = vrot.lane.b32.xlu0 %v23373_v55, %s17982_s21  ;;  %15160 = vmatprep.subr.bf16.mxu0 %v23717_v1 }
 0x6f0   :  { %v11593_v38 = vadd.f32 %v23299_v15, %v14858_v39  ;;  %v14882_v63 = vpop.f32.mrb[183].mxu1  ;;  %15181 = vmatpush3.bf16.msra.mxu1 %v23723_v20 }
 0x6f1   :  { %v11633_v55 = vadd.f32 %v23299_v15, %v14880_v59  ;;  %15182 = vmatprep.subr.bf16.mxu1 %v23729_v31 }
 0x6f2   :  { %17852 = vtanh.f32 %v11593_v38  ;;  %15161 = vmatpush3.bf16.msra.mxu0 %v23735_v62 }
 0x6f3   :  { %12234 = vrot.lane.b32.xlu0 %v12175_v18, %s17982_s21  ;;  %15162 = vmatprep.subr.bf16.mxu0 %v23743_v32  ;;  %17854 = vtanh.f32 %v11633_v55 }
 0x6f4   :  { %15183 = vmatpush3.bf16.msra.mxu1 %v23750_v24 }
 0x6f5   :  { %15184 = vmatprep.subr.bf16.mxu1 %v23757_v2 }
 0x6f6   :  { %15163 = vmatpush3.bf16.msra.mxu0 %v23763_v3 }
 0x6f7   :  { %15192 = vmatprep.subr.bf16.mxu0 %v23562_v19 }
 0x6f8   :  { %15185 = vmatpush3.bf16.msra.mxu1 %v23771_v53 }
 0x6f9   :  { %12684 = vmatmul.mubr.bf16.vlgmr.msra.gmra.mrb[208].mxu0 %v12313_v56  ;;  %15214 = vmatprep.subr.bf16.mxu1 %v23568_v16 }
 0x6fa   :  { %15193 = vmatpush3.bf16.msra.mxu0 %v23575_v46 }
 0x6fb   :  { %15194 = vmatprep.subr.bf16.mxu0 %v23583_v60 }
 0x6fc   :  { %v17853_v26 = vpop.eup %17852 }
 0x6fd   :  { %v12176_v8 = vpack.c.bf16 %v17853_v26, %v17853_v26  ;;  %v17855_v58 = vpop.eup %17854 }
 0x6fe   :  { %15195 = vmatpush3.bf16.msra.mxu0 %v23605_v52  ;;  %v12177_v29 = vpack.c.bf16 %v17855_v58, %v17855_v58 }
 0x6ff   :  { %12246 = vrot.lane.b32.xlu0 %v12176_v8, %s17984_s13  ;;  %15196 = vmatprep.subr.bf16.mxu0 %v23611_v35 }
 0x702   :  { %15197 = vmatpush3.bf16.msra.mxu0 %v23631_v21 }
 0x703   :  { %12256 = vrot.lane.b32.xlu0 %v12177_v29, %s17986_s19  ;;  %15198 = vmatprep.subr.bf16.mxu0 %v23639_v17 }
 0x706   :  { %15199 = vmatpush3.bf16.msra.mxu0 %v23657_v7 }
 0x707   :  { %15200 = vmatprep.subr.bf16.mxu0 %v23666_v27 }
 0x70a   :  { %15201 = vmatpush3.bf16.msra.mxu0 %v23684_v50 }
 0x70b   :  { %15202 = vmatprep.subr.bf16.mxu0 %v23692_v28 }
 0x70c   :  { %v14900_v57 = vpop.f32.mrb[184].mxu0 }
 0x70d   :  { %v14922_v18 = vpop.f32.mrb[184].mxu1  ;;  %v14901_v49 = vpop.f32.mrb[185].mxu0 }
 0x70e   :  { %v23796_v14 = vadd.f32 %v14901_v49, %v14900_v57  ;;  %v14923_v5 = vpop.f32.mrb[185].mxu1  ;;  %v14903_v44 = vpop.f32.mrb[186].mxu0  ;;  %15203 = vmatpush3.bf16.msra.mxu0 %v23710_v48  ;;  %v11433_v49 = vadd.f32 %v23299_v15, %v23484_v41 }
 0x70f   :  { %v14924_v0 = vadd.f32 %v14923_v5, %v14922_v18  ;;  %v14925_v6 = vpop.f32.mrb[186].mxu1  ;;  %v14904_v61 = vpop.f32.mrb[187].mxu0  ;;  %15204 = vmatprep.subr.bf16.mxu0 %v23717_v1  ;;  %v11193_v44 = vadd.f32 %v23299_v15, %v23195_v33 }
 0x710   :  { %v14926_v39 = vpop.f32.mrb[187].mxu1  ;;  %v12211_v18 = vpop.permute.xlu1 %12210 }
 0x711   :  { %v11713_v22 = vadd.f32 %v23299_v15, %v14924_v0  ;;  %v12199_v6 = vpop.permute.xlu0 %12198 }
 0x712   :  { %15205 = vmatpush3.bf16.msra.mxu0 %v23735_v62 }
 0x713   :  { %17856 = vtanh.f32 %v11713_v22  ;;  %15206 = vmatprep.subr.bf16.mxu0 %v23743_v32 }
 0x714   :  { %v12221_v0 = vpop.permute.xlu1 %12220 }
 0x716   :  { %15207 = vmatpush3.bf16.msra.mxu0 %v23763_v3 }
 0x717   :  { %15236 = vmatprep.subr.bf16.mxu0 %v23562_v19 }
 0x718   :  { %v12197_v61 = vpop.permute.xlu1 %12196 }
 0x71d   :  { %v17857_v10 = vpop.eup %17856 }
 0x71e   :  { %v12179_v59 = vpack.c.bf16 %v17857_v10, %v17857_v10 }
 0x720   :  { %12260 = vrot.lane.b32.xlu1 %v12179_v59, %s17982_s21 }
 0x72c   :  { %v14944_v40 = vpop.f32.mrb[188].mxu0 }
 0x72d   :  { %v14966_v34 = vpop.f32.mrb[188].mxu1  ;;  %v14945_v38 = vpop.f32.mrb[189].mxu0 }
 0x72e   :  { %v14946_v63 = vadd.f32 %v14945_v38, %v14944_v40  ;;  %v14967_v25 = vpop.f32.mrb[189].mxu1  ;;  %v14947_v55 = vpop.f32.mrb[190].mxu0 }
 0x72f   :  { %v14968_v37 = vadd.f32 %v14967_v25, %v14966_v34  ;;  %v14969_v23 = vpop.f32.mrb[190].mxu1  ;;  %v14948_v47 = vpop.f32.mrb[191].mxu0 }
 0x730   :  { %v11753_v56 = vadd.f32 %v23299_v15, %v14946_v63  ;;  %v14970_v26 = vpop.f32.mrb[191].mxu1  ;;  %v12209_v47 = vpop.permute.xlu1 %12208 }
 0x731   :  { %v11793_v8 = vadd.f32 %v23299_v15, %v14968_v37 }
 0x732   :  { %17858 = vtanh.f32 %v11753_v56  ;;  %v12233_v39 = vpop.permute.xlu0 %12232 }
 0x733   :  { %17860 = vtanh.f32 %v11793_v8 }
 0x734   :  { %17862 = vtanh.f32 %v11433_v49 }
 0x735   :  { %17864 = vtanh.f32 %v11193_v44 }
 0x73c   :  { %v17859_v58 = vpop.eup %17858 }
 0x73d   :  { %v23808_v29 = vpack.c.bf16 %v17859_v58, %v17859_v58  ;;  %v17861_v57 = vpop.eup %17860 }
 0x73e   :  { %v12181_v5 = vpack.c.bf16 %v17861_v57, %v17861_v57  ;;  %v17863_v38 = vpop.eup %17862 }
 0x73f   :  { %12266 = vrot.lane.b32.xlu1 %v23808_v29, %s17984_s13  ;;  %v17865_v55 = vpop.eup %17864  ;;  %v12172_v8 = vpack.c.bf16 %v17863_v38, %v17863_v38 }
 0x740   :  { %v12166_v58 = vpack.c.bf16 %v17865_v55, %v17865_v55 }
 0x741   :  { %v12332_v57 = vsel %vm9974_vm3, %v12172_v8, %v12233_v39 }
 0x742   :  { %v12300_v49 = vsel %vm9974_vm3, %v12166_v58, %v12199_v6 }
 0x743   :  { %12271 = vrot.lane.b32.xlu1 %v12181_v5, %s17986_s19 }
 0x747   :  { %12262 = vrot.lane.b32.xlu1 %v12181_v5, %s17982_s21 }
 0x74c   :  { %v14988_v22 = vpop.f32.mrb[192].mxu0 }
 0x74d   :  { %v15010_v10 = vpop.f32.mrb[192].mxu1  ;;  %v14989_v59 = vpop.f32.mrb[193].mxu0 }
 0x74e   :  { %v14990_v40 = vadd.f32 %v14989_v59, %v14988_v22  ;;  %v15011_v34 = vpop.f32.mrb[193].mxu1  ;;  %v14991_v41 = vpop.f32.mrb[194].mxu0  ;;  %v12309_v22 = vsel %vm10119_vm4, %v12300_v49, %v12211_v18 }
 0x74f   :  { %v15012_v63 = vadd.f32 %v15011_v34, %v15010_v10  ;;  %v15013_v25 = vpop.f32.mrb[194].mxu1  ;;  %v14992_v33 = vpop.f32.mrb[195].mxu0  ;;  %v23826_v59 = vsel %vm10265_vm6, %v12309_v22, %v12221_v0  ;;  %v24479_v41 = vld [vmem:[#allocation21_spill] sm:$0xff] }
 0x750   :  { %v11833_v37 = vadd.f32 %v23299_v15, %v14990_v40  ;;  %v15014_v23 = vpop.f32.mrb[195].mxu1 }
 0x751   :  { %v11873_v56 = vadd.f32 %v23299_v15, %v15012_v63  ;;  %v12245_v26 = vpop.permute.xlu0 %12244  ;;  %v12253_v15 = vpop.permute.xlu1 %12252  ;;  %v24480_v63 = vld [vmem:[#allocation72_spill] sm:$0xff] }
 0x752   :  { %17866 = vtanh.f32 %v11833_v37  ;;  %v12341_v5 = vsel %vm10119_vm4, %v12332_v57, %v12245_v26  ;;  %v12297_v25 = vsel %vm9974_vm3, %v24480_v63, %v12197_v61 }
 0x753   :  { %17868 = vtanh.f32 %v11873_v56  ;;  %v12307_v55 = vsel %vm10119_vm4, %v12297_v25, %v12209_v47 }
 0x755   :  { %v12255_v44 = vpop.permute.xlu0 %12254  ;;  %v12219_v39 = vpop.permute.xlu1 %12218 }
 0x756   :  { %v12351_v10 = vsel %vm10265_vm6, %v12341_v5, %v12255_v44  ;;  %v12316_v23 = vsel %vm10265_vm6, %v12307_v55, %v12219_v39  ;;  %v23866_v39 = vld [vmem:[%s24089_s4] ss:$0 sm:$0xff] }
 0x757   :  { %12723 = vmatprep.mubr.bf16.mxu1 %v12351_v10 }
 0x758   :  { %12724 = vmatmul.mubr.bf16.vlgmr.msra.gmra.mrb[208].mxu1 %v23826_v59 }
 0x759   :  { %v12231_v40 = vpop.permute.xlu0 %12230  ;;  %15215 = vmatpush3.bf16.msra.mxu1 %v23591_v11 }
 0x75a   :  { %15216 = vmatprep.subr.bf16.mxu1 %v23597_v4  ;;  %v12329_v18 = vsel %vm9974_vm3, %v24479_v41, %v12231_v40 }
 0x75c   :  { %v17867_v6 = vpop.eup %17866 }
 0x75d   :  { %v12182_v34 = vpack.c.bf16 %v17867_v6, %v17867_v6  ;;  %v12243_v38 = vpop.permute.xlu0 %12242  ;;  %15217 = vmatpush3.bf16.msra.mxu1 %v23617_v12  ;;  %v17869_v0 = vpop.eup %17868 }
 0x75e   :  { %v12339_v33 = vsel %vm10119_vm4, %v12329_v18, %v12243_v38  ;;  %15218 = vmatprep.subr.bf16.mxu1 %v23625_v42  ;;  %v12183_v56 = vpack.c.bf16 %v17869_v0, %v17869_v0 }
 0x75f   :  { %12268 = vrot.lane.b32.xlu1 %v12182_v34, %s17984_s13  ;;  %v12348_v37 = vsel %vm10265_vm6, %v12339_v33, %v12253_v15  ;;  %v12213_v15 = vpop.permute.xlu1 %12212 }
 0x760   :  { %12763 = vmatprep.mubr.bf16.mxu0 %v12348_v37 }
 0x761   :  { %12764 = vmatmul.mubr.bf16.vlgmr.msra.gmra.mrb[212].mxu0 %v12316_v23  ;;  %15219 = vmatpush3.bf16.msra.mxu1 %v23645_v45  ;;  %v12201_v61 = vpop.permute.xlu0 %12200 }
 0x762   :  { %15237 = vmatpush3.bf16.msra.mxu0 %v23575_v46  ;;  %12843 = vmatprep.mubr.bf16.mxu0 %v12351_v10  ;;  %v12303_v6 = vsel %vm9974_vm3, %v23358_v30, %v12201_v61 }
 0x763   :  { %12273 = vrot.lane.b32.xlu1 %v12183_v56, %s17986_s19  ;;  %15220 = vmatprep.subr.bf16.mxu1 %v23651_v51  ;;  %v12311_v18 = vsel %vm10119_vm4, %v12303_v6, %v12213_v15  ;;  %v12223_v63 = vpop.permute.xlu1 %12222 }
 0x764   :  { %15238 = vmatprep.subr.bf16.mxu0 %v23583_v60  ;;  %v23882_v33 = vsel %vm10265_vm6, %v12311_v18, %v12223_v63 }
 0x765   :  { %15221 = vmatpush3.bf16.msra.mxu1 %v23672_v43  ;;  %v12235_v47 = vpop.permute.xlu0 %12234 }
 0x766   :  { %15239 = vmatpush3.bf16.msra.mxu0 %v23605_v52  ;;  %15222 = vmatprep.subr.bf16.mxu1 %v23678_v36  ;;  %v12335_v30 = vsel %vm9974_vm3, %v23619_v13, %v12235_v47 }
 0x767   :  { %15240 = vmatprep.subr.bf16.mxu0 %v23611_v35 }
 0x769   :  { %15223 = vmatpush3.bf16.msra.mxu1 %v23698_v54 }
 0x76a   :  { %15241 = vmatpush3.bf16.msra.mxu0 %v23631_v21  ;;  %15224 = vmatprep.subr.bf16.mxu1 %v23704_v9 }
 0x76b   :  { %15242 = vmatprep.subr.bf16.mxu0 %v23639_v17 }
 0x76c   :  { %v15032_v26 = vpop.f32.mrb[196].mxu0 }
 0x76d   :  { %v15054_v8 = vpop.f32.mrb[196].mxu1  ;;  %v15033_v58 = vpop.f32.mrb[197].mxu0  ;;  %15225 = vmatpush3.bf16.msra.mxu1 %v23723_v20 }
 0x76e   :  { %v23856_v57 = vadd.f32 %v15033_v58, %v15032_v26  ;;  %v15055_v49 = vpop.f32.mrb[197].mxu1  ;;  %15243 = vmatpush3.bf16.msra.mxu0 %v23657_v7  ;;  %v15035_v5 = vpop.f32.mrb[198].mxu0  ;;  %15226 = vmatprep.subr.bf16.mxu1 %v23729_v31 }
 0x76f   :  { %v15056_v44 = vadd.f32 %v15055_v49, %v15054_v8  ;;  %v15057_v22 = vpop.f32.mrb[198].mxu1  ;;  %v15036_v10 = vpop.f32.mrb[199].mxu0  ;;  %15244 = vmatprep.subr.bf16.mxu0 %v23666_v27 }
 0x770   :  { %v15058_v40 = vpop.f32.mrb[199].mxu1 }
 0x771   :  { %v11953_v34 = vadd.f32 %v23866_v39, %v15056_v44  ;;  %v12247_v41 = vpop.permute.xlu0 %12246  ;;  %15227 = vmatpush3.bf16.msra.mxu1 %v23750_v24 }
 0x772   :  { %15245 = vmatpush3.bf16.msra.mxu0 %v23684_v50  ;;  %15228 = vmatprep.subr.bf16.mxu1 %v23757_v2  ;;  %v12343_v38 = vsel %vm10119_vm4, %v12335_v30, %v12247_v41  ;;  %v11913_v30 = vadd.f32 %v23866_v39, %v23856_v57 }
 0x773   :  { %17870 = vtanh.f32 %v11953_v34  ;;  %15246 = vmatprep.subr.bf16.mxu0 %v23692_v28 }
 0x775   :  { %v12257_v0 = vpop.permute.xlu0 %12256  ;;  %15229 = vmatpush3.bf16.msra.mxu1 %v23771_v53 }
 0x776   :  { %15247 = vmatpush3.bf16.msra.mxu0 %v23710_v48  ;;  %v12354_v25 = vsel %vm10265_vm6, %v12343_v38, %v12257_v0  ;;  %15258 = vmatprep.subr.bf16.mxu1 %v23568_v16  ;;  %v11673_v38 = vadd.f32 %v23866_v39, %v23796_v14 }
 0x777   :  { %12803 = vmatprep.mubr.bf16.mxu1 %v12354_v25  ;;  %15248 = vmatprep.subr.bf16.mxu0 %v23717_v1 }
 0x778   :  { %12804 = vmatmul.mubr.bf16.vlgmr.msra.gmra.mrb[212].mxu1 %v23882_v33 }
 0x779   :  { %15259 = vmatpush3.bf16.msra.mxu1 %v23591_v11 }
 0x77a   :  { %15249 = vmatpush3.bf16.msra.mxu0 %v23735_v62  ;;  %15260 = vmatprep.subr.bf16.mxu1 %v23597_v4 }
 0x77b   :  { %15250 = vmatprep.subr.bf16.mxu0 %v23743_v32 }
 0x77d   :  { %v17871_v13 = vpop.eup %17870  ;;  %15261 = vmatpush3.bf16.msra.mxu1 %v23617_v12 }
 0x77e   :  { %v12185_v55 = vpack.c.bf16 %v17871_v13, %v17871_v13  ;;  %15251 = vmatpush3.bf16.msra.mxu0 %v23763_v3  ;;  %15262 = vmatprep.subr.bf16.mxu1 %v23625_v42 }
 0x77f   :  { %15280 = vmatprep.subr.bf16.mxu0 %v23562_v19 }
 0x780   :  { %12277 = vrot.lane.b32.xlu0 %v12185_v55, %s17982_s21 }
 0x781   :  { %12844 = vmatmul.mubr.bf16.vlgmr.msra.gmra.mrb[216].mxu0 %v23826_v59  ;;  %15263 = vmatpush3.bf16.msra.mxu1 %v23645_v45 }
 0x782   :  { %15281 = vmatpush3.bf16.msra.mxu0 %v23575_v46  ;;  %12923 = vmatprep.mubr.bf16.mxu0 %v12354_v25 }
 0x783   :  { %15282 = vmatprep.subr.bf16.mxu0 %v23583_v60  ;;  %15264 = vmatprep.subr.bf16.mxu1 %v23651_v51 }
 0x785   :  { %15265 = vmatpush3.bf16.msra.mxu1 %v23672_v43 }
 0x786   :  { %15283 = vmatpush3.bf16.msra.mxu0 %v23605_v52  ;;  %15266 = vmatprep.subr.bf16.mxu1 %v23678_v36 }
 0x787   :  { %15284 = vmatprep.subr.bf16.mxu0 %v23611_v35 }
 0x789   :  { %15267 = vmatpush3.bf16.msra.mxu1 %v23698_v54 }
 0x78a   :  { %15285 = vmatpush3.bf16.msra.mxu0 %v23631_v21  ;;  %15268 = vmatprep.subr.bf16.mxu1 %v23704_v9 }
 0x78b   :  { %15286 = vmatprep.subr.bf16.mxu0 %v23639_v17 }
 0x78c   :  { %v15076_v19 = vpop.f32.mrb[200].mxu0 }
 0x78d   :  { %v15098_v46 = vpop.f32.mrb[200].mxu1  ;;  %v15077_v60 = vpop.f32.mrb[201].mxu0  ;;  %15269 = vmatpush3.bf16.msra.mxu1 %v23723_v20 }
 0x78e   :  { %v15078_v59 = vadd.f32 %v15077_v60, %v15076_v19  ;;  %v15099_v37 = vpop.f32.mrb[201].mxu1  ;;  %15287 = vmatpush3.bf16.msra.mxu0 %v23657_v7  ;;  %v15079_v52 = vpop.f32.mrb[202].mxu0  ;;  %15270 = vmatprep.subr.bf16.mxu1 %v23729_v31 }
 0x78f   :  { %v15100_v35 = vadd.f32 %v15099_v37, %v15098_v46  ;;  %v15101_v23 = vpop.f32.mrb[202].mxu1  ;;  %v15080_v56 = vpop.f32.mrb[203].mxu0  ;;  %15288 = vmatprep.subr.bf16.mxu0 %v23666_v27 }
 0x790   :  { %v11993_v21 = vadd.f32 %v23866_v39, %v15078_v59  ;;  %v15102_v17 = vpop.f32.mrb[203].mxu1 }
 0x791   :  { %v12033_v61 = vadd.f32 %v23866_v39, %v15100_v35  ;;  %15271 = vmatpush3.bf16.msra.mxu1 %v23750_v24 }
 0x792   :  { %17872 = vtanh.f32 %v11993_v21  ;;  %15289 = vmatpush3.bf16.msra.mxu0 %v23684_v50  ;;  %15272 = vmatprep.subr.bf16.mxu1 %v23757_v2  ;;  %v12261_v0 = vpop.permute.xlu1 %12260 }
 0x793   :  { %15290 = vmatprep.subr.bf16.mxu0 %v23692_v28  ;;  %17874 = vtanh.f32 %v12033_v61 }
 0x795   :  { %15273 = vmatpush3.bf16.msra.mxu1 %v23771_v53 }
 0x796   :  { %15291 = vmatpush3.bf16.msra.mxu0 %v23710_v48  ;;  %15302 = vmatprep.subr.bf16.mxu1 %v23568_v16 }
 0x797   :  { %15292 = vmatprep.subr.bf16.mxu0 %v23717_v1 }
 0x79a   :  { %15293 = vmatpush3.bf16.msra.mxu0 %v23735_v62 }
 0x79b   :  { %15294 = vmatprep.subr.bf16.mxu0 %v23743_v32 }
 0x79c   :  { %v17873_v7 = vpop.eup %17872 }
 0x79d   :  { %v23924_v27 = vpack.c.bf16 %v17873_v7, %v17873_v7  ;;  %v17875_v50 = vpop.eup %17874 }
 0x79e   :  { %15295 = vmatpush3.bf16.msra.mxu0 %v23763_v3  ;;  %v12187_v28 = vpack.c.bf16 %v17875_v50, %v17875_v50 }
 0x79f   :  { %12283 = vrot.lane.b32.xlu0 %v23924_v27, %s17984_s13 }
 0x7a1   :  { %12924 = vmatmul.mubr.bf16.vlgmr.msra.gmra.mrb[220].mxu0 %v23882_v33 }
 0x7a3   :  { %12288 = vrot.lane.b32.xlu0 %v12187_v28, %s17986_s19 }
 0x7a7   :  { %12279 = vrot.lane.b32.xlu0 %v12187_v28, %s17982_s21 }
 0x7ac   :  { %v15120_v16 = vpop.f32.mrb[204].mxu0 }
 0x7ad   :  { %v15142_v48 = vpop.f32.mrb[204].mxu1  ;;  %v15121_v1 = vpop.f32.mrb[205].mxu0 }
 0x7ae   :  { %v15122_v62 = vadd.f32 %v15121_v1, %v15120_v16  ;;  %v15143_v32 = vpop.f32.mrb[205].mxu1  ;;  %v15123_v47 = vpop.f32.mrb[206].mxu0 }
 0x7af   :  { %v15144_v26 = vadd.f32 %v15143_v32, %v15142_v48  ;;  %v15145_v8 = vpop.f32.mrb[206].mxu1  ;;  %v15124_v58 = vpop.f32.mrb[207].mxu0  ;;  %v24481_v48 = vmov 0.0  }
 0x7b0   :  { %v12073_v3 = vadd.f32 %v23866_v39, %v15122_v62  ;;  %v15146_v49 = vpop.f32.mrb[207].mxu1 }
 0x7b1   :  { %v12113_v5 = vadd.f32 %v23866_v39, %v15144_v26  ;;  %v12267_v25 = vpop.permute.xlu1 %12266 }
 0x7b2   :  { %17876 = vtanh.f32 %v12073_v3 }
 0x7b3   :  { %17878 = vtanh.f32 %v12113_v5 }
 0x7b4   :  { %17880 = vtanh.f32 %v11913_v30  ;;  %v17397_v30 = vld [vmem:[%s24092_s7] sm:$0xff]  }
 0x7b5   :  { %17882 = vtanh.f32 %v11673_v38  ;;  %v12272_v60 = vpop.permute.xlu1 %12271  ;;  %v17398_v38 = vld [vmem:[%s24092_s7 + $0x48] sm:$0xff]  }
 0x7b9   :  { %v12263_v23 = vpop.permute.xlu1 %12262 }
 0x7ba   :  { %v12361_v7 = vsel %vm9974_vm3, %v23808_v29, %v12263_v23 }
 0x7bc   :  { %v17877_v44 = vpop.eup %17876 }
 0x7bd   :  { %v12188_v22 = vpack.c.bf16 %v17877_v44, %v17877_v44  ;;  %v17879_v10 = vpop.eup %17878 }
 0x7be   :  { %v12189_v15 = vpack.c.bf16 %v17879_v10, %v17879_v10  ;;  %v17881_v33 = vpop.eup %17880 }
 0x7bf   :  { %12285 = vrot.lane.b32.xlu0 %v12188_v22, %s17984_s13  ;;  %v17883_v13 = vpop.eup %17882  ;;  %v12184_v19 = vpack.c.bf16 %v17881_v33, %v17881_v33  ;;  %v17402_v33 = vld [vmem:[%s24092_s7 + $0x58] sm:$0xff]  }
 0x7c0   :  { %v12178_v46 = vpack.c.bf16 %v17883_v13, %v17883_v13  ;;  %v17403_v13 = vld [vmem:[%s24092_s7 + $0x18] sm:$0xff]  }
 0x7c2   :  { %v12358_v37 = vsel %vm9974_vm3, %v12178_v46, %v12261_v0  ;;  %v17399_v0 = vld [vmem:[%s24092_s7 + $0x8] sm:$0xff]  }
 0x7c3   :  { %12290 = vrot.lane.b32.xlu0 %v12189_v15, %s17986_s19  ;;  %v12363_v14 = vsel %vm10119_vm4, %v12358_v37, %v12267_v25  ;;  %v17401_v25 = vld [vmem:[%s24092_s7 + $0x10] sm:$0xff]   ;;  %v17406_v46 = vld [vmem:[%s24092_s7 + $0x68] sm:$0xff]  }
 0x7c4   :  { %v12367_v35 = vsel %vm10265_vm6, %v12363_v14, %v12272_v60  ;;  %v17407_v60 = vld [vmem:[%s24092_s7 + $0x28] sm:$0xff]   ;;  %v17409_v37 = vld [vmem:[%s24092_s7 + $0x30] sm:$0xff]  }
 0x7cc   :  { %v15164_v40 = vpop.f32.mrb[208].mxu0 }
 0x7cd   :  { %v15165_v6 = vpop.f32.mrb[209].mxu0 }
 0x7ce   :  { %v15166_v34 = vadd.f32 %v15165_v6, %v15164_v40  ;;  %v15167_v41 = vpop.f32.mrb[210].mxu0 }
 0x7cf   :  { %v15168_v18 = vpop.f32.mrb[211].mxu0 }
 0x7d0   :  { %v17396_v18 = vld [vmem:[%s24092_s7 + $0x40] sm:$0xff]  }
 0x7d1   :  { %15324 = vmatprep.subr.bf16.mxu0 %v17396_v18 }
 0x7d2   :  { %15325 = vmatpush3.bf16.msra.mxu0 %v17397_v30 }
 0x7d3   :  { %15326 = vmatprep.subr.bf16.mxu0 %v17398_v38 }
 0x7d6   :  { %15327 = vmatpush3.bf16.msra.mxu0 %v17399_v0 }
 0x7f2   :  { %v12278_v63 = vpop.permute.xlu0 %12277 }
 0x7f3   :  { %v12374_v59 = vsel %vm9974_vm3, %v12184_v19, %v12278_v63  ;;  %v17400_v63 = vld [vmem:[%s24092_s7 + $0x50] sm:$0xff]   ;;  %v17405_v19 = vld [vmem:[%s24092_s7 + $0x20] sm:$0xff]  }
 0x7f4   :  { %15328 = vmatprep.subr.bf16.mxu0 %v17400_v63 }
 0x7f5   :  { %15329 = vmatpush3.bf16.msra.mxu0 %v17401_v25 }
 0x7f6   :  { %15330 = vmatprep.subr.bf16.mxu0 %v17402_v33 }
 0x7f9   :  { %15331 = vmatpush3.bf16.msra.mxu0 %v17403_v13 }
 0x811   :  { %v12284_v55 = vpop.permute.xlu0 %12283 }
 0x812   :  { %v12379_v57 = vsel %vm10119_vm4, %v12374_v59, %v12284_v55  ;;  %v17404_v55 = vld [vmem:[%s24092_s7 + $0x60] sm:$0xff]   ;;  %v17408_v59 = vld [vmem:[%s24092_s7 + $0x70] sm:$0xff]  }
 0x813   :  { %15332 = vmatprep.subr.bf16.mxu0 %v17404_v55 }
 0x814   :  { %15333 = vmatpush3.bf16.msra.mxu0 %v17405_v19 }
 0x815   :  { %v12289_v52 = vpop.permute.xlu0 %12288  ;;  %15334 = vmatprep.subr.bf16.mxu0 %v17406_v46 }
 0x816   :  { %v12383_v39 = vsel %vm10265_vm6, %v12379_v57, %v12289_v52  ;;  %v17410_v57 = vld [vmem:[%s24092_s7 + $0x78] sm:$0xff]  }
 0x817   :  { %12883 = vmatprep.mubr.bf16.mxu1 %v12383_v39  ;;  %v17411_v52 = vld [vmem:[%s24092_s7 + $0x38] sm:$0xff]  }
 0x818   :  { %12884 = vmatmul.mubr.bf16.vlgmr.msra.gmra.mrb[216].mxu1 %v12367_v35  ;;  %15335 = vmatpush3.bf16.msra.mxu0 %v17407_v60 }
 0x819   :  { %15303 = vmatpush3.bf16.msra.mxu1 %v23591_v11  ;;  %v23958_v11 = vld [vmem:[%s24091_s6] ss:$0 sm:$0xff]  ;;  %15336 = vmatprep.subr.bf16.mxu0 %v17408_v59  ;;  %s17988_s6 = smov [#allocation2]  }
 0x81a   :  { %15304 = vmatprep.subr.bf16.mxu1 %v23597_v4  ;;  %s13288_s19 = sshll.u32 %s17988_s6, 4  ;;  %s13289_s19 = int_to_ptr.vmem [resolvable:$true] %s13288_s19 }
 0x81b   :  { %p17960_p1 = scmp.lt.s32.totalorder %s13289_s19, %s13289_s19 }
 0x81c   :  { %15337 = vmatpush3.bf16.msra.mxu0 %v17409_v37 }
 0x81d   :  { %15305 = vmatpush3.bf16.msra.mxu1 %v23617_v12  ;;  %15338 = vmatprep.subr.bf16.mxu0 %v17410_v57 }
 0x81e   :  { %15306 = vmatprep.subr.bf16.mxu1 %v23625_v42  ;;  %v12686_v42 = vadd.f32 %v15166_v34, %v23958_v11 }
 0x820   :  { %15339 = vmatpush3.bf16.msra.mxu0 %v17411_v52 }
 0x821   :  { %15307 = vmatpush3.bf16.msra.mxu1 %v23645_v45  ;;  %v12280_v45 = vpop.permute.xlu0 %12279 }
 0x822   :  { %15308 = vmatprep.subr.bf16.mxu1 %v23651_v51  ;;  %v12377_v17 = vsel %vm9974_vm3, %v23924_v27, %v12280_v45 }
 0x825   :  { %15309 = vmatpush3.bf16.msra.mxu1 %v23672_v43  ;;  %v12269_v43 = vpop.permute.xlu1 %12268 }
 0x826   :  { %15310 = vmatprep.subr.bf16.mxu1 %v23678_v36 }
 0x829   :  { %15311 = vmatpush3.bf16.msra.mxu1 %v23698_v54 }
 0x82a   :  { %15312 = vmatprep.subr.bf16.mxu1 %v23704_v9  ;;  %v12274_v9 = vpop.permute.xlu1 %12273 }
 0x82b   :  { %v15186_v4 = vpop.f32.mrb[208].mxu1 }
 0x82c   :  { %v15187_v12 = vpop.f32.mrb[209].mxu1 }
 0x82d   :  { %v15188_v51 = vadd.f32 %v15187_v12, %v15186_v4  ;;  %v15189_v56 = vpop.f32.mrb[210].mxu1  ;;  %15313 = vmatpush3.bf16.msra.mxu1 %v23723_v20 }
 0x82e   :  { %v15190_v36 = vpop.f32.mrb[211].mxu1  ;;  %15314 = vmatprep.subr.bf16.mxu1 %v23729_v31  ;;  %v12365_v31 = vsel %vm10119_vm4, %v12361_v7, %v12269_v43 }
 0x82f   :  { %v23964_v54 = vadd.f32 %v15188_v51, %v12686_v42  ;;  %v12370_v27 = vsel %vm10265_vm6, %v12365_v31, %v12274_v9  ;;  %v17417_v31 = vld [vmem:[%s24094_s9 + $0x28] sm:$0xff]  }
 0x831   :  { %v12286_v21 = vpop.permute.xlu0 %12285  ;;  %15315 = vmatpush3.bf16.msra.mxu1 %v23750_v24 }
 0x832   :  { %15316 = vmatprep.subr.bf16.mxu1 %v23757_v2  ;;  %v12381_v20 = vsel %vm10119_vm4, %v12377_v17, %v12286_v21  ;;  %v17412_v17 = vld [vmem:[%s24094_s9] sm:$0xff]  }
 0x834   :  { %v15208_v61 = vpop.f32.mrb[212].mxu0 }
 0x835   :  { %v12291_v50 = vpop.permute.xlu0 %12290  ;;  %v15209_v28 = vpop.f32.mrb[213].mxu0  ;;  %15317 = vmatpush3.bf16.msra.mxu1 %v23771_v53 }
 0x836   :  { %v15210_v16 = vadd.f32 %v15209_v28, %v15208_v61  ;;  %v15211_v24 = vpop.f32.mrb[214].mxu0  ;;  %v12386_v2 = vsel %vm10265_vm6, %v12381_v20, %v12291_v50  ;;  %17315 = vmatprep.subr.bf16.mxu1 %v24481_v48  ;;  %v17413_v61 = vld [vmem:[%s24094_s9 + $0x8] sm:$0xff]   ;;  %v17415_v50 = vld [vmem:[%s24094_s9 + $0x18] sm:$0xff]   ;;  %v17416_v28 = vld [vmem:[%s24094_s9 + $0x20] sm:$0xff]  }
 0x837   :  { %v15212_v1 = vpop.f32.mrb[215].mxu0  ;;  %12963 = vmatprep.mubr.bf16.mxu1 %v12386_v2 }
 0x838   :  { %12964 = vmatmul.mubr.bf16.vlgmr.msra.gmra.mrb[220].mxu1 %v12370_v27  ;;  %v12766_v53 = vadd.f32 %v15210_v16, %v23958_v11 }
 0x839   :  { %17331 = vmatprep.mubr.msk.bf16.mxu1 %vm17980_vm0, %v24481_v48  ;;  %17316 = vmatpush3.bf16.msra.mxu1 %v17412_v17 }
 0x83a   :  { %17317 = vmatprep.subr.bf16.mxu1 %v24481_v48 }
 0x83d   :  { %17318 = vmatpush3.bf16.msra.mxu1 %v17413_v61 }
 0x83e   :  { %17319 = vmatprep.subr.bf16.mxu1 %v24481_v48 }
 0x84b   :  { %v15230_v29 = vpop.f32.mrb[212].mxu1 }
 0x84c   :  { %v15231_v62 = vpop.f32.mrb[213].mxu1 }
 0x84d   :  { %v15232_v32 = vadd.f32 %v15231_v62, %v15230_v29  ;;  %v15233_v47 = vpop.f32.mrb[214].mxu1 }
 0x84e   :  { %v15234_v26 = vpop.f32.mrb[215].mxu1 }
 0x84f   :  { %v12806_v8 = vadd.f32 %v15232_v32, %v12766_v53  ;;  %v17418_v32 = vld [vmem:[%s24094_s9 + $0x30] sm:$0xff]   ;;  %v13546_v26 = vld [vmem:[%s24093_s8] ss:$0 sm:$0xff]  ;;  %s17955_s8 = scalar_lea.vmem %s13289_s19, 32 }
 0x850   :  { %p17956_p0 = scmp.ne.s32.totalorder %s13289_s19, %s17955_s8  ;;  %p17961_p2 = scmp.lt.s32.totalorder %s17955_s8, %s17955_s8 }
 0x851   :  { %17884 = vtanh.f32 %v12806_v8 }
 0x852   :  { %p17962_p3 = por %p17961_p2, %p17960_p1 }
 0x854   :  { %v15252_v58 = vpop.f32.mrb[216].mxu0  ;;  %p17963_p4 = pnand %p17962_p3, %p17956_p0 }
 0x855   :  { %v15253_v3 = vpop.f32.mrb[217].mxu0 }
 0x856   :  { %v15254_v49 = vadd.f32 %v15253_v3, %v15252_v58  ;;  %v15255_v5 = vpop.f32.mrb[218].mxu0 }
 0x857   :  { %v15256_v44 = vpop.f32.mrb[219].mxu0 }
 0x858   :  { %v12846_v35 = vadd.f32 %v15254_v49, %v23958_v11 }
 0x85b   :  { %v17885_v22 = vpop.eup %17884 }
 0x85c   :  { %v12976_v10 = vpack.c.bf16 %v17885_v22, %v17885_v22 }
 0x85e   :  { %12980 = vrot.lane.b32.xlu1 %v12976_v10, %s17984_s13 }
 0x874   :  { %v15296_v15 = vpop.f32.mrb[220].mxu0 }
 0x875   :  { %v15297_v40 = vpop.f32.mrb[221].mxu0 }
 0x876   :  { %v15298_v6 = vadd.f32 %v15297_v40, %v15296_v15  ;;  %v15299_v34 = vpop.f32.mrb[222].mxu0 }
 0x877   :  { %v15300_v41 = vpop.f32.mrb[223].mxu0 }
 0x878   :  { %v12926_v56 = vadd.f32 %v15298_v6, %v23958_v11  ;;  %v17414_v11 = vld [vmem:[%s24094_s9 + $0x10] sm:$0xff]  }
 0x879   :  { %17320 = vmatpush3.bf16.msra.mxu1 %v17414_v11 }
 0x87a   :  { %17321 = vmatprep.subr.bf16.mxu1 %v24481_v48 }
 0x87d   :  { %17322 = vmatpush3.bf16.msra.mxu1 %v17415_v50 }
 0x87e   :  { %17323 = vmatprep.subr.bf16.mxu1 %v24481_v48 }
 0x881   :  { %17324 = vmatpush3.bf16.msra.mxu1 %v17416_v28 }
 0x882   :  { %17325 = vmatprep.subr.bf16.mxu1 %v24481_v48 }
 0x885   :  { %17326 = vmatpush3.bf16.msra.mxu1 %v17417_v31 }
 0x886   :  { %17327 = vmatprep.subr.bf16.mxu1 %v24481_v48 }
 0x889   :  { %17328 = vmatpush3.bf16.msra.mxu1 %v17418_v32 }
 0x88a   :  { %17329 = vmatprep.subr.bf16.mxu1 %v24481_v48  ;;  %v13563_v48 = vld [vmem:[%s24095_s10] ss:$0 sm:$0xff] }
 0x8d0   :  { %v12981_v2 = vpop.permute.xlu1 %12980 }
 0x8eb   :  { %v15274_v14 = vpop.f32.mrb[216].mxu1 }
 0x8ec   :  { %v15275_v39 = vpop.f32.mrb[217].mxu1 }
 0x8ed   :  { %v15276_v23 = vadd.f32 %v15275_v39, %v15274_v14  ;;  %v15277_v4 = vpop.f32.mrb[218].mxu1 }
 0x8ee   :  { %v15278_v12 = vpop.f32.mrb[219].mxu1 }
 0x8ef   :  { %v12886_v42 = vadd.f32 %v15276_v23, %v12846_v35 }
 0x90b   :  { %v15318_v45 = vpop.f32.mrb[220].mxu1 }
 0x90c   :  { %v15319_v51 = vpop.f32.mrb[221].mxu1 }
 0x90d   :  { %v15320_v43 = vadd.f32 %v15319_v51, %v15318_v45  ;;  %v15321_v36 = vpop.f32.mrb[222].mxu1 }
 0x90e   :  { %v15322_v21 = vpop.f32.mrb[223].mxu1 }
 0x90f   :  { %v12966_v9 = vadd.f32 %v15320_v43, %v12926_v56 }
 0x911   :  { %17886 = vtanh.f32 %v12966_v9 }
 0x912   :  { %17888 = vtanh.f32 %v12886_v42 }
 0x913   :  { %17890 = vtanh.f32 %v23964_v54  ;;  %v17419_v54 = vld [vmem:[%s24094_s9 + $0x38] sm:$0xff]  }
 0x914   :  { %17330 = vmatpush3.bf16.msra.mxu1 %v17419_v54 }
 0x91b   :  { %v17887_v7 = vpop.eup %17886 }
 0x91c   :  { %v12978_v20 = vpack.c.bf16 %v17887_v7, %v17887_v7  ;;  %v17889_v16 = vpop.eup %17888 }
 0x91d   :  { %v17891_v24 = vpop.eup %17890  ;;  %v12977_v27 = vpack.c.bf16 %v17889_v16, %v17889_v16 }
 0x91e   :  { %12983 = vrot.lane.b32.xlu0 %v12978_v20, %s17984_s13  ;;  %v12975_v1 = vpack.c.bf16 %v17891_v24, %v17891_v24 }
 0x920   :  { %v12987_v53 = vsel %vm10119_vm4, %v12975_v1, %v12981_v2 }
 0x990   :  { %v12984_v29 = vpop.permute.xlu0 %12983 }
 0x991   :  { %v12991_v62 = vsel %vm10119_vm4, %v12977_v27, %v12984_v29 }
 0x992   :  { %13160 = vmatprep.mubr.bf16.mxu0 %v12991_v62 }
 0x993   :  { %13161 = vmatmul.mubr.bf16.vlgmr.msra.gmra.mrb[224].mxu0 %v12987_v53 }
 0xa66   :  { %v15340_v47 = vpop.f32.mrb[224].mxu0 }
 0xa67   :  { %v15341_v8 = vpop.f32.mrb[225].mxu0 }
 0xa68   :  { %v15342_v58 = vadd.f32 %v15341_v8, %v15340_v47  ;;  %v15343_v3 = vpop.f32.mrb[226].mxu0 }
 0xa69   :  { %v15344_v49 = vpop.f32.mrb[227].mxu0 }
 0xa6a   :  { %v13163_v5 = vadd.f32 %v15342_v58, %v13546_v26 }
 0xa6c   :  { %v13168_v44 = vpack.c.bf16 %v13163_v5, %v13163_v5 }
 0xa6e   :  { %17332 = vmatmul.mubr.bf16.vlgmr.msra.gmra.mrb[224].mxu1 %v13168_v44 }
 0xb41   :  { %v13274_v22 = vpop.f32.mrb[224].mxu1 }
 0xb42   :  { %v13275_v10 = vadd.f32 %v13563_v48, %v13274_v22  ;;  %v17333_v15 = vpop.f32.mrb[225].mxu1 }
 0xb43   :  { %v13277_v40 = vpop.f32.mrb[226].mxu1 }
 0xb44   :  { %v17334_v6 = vpop.f32.mrb[227].mxu1  ;;  %13281 = vst.msk [vmem:[#allocation2] sm:$0x3] %vm13280_vm8, %v13275_v10 }
 0xb45   :  { %17966 = shalt.err (!%p17963_p4)
}
 0xb46   :  { %s17967_s10 = scalar_lea.hbm %s24096_s11, 32 }
 0xb47   :  { %p17968_p5 = scmp.ne.s32.totalorder %s24096_s11, %s17967_s10  ;;  %p17971_p6 = scmp.lt.u32.totalorder %s17967_s10, %s24096_s11 }
 0xb49   :  { %p17973_p7 = pnand %p17971_p6, %p17968_p5 }
 0xb4b   :  { %17976 = shalt.err (!%p17973_p7)
}
 0xb4c   :  { %13291 = dma.vmem_to_hbm [thread:$0]  %s13289_s19, 32, %s24096_s11, [#allocation3]  }
 0xb4d   :  { %17977 = dma.done.wait [#allocation3], 32  }
 0xb4e   :  { %17978 = vsyncadd [#allocation3], 4294967264 }
 0xb4f   :  { %13295 = vsyncpa [#allocation3], 1 }

</bundles_post_ra>
